<compile_context>
chip_gen: v7x
topology: tpu7x:2x2x1
jax: 0.10.0
libtpu: 0.0.40
codegen_flags: <defaults>
</compile_context>

<pallas_src>
import numpy as np
import jax
import jax.numpy as jnp
from jax.experimental import pallas as pl
from jax.experimental.pallas import tpu as pltpu


# ----------------------------- in-kernel helpers ---------------------------

def _conv3x3_deepk(pad_ref, w_ref, b_ref, relu):
    """3x3 conv as ONE deep-K matmul (used where Cin == 64):
    (H*W, 9*Cin) x (9*Cin, Cout)."""
    Hp, Wp, C = pad_ref.shape
    H, W = Hp - 2, Wp - 2
    P = H * W
    cols = [pad_ref[pl.ds(ky, H), pl.ds(kx, W), :].reshape(P, C)
            for ky in range(3) for kx in range(3)]
    patch = jnp.concatenate(cols, axis=-1)                      # (P, 9*C)
    y = jnp.dot(patch, w_ref[...], preferred_element_type=jnp.float32)
    y = y + b_ref[...]                                          # (1, Cout) broadcast
    return jnp.maximum(y, 0.0) if relu else y                   # (P, Cout) f32


def _conv3x3_acc(pad_ref, w_ref, b_ref, relu):
    """3x3 conv as 9 accumulating K=Cin matmuls (used where Cin >= 128):
    avoids materializing the (P, 9*Cin) patch through VALU/XLU slots."""
    Hp, Wp, C = pad_ref.shape
    H, W = Hp - 2, Wp - 2
    P = H * W
    acc = None
    for t in range(9):
        ky, kx = divmod(t, 3)
        tap = pad_ref[pl.ds(ky, H), pl.ds(kx, W), :].reshape(P, C)
        part = jnp.dot(tap, w_ref[pl.ds(t * C, C), :],
                       preferred_element_type=jnp.float32)
        acc = part if acc is None else acc + part
    y = acc + b_ref[...]
    return jnp.maximum(y, 0.0) if relu else y                   # (P, Cout) f32


def _maxpool_matmul(y_flat, s_ref, p4):
    """Exact 2x2/2 maxpool on a row-major (H*W, C) activation.

    s_ref is a one-hot (4*P4, P) gather matrix: block t selects the (dy,dx)
    corner of every 2x2 window.  The gather runs on the MXU (exact: one-hot
    rows), the max on the VPU.  No strided sublane selects / padded reshapes.
    """
    g = jnp.dot(s_ref[...], y_flat, preferred_element_type=jnp.float32)  # (4*P4, C)
    return jnp.maximum(jnp.maximum(g[0:p4], g[p4:2 * p4]),
                       jnp.maximum(g[2 * p4:3 * p4], g[3 * p4:4 * p4]))  # (P4, C)


# ----------------------------- fused Pallas kernel --------------------------

def _vgg_features_kernel(xcol_ref, s1_ref, s2_ref,
                         w0_ref, b0_ref, w1_ref, b1_ref, w2_ref, b2_ref,
                         w3_ref, b3_ref, w4_ref, b4_ref, w5_ref, b5_ref,
                         w6_ref, b6_ref,
                         o_ref,
                         pad1, pad2a, pad2b, pad3a, pad3b):
    H1, W1, C1 = pad1.shape[0] - 2, pad1.shape[1] - 2, pad1.shape[2]
    H2, W2 = pad2a.shape[0] - 2, pad2a.shape[1] - 2
    H3, W3 = pad3a.shape[0] - 2, pad3a.shape[1] - 2
    C2, C3 = pad2b.shape[2], pad3b.shape[2]
    P2, P3 = H2 * W2, H3 * W3

    # Zero the halo scratches once per image; each conv's input store fully
    # overwrites the interior, so only the 1-px border must stay zero.
    for p in (pad1, pad2a, pad2b, pad3a, pad3b):
        p[...] = jnp.zeros(p.shape, p.dtype)

    # conv0 (3->64) + ReLU : wrapper-packed im2col, single K=27 matmul.
    y = jnp.dot(xcol_ref[0], w0_ref[...], preferred_element_type=jnp.float32)
    y = jnp.maximum(y + b0_ref[...], 0.0)                       # (H1*W1, 64)

    # conv1 (64->64) + ReLU : deep-K (K=576).
    pad1[pl.ds(1, H1), pl.ds(1, W1), :] = y.reshape(H1, W1, C1)
    y = _conv3x3_deepk(pad1, w1_ref, b1_ref, relu=True)         # (H1*W1, 64)

    # maxpool 2x2.
    y = _maxpool_matmul(y, s1_ref, P2)                          # (H2*W2, 64)

    # conv2 (64->128) + ReLU : deep-K (Cin=64).
    pad2a[pl.ds(1, H2), pl.ds(1, W2), :] = y.reshape(H2, W2, C1)
    y = _conv3x3_deepk(pad2a, w2_ref, b2_ref, relu=True)        # (H2*W2, 128)

    # conv3 (128->128) + ReLU : 9 accumulating K=128 matmuls.
    pad2b[pl.ds(1, H2), pl.ds(1, W2), :] = y.reshape(H2, W2, C2)
    y = _conv3x3_acc(pad2b, w3_ref, b3_ref, relu=True)          # (H2*W2, 128)

    # maxpool 2x2.
    y = _maxpool_matmul(y, s2_ref, P3)                          # (H3*W3, 128)

    # conv4 (128->256) + ReLU.
    pad3a[pl.ds(1, H3), pl.ds(1, W3), :] = y.reshape(H3, W3, C2)
    y = _conv3x3_acc(pad3a, w4_ref, b4_ref, relu=True)          # (H3*W3, 256)

    # conv5 (256->256) + ReLU.
    pad3b[pl.ds(1, H3), pl.ds(1, W3), :] = y.reshape(H3, W3, C3)
    y = _conv3x3_acc(pad3b, w5_ref, b5_ref, relu=True)

    # conv6 (256->256), NO ReLU (features[0:15] stops before ReLU(15)).
    pad3b[pl.ds(1, H3), pl.ds(1, W3), :] = y.reshape(H3, W3, C3)
    y = _conv3x3_acc(pad3b, w6_ref, b6_ref, relu=False)

    # Lane-dense final store: (H3*W3, 256).
    o_ref[0] = y.astype(o_ref.dtype)


# ----------------------------- glue / parameters ---------------------------

_CONV_CHANNELS = [(3, 64), (64, 64), (64, 128), (128, 128),
                  (128, 256), (256, 256), (256, 256)]
_RELU = [True, True, True, True, True, True, False]
_POOL_AFTER = {1, 3}

_COMPILER_PARAMS = pltpu.CompilerParams(
    dimension_semantics=("parallel",),
    vmem_limit_bytes=32 * 1024 * 1024,
)


def init_params(key):
    params = []
    for cin, cout in _CONV_CHANNELS:
        key, kw, kb = jax.random.split(key, 3)
        w = jax.random.normal(kw, (cout, cin, 3, 3), jnp.float32) * np.sqrt(2.0 / (cin * 9))
        b = jax.random.normal(kb, (cout,), jnp.float32) * 0.01
        params.append((w, b))
    return params


def _pack_w(w):
    # OIHW -> (9*Cin, Cout) with row order (ky, kx, cin): matches im2col columns.
    cout, cin = w.shape[0], w.shape[1]
    return jnp.transpose(w, (2, 3, 1, 0)).reshape(9 * cin, cout)


def _pack_b(b):
    return b.reshape(1, -1)


def _pool_select_matrix(H, W):
    """One-hot (4*H2*W2, H*W) gather matrix for an exact 2x2/2 maxpool."""
    H2, W2 = H // 2, W // 2
    P, P4 = H * W, H2 * W2
    S = np.zeros((4 * P4, P), np.float32)
    for t, (dy, dx) in enumerate(((0, 0), (0, 1), (1, 0), (1, 1))):
        for h2 in range(H2):
            for w2 in range(W2):
                i = h2 * W2 + w2
                p = (2 * h2 + dy) * W + (2 * w2 + dx)
                S[t * P4 + i, p] = 1.0
    return jnp.asarray(S)


def vgg16_features_forward(x_nchw, params):
    """x_nchw: (B, 3, H, W) -> (B, 256, H//4, W//4)   (VGG16 features[0:15])."""
    B, Cin, H, W = x_nchw.shape
    H2, W2 = H // 2, W // 2
    H3, W3 = H2 // 2, W2 // 2

    x = jnp.transpose(x_nchw, (0, 2, 3, 1))            # NCHW -> NHWC

    # Layer-0 im2col pre-pack in the wrapper (tiny): avoids a 3-lane operand and
    # shallow K=3 matmuls inside the kernel.
    xp = jnp.pad(x, ((0, 0), (1, 1), (1, 1), (0, 0)))
    cols = [xp[:, ky:ky + H, kx:kx + W, :] for ky in range(3) for kx in range(3)]
    xcol = jnp.concatenate(cols, axis=-1).reshape(B, H * W, 9 * Cin)

    Ws = [_pack_w(w) for (w, _) in params]
    Bs = [_pack_b(b) for (_, b) in params]
    C1, C2, C3 = Ws[1].shape[1], Ws[3].shape[1], Ws[6].shape[1]   # 64, 128, 256

    S1 = _pool_select_matrix(H, W)       # (4*H2*W2, H*W)
    S2 = _pool_select_matrix(H2, W2)     # (4*H3*W3, H2*W2)

    weight_inputs, weight_specs = [], []
    for wm, bm in zip(Ws, Bs):
        weight_inputs += [wm, bm]
        weight_specs += [pl.BlockSpec(wm.shape, lambda b: (0, 0)),
                         pl.BlockSpec(bm.shape, lambda b: (0, 0))]

    out = pl.pallas_call(
        _vgg_features_kernel,
        out_shape=jax.ShapeDtypeStruct((B, H3 * W3, C3), jnp.float32),
        grid=(B,),
        in_specs=[
            pl.BlockSpec((1, H * W, 9 * Cin), lambda b: (b, 0, 0)),
            pl.BlockSpec(S1.shape, lambda b: (0, 0)),
            pl.BlockSpec(S2.shape, lambda b: (0, 0)),
            *weight_specs,
        ],
        out_specs=pl.BlockSpec((1, H3 * W3, C3), lambda b: (b, 0, 0)),
        scratch_shapes=[
            pltpu.VMEM((H + 2, W + 2, C1), jnp.float32),      # pad1  (conv1 in)
            pltpu.VMEM((H2 + 2, W2 + 2, C1), jnp.float32),    # pad2a (conv2 in)
            pltpu.VMEM((H2 + 2, W2 + 2, C2), jnp.float32),    # pad2b (conv3 in)
            pltpu.VMEM((H3 + 2, W3 + 2, C2), jnp.float32),    # pad3a (conv4 in)
            pltpu.VMEM((H3 + 2, W3 + 2, C3), jnp.float32),    # pad3b (conv5/6 in)
        ],
        compiler_params=_COMPILER_PARAMS,
    )(xcol, S1, S2, *weight_inputs)

    y = out.reshape(B, H3, W3, C3)
    return jnp.transpose(y, (0, 3, 1, 2))               # NHWC -> NCHW


# ----------------------------- pure-JAX reference --------------------------

def ref_forward(x, params):
    for i, (w, b) in enumerate(params):
        x = jax.lax.conv_general_dilated(
            x, w, (1, 1), ((1, 1), (1, 1)),
            dimension_numbers=("NCHW", "OIHW", "NCHW")) + b[None, :, None, None]
        if _RELU[i]:
            x = jnp.maximum(x, 0.0)
        if i in _POOL_AFTER:
            x = jax.lax.reduce_window(x, -jnp.inf, jax.lax.max,
                                      (1, 1, 2, 2), (1, 1, 2, 2), "VALID")
    return x


# ----------------------------------- main -----------------------------------

if __name__ == "__main__":
    key = jax.random.PRNGKey(0)
    kx_, kp = jax.random.split(key)
    B, C, H, W = 2, 3, 16, 16
    x = jax.random.normal(kx_, (B, C, H, W), jnp.float32)
    params = init_params(kp)

    fwd = jax.jit(vgg16_features_forward)
    out = fwd(x, params)
    jax.block_until_ready(out)

    assert out.shape == (B, 256, H // 4, W // 4), out.shape

    ref = ref_forward(x, params)
    np.testing.assert_allclose(np.asarray(out), np.asarray(ref), rtol=3e-3, atol=3e-3)

    print("KERNEL_OK")
</pallas_src>

<mosaic_0001>
module attributes {stable_mosaic.version = 11 : i64} {
  func.func @_vgg_features_kernel(%arg0: i32, %arg1: memref<1x256x27xf32, #tpu.memory_space<vmem>>, %arg2: memref<256x256xf32, #tpu.memory_space<vmem>>, %arg3: memref<64x64xf32, #tpu.memory_space<vmem>>, %arg4: memref<27x64xf32, #tpu.memory_space<vmem>>, %arg5: memref<1x64xf32, #tpu.memory_space<vmem>>, %arg6: memref<576x64xf32, #tpu.memory_space<vmem>>, %arg7: memref<1x64xf32, #tpu.memory_space<vmem>>, %arg8: memref<576x128xf32, #tpu.memory_space<vmem>>, %arg9: memref<1x128xf32, #tpu.memory_space<vmem>>, %arg10: memref<1152x128xf32, #tpu.memory_space<vmem>>, %arg11: memref<1x128xf32, #tpu.memory_space<vmem>>, %arg12: memref<1152x256xf32, #tpu.memory_space<vmem>>, %arg13: memref<1x256xf32, #tpu.memory_space<vmem>>, %arg14: memref<2304x256xf32, #tpu.memory_space<vmem>>, %arg15: memref<1x256xf32, #tpu.memory_space<vmem>>, %arg16: memref<2304x256xf32, #tpu.memory_space<vmem>>, %arg17: memref<1x256xf32, #tpu.memory_space<vmem>>, %arg18: memref<1x16x256xf32, #tpu.memory_space<vmem>>, %arg19: memref<18x18x64xf32, #tpu.memory_space<vmem>>, %arg20: memref<10x10x64xf32, #tpu.memory_space<vmem>>, %arg21: memref<10x10x128xf32, #tpu.memory_space<vmem>>, %arg22: memref<6x6x128xf32, #tpu.memory_space<vmem>>, %arg23: memref<6x6x256xf32, #tpu.memory_space<vmem>>) attributes {dimension_semantics = [#tpu.dimension_semantics<parallel>], iteration_bounds = array<i64: 2>, scalar_prefetch = 0 : i64, scratch_operands = 5 : i64, tpu.core_type = #tpu.core_type<tc>, window_params = [{transform_indices = @transform_0, window_bounds = array<i64: 1, 256, 27>}, {pipeline_mode = #tpu.pipeline_mode<synchronous>, transform_indices = @transform_1, window_bounds = array<i64: 256, 256>}, {pipeline_mode = #tpu.pipeline_mode<synchronous>, transform_indices = @transform_2, window_bounds = array<i64: 64, 64>}, {pipeline_mode = #tpu.pipeline_mode<synchronous>, transform_indices = @transform_3, window_bounds = array<i64: 27, 64>}, {pipeline_mode = #tpu.pipeline_mode<synchronous>, transform_indices = @transform_4, window_bounds = array<i64: 1, 64>}, {pipeline_mode = #tpu.pipeline_mode<synchronous>, transform_indices = @transform_5, window_bounds = array<i64: 576, 64>}, {pipeline_mode = #tpu.pipeline_mode<synchronous>, transform_indices = @transform_6, window_bounds = array<i64: 1, 64>}, {pipeline_mode = #tpu.pipeline_mode<synchronous>, transform_indices = @transform_7, window_bounds = array<i64: 576, 128>}, {pipeline_mode = #tpu.pipeline_mode<synchronous>, transform_indices = @transform_8, window_bounds = array<i64: 1, 128>}, {pipeline_mode = #tpu.pipeline_mode<synchronous>, transform_indices = @transform_9, window_bounds = array<i64: 1152, 128>}, {pipeline_mode = #tpu.pipeline_mode<synchronous>, transform_indices = @transform_10, window_bounds = array<i64: 1, 128>}, {pipeline_mode = #tpu.pipeline_mode<synchronous>, transform_indices = @transform_11, window_bounds = array<i64: 1152, 256>}, {pipeline_mode = #tpu.pipeline_mode<synchronous>, transform_indices = @transform_12, window_bounds = array<i64: 1, 256>}, {pipeline_mode = #tpu.pipeline_mode<synchronous>, transform_indices = @transform_13, window_bounds = array<i64: 2304, 256>}, {pipeline_mode = #tpu.pipeline_mode<synchronous>, transform_indices = @transform_14, window_bounds = array<i64: 1, 256>}, {pipeline_mode = #tpu.pipeline_mode<synchronous>, transform_indices = @transform_15, window_bounds = array<i64: 2304, 256>}, {pipeline_mode = #tpu.pipeline_mode<synchronous>, transform_indices = @transform_16, window_bounds = array<i64: 1, 256>}, {transform_indices = @transform_17, window_bounds = array<i64: 1, 16, 256>}]} {
    %cst = arith.constant 0.000000e+00 : f32
    %0 = vector.broadcast %cst : f32 to vector<18x18x64xf32>
    %c0 = arith.constant 0 : index
    %c0_0 = arith.constant 0 : index
    %c0_1 = arith.constant 0 : index
    %1 = vector.load %arg19[%c0, %c0_0, %c0_1] : memref<18x18x64xf32, #tpu.memory_space<vmem>>, vector<18x18x64xf32>
    tpu.vector_store %arg19[%c0, %c0_0, %c0_1], %0 {strides = array<i32>} : memref<18x18x64xf32, #tpu.memory_space<vmem>>, vector<18x18x64xf32>,
    %cst_2 = arith.constant 0.000000e+00 : f32
    %2 = vector.broadcast %cst_2 : f32 to vector<10x10x64xf32>
    %c0_3 = arith.constant 0 : index
    %c0_4 = arith.constant 0 : index
    %c0_5 = arith.constant 0 : index
    %3 = vector.load %arg20[%c0_3, %c0_4, %c0_5] : memref<10x10x64xf32, #tpu.memory_space<vmem>>, vector<10x10x64xf32>
    tpu.vector_store %arg20[%c0_3, %c0_4, %c0_5], %2 {strides = array<i32>} : memref<10x10x64xf32, #tpu.memory_space<vmem>>, vector<10x10x64xf32>,
    %cst_6 = arith.constant 0.000000e+00 : f32
    %4 = vector.broadcast %cst_6 : f32 to vector<10x10x128xf32>
    %c0_7 = arith.constant 0 : index
    %c0_8 = arith.constant 0 : index
    %c0_9 = arith.constant 0 : index
    %5 = vector.load %arg21[%c0_7, %c0_8, %c0_9] : memref<10x10x128xf32, #tpu.memory_space<vmem>>, vector<10x10x128xf32>
    tpu.vector_store %arg21[%c0_7, %c0_8, %c0_9], %4 {strides = array<i32>} : memref<10x10x128xf32, #tpu.memory_space<vmem>>, vector<10x10x128xf32>,
    %cst_10 = arith.constant 0.000000e+00 : f32
    %6 = vector.broadcast %cst_10 : f32 to vector<6x6x128xf32>
    %c0_11 = arith.constant 0 : index
    %c0_12 = arith.constant 0 : index
    %c0_13 = arith.constant 0 : index
    %7 = vector.load %arg22[%c0_11, %c0_12, %c0_13] : memref<6x6x128xf32, #tpu.memory_space<vmem>>, vector<6x6x128xf32>
    tpu.vector_store %arg22[%c0_11, %c0_12, %c0_13], %6 {strides = array<i32>} : memref<6x6x128xf32, #tpu.memory_space<vmem>>, vector<6x6x128xf32>,
    %cst_14 = arith.constant 0.000000e+00 : f32
    %8 = vector.broadcast %cst_14 : f32 to vector<6x6x256xf32>
    %c0_15 = arith.constant 0 : index
    %c0_16 = arith.constant 0 : index
    %c0_17 = arith.constant 0 : index
    %9 = vector.load %arg23[%c0_15, %c0_16, %c0_17] : memref<6x6x256xf32, #tpu.memory_space<vmem>>, vector<6x6x256xf32>
    tpu.vector_store %arg23[%c0_15, %c0_16, %c0_17], %8 {strides = array<i32>} : memref<6x6x256xf32, #tpu.memory_space<vmem>>, vector<6x6x256xf32>,
    %c0_18 = arith.constant 0 : index
    %c0_19 = arith.constant 0 : index
    %c0_20 = arith.constant 0 : index
    %10 = vector.load %arg1[%c0_18, %c0_19, %c0_20] : memref<1x256x27xf32, #tpu.memory_space<vmem>>, vector<1x256x27xf32>
    %11 = vector.shape_cast %10 : vector<1x256x27xf32> to vector<256x27xf32>
    %c0_21 = arith.constant 0 : index
    %c0_22 = arith.constant 0 : index
    %12 = vector.load %arg4[%c0_21, %c0_22] : memref<27x64xf32, #tpu.memory_space<vmem>>, vector<27x64xf32>
    %cst_23 = arith.constant dense<0.000000e+00> : vector<256x64xf32>
    %13 = tpu.matmul %11, %12, %cst_23 {dimension_numbers = #tpu.dot_dimension_numbers<[1], [0], [0], [1], [0, 0, 1, 1], [], []>} : vector<256x27xf32>, vector<27x64xf32>, vector<256x64xf32> -> vector<256x64xf32>
    %c0_24 = arith.constant 0 : index
    %c0_25 = arith.constant 0 : index
    %14 = vector.load %arg5[%c0_24, %c0_25] : memref<1x64xf32, #tpu.memory_space<vmem>>, vector<1x64xf32>
    %15 = vector.broadcast %14 : vector<1x64xf32> to vector<256x64xf32>
    %16 = arith.addf %13, %15 : vector<256x64xf32>
    %cst_26 = arith.constant 0.000000e+00 : f32
    %17 = vector.broadcast %cst_26 : f32 to vector<256x64xf32>
    %18 = arith.maximumf %16, %17 : vector<256x64xf32>
    %19 = vector.shape_cast %18 : vector<256x64xf32> to vector<16x16x64xf32>
    %c1 = arith.constant 1 : index
    %c1_27 = arith.constant 1 : index
    %c0_28 = arith.constant 0 : index
    %20 = vector.load %arg19[%c1, %c1_27, %c0_28] : memref<18x18x64xf32, #tpu.memory_space<vmem>>, vector<16x16x64xf32>
    tpu.vector_store %arg19[%c1, %c1_27, %c0_28], %19 {strides = array<i32>} : memref<18x18x64xf32, #tpu.memory_space<vmem>>, vector<16x16x64xf32>,
    %c0_29 = arith.constant 0 : index
    %c0_30 = arith.constant 0 : index
    %c0_31 = arith.constant 0 : index
    %21 = vector.load %arg19[%c0_29, %c0_30, %c0_31] : memref<18x18x64xf32, #tpu.memory_space<vmem>>, vector<16x16x64xf32>
    %22 = vector.shape_cast %21 : vector<16x16x64xf32> to vector<256x64xf32>
    %c0_32 = arith.constant 0 : index
    %c1_33 = arith.constant 1 : index
    %c0_34 = arith.constant 0 : index
    %23 = vector.load %arg19[%c0_32, %c1_33, %c0_34] : memref<18x18x64xf32, #tpu.memory_space<vmem>>, vector<16x16x64xf32>
    %24 = vector.shape_cast %23 : vector<16x16x64xf32> to vector<256x64xf32>
    %c0_35 = arith.constant 0 : index
    %c2 = arith.constant 2 : index
    %c0_36 = arith.constant 0 : index
    %25 = vector.load %arg19[%c0_35, %c2, %c0_36] : memref<18x18x64xf32, #tpu.memory_space<vmem>>, vector<16x16x64xf32>
    %26 = vector.shape_cast %25 : vector<16x16x64xf32> to vector<256x64xf32>
    %c1_37 = arith.constant 1 : index
    %c0_38 = arith.constant 0 : index
    %c0_39 = arith.constant 0 : index
    %27 = vector.load %arg19[%c1_37, %c0_38, %c0_39] : memref<18x18x64xf32, #tpu.memory_space<vmem>>, vector<16x16x64xf32>
    %28 = vector.shape_cast %27 : vector<16x16x64xf32> to vector<256x64xf32>
    %c1_40 = arith.constant 1 : index
    %c1_41 = arith.constant 1 : index
    %c0_42 = arith.constant 0 : index
    %29 = vector.load %arg19[%c1_40, %c1_41, %c0_42] : memref<18x18x64xf32, #tpu.memory_space<vmem>>, vector<16x16x64xf32>
    %30 = vector.shape_cast %29 : vector<16x16x64xf32> to vector<256x64xf32>
    %c1_43 = arith.constant 1 : index
    %c2_44 = arith.constant 2 : index
    %c0_45 = arith.constant 0 : index
    %31 = vector.load %arg19[%c1_43, %c2_44, %c0_45] : memref<18x18x64xf32, #tpu.memory_space<vmem>>, vector<16x16x64xf32>
    %32 = vector.shape_cast %31 : vector<16x16x64xf32> to vector<256x64xf32>
    %c2_46 = arith.constant 2 : index
    %c0_47 = arith.constant 0 : index
    %c0_48 = arith.constant 0 : index
    %33 = vector.load %arg19[%c2_46, %c0_47, %c0_48] : memref<18x18x64xf32, #tpu.memory_space<vmem>>, vector<16x16x64xf32>
    %34 = vector.shape_cast %33 : vector<16x16x64xf32> to vector<256x64xf32>
    %c2_49 = arith.constant 2 : index
    %c1_50 = arith.constant 1 : index
    %c0_51 = arith.constant 0 : index
    %35 = vector.load %arg19[%c2_49, %c1_50, %c0_51] : memref<18x18x64xf32, #tpu.memory_space<vmem>>, vector<16x16x64xf32>
    %36 = vector.shape_cast %35 : vector<16x16x64xf32> to vector<256x64xf32>
    %c2_52 = arith.constant 2 : index
    %c2_53 = arith.constant 2 : index
    %c0_54 = arith.constant 0 : index
    %37 = vector.load %arg19[%c2_52, %c2_53, %c0_54] : memref<18x18x64xf32, #tpu.memory_space<vmem>>, vector<16x16x64xf32>
    %38 = vector.shape_cast %37 : vector<16x16x64xf32> to vector<256x64xf32>
    %39 = tpu.concatenate %22, %24, %26, %28, %30, %32, %34, %36, %38 in 1 : vector<256x64xf32>, vector<256x64xf32>, vector<256x64xf32>, vector<256x64xf32>, vector<256x64xf32>, vector<256x64xf32>, vector<256x64xf32>, vector<256x64xf32>, vector<256x64xf32> -> vector<256x576xf32>
    %c0_55 = arith.constant 0 : index
    %c0_56 = arith.constant 0 : index
    %40 = vector.load %arg6[%c0_55, %c0_56] : memref<576x64xf32, #tpu.memory_space<vmem>>, vector<576x64xf32>
    %cst_57 = arith.constant dense<0.000000e+00> : vector<256x64xf32>
    %41 = tpu.matmul %39, %40, %cst_57 {dimension_numbers = #tpu.dot_dimension_numbers<[1], [0], [0], [1], [0, 0, 1, 1], [], []>} : vector<256x576xf32>, vector<576x64xf32>, vector<256x64xf32> -> vector<256x64xf32>
    %c0_58 = arith.constant 0 : index
    %c0_59 = arith.constant 0 : index
    %42 = vector.load %arg7[%c0_58, %c0_59] : memref<1x64xf32, #tpu.memory_space<vmem>>, vector<1x64xf32>
    %43 = vector.broadcast %42 : vector<1x64xf32> to vector<256x64xf32>
    %44 = arith.addf %41, %43 : vector<256x64xf32>
    %cst_60 = arith.constant 0.000000e+00 : f32
    %45 = vector.broadcast %cst_60 : f32 to vector<256x64xf32>
    %46 = arith.maximumf %44, %45 : vector<256x64xf32>
    %c0_61 = arith.constant 0 : index
    %c0_62 = arith.constant 0 : index
    %47 = vector.load %arg2[%c0_61, %c0_62] : memref<256x256xf32, #tpu.memory_space<vmem>>, vector<256x256xf32>
    %cst_63 = arith.constant dense<0.000000e+00> : vector<256x64xf32>
    %48 = tpu.matmul %47, %46, %cst_63 {dimension_numbers = #tpu.dot_dimension_numbers<[1], [0], [0], [1], [0, 0, 1, 1], [], []>} : vector<256x256xf32>, vector<256x64xf32>, vector<256x64xf32> -> vector<256x64xf32>
    %49 = vector.extract_strided_slice %48 {offsets = [0, 0], sizes = [64, 64], strides = [1, 1]} : vector<256x64xf32> to vector<64x64xf32>
    %50 = vector.extract_strided_slice %48 {offsets = [64, 0], sizes = [64, 64], strides = [1, 1]} : vector<256x64xf32> to vector<64x64xf32>
    %51 = arith.maximumf %49, %50 : vector<64x64xf32>
    %52 = vector.extract_strided_slice %48 {offsets = [128, 0], sizes = [64, 64], strides = [1, 1]} : vector<256x64xf32> to vector<64x64xf32>
    %53 = vector.extract_strided_slice %48 {offsets = [192, 0], sizes = [64, 64], strides = [1, 1]} : vector<256x64xf32> to vector<64x64xf32>
    %54 = arith.maximumf %52, %53 : vector<64x64xf32>
    %55 = arith.maximumf %51, %54 : vector<64x64xf32>
    %56 = vector.shape_cast %55 : vector<64x64xf32> to vector<8x8x64xf32>
    %c1_64 = arith.constant 1 : index
    %c1_65 = arith.constant 1 : index
    %c0_66 = arith.constant 0 : index
    %57 = vector.load %arg20[%c1_64, %c1_65, %c0_66] : memref<10x10x64xf32, #tpu.memory_space<vmem>>, vector<8x8x64xf32>
    tpu.vector_store %arg20[%c1_64, %c1_65, %c0_66], %56 {strides = array<i32>} : memref<10x10x64xf32, #tpu.memory_space<vmem>>, vector<8x8x64xf32>,
    %c0_67 = arith.constant 0 : index
    %c0_68 = arith.constant 0 : index
    %c0_69 = arith.constant 0 : index
    %58 = vector.load %arg20[%c0_67, %c0_68, %c0_69] : memref<10x10x64xf32, #tpu.memory_space<vmem>>, vector<8x8x64xf32>
    %59 = vector.shape_cast %58 : vector<8x8x64xf32> to vector<64x64xf32>
    %c0_70 = arith.constant 0 : index
    %c1_71 = arith.constant 1 : index
    %c0_72 = arith.constant 0 : index
    %60 = vector.load %arg20[%c0_70, %c1_71, %c0_72] : memref<10x10x64xf32, #tpu.memory_space<vmem>>, vector<8x8x64xf32>
    %61 = vector.shape_cast %60 : vector<8x8x64xf32> to vector<64x64xf32>
    %c0_73 = arith.constant 0 : index
    %c2_74 = arith.constant 2 : index
    %c0_75 = arith.constant 0 : index
    %62 = vector.load %arg20[%c0_73, %c2_74, %c0_75] : memref<10x10x64xf32, #tpu.memory_space<vmem>>, vector<8x8x64xf32>
    %63 = vector.shape_cast %62 : vector<8x8x64xf32> to vector<64x64xf32>
    %c1_76 = arith.constant 1 : index
    %c0_77 = arith.constant 0 : index
    %c0_78 = arith.constant 0 : index
    %64 = vector.load %arg20[%c1_76, %c0_77, %c0_78] : memref<10x10x64xf32, #tpu.memory_space<vmem>>, vector<8x8x64xf32>
    %65 = vector.shape_cast %64 : vector<8x8x64xf32> to vector<64x64xf32>
    %c1_79 = arith.constant 1 : index
    %c1_80 = arith.constant 1 : index
    %c0_81 = arith.constant 0 : index
    %66 = vector.load %arg20[%c1_79, %c1_80, %c0_81] : memref<10x10x64xf32, #tpu.memory_space<vmem>>, vector<8x8x64xf32>
    %67 = vector.shape_cast %66 : vector<8x8x64xf32> to vector<64x64xf32>
    %c1_82 = arith.constant 1 : index
    %c2_83 = arith.constant 2 : index
    %c0_84 = arith.constant 0 : index
    %68 = vector.load %arg20[%c1_82, %c2_83, %c0_84] : memref<10x10x64xf32, #tpu.memory_space<vmem>>, vector<8x8x64xf32>
    %69 = vector.shape_cast %68 : vector<8x8x64xf32> to vector<64x64xf32>
    %c2_85 = arith.constant 2 : index
    %c0_86 = arith.constant 0 : index
    %c0_87 = arith.constant 0 : index
    %70 = vector.load %arg20[%c2_85, %c0_86, %c0_87] : memref<10x10x64xf32, #tpu.memory_space<vmem>>, vector<8x8x64xf32>
    %71 = vector.shape_cast %70 : vector<8x8x64xf32> to vector<64x64xf32>
    %c2_88 = arith.constant 2 : index
    %c1_89 = arith.constant 1 : index
    %c0_90 = arith.constant 0 : index
    %72 = vector.load %arg20[%c2_88, %c1_89, %c0_90] : memref<10x10x64xf32, #tpu.memory_space<vmem>>, vector<8x8x64xf32>
    %73 = vector.shape_cast %72 : vector<8x8x64xf32> to vector<64x64xf32>
    %c2_91 = arith.constant 2 : index
    %c2_92 = arith.constant 2 : index
    %c0_93 = arith.constant 0 : index
    %74 = vector.load %arg20[%c2_91, %c2_92, %c0_93] : memref<10x10x64xf32, #tpu.memory_space<vmem>>, vector<8x8x64xf32>
    %75 = vector.shape_cast %74 : vector<8x8x64xf32> to vector<64x64xf32>
    %76 = tpu.concatenate %59, %61, %63, %65, %67, %69, %71, %73, %75 in 1 : vector<64x64xf32>, vector<64x64xf32>, vector<64x64xf32>, vector<64x64xf32>, vector<64x64xf32>, vector<64x64xf32>, vector<64x64xf32>, vector<64x64xf32>, vector<64x64xf32> -> vector<64x576xf32>
    %c0_94 = arith.constant 0 : index
    %c0_95 = arith.constant 0 : index
    %77 = vector.load %arg8[%c0_94, %c0_95] : memref<576x128xf32, #tpu.memory_space<vmem>>, vector<576x128xf32>
    %cst_96 = arith.constant dense<0.000000e+00> : vector<64x128xf32>
    %78 = tpu.matmul %76, %77, %cst_96 {dimension_numbers = #tpu.dot_dimension_numbers<[1], [0], [0], [1], [0, 0, 1, 1], [], []>} : vector<64x576xf32>, vector<576x128xf32>, vector<64x128xf32> -> vector<64x128xf32>
    %c0_97 = arith.constant 0 : index
    %c0_98 = arith.constant 0 : index
    %79 = vector.load %arg9[%c0_97, %c0_98] : memref<1x128xf32, #tpu.memory_space<vmem>>, vector<1x128xf32>
    %80 = vector.broadcast %79 : vector<1x128xf32> to vector<64x128xf32>
    %81 = arith.addf %78, %80 : vector<64x128xf32>
    %cst_99 = arith.constant 0.000000e+00 : f32
    %82 = vector.broadcast %cst_99 : f32 to vector<64x128xf32>
    %83 = arith.maximumf %81, %82 : vector<64x128xf32>
    %84 = vector.shape_cast %83 : vector<64x128xf32> to vector<8x8x128xf32>
    %c1_100 = arith.constant 1 : index
    %c1_101 = arith.constant 1 : index
    %c0_102 = arith.constant 0 : index
    %85 = vector.load %arg21[%c1_100, %c1_101, %c0_102] : memref<10x10x128xf32, #tpu.memory_space<vmem>>, vector<8x8x128xf32>
    tpu.vector_store %arg21[%c1_100, %c1_101, %c0_102], %84 {strides = array<i32>} : memref<10x10x128xf32, #tpu.memory_space<vmem>>, vector<8x8x128xf32>,
    %c0_103 = arith.constant 0 : index
    %c0_104 = arith.constant 0 : index
    %c0_105 = arith.constant 0 : index
    %86 = vector.load %arg21[%c0_103, %c0_104, %c0_105] : memref<10x10x128xf32, #tpu.memory_space<vmem>>, vector<8x8x128xf32>
    %87 = vector.shape_cast %86 : vector<8x8x128xf32> to vector<64x128xf32>
    %c0_106 = arith.constant 0 : index
    %c0_107 = arith.constant 0 : index
    %88 = vector.load %arg10[%c0_106, %c0_107] : memref<1152x128xf32, #tpu.memory_space<vmem>>, vector<128x128xf32>
    %cst_108 = arith.constant dense<0.000000e+00> : vector<64x128xf32>
    %89 = tpu.matmul %87, %88, %cst_108 {dimension_numbers = #tpu.dot_dimension_numbers<[1], [0], [0], [1], [0, 0, 1, 1], [], []>} : vector<64x128xf32>, vector<128x128xf32>, vector<64x128xf32> -> vector<64x128xf32>
    %c0_109 = arith.constant 0 : index
    %c1_110 = arith.constant 1 : index
    %c0_111 = arith.constant 0 : index
    %90 = vector.load %arg21[%c0_109, %c1_110, %c0_111] : memref<10x10x128xf32, #tpu.memory_space<vmem>>, vector<8x8x128xf32>
    %91 = vector.shape_cast %90 : vector<8x8x128xf32> to vector<64x128xf32>
    %c128 = arith.constant 128 : index
    %c0_112 = arith.constant 0 : index
    %92 = vector.load %arg10[%c128, %c0_112] : memref<1152x128xf32, #tpu.memory_space<vmem>>, vector<128x128xf32>
    %cst_113 = arith.constant dense<0.000000e+00> : vector<64x128xf32>
    %93 = tpu.matmul %91, %92, %cst_113 {dimension_numbers = #tpu.dot_dimension_numbers<[1], [0], [0], [1], [0, 0, 1, 1], [], []>} : vector<64x128xf32>, vector<128x128xf32>, vector<64x128xf32> -> vector<64x128xf32>
    %94 = arith.addf %89, %93 : vector<64x128xf32>
    %c0_114 = arith.constant 0 : index
    %c2_115 = arith.constant 2 : index
    %c0_116 = arith.constant 0 : index
    %95 = vector.load %arg21[%c0_114, %c2_115, %c0_116] : memref<10x10x128xf32, #tpu.memory_space<vmem>>, vector<8x8x128xf32>
    %96 = vector.shape_cast %95 : vector<8x8x128xf32> to vector<64x128xf32>
    %c256 = arith.constant 256 : index
    %c0_117 = arith.constant 0 : index
    %97 = vector.load %arg10[%c256, %c0_117] : memref<1152x128xf32, #tpu.memory_space<vmem>>, vector<128x128xf32>
    %cst_118 = arith.constant dense<0.000000e+00> : vector<64x128xf32>
    %98 = tpu.matmul %96, %97, %cst_118 {dimension_numbers = #tpu.dot_dimension_numbers<[1], [0], [0], [1], [0, 0, 1, 1], [], []>} : vector<64x128xf32>, vector<128x128xf32>, vector<64x128xf32> -> vector<64x128xf32>
    %99 = arith.addf %94, %98 : vector<64x128xf32>
    %c1_119 = arith.constant 1 : index
    %c0_120 = arith.constant 0 : index
    %c0_121 = arith.constant 0 : index
    %100 = vector.load %arg21[%c1_119, %c0_120, %c0_121] : memref<10x10x128xf32, #tpu.memory_space<vmem>>, vector<8x8x128xf32>
    %101 = vector.shape_cast %100 : vector<8x8x128xf32> to vector<64x128xf32>
    %c384 = arith.constant 384 : index
    %c0_122 = arith.constant 0 : index
    %102 = vector.load %arg10[%c384, %c0_122] : memref<1152x128xf32, #tpu.memory_space<vmem>>, vector<128x128xf32>
    %cst_123 = arith.constant dense<0.000000e+00> : vector<64x128xf32>
    %103 = tpu.matmul %101, %102, %cst_123 {dimension_numbers = #tpu.dot_dimension_numbers<[1], [0], [0], [1], [0, 0, 1, 1], [], []>} : vector<64x128xf32>, vector<128x128xf32>, vector<64x128xf32> -> vector<64x128xf32>
    %104 = arith.addf %99, %103 : vector<64x128xf32>
    %c1_124 = arith.constant 1 : index
    %c1_125 = arith.constant 1 : index
    %c0_126 = arith.constant 0 : index
    %105 = vector.load %arg21[%c1_124, %c1_125, %c0_126] : memref<10x10x128xf32, #tpu.memory_space<vmem>>, vector<8x8x128xf32>
    %106 = vector.shape_cast %105 : vector<8x8x128xf32> to vector<64x128xf32>
    %c512 = arith.constant 512 : index
    %c0_127 = arith.constant 0 : index
    %107 = vector.load %arg10[%c512, %c0_127] : memref<1152x128xf32, #tpu.memory_space<vmem>>, vector<128x128xf32>
    %cst_128 = arith.constant dense<0.000000e+00> : vector<64x128xf32>
    %108 = tpu.matmul %106, %107, %cst_128 {dimension_numbers = #tpu.dot_dimension_numbers<[1], [0], [0], [1], [0, 0, 1, 1], [], []>} : vector<64x128xf32>, vector<128x128xf32>, vector<64x128xf32> -> vector<64x128xf32>
    %109 = arith.addf %104, %108 : vector<64x128xf32>
    %c1_129 = arith.constant 1 : index
    %c2_130 = arith.constant 2 : index
    %c0_131 = arith.constant 0 : index
    %110 = vector.load %arg21[%c1_129, %c2_130, %c0_131] : memref<10x10x128xf32, #tpu.memory_space<vmem>>, vector<8x8x128xf32>
    %111 = vector.shape_cast %110 : vector<8x8x128xf32> to vector<64x128xf32>
    %c640 = arith.constant 640 : index
    %c0_132 = arith.constant 0 : index
    %112 = vector.load %arg10[%c640, %c0_132] : memref<1152x128xf32, #tpu.memory_space<vmem>>, vector<128x128xf32>
    %cst_133 = arith.constant dense<0.000000e+00> : vector<64x128xf32>
    %113 = tpu.matmul %111, %112, %cst_133 {dimension_numbers = #tpu.dot_dimension_numbers<[1], [0], [0], [1], [0, 0, 1, 1], [], []>} : vector<64x128xf32>, vector<128x128xf32>, vector<64x128xf32> -> vector<64x128xf32>
    %114 = arith.addf %109, %113 : vector<64x128xf32>
    %c2_134 = arith.constant 2 : index
    %c0_135 = arith.constant 0 : index
    %c0_136 = arith.constant 0 : index
    %115 = vector.load %arg21[%c2_134, %c0_135, %c0_136] : memref<10x10x128xf32, #tpu.memory_space<vmem>>, vector<8x8x128xf32>
    %116 = vector.shape_cast %115 : vector<8x8x128xf32> to vector<64x128xf32>
    %c768 = arith.constant 768 : index
    %c0_137 = arith.constant 0 : index
    %117 = vector.load %arg10[%c768, %c0_137] : memref<1152x128xf32, #tpu.memory_space<vmem>>, vector<128x128xf32>
    %cst_138 = arith.constant dense<0.000000e+00> : vector<64x128xf32>
    %118 = tpu.matmul %116, %117, %cst_138 {dimension_numbers = #tpu.dot_dimension_numbers<[1], [0], [0], [1], [0, 0, 1, 1], [], []>} : vector<64x128xf32>, vector<128x128xf32>, vector<64x128xf32> -> vector<64x128xf32>
    %119 = arith.addf %114, %118 : vector<64x128xf32>
    %c2_139 = arith.constant 2 : index
    %c1_140 = arith.constant 1 : index
    %c0_141 = arith.constant 0 : index
    %120 = vector.load %arg21[%c2_139, %c1_140, %c0_141] : memref<10x10x128xf32, #tpu.memory_space<vmem>>, vector<8x8x128xf32>
    %121 = vector.shape_cast %120 : vector<8x8x128xf32> to vector<64x128xf32>
    %c896 = arith.constant 896 : index
    %c0_142 = arith.constant 0 : index
    %122 = vector.load %arg10[%c896, %c0_142] : memref<1152x128xf32, #tpu.memory_space<vmem>>, vector<128x128xf32>
    %cst_143 = arith.constant dense<0.000000e+00> : vector<64x128xf32>
    %123 = tpu.matmul %121, %122, %cst_143 {dimension_numbers = #tpu.dot_dimension_numbers<[1], [0], [0], [1], [0, 0, 1, 1], [], []>} : vector<64x128xf32>, vector<128x128xf32>, vector<64x128xf32> -> vector<64x128xf32>
    %124 = arith.addf %119, %123 : vector<64x128xf32>
    %c2_144 = arith.constant 2 : index
    %c2_145 = arith.constant 2 : index
    %c0_146 = arith.constant 0 : index
    %125 = vector.load %arg21[%c2_144, %c2_145, %c0_146] : memref<10x10x128xf32, #tpu.memory_space<vmem>>, vector<8x8x128xf32>
    %126 = vector.shape_cast %125 : vector<8x8x128xf32> to vector<64x128xf32>
    %c1024 = arith.constant 1024 : index
    %c0_147 = arith.constant 0 : index
    %127 = vector.load %arg10[%c1024, %c0_147] : memref<1152x128xf32, #tpu.memory_space<vmem>>, vector<128x128xf32>
    %cst_148 = arith.constant dense<0.000000e+00> : vector<64x128xf32>
    %128 = tpu.matmul %126, %127, %cst_148 {dimension_numbers = #tpu.dot_dimension_numbers<[1], [0], [0], [1], [0, 0, 1, 1], [], []>} : vector<64x128xf32>, vector<128x128xf32>, vector<64x128xf32> -> vector<64x128xf32>
    %129 = arith.addf %124, %128 : vector<64x128xf32>
    %c0_149 = arith.constant 0 : index
    %c0_150 = arith.constant 0 : index
    %130 = vector.load %arg11[%c0_149, %c0_150] : memref<1x128xf32, #tpu.memory_space<vmem>>, vector<1x128xf32>
    %131 = vector.broadcast %130 : vector<1x128xf32> to vector<64x128xf32>
    %132 = arith.addf %129, %131 : vector<64x128xf32>
    %cst_151 = arith.constant 0.000000e+00 : f32
    %133 = vector.broadcast %cst_151 : f32 to vector<64x128xf32>
    %134 = arith.maximumf %132, %133 : vector<64x128xf32>
    %c0_152 = arith.constant 0 : index
    %c0_153 = arith.constant 0 : index
    %135 = vector.load %arg3[%c0_152, %c0_153] : memref<64x64xf32, #tpu.memory_space<vmem>>, vector<64x64xf32>
    %cst_154 = arith.constant dense<0.000000e+00> : vector<64x128xf32>
    %136 = tpu.matmul %135, %134, %cst_154 {dimension_numbers = #tpu.dot_dimension_numbers<[1], [0], [0], [1], [0, 0, 1, 1], [], []>} : vector<64x64xf32>, vector<64x128xf32>, vector<64x128xf32> -> vector<64x128xf32>
    %137 = vector.extract_strided_slice %136 {offsets = [0, 0], sizes = [16, 128], strides = [1, 1]} : vector<64x128xf32> to vector<16x128xf32>
    %138 = vector.extract_strided_slice %136 {offsets = [16, 0], sizes = [16, 128], strides = [1, 1]} : vector<64x128xf32> to vector<16x128xf32>
    %139 = arith.maximumf %137, %138 : vector<16x128xf32>
    %140 = vector.extract_strided_slice %136 {offsets = [32, 0], sizes = [16, 128], strides = [1, 1]} : vector<64x128xf32> to vector<16x128xf32>
    %141 = vector.extract_strided_slice %136 {offsets = [48, 0], sizes = [16, 128], strides = [1, 1]} : vector<64x128xf32> to vector<16x128xf32>
    %142 = arith.maximumf %140, %141 : vector<16x128xf32>
    %143 = arith.maximumf %139, %142 : vector<16x128xf32>
    %144 = vector.shape_cast %143 : vector<16x128xf32> to vector<4x4x128xf32>
    %c1_155 = arith.constant 1 : index
    %c1_156 = arith.constant 1 : index
    %c0_157 = arith.constant 0 : index
    %145 = vector.load %arg22[%c1_155, %c1_156, %c0_157] : memref<6x6x128xf32, #tpu.memory_space<vmem>>, vector<4x4x128xf32>
    tpu.vector_store %arg22[%c1_155, %c1_156, %c0_157], %144 {strides = array<i32>} : memref<6x6x128xf32, #tpu.memory_space<vmem>>, vector<4x4x128xf32>,
    %c0_158 = arith.constant 0 : index
    %c0_159 = arith.constant 0 : index
    %c0_160 = arith.constant 0 : index
    %146 = vector.load %arg22[%c0_158, %c0_159, %c0_160] : memref<6x6x128xf32, #tpu.memory_space<vmem>>, vector<4x4x128xf32>
    %147 = vector.shape_cast %146 : vector<4x4x128xf32> to vector<16x128xf32>
    %c0_161 = arith.constant 0 : index
    %c0_162 = arith.constant 0 : index
    %148 = vector.load %arg12[%c0_161, %c0_162] : memref<1152x256xf32, #tpu.memory_space<vmem>>, vector<128x256xf32>
    %cst_163 = arith.constant dense<0.000000e+00> : vector<16x256xf32>
    %149 = tpu.matmul %147, %148, %cst_163 {dimension_numbers = #tpu.dot_dimension_numbers<[1], [0], [0], [1], [0, 0, 1, 1], [], []>} : vector<16x128xf32>, vector<128x256xf32>, vector<16x256xf32> -> vector<16x256xf32>
    %c0_164 = arith.constant 0 : index
    %c1_165 = arith.constant 1 : index
    %c0_166 = arith.constant 0 : index
    %150 = vector.load %arg22[%c0_164, %c1_165, %c0_166] : memref<6x6x128xf32, #tpu.memory_space<vmem>>, vector<4x4x128xf32>
    %151 = vector.shape_cast %150 : vector<4x4x128xf32> to vector<16x128xf32>
    %c128_167 = arith.constant 128 : index
    %c0_168 = arith.constant 0 : index
    %152 = vector.load %arg12[%c128_167, %c0_168] : memref<1152x256xf32, #tpu.memory_space<vmem>>, vector<128x256xf32>
    %cst_169 = arith.constant dense<0.000000e+00> : vector<16x256xf32>
    %153 = tpu.matmul %151, %152, %cst_169 {dimension_numbers = #tpu.dot_dimension_numbers<[1], [0], [0], [1], [0, 0, 1, 1], [], []>} : vector<16x128xf32>, vector<128x256xf32>, vector<16x256xf32> -> vector<16x256xf32>
    %154 = arith.addf %149, %153 : vector<16x256xf32>
    %c0_170 = arith.constant 0 : index
    %c2_171 = arith.constant 2 : index
    %c0_172 = arith.constant 0 : index
    %155 = vector.load %arg22[%c0_170, %c2_171, %c0_172] : memref<6x6x128xf32, #tpu.memory_space<vmem>>, vector<4x4x128xf32>
    %156 = vector.shape_cast %155 : vector<4x4x128xf32> to vector<16x128xf32>
    %c256_173 = arith.constant 256 : index
    %c0_174 = arith.constant 0 : index
    %157 = vector.load %arg12[%c256_173, %c0_174] : memref<1152x256xf32, #tpu.memory_space<vmem>>, vector<128x256xf32>
    %cst_175 = arith.constant dense<0.000000e+00> : vector<16x256xf32>
    %158 = tpu.matmul %156, %157, %cst_175 {dimension_numbers = #tpu.dot_dimension_numbers<[1], [0], [0], [1], [0, 0, 1, 1], [], []>} : vector<16x128xf32>, vector<128x256xf32>, vector<16x256xf32> -> vector<16x256xf32>
    %159 = arith.addf %154, %158 : vector<16x256xf32>
    %c1_176 = arith.constant 1 : index
    %c0_177 = arith.constant 0 : index
    %c0_178 = arith.constant 0 : index
    %160 = vector.load %arg22[%c1_176, %c0_177, %c0_178] : memref<6x6x128xf32, #tpu.memory_space<vmem>>, vector<4x4x128xf32>
    %161 = vector.shape_cast %160 : vector<4x4x128xf32> to vector<16x128xf32>
    %c384_179 = arith.constant 384 : index
    %c0_180 = arith.constant 0 : index
    %162 = vector.load %arg12[%c384_179, %c0_180] : memref<1152x256xf32, #tpu.memory_space<vmem>>, vector<128x256xf32>
    %cst_181 = arith.constant dense<0.000000e+00> : vector<16x256xf32>
    %163 = tpu.matmul %161, %162, %cst_181 {dimension_numbers = #tpu.dot_dimension_numbers<[1], [0], [0], [1], [0, 0, 1, 1], [], []>} : vector<16x128xf32>, vector<128x256xf32>, vector<16x256xf32> -> vector<16x256xf32>
    %164 = arith.addf %159, %163 : vector<16x256xf32>
    %c1_182 = arith.constant 1 : index
    %c1_183 = arith.constant 1 : index
    %c0_184 = arith.constant 0 : index
    %165 = vector.load %arg22[%c1_182, %c1_183, %c0_184] : memref<6x6x128xf32, #tpu.memory_space<vmem>>, vector<4x4x128xf32>
    %166 = vector.shape_cast %165 : vector<4x4x128xf32> to vector<16x128xf32>
    %c512_185 = arith.constant 512 : index
    %c0_186 = arith.constant 0 : index
    %167 = vector.load %arg12[%c512_185, %c0_186] : memref<1152x256xf32, #tpu.memory_space<vmem>>, vector<128x256xf32>
    %cst_187 = arith.constant dense<0.000000e+00> : vector<16x256xf32>
    %168 = tpu.matmul %166, %167, %cst_187 {dimension_numbers = #tpu.dot_dimension_numbers<[1], [0], [0], [1], [0, 0, 1, 1], [], []>} : vector<16x128xf32>, vector<128x256xf32>, vector<16x256xf32> -> vector<16x256xf32>
    %169 = arith.addf %164, %168 : vector<16x256xf32>
    %c1_188 = arith.constant 1 : index
    %c2_189 = arith.constant 2 : index
    %c0_190 = arith.constant 0 : index
    %170 = vector.load %arg22[%c1_188, %c2_189, %c0_190] : memref<6x6x128xf32, #tpu.memory_space<vmem>>, vector<4x4x128xf32>
    %171 = vector.shape_cast %170 : vector<4x4x128xf32> to vector<16x128xf32>
    %c640_191 = arith.constant 640 : index
    %c0_192 = arith.constant 0 : index
    %172 = vector.load %arg12[%c640_191, %c0_192] : memref<1152x256xf32, #tpu.memory_space<vmem>>, vector<128x256xf32>
    %cst_193 = arith.constant dense<0.000000e+00> : vector<16x256xf32>
    %173 = tpu.matmul %171, %172, %cst_193 {dimension_numbers = #tpu.dot_dimension_numbers<[1], [0], [0], [1], [0, 0, 1, 1], [], []>} : vector<16x128xf32>, vector<128x256xf32>, vector<16x256xf32> -> vector<16x256xf32>
    %174 = arith.addf %169, %173 : vector<16x256xf32>
    %c2_194 = arith.constant 2 : index
    %c0_195 = arith.constant 0 : index
    %c0_196 = arith.constant 0 : index
    %175 = vector.load %arg22[%c2_194, %c0_195, %c0_196] : memref<6x6x128xf32, #tpu.memory_space<vmem>>, vector<4x4x128xf32>
    %176 = vector.shape_cast %175 : vector<4x4x128xf32> to vector<16x128xf32>
    %c768_197 = arith.constant 768 : index
    %c0_198 = arith.constant 0 : index
    %177 = vector.load %arg12[%c768_197, %c0_198] : memref<1152x256xf32, #tpu.memory_space<vmem>>, vector<128x256xf32>
    %cst_199 = arith.constant dense<0.000000e+00> : vector<16x256xf32>
    %178 = tpu.matmul %176, %177, %cst_199 {dimension_numbers = #tpu.dot_dimension_numbers<[1], [0], [0], [1], [0, 0, 1, 1], [], []>} : vector<16x128xf32>, vector<128x256xf32>, vector<16x256xf32> -> vector<16x256xf32>
    %179 = arith.addf %174, %178 : vector<16x256xf32>
    %c2_200 = arith.constant 2 : index
    %c1_201 = arith.constant 1 : index
    %c0_202 = arith.constant 0 : index
    %180 = vector.load %arg22[%c2_200, %c1_201, %c0_202] : memref<6x6x128xf32, #tpu.memory_space<vmem>>, vector<4x4x128xf32>
    %181 = vector.shape_cast %180 : vector<4x4x128xf32> to vector<16x128xf32>
    %c896_203 = arith.constant 896 : index
    %c0_204 = arith.constant 0 : index
    %182 = vector.load %arg12[%c896_203, %c0_204] : memref<1152x256xf32, #tpu.memory_space<vmem>>, vector<128x256xf32>
    %cst_205 = arith.constant dense<0.000000e+00> : vector<16x256xf32>
    %183 = tpu.matmul %181, %182, %cst_205 {dimension_numbers = #tpu.dot_dimension_numbers<[1], [0], [0], [1], [0, 0, 1, 1], [], []>} : vector<16x128xf32>, vector<128x256xf32>, vector<16x256xf32> -> vector<16x256xf32>
    %184 = arith.addf %179, %183 : vector<16x256xf32>
    %c2_206 = arith.constant 2 : index
    %c2_207 = arith.constant 2 : index
    %c0_208 = arith.constant 0 : index
    %185 = vector.load %arg22[%c2_206, %c2_207, %c0_208] : memref<6x6x128xf32, #tpu.memory_space<vmem>>, vector<4x4x128xf32>
    %186 = vector.shape_cast %185 : vector<4x4x128xf32> to vector<16x128xf32>
    %c1024_209 = arith.constant 1024 : index
    %c0_210 = arith.constant 0 : index
    %187 = vector.load %arg12[%c1024_209, %c0_210] : memref<1152x256xf32, #tpu.memory_space<vmem>>, vector<128x256xf32>
    %cst_211 = arith.constant dense<0.000000e+00> : vector<16x256xf32>
    %188 = tpu.matmul %186, %187, %cst_211 {dimension_numbers = #tpu.dot_dimension_numbers<[1], [0], [0], [1], [0, 0, 1, 1], [], []>} : vector<16x128xf32>, vector<128x256xf32>, vector<16x256xf32> -> vector<16x256xf32>
    %189 = arith.addf %184, %188 : vector<16x256xf32>
    %c0_212 = arith.constant 0 : index
    %c0_213 = arith.constant 0 : index
    %190 = vector.load %arg13[%c0_212, %c0_213] : memref<1x256xf32, #tpu.memory_space<vmem>>, vector<1x256xf32>
    %191 = vector.broadcast %190 : vector<1x256xf32> to vector<16x256xf32>
    %192 = arith.addf %189, %191 : vector<16x256xf32>
    %cst_214 = arith.constant 0.000000e+00 : f32
    %193 = vector.broadcast %cst_214 : f32 to vector<16x256xf32>
    %194 = arith.maximumf %192, %193 : vector<16x256xf32>
    %195 = vector.shape_cast %194 : vector<16x256xf32> to vector<4x4x256xf32>
    %c1_215 = arith.constant 1 : index
    %c1_216 = arith.constant 1 : index
    %c0_217 = arith.constant 0 : index
    %196 = vector.load %arg23[%c1_215, %c1_216, %c0_217] : memref<6x6x256xf32, #tpu.memory_space<vmem>>, vector<4x4x256xf32>
    tpu.vector_store %arg23[%c1_215, %c1_216, %c0_217], %195 {strides = array<i32>} : memref<6x6x256xf32, #tpu.memory_space<vmem>>, vector<4x4x256xf32>,
    %c0_218 = arith.constant 0 : index
    %c0_219 = arith.constant 0 : index
    %c0_220 = arith.constant 0 : index
    %197 = vector.load %arg23[%c0_218, %c0_219, %c0_220] : memref<6x6x256xf32, #tpu.memory_space<vmem>>, vector<4x4x256xf32>
    %198 = vector.shape_cast %197 : vector<4x4x256xf32> to vector<16x256xf32>
    %c0_221 = arith.constant 0 : index
    %c0_222 = arith.constant 0 : index
    %199 = vector.load %arg14[%c0_221, %c0_222] : memref<2304x256xf32, #tpu.memory_space<vmem>>, vector<256x256xf32>
    %cst_223 = arith.constant dense<0.000000e+00> : vector<16x256xf32>
    %200 = tpu.matmul %198, %199, %cst_223 {dimension_numbers = #tpu.dot_dimension_numbers<[1], [0], [0], [1], [0, 0, 1, 1], [], []>} : vector<16x256xf32>, vector<256x256xf32>, vector<16x256xf32> -> vector<16x256xf32>
    %c0_224 = arith.constant 0 : index
    %c1_225 = arith.constant 1 : index
    %c0_226 = arith.constant 0 : index
    %201 = vector.load %arg23[%c0_224, %c1_225, %c0_226] : memref<6x6x256xf32, #tpu.memory_space<vmem>>, vector<4x4x256xf32>
    %202 = vector.shape_cast %201 : vector<4x4x256xf32> to vector<16x256xf32>
    %c256_227 = arith.constant 256 : index
    %c0_228 = arith.constant 0 : index
    %203 = vector.load %arg14[%c256_227, %c0_228] : memref<2304x256xf32, #tpu.memory_space<vmem>>, vector<256x256xf32>
    %cst_229 = arith.constant dense<0.000000e+00> : vector<16x256xf32>
    %204 = tpu.matmul %202, %203, %cst_229 {dimension_numbers = #tpu.dot_dimension_numbers<[1], [0], [0], [1], [0, 0, 1, 1], [], []>} : vector<16x256xf32>, vector<256x256xf32>, vector<16x256xf32> -> vector<16x256xf32>
    %205 = arith.addf %200, %204 : vector<16x256xf32>
    %c0_230 = arith.constant 0 : index
    %c2_231 = arith.constant 2 : index
    %c0_232 = arith.constant 0 : index
    %206 = vector.load %arg23[%c0_230, %c2_231, %c0_232] : memref<6x6x256xf32, #tpu.memory_space<vmem>>, vector<4x4x256xf32>
    %207 = vector.shape_cast %206 : vector<4x4x256xf32> to vector<16x256xf32>
    %c512_233 = arith.constant 512 : index
    %c0_234 = arith.constant 0 : index
    %208 = vector.load %arg14[%c512_233, %c0_234] : memref<2304x256xf32, #tpu.memory_space<vmem>>, vector<256x256xf32>
    %cst_235 = arith.constant dense<0.000000e+00> : vector<16x256xf32>
    %209 = tpu.matmul %207, %208, %cst_235 {dimension_numbers = #tpu.dot_dimension_numbers<[1], [0], [0], [1], [0, 0, 1, 1], [], []>} : vector<16x256xf32>, vector<256x256xf32>, vector<16x256xf32> -> vector<16x256xf32>
    %210 = arith.addf %205, %209 : vector<16x256xf32>
    %c1_236 = arith.constant 1 : index
    %c0_237 = arith.constant 0 : index
    %c0_238 = arith.constant 0 : index
    %211 = vector.load %arg23[%c1_236, %c0_237, %c0_238] : memref<6x6x256xf32, #tpu.memory_space<vmem>>, vector<4x4x256xf32>
    %212 = vector.shape_cast %211 : vector<4x4x256xf32> to vector<16x256xf32>
    %c768_239 = arith.constant 768 : index
    %c0_240 = arith.constant 0 : index
    %213 = vector.load %arg14[%c768_239, %c0_240] : memref<2304x256xf32, #tpu.memory_space<vmem>>, vector<256x256xf32>
    %cst_241 = arith.constant dense<0.000000e+00> : vector<16x256xf32>
    %214 = tpu.matmul %212, %213, %cst_241 {dimension_numbers = #tpu.dot_dimension_numbers<[1], [0], [0], [1], [0, 0, 1, 1], [], []>} : vector<16x256xf32>, vector<256x256xf32>, vector<16x256xf32> -> vector<16x256xf32>
    %215 = arith.addf %210, %214 : vector<16x256xf32>
    %c1_242 = arith.constant 1 : index
    %c1_243 = arith.constant 1 : index
    %c0_244 = arith.constant 0 : index
    %216 = vector.load %arg23[%c1_242, %c1_243, %c0_244] : memref<6x6x256xf32, #tpu.memory_space<vmem>>, vector<4x4x256xf32>
    %217 = vector.shape_cast %216 : vector<4x4x256xf32> to vector<16x256xf32>
    %c1024_245 = arith.constant 1024 : index
    %c0_246 = arith.constant 0 : index
    %218 = vector.load %arg14[%c1024_245, %c0_246] : memref<2304x256xf32, #tpu.memory_space<vmem>>, vector<256x256xf32>
    %cst_247 = arith.constant dense<0.000000e+00> : vector<16x256xf32>
    %219 = tpu.matmul %217, %218, %cst_247 {dimension_numbers = #tpu.dot_dimension_numbers<[1], [0], [0], [1], [0, 0, 1, 1], [], []>} : vector<16x256xf32>, vector<256x256xf32>, vector<16x256xf32> -> vector<16x256xf32>
    %220 = arith.addf %215, %219 : vector<16x256xf32>
    %c1_248 = arith.constant 1 : index
    %c2_249 = arith.constant 2 : index
    %c0_250 = arith.constant 0 : index
    %221 = vector.load %arg23[%c1_248, %c2_249, %c0_250] : memref<6x6x256xf32, #tpu.memory_space<vmem>>, vector<4x4x256xf32>
    %222 = vector.shape_cast %221 : vector<4x4x256xf32> to vector<16x256xf32>
    %c1280 = arith.constant 1280 : index
    %c0_251 = arith.constant 0 : index
    %223 = vector.load %arg14[%c1280, %c0_251] : memref<2304x256xf32, #tpu.memory_space<vmem>>, vector<256x256xf32>
    %cst_252 = arith.constant dense<0.000000e+00> : vector<16x256xf32>
    %224 = tpu.matmul %222, %223, %cst_252 {dimension_numbers = #tpu.dot_dimension_numbers<[1], [0], [0], [1], [0, 0, 1, 1], [], []>} : vector<16x256xf32>, vector<256x256xf32>, vector<16x256xf32> -> vector<16x256xf32>
    %225 = arith.addf %220, %224 : vector<16x256xf32>
    %c2_253 = arith.constant 2 : index
    %c0_254 = arith.constant 0 : index
    %c0_255 = arith.constant 0 : index
    %226 = vector.load %arg23[%c2_253, %c0_254, %c0_255] : memref<6x6x256xf32, #tpu.memory_space<vmem>>, vector<4x4x256xf32>
    %227 = vector.shape_cast %226 : vector<4x4x256xf32> to vector<16x256xf32>
    %c1536 = arith.constant 1536 : index
    %c0_256 = arith.constant 0 : index
    %228 = vector.load %arg14[%c1536, %c0_256] : memref<2304x256xf32, #tpu.memory_space<vmem>>, vector<256x256xf32>
    %cst_257 = arith.constant dense<0.000000e+00> : vector<16x256xf32>
    %229 = tpu.matmul %227, %228, %cst_257 {dimension_numbers = #tpu.dot_dimension_numbers<[1], [0], [0], [1], [0, 0, 1, 1], [], []>} : vector<16x256xf32>, vector<256x256xf32>, vector<16x256xf32> -> vector<16x256xf32>
    %230 = arith.addf %225, %229 : vector<16x256xf32>
    %c2_258 = arith.constant 2 : index
    %c1_259 = arith.constant 1 : index
    %c0_260 = arith.constant 0 : index
    %231 = vector.load %arg23[%c2_258, %c1_259, %c0_260] : memref<6x6x256xf32, #tpu.memory_space<vmem>>, vector<4x4x256xf32>
    %232 = vector.shape_cast %231 : vector<4x4x256xf32> to vector<16x256xf32>
    %c1792 = arith.constant 1792 : index
    %c0_261 = arith.constant 0 : index
    %233 = vector.load %arg14[%c1792, %c0_261] : memref<2304x256xf32, #tpu.memory_space<vmem>>, vector<256x256xf32>
    %cst_262 = arith.constant dense<0.000000e+00> : vector<16x256xf32>
    %234 = tpu.matmul %232, %233, %cst_262 {dimension_numbers = #tpu.dot_dimension_numbers<[1], [0], [0], [1], [0, 0, 1, 1], [], []>} : vector<16x256xf32>, vector<256x256xf32>, vector<16x256xf32> -> vector<16x256xf32>
    %235 = arith.addf %230, %234 : vector<16x256xf32>
    %c2_263 = arith.constant 2 : index
    %c2_264 = arith.constant 2 : index
    %c0_265 = arith.constant 0 : index
    %236 = vector.load %arg23[%c2_263, %c2_264, %c0_265] : memref<6x6x256xf32, #tpu.memory_space<vmem>>, vector<4x4x256xf32>
    %237 = vector.shape_cast %236 : vector<4x4x256xf32> to vector<16x256xf32>
    %c2048 = arith.constant 2048 : index
    %c0_266 = arith.constant 0 : index
    %238 = vector.load %arg14[%c2048, %c0_266] : memref<2304x256xf32, #tpu.memory_space<vmem>>, vector<256x256xf32>
    %cst_267 = arith.constant dense<0.000000e+00> : vector<16x256xf32>
    %239 = tpu.matmul %237, %238, %cst_267 {dimension_numbers = #tpu.dot_dimension_numbers<[1], [0], [0], [1], [0, 0, 1, 1], [], []>} : vector<16x256xf32>, vector<256x256xf32>, vector<16x256xf32> -> vector<16x256xf32>
    %240 = arith.addf %235, %239 : vector<16x256xf32>
    %c0_268 = arith.constant 0 : index
    %c0_269 = arith.constant 0 : index
    %241 = vector.load %arg15[%c0_268, %c0_269] : memref<1x256xf32, #tpu.memory_space<vmem>>, vector<1x256xf32>
    %242 = vector.broadcast %241 : vector<1x256xf32> to vector<16x256xf32>
    %243 = arith.addf %240, %242 : vector<16x256xf32>
    %cst_270 = arith.constant 0.000000e+00 : f32
    %244 = vector.broadcast %cst_270 : f32 to vector<16x256xf32>
    %245 = arith.maximumf %243, %244 : vector<16x256xf32>
    %246 = vector.shape_cast %245 : vector<16x256xf32> to vector<4x4x256xf32>
    %c1_271 = arith.constant 1 : index
    %c1_272 = arith.constant 1 : index
    %c0_273 = arith.constant 0 : index
    %247 = vector.load %arg23[%c1_271, %c1_272, %c0_273] : memref<6x6x256xf32, #tpu.memory_space<vmem>>, vector<4x4x256xf32>
    tpu.vector_store %arg23[%c1_271, %c1_272, %c0_273], %246 {strides = array<i32>} : memref<6x6x256xf32, #tpu.memory_space<vmem>>, vector<4x4x256xf32>,
    %c0_274 = arith.constant 0 : index
    %c0_275 = arith.constant 0 : index
    %c0_276 = arith.constant 0 : index
    %248 = vector.load %arg23[%c0_274, %c0_275, %c0_276] : memref<6x6x256xf32, #tpu.memory_space<vmem>>, vector<4x4x256xf32>
    %249 = vector.shape_cast %248 : vector<4x4x256xf32> to vector<16x256xf32>
    %c0_277 = arith.constant 0 : index
    %c0_278 = arith.constant 0 : index
    %250 = vector.load %arg16[%c0_277, %c0_278] : memref<2304x256xf32, #tpu.memory_space<vmem>>, vector<256x256xf32>
    %cst_279 = arith.constant dense<0.000000e+00> : vector<16x256xf32>
    %251 = tpu.matmul %249, %250, %cst_279 {dimension_numbers = #tpu.dot_dimension_numbers<[1], [0], [0], [1], [0, 0, 1, 1], [], []>} : vector<16x256xf32>, vector<256x256xf32>, vector<16x256xf32> -> vector<16x256xf32>
    %c0_280 = arith.constant 0 : index
    %c1_281 = arith.constant 1 : index
    %c0_282 = arith.constant 0 : index
    %252 = vector.load %arg23[%c0_280, %c1_281, %c0_282] : memref<6x6x256xf32, #tpu.memory_space<vmem>>, vector<4x4x256xf32>
    %253 = vector.shape_cast %252 : vector<4x4x256xf32> to vector<16x256xf32>
    %c256_283 = arith.constant 256 : index
    %c0_284 = arith.constant 0 : index
    %254 = vector.load %arg16[%c256_283, %c0_284] : memref<2304x256xf32, #tpu.memory_space<vmem>>, vector<256x256xf32>
    %cst_285 = arith.constant dense<0.000000e+00> : vector<16x256xf32>
    %255 = tpu.matmul %253, %254, %cst_285 {dimension_numbers = #tpu.dot_dimension_numbers<[1], [0], [0], [1], [0, 0, 1, 1], [], []>} : vector<16x256xf32>, vector<256x256xf32>, vector<16x256xf32> -> vector<16x256xf32>
    %256 = arith.addf %251, %255 : vector<16x256xf32>
    %c0_286 = arith.constant 0 : index
    %c2_287 = arith.constant 2 : index
    %c0_288 = arith.constant 0 : index
    %257 = vector.load %arg23[%c0_286, %c2_287, %c0_288] : memref<6x6x256xf32, #tpu.memory_space<vmem>>, vector<4x4x256xf32>
    %258 = vector.shape_cast %257 : vector<4x4x256xf32> to vector<16x256xf32>
    %c512_289 = arith.constant 512 : index
    %c0_290 = arith.constant 0 : index
    %259 = vector.load %arg16[%c512_289, %c0_290] : memref<2304x256xf32, #tpu.memory_space<vmem>>, vector<256x256xf32>
    %cst_291 = arith.constant dense<0.000000e+00> : vector<16x256xf32>
    %260 = tpu.matmul %258, %259, %cst_291 {dimension_numbers = #tpu.dot_dimension_numbers<[1], [0], [0], [1], [0, 0, 1, 1], [], []>} : vector<16x256xf32>, vector<256x256xf32>, vector<16x256xf32> -> vector<16x256xf32>
    %261 = arith.addf %256, %260 : vector<16x256xf32>
    %c1_292 = arith.constant 1 : index
    %c0_293 = arith.constant 0 : index
    %c0_294 = arith.constant 0 : index
    %262 = vector.load %arg23[%c1_292, %c0_293, %c0_294] : memref<6x6x256xf32, #tpu.memory_space<vmem>>, vector<4x4x256xf32>
    %263 = vector.shape_cast %262 : vector<4x4x256xf32> to vector<16x256xf32>
    %c768_295 = arith.constant 768 : index
    %c0_296 = arith.constant 0 : index
    %264 = vector.load %arg16[%c768_295, %c0_296] : memref<2304x256xf32, #tpu.memory_space<vmem>>, vector<256x256xf32>
    %cst_297 = arith.constant dense<0.000000e+00> : vector<16x256xf32>
    %265 = tpu.matmul %263, %264, %cst_297 {dimension_numbers = #tpu.dot_dimension_numbers<[1], [0], [0], [1], [0, 0, 1, 1], [], []>} : vector<16x256xf32>, vector<256x256xf32>, vector<16x256xf32> -> vector<16x256xf32>
    %266 = arith.addf %261, %265 : vector<16x256xf32>
    %c1_298 = arith.constant 1 : index
    %c1_299 = arith.constant 1 : index
    %c0_300 = arith.constant 0 : index
    %267 = vector.load %arg23[%c1_298, %c1_299, %c0_300] : memref<6x6x256xf32, #tpu.memory_space<vmem>>, vector<4x4x256xf32>
    %268 = vector.shape_cast %267 : vector<4x4x256xf32> to vector<16x256xf32>
    %c1024_301 = arith.constant 1024 : index
    %c0_302 = arith.constant 0 : index
    %269 = vector.load %arg16[%c1024_301, %c0_302] : memref<2304x256xf32, #tpu.memory_space<vmem>>, vector<256x256xf32>
    %cst_303 = arith.constant dense<0.000000e+00> : vector<16x256xf32>
    %270 = tpu.matmul %268, %269, %cst_303 {dimension_numbers = #tpu.dot_dimension_numbers<[1], [0], [0], [1], [0, 0, 1, 1], [], []>} : vector<16x256xf32>, vector<256x256xf32>, vector<16x256xf32> -> vector<16x256xf32>
    %271 = arith.addf %266, %270 : vector<16x256xf32>
    %c1_304 = arith.constant 1 : index
    %c2_305 = arith.constant 2 : index
    %c0_306 = arith.constant 0 : index
    %272 = vector.load %arg23[%c1_304, %c2_305, %c0_306] : memref<6x6x256xf32, #tpu.memory_space<vmem>>, vector<4x4x256xf32>
    %273 = vector.shape_cast %272 : vector<4x4x256xf32> to vector<16x256xf32>
    %c1280_307 = arith.constant 1280 : index
    %c0_308 = arith.constant 0 : index
    %274 = vector.load %arg16[%c1280_307, %c0_308] : memref<2304x256xf32, #tpu.memory_space<vmem>>, vector<256x256xf32>
    %cst_309 = arith.constant dense<0.000000e+00> : vector<16x256xf32>
    %275 = tpu.matmul %273, %274, %cst_309 {dimension_numbers = #tpu.dot_dimension_numbers<[1], [0], [0], [1], [0, 0, 1, 1], [], []>} : vector<16x256xf32>, vector<256x256xf32>, vector<16x256xf32> -> vector<16x256xf32>
    %276 = arith.addf %271, %275 : vector<16x256xf32>
    %c2_310 = arith.constant 2 : index
    %c0_311 = arith.constant 0 : index
    %c0_312 = arith.constant 0 : index
    %277 = vector.load %arg23[%c2_310, %c0_311, %c0_312] : memref<6x6x256xf32, #tpu.memory_space<vmem>>, vector<4x4x256xf32>
    %278 = vector.shape_cast %277 : vector<4x4x256xf32> to vector<16x256xf32>
    %c1536_313 = arith.constant 1536 : index
    %c0_314 = arith.constant 0 : index
    %279 = vector.load %arg16[%c1536_313, %c0_314] : memref<2304x256xf32, #tpu.memory_space<vmem>>, vector<256x256xf32>
    %cst_315 = arith.constant dense<0.000000e+00> : vector<16x256xf32>
    %280 = tpu.matmul %278, %279, %cst_315 {dimension_numbers = #tpu.dot_dimension_numbers<[1], [0], [0], [1], [0, 0, 1, 1], [], []>} : vector<16x256xf32>, vector<256x256xf32>, vector<16x256xf32> -> vector<16x256xf32>
    %281 = arith.addf %276, %280 : vector<16x256xf32>
    %c2_316 = arith.constant 2 : index
    %c1_317 = arith.constant 1 : index
    %c0_318 = arith.constant 0 : index
    %282 = vector.load %arg23[%c2_316, %c1_317, %c0_318] : memref<6x6x256xf32, #tpu.memory_space<vmem>>, vector<4x4x256xf32>
    %283 = vector.shape_cast %282 : vector<4x4x256xf32> to vector<16x256xf32>
    %c1792_319 = arith.constant 1792 : index
    %c0_320 = arith.constant 0 : index
    %284 = vector.load %arg16[%c1792_319, %c0_320] : memref<2304x256xf32, #tpu.memory_space<vmem>>, vector<256x256xf32>
    %cst_321 = arith.constant dense<0.000000e+00> : vector<16x256xf32>
    %285 = tpu.matmul %283, %284, %cst_321 {dimension_numbers = #tpu.dot_dimension_numbers<[1], [0], [0], [1], [0, 0, 1, 1], [], []>} : vector<16x256xf32>, vector<256x256xf32>, vector<16x256xf32> -> vector<16x256xf32>
    %286 = arith.addf %281, %285 : vector<16x256xf32>
    %c2_322 = arith.constant 2 : index
    %c2_323 = arith.constant 2 : index
    %c0_324 = arith.constant 0 : index
    %287 = vector.load %arg23[%c2_322, %c2_323, %c0_324] : memref<6x6x256xf32, #tpu.memory_space<vmem>>, vector<4x4x256xf32>
    %288 = vector.shape_cast %287 : vector<4x4x256xf32> to vector<16x256xf32>
    %c2048_325 = arith.constant 2048 : index
    %c0_326 = arith.constant 0 : index
    %289 = vector.load %arg16[%c2048_325, %c0_326] : memref<2304x256xf32, #tpu.memory_space<vmem>>, vector<256x256xf32>
    %cst_327 = arith.constant dense<0.000000e+00> : vector<16x256xf32>
    %290 = tpu.matmul %288, %289, %cst_327 {dimension_numbers = #tpu.dot_dimension_numbers<[1], [0], [0], [1], [0, 0, 1, 1], [], []>} : vector<16x256xf32>, vector<256x256xf32>, vector<16x256xf32> -> vector<16x256xf32>
    %291 = arith.addf %286, %290 : vector<16x256xf32>
    %c0_328 = arith.constant 0 : index
    %c0_329 = arith.constant 0 : index
    %292 = vector.load %arg17[%c0_328, %c0_329] : memref<1x256xf32, #tpu.memory_space<vmem>>, vector<1x256xf32>
    %293 = vector.broadcast %292 : vector<1x256xf32> to vector<16x256xf32>
    %294 = arith.addf %291, %293 : vector<16x256xf32>
    %c0_330 = arith.constant 0 : index
    %c0_331 = arith.constant 0 : index
    %c0_332 = arith.constant 0 : index
    %295 = vector.load %arg18[%c0_330, %c0_331, %c0_332] : memref<1x16x256xf32, #tpu.memory_space<vmem>>, vector<1x16x256xf32>
    %296 = vector.shape_cast %295 : vector<1x16x256xf32> to vector<16x256xf32>
    %297 = vector.shape_cast %294 : vector<16x256xf32> to vector<1x16x256xf32>
    tpu.vector_store %arg18[%c0_330, %c0_331, %c0_332], %297 {strides = array<i32>} : memref<1x16x256xf32, #tpu.memory_space<vmem>>, vector<1x16x256xf32>,
    return
  }
  func.func @transform_0(%arg0: i32) -> (i32, i32, i32) {
    %c0_i32 = arith.constant 0 : i32
    %c0_i32_0 = arith.constant 0 : i32
    %c0_i32_1 = arith.constant 0 : i32
    return %arg0, %c0_i32, %c0_i32_0 : i32, i32, i32
  }
  func.func @transform_1(%arg0: i32) -> (i32, i32) {
    %c0_i32 = arith.constant 0 : i32
    %c0_i32_0 = arith.constant 0 : i32
    %c0_i32_1 = arith.constant 0 : i32
    return %c0_i32, %c0_i32_0 : i32, i32
  }
  func.func @transform_2(%arg0: i32) -> (i32, i32) {
    %c0_i32 = arith.constant 0 : i32
    %c0_i32_0 = arith.constant 0 : i32
    %c0_i32_1 = arith.constant 0 : i32
    return %c0_i32, %c0_i32_0 : i32, i32
  }
  func.func @transform_3(%arg0: i32) -> (i32, i32) {
    %c0_i32 = arith.constant 0 : i32
    %c0_i32_0 = arith.constant 0 : i32
    %c0_i32_1 = arith.constant 0 : i32
    return %c0_i32, %c0_i32_0 : i32, i32
  }
  func.func @transform_4(%arg0: i32) -> (i32, i32) {
    %c0_i32 = arith.constant 0 : i32
    %c0_i32_0 = arith.constant 0 : i32
    %c0_i32_1 = arith.constant 0 : i32
    return %c0_i32, %c0_i32_0 : i32, i32
  }
  func.func @transform_5(%arg0: i32) -> (i32, i32) {
    %c0_i32 = arith.constant 0 : i32
    %c0_i32_0 = arith.constant 0 : i32
    %c0_i32_1 = arith.constant 0 : i32
    return %c0_i32, %c0_i32_0 : i32, i32
  }
  func.func @transform_6(%arg0: i32) -> (i32, i32) {
    %c0_i32 = arith.constant 0 : i32
    %c0_i32_0 = arith.constant 0 : i32
    %c0_i32_1 = arith.constant 0 : i32
    return %c0_i32, %c0_i32_0 : i32, i32
  }
  func.func @transform_7(%arg0: i32) -> (i32, i32) {
    %c0_i32 = arith.constant 0 : i32
    %c0_i32_0 = arith.constant 0 : i32
    %c0_i32_1 = arith.constant 0 : i32
    return %c0_i32, %c0_i32_0 : i32, i32
  }
  func.func @transform_8(%arg0: i32) -> (i32, i32) {
    %c0_i32 = arith.constant 0 : i32
    %c0_i32_0 = arith.constant 0 : i32
    %c0_i32_1 = arith.constant 0 : i32
    return %c0_i32, %c0_i32_0 : i32, i32
  }
  func.func @transform_9(%arg0: i32) -> (i32, i32) {
    %c0_i32 = arith.constant 0 : i32
    %c0_i32_0 = arith.constant 0 : i32
    %c0_i32_1 = arith.constant 0 : i32
    return %c0_i32, %c0_i32_0 : i32, i32
  }
  func.func @transform_10(%arg0: i32) -> (i32, i32) {
    %c0_i32 = arith.constant 0 : i32
    %c0_i32_0 = arith.constant 0 : i32
    %c0_i32_1 = arith.constant 0 : i32
    return %c0_i32, %c0_i32_0 : i32, i32
  }
  func.func @transform_11(%arg0: i32) -> (i32, i32) {
    %c0_i32 = arith.constant 0 : i32
    %c0_i32_0 = arith.constant 0 : i32
    %c0_i32_1 = arith.constant 0 : i32
    return %c0_i32, %c0_i32_0 : i32, i32
  }
  func.func @transform_12(%arg0: i32) -> (i32, i32) {
    %c0_i32 = arith.constant 0 : i32
    %c0_i32_0 = arith.constant 0 : i32
    %c0_i32_1 = arith.constant 0 : i32
    return %c0_i32, %c0_i32_0 : i32, i32
  }
  func.func @transform_13(%arg0: i32) -> (i32, i32) {
    %c0_i32 = arith.constant 0 : i32
    %c0_i32_0 = arith.constant 0 : i32
    %c0_i32_1 = arith.constant 0 : i32
    return %c0_i32, %c0_i32_0 : i32, i32
  }
  func.func @transform_14(%arg0: i32) -> (i32, i32) {
    %c0_i32 = arith.constant 0 : i32
    %c0_i32_0 = arith.constant 0 : i32
    %c0_i32_1 = arith.constant 0 : i32
    return %c0_i32, %c0_i32_0 : i32, i32
  }
  func.func @transform_15(%arg0: i32) -> (i32, i32) {
    %c0_i32 = arith.constant 0 : i32
    %c0_i32_0 = arith.constant 0 : i32
    %c0_i32_1 = arith.constant 0 : i32
    return %c0_i32, %c0_i32_0 : i32, i32
  }
  func.func @transform_16(%arg0: i32) -> (i32, i32) {
    %c0_i32 = arith.constant 0 : i32
    %c0_i32_0 = arith.constant 0 : i32
    %c0_i32_1 = arith.constant 0 : i32
    return %c0_i32, %c0_i32_0 : i32, i32
  }
  func.func @transform_17(%arg0: i32) -> (i32, i32, i32) {
    %c0_i32 = arith.constant 0 : i32
    %c0_i32_0 = arith.constant 0 : i32
    %c0_i32_1 = arith.constant 0 : i32
    return %arg0, %c0_i32, %c0_i32_0 : i32, i32, i32
  }
}

</mosaic_0001>

<bundles_post_ra>
// kernel: vgg16_features_forward.1
= control target key start
LH: loop header
LB: loop body
LE: loop exit
PB: predicated region body
PF: predicated region fallthrough
CT: control target
= control target key end

     0   :  { %s14109_s24 = smov 0   ;;  %s21404_s0 = inlined_call_operand.vmem [shape: f32[2,256,27], index: 0, kind: input, shape index: {}]   ;;  %s21405_s1 = inlined_call_operand.vmem [shape: f32[256,256], index: 1, kind: input, shape index: {}]   ;;  %s21406_s2 = inlined_call_operand.vmem [shape: f32[64,64], index: 2, kind: input, shape index: {}]   ;;  %s21407_s3 = inlined_call_operand.vmem [shape: f32[27,64], index: 3, kind: input, shape index: {}]   ;;  %s21408_s4 = inlined_call_operand.vmem [shape: f32[1,64], index: 4, kind: input, shape index: {}]   ;;  %s21409_s5 = inlined_call_operand.vmem [shape: f32[576,64], index: 5, kind: input, shape index: {}]   ;;  %s21410_s6 = inlined_call_operand.vmem [shape: f32[1,64], index: 6, kind: input, shape index: {}]   ;;  %s21411_s7 = inlined_call_operand.vmem [shape: f32[576,128], index: 7, kind: input, shape index: {}]   ;;  %s21412_s8 = inlined_call_operand.vmem [shape: f32[1,128], index: 8, kind: input, shape index: {}]   ;;  %s21413_s9 = inlined_call_operand.vmem [shape: f32[1152,128], index: 9, kind: input, shape index: {}]   ;;  %s21414_s10 = inlined_call_operand.vmem [shape: f32[1,128], index: 10, kind: input, shape index: {}]   ;;  %s21415_s11 = inlined_call_operand.vmem [shape: f32[1152,256], index: 11, kind: input, shape index: {}]   ;;  %s21416_s12 = inlined_call_operand.vmem [shape: f32[1,256], index: 12, kind: input, shape index: {}]   ;;  %s21417_s13 = inlined_call_operand.vmem [shape: f32[2304,256], index: 13, kind: input, shape index: {}]   ;;  %s21418_s14 = inlined_call_operand.vmem [shape: f32[1,256], index: 14, kind: input, shape index: {}]   ;;  %s21419_s15 = inlined_call_operand.vmem [shape: f32[2304,256], index: 15, kind: input, shape index: {}]   ;;  %s21420_s16 = inlined_call_operand.vmem [shape: f32[1,256], index: 16, kind: input, shape index: {}]   ;;  %s21421_s17 = inlined_call_operand.vmem [shape: f32[2,16,256], index: 17, kind: output, shape index: {}]  }
   0x1   :  { %21423 = sst [smem:[#allocation7_spill]] %s21404_s0 }
   0x2   :  { %21424 = sst [smem:[#allocation8_spill]] %s21405_s1 }
   0x3 LB: > { %s9943_s25 = sadd.s32 4294967295, %s14013_s24   ;;  %p9947_p0 = scmp.ge.s32.totalorder %s14013_s24, 1  ;;  %s14013_s24 = sphi %s14109_s24, %s27_s24  }
   0x4   : > { %p487_p1 = scmp.lt.s32.totalorder %s14013_s24, 3 }
   0x6   : > { %p488_p2 = pnand %p9947_p0, %p487_p1 }
   0x7   : > { %v695_v0 = vld [vmem:[%s21407_s3] sm:$0xff] (!%p488_p2)  ;;  %v696_v1 = vld [vmem:[%s21407_s3 + $0x8] sm:$0xff] (!%p488_p2)  ;;  %v697_v2 = vld [vmem:[%s21407_s3 + $0x10] sm:$0xff] (!%p488_p2)  ;;  %vm803_vm0 = vcmask (!%p488_p2), 1042432   ;;  %p14133_p3 = scmp.lt.s32.totalorder (!%p488_p2), %s9943_s25, 1  ;;  %vm549_vm1 = vcmask (!%p488_p2), 523264  }
   0x8   : > { %491 = sbr.rel (%p488_p2) target bundleno = 4224 (0x1080), region = 88  ;;  %v14126_v3 = vpack.c.bf16 (!%p488_p2), %v696_v1, %v695_v0  ;;  %v698_v4 = vld [vmem:[%s21407_s3 + $0x18] sm:$0x7] (!%p488_p2)  ;;  %vm14015_vm2 = vmmov (!%p488_p2), 1   ;;  %vm552_vm4 = vcmask (!%p488_p2), 517120   ;;  %v14016_v7 = vmov (!%p488_p2), 0.0  }
   0x9   : > { %v14137_v5 = vpack.c.bf16 (!%p488_p2), %v698_v4, %v697_v2  ;;  %vm14140_vm3 = vmpackc.low (!%p488_p2), %vm803_vm0, %vm14015_vm2  ;;  %555 = vst.msk [vmem:[#allocation2 + $0x20] sm:$0xff] (!%p488_p2), %vm549_vm1, %v14016_v7  ;;  %vm706_vm5 = vcmask (!%p488_p2), 220160   ;;  %s21428_s23 = sld [smem:[#allocation7_spill]] (!%p488_p2)  ;;  %v2026_v40 = vld [vmem:[%s21409_s5] sm:$0xff] (!%p488_p2)  ;;  %v2027_v41 = vld [vmem:[%s21409_s5 + $0x8] sm:$0xff] (!%p488_p2)  ;;  %v14017_v42 = vmov (!%p488_p2), 0.0|0.0  }
   0xa   : > { %550 = vst.msk [vmem:[#allocation2] sm:$0xff] (!%p488_p2), %vm549_vm1, %v14016_v7  ;;  %551 = vst.msk [vmem:[#allocation2 + $0x8] sm:$0xff] (!%p488_p2), %vm549_vm1, %v14016_v7  ;;  %11130 = vmatprep.subr.bf16.mxu0 (!%p488_p2), %v14126_v3  ;;  %13123 = vmatprep.subr.bf16.mxu1 (!%p488_p2), %v14017_v42  ;;  %v11140_v43 = vpack.c.bf16 (!%p488_p2), %v2027_v41, %v2026_v40  ;;  %v2028_v44 = vld [vmem:[%s21409_s5 + $0x10] sm:$0xff] (!%p488_p2)  ;;  %v2029_v45 = vld [vmem:[%s21409_s5 + $0x18] sm:$0xff] (!%p488_p2)  ;;  %s14018_s28 = smov (!%p488_p2), 64   ;;  %s21429_s29 = sld [smem:[#allocation8_spill]] (!%p488_p2) }
   0xb   : > { %554 = vst.msk [vmem:[#allocation2 + $0x18] sm:$0xff] (!%p488_p2), %vm549_vm1, %v14016_v7  ;;  %557 = vst.msk [vmem:[#allocation2 + $0x30] sm:$0xff] (!%p488_p2), %vm549_vm1, %v14016_v7  ;;  %11132 = vmatpush3.bf16.msra.mxu0 (!%p488_p2), %v14126_v3  ;;  %v11143_v46 = vpack.c.bf16 (!%p488_p2), %v2029_v45, %v2028_v44  ;;  %v2030_v47 = vld [vmem:[%s21409_s5 + $0x20] sm:$0xff] (!%p488_p2)  ;;  %v2031_v48 = vld [vmem:[%s21409_s5 + $0x28] sm:$0xff] (!%p488_p2)  ;;  %vm6576_vm6 = vcmask (!%p488_p2), 1046532   ;;  %vm6852_vm8 = vcmask (!%p488_p2), 1041408  }
   0xc   : > { %558 = vst.msk [vmem:[#allocation2 + $0x38] sm:$0xff] (!%p488_p2), %vm549_vm1, %v14016_v7  ;;  %560 = vst.msk [vmem:[#allocation2 + $0x48] sm:$0xff] (!%p488_p2), %vm549_vm1, %v14016_v7  ;;  %11135 = vmatprep.subr.msk.bf16.mxu0 (!%p488_p2), %vm14140_vm3, %v14137_v5  ;;  %13139 = vmatpush1.bf16.msra.mxu1 (!%p488_p2), %v11140_v43  ;;  %v11146_v49 = vpack.c.bf16 (!%p488_p2), %v2031_v48, %v2030_v47  ;;  %v2032_v50 = vld [vmem:[%s21409_s5 + $0x30] sm:$0xff] (!%p488_p2)  ;;  %v2033_v51 = vld [vmem:[%s21409_s5 + $0x38] sm:$0xff] (!%p488_p2)  ;;  %vm6853_vm9 = vcmask (!%p488_p2), 1045508  }
   0xd   : > { %561 = vst.msk [vmem:[#allocation2 + $0x50] sm:$0xff] (!%p488_p2), %vm549_vm1, %v14016_v7  ;;  %563 = vst.msk [vmem:[#allocation2 + $0x60] sm:$0xff] (!%p488_p2), %vm549_vm1, %v14016_v7  ;;  %13124 = vmatprep.subr.bf16.mxu1 (!%p488_p2), %v14017_v42  ;;  %v11149_v52 = vpack.c.bf16 (!%p488_p2), %v2033_v51, %v2032_v50  ;;  %v2034_v53 = vld [vmem:[%s21409_s5 + $0x40] sm:$0xff] (!%p488_p2)  ;;  %v2035_v54 = vld [vmem:[%s21409_s5 + $0x48] sm:$0xff] (!%p488_p2) }
   0xe   : > { %564 = vst.msk [vmem:[#allocation2 + $0x68] sm:$0xff] (!%p488_p2), %vm549_vm1, %v14016_v7  ;;  %566 = vst.msk [vmem:[#allocation2 + $0x78] sm:$0xff] (!%p488_p2), %vm549_vm1, %v14016_v7  ;;  %v11152_v55 = vpack.c.bf16 (!%p488_p2), %v2035_v54, %v2034_v53  ;;  %v2036_v56 = vld [vmem:[%s21409_s5 + $0x50] sm:$0xff] (!%p488_p2)  ;;  %v2037_v57 = vld [vmem:[%s21409_s5 + $0x58] sm:$0xff] (!%p488_p2) }
   0xf   : > { %567 = vst.msk [vmem:[#allocation2 + $0x80] sm:$0xff] %vm549_vm1, %v14016_v7  ;;  %569 = vst.msk [vmem:[#allocation2 + $0x90] sm:$0xff] %vm549_vm1, %v14016_v7  ;;  %s21435_s25 = smov (!%p14133_p3, %s9943_s25), 1  ;;  %11138 = vmatpush3.bf16.msk.msra.mxu0 %vm14140_vm3, %v14137_v5  ;;  %v11155_v58 = vpack.c.bf16 %v2037_v57, %v2036_v56  ;;  %v2038_v59 = vld [vmem:[%s21409_s5 + $0x60] sm:$0xff]  ;;  %v2039_v60 = vld [vmem:[%s21409_s5 + $0x68] sm:$0xff] }
  0x10   : > { %570 = vst.msk [vmem:[#allocation2 + $0x98] sm:$0xff] %vm549_vm1, %v14016_v7  ;;  %572 = vst.msk [vmem:[#allocation2 + $0xa8] sm:$0xff] %vm549_vm1, %v14016_v7  ;;  %s10119_s20 = sshll.u32 %s21435_s25, 8  ;;  %11139 = vmatprep.subr.bf16.mxu0 %v14017_v42  ;;  %13140 = vmatpush1.bf16.msra.mxu1 %v11143_v46  ;;  %v11158_v61 = vpack.c.bf16 %v2039_v60, %v2038_v59  ;;  %v2040_v62 = vld [vmem:[%s21409_s5 + $0x70] sm:$0xff]  ;;  %v2041_v63 = vld [vmem:[%s21409_s5 + $0x78] sm:$0xff]  ;;  %s10120_s19 = sshll.u32 %s21435_s25, 5 }
  0x11   : > { %573 = vst.msk [vmem:[#allocation2 + $0xb0] sm:$0xff] %vm549_vm1, %v14016_v7  ;;  %575 = vst.msk [vmem:[#allocation2 + $0xc0] sm:$0xff] %vm549_vm1, %v14016_v7  ;;  %s14345_s26 = scalar_lea.vmem %s21428_s23, %s10119_s20  ;;  %13125 = vmatprep.subr.bf16.mxu1 %v14017_v42  ;;  %v11161_v0 = vpack.c.bf16 %v2041_v63, %v2040_v62  ;;  %v2042_v1 = vld [vmem:[%s21409_s5 + $0x80] sm:$0xff]  ;;  %v2043_v2 = vld [vmem:[%s21409_s5 + $0x88] sm:$0xff]  ;;  %s548_s21 = scalar_lea.vmem %s21421_s17, %s10120_s19 }
  0x12   : > { %576 = vst.msk [vmem:[#allocation2 + $0xc8] sm:$0xff] %vm549_vm1, %v14016_v7  ;;  %578 = vst.msk [vmem:[#allocation2 + $0xd8] sm:$0xff] %vm549_vm1, %v14016_v7  ;;  %v663_v8 = vld [vmem:[%s14345_s26] sm:$0xff]  ;;  %v664_v9 = vld [vmem:[%s14345_s26 + $0x8] sm:$0xff]  ;;  %v11164_v3 = vpack.c.bf16 %v2043_v2, %v2042_v1 }
  0x13   : > { %579 = vst.msk [vmem:[#allocation2 + $0xe0] sm:$0xff] %vm549_vm1, %v14016_v7  ;;  %581 = vst.msk [vmem:[#allocation2 + $0xf0] sm:$0xff] %vm549_vm1, %v14016_v7  ;;  %10565 = vmatprep.mubr.msk.f32.mxu0 %vm706_vm5, %v663_v8  ;;  %v665_v10 = vld [vmem:[%s14345_s26 + $0x10] sm:$0xff]  ;;  %v666_v11 = vld [vmem:[%s14345_s26 + $0x18] sm:$0xff] }
  0x14   : > { %582 = vst.msk [vmem:[#allocation2 + $0xf8] sm:$0xff] %vm549_vm1, %v14016_v7  ;;  %584 = vst.msk [vmem:[#allocation2 + $0x108] sm:$0xff] %vm549_vm1, %v14016_v7  ;;  %10566 = vmatmul.mubr.msk.f32.vlgmr.msra.gmra.mrb[0].mxu0 %vm706_vm5, %v664_v9  ;;  %v667_v12 = vld [vmem:[%s14345_s26 + $0x20] sm:$0xff]  ;;  %v668_v13 = vld [vmem:[%s14345_s26 + $0x28] sm:$0xff]  ;;  %13141 = vmatpush1.bf16.msra.mxu1 %v11146_v49 }
  0x15   : > { %585 = vst.msk [vmem:[#allocation2 + $0x110] sm:$0xff] %vm549_vm1, %v14016_v7  ;;  %587 = vst.msk [vmem:[#allocation2 + $0x120] sm:$0xff] %vm549_vm1, %v14016_v7  ;;  %10568 = vmatprep.mubr.msk.f32.mxu0 %vm706_vm5, %v665_v10  ;;  %v669_v14 = vld [vmem:[%s14345_s26 + $0x30] sm:$0xff]  ;;  %v670_v15 = vld [vmem:[%s14345_s26 + $0x38] sm:$0xff]  ;;  %11141 = vmatpush1.bf16.msra.mxu0 %v11140_v43 }
  0x16   : > { %588 = vst.msk [vmem:[#allocation2 + $0x128] sm:$0xff] %vm549_vm1, %v14016_v7  ;;  %590 = vst.msk [vmem:[#allocation2 + $0x138] sm:$0xff] %vm549_vm1, %v14016_v7  ;;  %v671_v16 = vld [vmem:[%s14345_s26 + $0x40] sm:$0xff]  ;;  %v672_v17 = vld [vmem:[%s14345_s26 + $0x48] sm:$0xff]  ;;  %11142 = vmatprep.subr.bf16.mxu0 %v14017_v42  ;;  %13126 = vmatprep.subr.bf16.mxu1 %v14017_v42 }
  0x17   : > { %591 = vst.msk [vmem:[#allocation2 + $0x140] sm:$0xff] %vm549_vm1, %v14016_v7  ;;  %593 = vst.msk [vmem:[#allocation2 + $0x150] sm:$0xff] %vm549_vm1, %v14016_v7  ;;  %v673_v18 = vld [vmem:[%s14345_s26 + $0x50] sm:$0xff]  ;;  %v674_v19 = vld [vmem:[%s14345_s26 + $0x58] sm:$0xff] }
  0x18   : > { %594 = vst.msk [vmem:[#allocation2 + $0x158] sm:$0xff] %vm549_vm1, %v14016_v7  ;;  %596 = vst.msk [vmem:[#allocation2 + $0x168] sm:$0xff] %vm549_vm1, %v14016_v7  ;;  %10569 = vmatmul.mubr.msk.f32.gmra.mrb[2].mxu0 %vm706_vm5, %v666_v11  ;;  %v675_v20 = vld [vmem:[%s14345_s26 + $0x60] sm:$0xff]  ;;  %v676_v21 = vld [vmem:[%s14345_s26 + $0x68] sm:$0xff]  ;;  %13142 = vmatpush1.bf16.msra.mxu1 %v11149_v52 }
  0x19   : > { %597 = vst.msk [vmem:[#allocation2 + $0x170] sm:$0xff] %vm549_vm1, %v14016_v7  ;;  %599 = vst.msk [vmem:[#allocation2 + $0x180] sm:$0xff] %vm549_vm1, %v14016_v7  ;;  %10571 = vmatprep.mubr.msk.f32.mxu0 %vm706_vm5, %v667_v12  ;;  %v677_v22 = vld [vmem:[%s14345_s26 + $0x70] sm:$0xff]  ;;  %v678_v23 = vld [vmem:[%s14345_s26 + $0x78] sm:$0xff]  ;;  %11144 = vmatpush1.bf16.msra.mxu0 %v11143_v46 }
  0x1a   : > { %600 = vst.msk [vmem:[#allocation2 + $0x188] sm:$0xff] %vm549_vm1, %v14016_v7  ;;  %602 = vst.msk [vmem:[#allocation2 + $0x198] sm:$0xff] %vm549_vm1, %v14016_v7  ;;  %v679_v24 = vld [vmem:[%s14345_s26 + $0x80] sm:$0xff]  ;;  %v680_v25 = vld [vmem:[%s14345_s26 + $0x88] sm:$0xff]  ;;  %11145 = vmatprep.subr.bf16.mxu0 %v14017_v42  ;;  %13127 = vmatprep.subr.bf16.mxu1 %v14017_v42 }
  0x1b   : > { %603 = vst.msk [vmem:[#allocation2 + $0x1a0] sm:$0xff] %vm549_vm1, %v14016_v7  ;;  %605 = vst.msk [vmem:[#allocation3] sm:$0xff] %vm549_vm1, %v14016_v7  ;;  %v681_v26 = vld [vmem:[%s14345_s26 + $0x90] sm:$0xff]  ;;  %v682_v27 = vld [vmem:[%s14345_s26 + $0x98] sm:$0xff] }
  0x1c   : > { %607 = vst.msk [vmem:[#allocation3 + $0x10] sm:$0xff] %vm549_vm1, %v14016_v7  ;;  %609 = vst.msk [vmem:[#allocation3 + $0x20] sm:$0xff] %vm549_vm1, %v14016_v7  ;;  %10572 = vmatmul.mubr.msk.f32.gmra.mrb[4].mxu0 %vm706_vm5, %v668_v13  ;;  %v683_v28 = vld [vmem:[%s14345_s26 + $0xa0] sm:$0xff]  ;;  %v684_v29 = vld [vmem:[%s14345_s26 + $0xa8] sm:$0xff]  ;;  %13143 = vmatpush1.bf16.msra.mxu1 %v11152_v55 }
  0x1d   : > { %611 = vst.msk [vmem:[#allocation3 + $0x30] sm:$0xff] %vm549_vm1, %v14016_v7  ;;  %613 = vst.msk [vmem:[#allocation3 + $0x40] sm:$0xff] %vm549_vm1, %v14016_v7  ;;  %10574 = vmatprep.mubr.msk.f32.mxu0 %vm706_vm5, %v669_v14  ;;  %v685_v30 = vld [vmem:[%s14345_s26 + $0xb0] sm:$0xff]  ;;  %v686_v31 = vld [vmem:[%s14345_s26 + $0xb8] sm:$0xff]  ;;  %11147 = vmatpush1.bf16.msra.mxu0 %v11146_v49 }
  0x1e   : > { %615 = vst.msk [vmem:[#allocation3 + $0x50] sm:$0xff] %vm549_vm1, %v14016_v7  ;;  %617 = vst.msk [vmem:[#allocation3 + $0x60] sm:$0xff] %vm549_vm1, %v14016_v7  ;;  %v687_v32 = vld [vmem:[%s14345_s26 + $0xc0] sm:$0xff]  ;;  %v688_v33 = vld [vmem:[%s14345_s26 + $0xc8] sm:$0xff]  ;;  %11148 = vmatprep.subr.bf16.mxu0 %v14017_v42  ;;  %13128 = vmatprep.subr.bf16.mxu1 %v14017_v42 }
  0x1f   : > { %619 = vst.msk [vmem:[#allocation3 + $0x70] sm:$0xff] %vm549_vm1, %v14016_v7  ;;  %621 = vst.msk [vmem:[#allocation3 + $0x80] sm:$0xff] %vm549_vm1, %v14016_v7  ;;  %v689_v34 = vld [vmem:[%s14345_s26 + $0xd0] sm:$0xff]  ;;  %v690_v35 = vld [vmem:[%s14345_s26 + $0xd8] sm:$0xff] }
  0x20   : > { %623 = vst.msk [vmem:[#allocation3 + $0x90] sm:$0xff] %vm549_vm1, %v14016_v7  ;;  %625 = vst [vmem:[#allocation4] sm:$0xff] %v14016_v7  ;;  %10575 = vmatmul.mubr.msk.f32.gmra.mrb[6].mxu0 %vm706_vm5, %v670_v15  ;;  %v691_v36 = vld [vmem:[%s14345_s26 + $0xe0] sm:$0xff]  ;;  %v692_v37 = vld [vmem:[%s14345_s26 + $0xe8] sm:$0xff]  ;;  %13144 = vmatpush1.bf16.msra.mxu1 %v11155_v58 }
  0x21   : > { %626 = vst [vmem:[#allocation4 + $0x8] sm:$0x3] %v14016_v7  ;;  %627 = vst [vmem:[#allocation4 + $0x10] sm:$0xff] %v14016_v7  ;;  %10577 = vmatprep.mubr.msk.f32.mxu0 %vm706_vm5, %v671_v16  ;;  %v693_v38 = vld [vmem:[%s14345_s26 + $0xf0] sm:$0xff]  ;;  %v694_v39 = vld [vmem:[%s14345_s26 + $0xf8] sm:$0xff]  ;;  %11150 = vmatpush1.bf16.msra.mxu0 %v11149_v52 }
  0x22   : > { %628 = vst [vmem:[#allocation4 + $0x18] sm:$0x3] %v14016_v7  ;;  %629 = vst [vmem:[#allocation4 + $0x20] sm:$0xff] %v14016_v7  ;;  %11151 = vmatprep.subr.bf16.mxu0 %v14017_v42  ;;  %13129 = vmatprep.subr.bf16.mxu1 %v14017_v42  ;;  %v2044_v4 = vld [vmem:[%s21409_s5 + $0x90] sm:$0xff]  ;;  %v2045_v5 = vld [vmem:[%s21409_s5 + $0x98] sm:$0xff] }
  0x23   : > { %630 = vst [vmem:[#allocation4 + $0x28] sm:$0x3] %v14016_v7  ;;  %631 = vst [vmem:[#allocation4 + $0x30] sm:$0xff] %v14016_v7  ;;  %v11167_v6 = vpack.c.bf16 %v2045_v5, %v2044_v4  ;;  %v2047_v8 = vld [vmem:[%s21409_s5 + $0xa8] sm:$0xff]  ;;  %v2048_v10 = vld [vmem:[%s21409_s5 + $0xb0] sm:$0xff] }
  0x24   : > { %632 = vst [vmem:[#allocation4 + $0x38] sm:$0x3] %v14016_v7  ;;  %633 = vst [vmem:[#allocation4 + $0x40] sm:$0xff] %v14016_v7  ;;  %10578 = vmatmul.mubr.msk.f32.gmra.mrb[8].mxu0 %vm706_vm5, %v672_v17  ;;  %13145 = vmatpush1.bf16.msra.mxu1 %v11158_v61  ;;  %v2049_v11 = vld [vmem:[%s21409_s5 + $0xb8] sm:$0xff]  ;;  %v2050_v13 = vld [vmem:[%s21409_s5 + $0xc0] sm:$0xff] }
  0x25   : > { %634 = vst [vmem:[#allocation4 + $0x48] sm:$0x3] %v14016_v7  ;;  %635 = vst [vmem:[#allocation4 + $0x50] sm:$0xff] %v14016_v7  ;;  %10580 = vmatprep.mubr.msk.f32.mxu0 %vm706_vm5, %v673_v18  ;;  %11153 = vmatpush1.bf16.msra.mxu0 %v11152_v55  ;;  %v11173_v12 = vpack.c.bf16 %v2049_v11, %v2048_v10  ;;  %v2051_v14 = vld [vmem:[%s21409_s5 + $0xc8] sm:$0xff]  ;;  %v14521_v16 = vld [vmem:[%s21408_s4] ss:$0 sm:$0xff] }
  0x26   : > { %636 = vst [vmem:[#allocation4 + $0x58] sm:$0x3] %v14016_v7  ;;  %637 = vst [vmem:[#allocation4 + $0x60] sm:$0xff] %v14016_v7  ;;  %11154 = vmatprep.subr.bf16.mxu0 %v14017_v42  ;;  %13130 = vmatprep.subr.bf16.mxu1 %v14017_v42  ;;  %v11176_v15 = vpack.c.bf16 %v2051_v14, %v2050_v13  ;;  %v2052_v18 = vld [vmem:[%s21409_s5 + $0xd0] sm:$0xff]  ;;  %v2057_v40 = vld [vmem:[%s21409_s5 + $0xf8] sm:$0xff] }
  0x27   : > { %638 = vst [vmem:[#allocation4 + $0x68] sm:$0x3] %v14016_v7  ;;  %639 = vst [vmem:[#allocation4 + $0x70] sm:$0xff] %v14016_v7 }
  0x28   : > { %640 = vst [vmem:[#allocation4 + $0x78] sm:$0x3] %v14016_v7  ;;  %641 = vst [vmem:[#allocation4 + $0x80] sm:$0xff] %v14016_v7  ;;  %10581 = vmatmul.mubr.msk.f32.gmra.mrb[10].mxu0 %vm706_vm5, %v674_v19  ;;  %13146 = vmatpush1.bf16.msra.mxu1 %v11161_v0  ;;  %v2053_v19 = vld [vmem:[%s21409_s5 + $0xd8] sm:$0xff] }
  0x29   : > { %642 = vst [vmem:[#allocation4 + $0x88] sm:$0x3] %v14016_v7  ;;  %643 = vst [vmem:[#allocation4 + $0x90] sm:$0xff] %v14016_v7  ;;  %10583 = vmatprep.mubr.msk.f32.mxu0 %vm706_vm5, %v675_v20  ;;  %11156 = vmatpush1.bf16.msra.mxu0 %v11155_v58 }
  0x2a   : > { %644 = vst [vmem:[#allocation4 + $0x98] sm:$0x3] %v14016_v7  ;;  %645 = vst [vmem:[#allocation5] sm:$0x3f] %v14016_v7  ;;  %11157 = vmatprep.subr.bf16.mxu0 %v14017_v42  ;;  %13131 = vmatprep.subr.bf16.mxu1 %v14017_v42 }
  0x2b   : > { %646 = vst [vmem:[#allocation5 + $0x8] sm:$0x3f] %v14016_v7  ;;  %647 = vst [vmem:[#allocation5 + $0x10] sm:$0x3f] %v14016_v7 }
  0x2c   : > { %648 = vst [vmem:[#allocation5 + $0x18] sm:$0x3f] %v14016_v7  ;;  %649 = vst [vmem:[#allocation5 + $0x20] sm:$0x3f] %v14016_v7  ;;  %10584 = vmatmul.mubr.msk.f32.gmra.mrb[12].mxu0 %vm706_vm5, %v676_v21  ;;  %13147 = vmatpush1.bf16.msra.mxu1 %v11164_v3 }
  0x2d   : > { %650 = vst [vmem:[#allocation5 + $0x28] sm:$0x3f] %v14016_v7  ;;  %651 = vst [vmem:[#allocation6] sm:$0x3f] %v14016_v7  ;;  %10586 = vmatprep.mubr.msk.f32.mxu0 %vm706_vm5, %v677_v22  ;;  %11159 = vmatpush1.bf16.msra.mxu0 %v11158_v61  ;;  %v11179_v22 = vpack.c.bf16 %v2053_v19, %v2052_v18 }
  0x2e   : > { %652 = vst [vmem:[#allocation6 + $0x8] sm:$0x3f] %v14016_v7  ;;  %653 = vst [vmem:[#allocation6 + $0x10] sm:$0x3f] %v14016_v7  ;;  %11160 = vmatprep.subr.bf16.mxu0 %v14017_v42  ;;  %13132 = vmatprep.subr.bf16.mxu1 %v14017_v42 }
  0x2f   : > { %654 = vst [vmem:[#allocation6 + $0x18] sm:$0x3f] %v14016_v7  ;;  %655 = vst [vmem:[#allocation6 + $0x20] sm:$0x3f] %v14016_v7 }
  0x30   : > { %656 = vst [vmem:[#allocation6 + $0x28] sm:$0x3f] %v14016_v7  ;;  %657 = vst [vmem:[#allocation6 + $0x30] sm:$0x3f] %v14016_v7  ;;  %10587 = vmatmul.mubr.msk.f32.gmra.mrb[14].mxu0 %vm706_vm5, %v678_v23  ;;  %13148 = vmatpush1.bf16.msra.mxu1 %v11167_v6 }
  0x31   : > { %658 = vst [vmem:[#allocation6 + $0x38] sm:$0x3f] %v14016_v7  ;;  %659 = vst [vmem:[#allocation6 + $0x40] sm:$0x3f] %v14016_v7  ;;  %10589 = vmatprep.mubr.msk.f32.mxu0 %vm706_vm5, %v679_v24  ;;  %11162 = vmatpush1.bf16.msra.mxu0 %v11161_v0 }
  0x32   : > { %660 = vst [vmem:[#allocation6 + $0x48] sm:$0x3f] %v14016_v7  ;;  %661 = vst [vmem:[#allocation6 + $0x50] sm:$0x3f] %v14016_v7  ;;  %11163 = vmatprep.subr.bf16.mxu0 %v14017_v42  ;;  %13133 = vmatprep.subr.bf16.mxu1 %v14017_v42 }
  0x33   : > { %662 = vst [vmem:[#allocation6 + $0x58] sm:$0x3f] %v14016_v7  ;;  %556 = vst.msk [vmem:[#allocation2 + $0x28] sm:$0x3] %vm552_vm4, %v14016_v7 }
  0x34   : > { %553 = vst.msk [vmem:[#allocation2 + $0x10] sm:$0x3] %vm552_vm4, %v14016_v7  ;;  %559 = vst.msk [vmem:[#allocation2 + $0x40] sm:$0x3] %vm552_vm4, %v14016_v7  ;;  %10590 = vmatmul.mubr.msk.f32.gmra.mrb[16].mxu0 %vm706_vm5, %v680_v25 }
  0x35   : > { %562 = vst.msk [vmem:[#allocation2 + $0x58] sm:$0x3] %vm552_vm4, %v14016_v7  ;;  %565 = vst.msk [vmem:[#allocation2 + $0x70] sm:$0x3] %vm552_vm4, %v14016_v7  ;;  %10592 = vmatprep.mubr.msk.f32.mxu0 %vm706_vm5, %v681_v26  ;;  %11165 = vmatpush1.bf16.msra.mxu0 %v11164_v3 }
  0x36   : > { %568 = vst.msk [vmem:[#allocation2 + $0x88] sm:$0x3] %vm552_vm4, %v14016_v7  ;;  %571 = vst.msk [vmem:[#allocation2 + $0xa0] sm:$0x3] %vm552_vm4, %v14016_v7  ;;  %11166 = vmatprep.subr.bf16.mxu0 %v14017_v42 }
  0x37   : > { %574 = vst.msk [vmem:[#allocation2 + $0xb8] sm:$0x3] %vm552_vm4, %v14016_v7  ;;  %577 = vst.msk [vmem:[#allocation2 + $0xd0] sm:$0x3] %vm552_vm4, %v14016_v7 }
  0x38   : > { %580 = vst.msk [vmem:[#allocation2 + $0xe8] sm:$0x3] %vm552_vm4, %v14016_v7  ;;  %583 = vst.msk [vmem:[#allocation2 + $0x100] sm:$0x3] %vm552_vm4, %v14016_v7  ;;  %10593 = vmatmul.mubr.msk.f32.gmra.mrb[18].mxu0 %vm706_vm5, %v682_v27  ;;  %v2054_v27 = vld [vmem:[%s21409_s5 + $0xe0] sm:$0xff] }
  0x39   : > { %586 = vst.msk [vmem:[#allocation2 + $0x118] sm:$0x3] %vm552_vm4, %v14016_v7  ;;  %589 = vst.msk [vmem:[#allocation2 + $0x130] sm:$0x3] %vm552_vm4, %v14016_v7  ;;  %10595 = vmatprep.mubr.msk.f32.mxu0 %vm706_vm5, %v683_v28  ;;  %11168 = vmatpush1.bf16.msra.mxu0 %v11167_v6  ;;  %v2055_v28 = vld [vmem:[%s21409_s5 + $0xe8] sm:$0xff] }
  0x3a   : > { %592 = vst.msk [vmem:[#allocation2 + $0x148] sm:$0x3] %vm552_vm4, %v14016_v7  ;;  %595 = vst.msk [vmem:[#allocation2 + $0x160] sm:$0x3] %vm552_vm4, %v14016_v7  ;;  %11169 = vmatprep.subr.bf16.mxu0 %v14017_v42 }
  0x3b   : > { %598 = vst.msk [vmem:[#allocation2 + $0x178] sm:$0x3] %vm552_vm4, %v14016_v7  ;;  %601 = vst.msk [vmem:[#allocation2 + $0x190] sm:$0x3] %vm552_vm4, %v14016_v7 }
  0x3c   : > { %604 = vst.msk [vmem:[#allocation2 + $0x1a8] sm:$0x3] %vm552_vm4, %v14016_v7  ;;  %606 = vst.msk [vmem:[#allocation3 + $0x8] sm:$0x3] %vm552_vm4, %v14016_v7  ;;  %10596 = vmatmul.mubr.msk.f32.gmra.mrb[20].mxu0 %vm706_vm5, %v684_v29 }
  0x3d   : > { %608 = vst.msk [vmem:[#allocation3 + $0x18] sm:$0x3] %vm552_vm4, %v14016_v7  ;;  %610 = vst.msk [vmem:[#allocation3 + $0x28] sm:$0x3] %vm552_vm4, %v14016_v7  ;;  %10598 = vmatprep.mubr.msk.f32.mxu0 %vm706_vm5, %v685_v30 }
  0x3e   : > { %612 = vst.msk [vmem:[#allocation3 + $0x38] sm:$0x3] %vm552_vm4, %v14016_v7  ;;  %614 = vst.msk [vmem:[#allocation3 + $0x48] sm:$0x3] %vm552_vm4, %v14016_v7 }
  0x3f   : > { %616 = vst.msk [vmem:[#allocation3 + $0x58] sm:$0x3] %vm552_vm4, %v14016_v7  ;;  %618 = vst.msk [vmem:[#allocation3 + $0x68] sm:$0x3] %vm552_vm4, %v14016_v7 }
  0x40   : > { %620 = vst.msk [vmem:[#allocation3 + $0x78] sm:$0x3] %vm552_vm4, %v14016_v7  ;;  %622 = vst.msk [vmem:[#allocation3 + $0x88] sm:$0x3] %vm552_vm4, %v14016_v7  ;;  %10599 = vmatmul.mubr.msk.f32.gmra.mrb[22].mxu0 %vm706_vm5, %v686_v31  ;;  %v11182_v31 = vpack.c.bf16 %v2055_v28, %v2054_v27 }
  0x41   : > { %624 = vst.msk [vmem:[#allocation3 + $0x98] sm:$0x3] %vm552_vm4, %v14016_v7  ;;  %10601 = vmatprep.mubr.msk.f32.mxu0 %vm706_vm5, %v687_v32  ;;  %v2046_v7 = vld [vmem:[%s21409_s5 + $0xa0] sm:$0xff]  ;;  %vm17945_vm7 = vmor %vm803_vm0, %vm6576_vm6 }
  0x42   : > { %v11170_v9 = vpack.c.bf16 %v2047_v8, %v2046_v7  ;;  %vm18161_vm10 = vmor %vm6852_vm8, %vm6853_vm9 }
  0x44   : > { %10602 = vmatmul.mubr.msk.f32.gmra.mrb[24].mxu0 %vm706_vm5, %v688_v33  ;;  %13149 = vmatpush1.bf16.msra.mxu1 %v11170_v9 }
  0x45   : > { %10604 = vmatprep.mubr.msk.f32.mxu0 %vm706_vm5, %v689_v34  ;;  %11171 = vmatpush1.bf16.msra.mxu0 %v11170_v9 }
  0x46   : > { %13134 = vmatprep.subr.bf16.mxu1 %v14017_v42  ;;  %11172 = vmatprep.subr.bf16.mxu0 %v14017_v42 }
  0x48   : > { %10605 = vmatmul.mubr.msk.f32.gmra.mrb[26].mxu0 %vm706_vm5, %v690_v35  ;;  %13150 = vmatpush1.bf16.msra.mxu1 %v11173_v12 }
  0x49   : > { %10607 = vmatprep.mubr.msk.f32.mxu0 %vm706_vm5, %v691_v36  ;;  %11174 = vmatpush1.bf16.msra.mxu0 %v11173_v12 }
  0x4a   : > { %13135 = vmatprep.subr.bf16.mxu1 %v14017_v42  ;;  %11175 = vmatprep.subr.bf16.mxu0 %v14017_v42 }
  0x4c   : > { %10608 = vmatmul.mubr.msk.f32.gmra.mrb[28].mxu0 %vm706_vm5, %v692_v37  ;;  %13151 = vmatpush1.bf16.msra.mxu1 %v11176_v15 }
  0x4d   : > { %10610 = vmatprep.mubr.msk.f32.mxu0 %vm706_vm5, %v693_v38  ;;  %11177 = vmatpush1.bf16.msra.mxu0 %v11176_v15 }
  0x4e   : > { %13136 = vmatprep.subr.bf16.mxu1 %v14017_v42  ;;  %11178 = vmatprep.subr.bf16.mxu0 %v14017_v42 }
  0x50   : > { %10611 = vmatmul.mubr.msk.f32.gmra.mrb[30].mxu0 %vm706_vm5, %v694_v39  ;;  %13152 = vmatpush1.bf16.msra.mxu1 %v11179_v22  ;;  %v2056_v39 = vld [vmem:[%s21409_s5 + $0xf0] sm:$0xff] }
  0x51   : > { %11180 = vmatpush1.bf16.msra.mxu0 %v11179_v22  ;;  %13137 = vmatprep.subr.bf16.mxu1 %v14017_v42  ;;  %v11185_v43 = vpack.c.bf16 %v2057_v40, %v2056_v39 }
  0x52   : > { %11181 = vmatprep.subr.bf16.mxu0 %v14017_v42 }
  0x54   : > { %13153 = vmatpush1.bf16.msra.mxu1 %v11182_v31 }
  0x55   : > { %11183 = vmatpush1.bf16.msra.mxu0 %v11182_v31  ;;  %13138 = vmatprep.subr.bf16.mxu1 %v14017_v42 }
  0x56   : > { %11184 = vmatprep.subr.bf16.mxu0 %v14017_v42 }
  0x58   : > { %13154 = vmatpush1.bf16.msra.mxu1 %v11185_v43 }
  0x59   : > { %11186 = vmatpush1.bf16.msra.mxu0 %v11185_v43  ;;  %11187 = vmatprep.subr.bf16.mxu1 %v14017_v42 }
  0xe7   : > { %v10567_v17 = vpop.f32.mrb[0].mxu0 }
  0xe8   : > { %v879_v20 = vadd.f32 %v10567_v17, %v14521_v16  ;;  %v873_v21 = vpop.f32.mrb[1].mxu0 }
  0xe9   : > { %v874_v23 = vadd.f32 %v14521_v16, %v873_v21 }
  0xea   : > { %v1033_v24 = vmax.f32 %v879_v20, 0.0 }
  0xeb   : > { %v1032_v25 = vmax.f32 %v874_v23, 0.0  ;;  %v10570_v26 = vpop.f32.mrb[2].mxu0 }
  0xec   : > { %1066 = vst.msk [vmem:[#allocation2 + $0x21] sm:$0xff] %vm549_vm1, %v1033_v24  ;;  %v889_v29 = vadd.f32 %v10570_v26, %v14521_v16  ;;  %v883_v30 = vpop.f32.mrb[3].mxu0 }
  0xed   : > { %1065 = vst.msk [vmem:[#allocation2 + $0x19] sm:$0xff] %vm549_vm1, %v1032_v25  ;;  %v884_v32 = vadd.f32 %v14521_v16, %v883_v30 }
  0xee   : > { %v1035_v33 = vmax.f32 %v889_v29, 0.0 }
  0xef   : > { %v1034_v34 = vmax.f32 %v884_v32, 0.0  ;;  %v10573_v35 = vpop.f32.mrb[4].mxu0 }
  0xf0   : > { %1068 = vst.msk [vmem:[#allocation2 + $0x39] sm:$0xff] %vm549_vm1, %v1035_v33  ;;  %v899_v36 = vadd.f32 %v10573_v35, %v14521_v16  ;;  %v893_v37 = vpop.f32.mrb[5].mxu0 }
  0xf1   : > { %1067 = vst.msk [vmem:[#allocation2 + $0x31] sm:$0xff] %vm549_vm1, %v1034_v34  ;;  %v894_v38 = vadd.f32 %v14521_v16, %v893_v37 }
  0xf2   : > { %v1037_v41 = vmax.f32 %v899_v36, 0.0 }
  0xf3   : > { %v1036_v44 = vmax.f32 %v894_v38, 0.0  ;;  %v10576_v45 = vpop.f32.mrb[6].mxu0 }
  0xf4   : > { %1070 = vst.msk [vmem:[#allocation2 + $0x51] sm:$0xff] %vm549_vm1, %v1037_v41  ;;  %v909_v46 = vadd.f32 %v10576_v45, %v14521_v16  ;;  %v903_v47 = vpop.f32.mrb[7].mxu0 }
  0xf5   : > { %1069 = vst.msk [vmem:[#allocation2 + $0x49] sm:$0xff] %vm549_vm1, %v1036_v44  ;;  %v904_v48 = vadd.f32 %v14521_v16, %v903_v47 }
  0xf6   : > { %v1039_v49 = vmax.f32 %v909_v46, 0.0 }
  0xf7   : > { %v1038_v50 = vmax.f32 %v904_v48, 0.0  ;;  %v10579_v51 = vpop.f32.mrb[8].mxu0  ;;  %v14568_v60 = vld [vmem:[#allocation2 + $0x39] sm:$0xff] }
  0xf8   : > { %1072 = vst.msk [vmem:[#allocation2 + $0x69] sm:$0xff] %vm549_vm1, %v1039_v49  ;;  %v919_v52 = vadd.f32 %v10579_v51, %v14521_v16  ;;  %v913_v53 = vpop.f32.mrb[9].mxu0 }
  0xf9   : > { %1071 = vst.msk [vmem:[#allocation2 + $0x61] sm:$0xff] %vm549_vm1, %v1038_v50  ;;  %v914_v54 = vadd.f32 %v14521_v16, %v913_v53 }
  0xfa   : > { %v1041_v55 = vmax.f32 %v919_v52, 0.0 }
  0xfb   : > { %v1040_v56 = vmax.f32 %v914_v54, 0.0  ;;  %v10582_v57 = vpop.f32.mrb[10].mxu0  ;;  %v14577_v3 = vld [vmem:[#allocation2 + $0x51] sm:$0xff] }
  0xfc   : > { %1074 = vst.msk [vmem:[#allocation2 + $0x81] sm:$0xff] %vm549_vm1, %v1041_v55  ;;  %v929_v58 = vadd.f32 %v10582_v57, %v14521_v16  ;;  %v923_v59 = vpop.f32.mrb[11].mxu0  ;;  %v14570_v61 = vld [vmem:[#allocation2 + $0x50] sm:$0xff] }
  0xfd   : > { %1073 = vst.msk [vmem:[#allocation2 + $0x79] sm:$0xff] %vm549_vm1, %v1040_v56  ;;  %v924_v62 = vadd.f32 %v14521_v16, %v923_v59  ;;  %v13418_v63 = vpack.i.bf16 %v14568_v60, %v14570_v61  ;;  %v14583_v7 = vld [vmem:[#allocation2 + $0x49] sm:$0xff] }
  0xfe   : > { %v1043_v0 = vmax.f32 %v929_v58, 0.0 }
  0xff   : > { %v1042_v1 = vmax.f32 %v924_v62, 0.0  ;;  %v10585_v2 = vpop.f32.mrb[12].mxu0  ;;  %13419 = vrot.lane.b32.xlu0 %v13418_v63, %s14018_s28  ;;  %v14595_v15 = vld [vmem:[#allocation2 + $0x69] sm:$0xff] }
 0x100   : > { %1076 = vst.msk [vmem:[#allocation2 + $0x99] sm:$0xff] %vm549_vm1, %v1043_v0  ;;  %v939_v4 = vadd.f32 %v10585_v2, %v14521_v16  ;;  %v933_v5 = vpop.f32.mrb[13].mxu0  ;;  %v14581_v6 = vld [vmem:[#allocation2 + $0x68] sm:$0xff]  ;;  %v14585_v8 = vld [vmem:[#allocation2 + $0x60] sm:$0xff] }
 0x101   : > { %1075 = vst.msk [vmem:[#allocation2 + $0x91] sm:$0xff] %vm549_vm1, %v1042_v1  ;;  %v934_v9 = vadd.f32 %v14521_v16, %v933_v5  ;;  %v13428_v10 = vpack.i.bf16 %v14577_v3, %v14581_v6  ;;  %v13423_v11 = vpack.i.bf16 %v14583_v7, %v14585_v8  ;;  %v14599_v19 = vld [vmem:[#allocation2 + $0x61] sm:$0xff] }
 0x102   : > { %v1045_v12 = vmax.f32 %v939_v4, 0.0 }
 0x103   : > { %v1044_v13 = vmax.f32 %v934_v9, 0.0  ;;  %v10588_v14 = vpop.f32.mrb[14].mxu0  ;;  %13429 = vrot.lane.b32.xlu1 %v13428_v10, %s14018_s28  ;;  %13424 = vrot.lane.b32.xlu0 %v13423_v11, %s14018_s28  ;;  %v14613_v28 = vld [vmem:[#allocation2 + $0x81] sm:$0xff] }
 0x104   : > { %1078 = vst.msk [vmem:[#allocation2 + $0xb1] sm:$0xff] %vm549_vm1, %v1045_v12  ;;  %v949_v17 = vadd.f32 %v10588_v14, %v14521_v16  ;;  %v943_v18 = vpop.f32.mrb[15].mxu0  ;;  %v14601_v20 = vld [vmem:[#allocation2 + $0x78] sm:$0xff]  ;;  %v14603_v21 = vld [vmem:[#allocation2 + $0x80] sm:$0xff] }
 0x105   : > { %1077 = vst.msk [vmem:[#allocation2 + $0xa9] sm:$0xff] %vm549_vm1, %v1044_v13  ;;  %v944_v22 = vadd.f32 %v14521_v16, %v943_v18  ;;  %v13433_v23 = vpack.i.bf16 %v14599_v19, %v14601_v20  ;;  %v13438_v24 = vpack.i.bf16 %v14595_v15, %v14603_v21  ;;  %v14617_v31 = vld [vmem:[#allocation2 + $0x79] sm:$0xff] }
 0x106   : > { %v1047_v25 = vmax.f32 %v949_v17, 0.0 }
 0x107   : > { %v1046_v26 = vmax.f32 %v944_v22, 0.0  ;;  %v10591_v27 = vpop.f32.mrb[16].mxu0  ;;  %13434 = vrot.lane.b32.xlu1 %v13433_v23, %s14018_s28  ;;  %13439 = vrot.lane.b32.xlu0 %v13438_v24, %s14018_s28  ;;  %v14631_v40 = vld [vmem:[#allocation2 + $0x99] sm:$0xff] }
 0x108   : > { %1080 = vst.msk [vmem:[#allocation2 + $0xc9] sm:$0xff] %vm549_vm1, %v1047_v25  ;;  %v959_v29 = vadd.f32 %v10591_v27, %v14521_v16  ;;  %v953_v30 = vpop.f32.mrb[17].mxu0  ;;  %v14619_v32 = vld [vmem:[#allocation2 + $0x90] sm:$0xff]  ;;  %v14621_v33 = vld [vmem:[#allocation2 + $0x98] sm:$0xff] }
 0x109   : > { %1079 = vst.msk [vmem:[#allocation2 + $0xc1] sm:$0xff] %vm549_vm1, %v1046_v26  ;;  %v954_v34 = vadd.f32 %v14521_v16, %v953_v30  ;;  %v13443_v35 = vpack.i.bf16 %v14617_v31, %v14619_v32  ;;  %v13448_v36 = vpack.i.bf16 %v14613_v28, %v14621_v33  ;;  %v14635_v44 = vld [vmem:[#allocation2 + $0x91] sm:$0xff] }
 0x10a   : > { %v1049_v37 = vmax.f32 %v959_v29, 0.0 }
 0x10b   : > { %v1048_v38 = vmax.f32 %v954_v34, 0.0  ;;  %v10594_v39 = vpop.f32.mrb[18].mxu0  ;;  %13444 = vrot.lane.b32.xlu1 %v13443_v35, %s14018_s28  ;;  %13449 = vrot.lane.b32.xlu0 %v13448_v36, %s14018_s28  ;;  %v14647_v57 = vld [vmem:[#allocation2 + $0xb1] sm:$0xff] }
 0x10c   : > { %1082 = vst.msk [vmem:[#allocation2 + $0xe1] sm:$0xff] %vm549_vm1, %v1049_v37  ;;  %v969_v41 = vadd.f32 %v10594_v39, %v14521_v16  ;;  %v963_v43 = vpop.f32.mrb[19].mxu0  ;;  %v1205_v45 = vld [vmem:[#allocation2 + $0xa8] sm:$0xff]  ;;  %v1206_v46 = vld [vmem:[#allocation2 + $0xb0] sm:$0xff] }
 0x10d   : > { %1081 = vst.msk [vmem:[#allocation2 + $0xd9] sm:$0xff] %vm549_vm1, %v1048_v38  ;;  %v964_v47 = vadd.f32 %v14521_v16, %v963_v43  ;;  %v13453_v48 = vpack.i.bf16 %v14635_v44, %v1205_v45  ;;  %v13458_v49 = vpack.i.bf16 %v14631_v40, %v1206_v46  ;;  %v14641_v51 = vld [vmem:[#allocation2 + $0xa9] sm:$0xff] }
 0x10e   : > { %v1051_v50 = vmax.f32 %v969_v41, 0.0 }
 0x10f   : > { %v1050_v52 = vmax.f32 %v964_v47, 0.0  ;;  %v10597_v53 = vpop.f32.mrb[20].mxu0  ;;  %13454 = vrot.lane.b32.xlu1 %v13453_v48, %s14018_s28  ;;  %13459 = vrot.lane.b32.xlu0 %v13458_v49, %s14018_s28  ;;  %v14655_v4 = vld [vmem:[#allocation2 + $0xc9] sm:$0xff] }
 0x110   : > { %1084 = vst.msk [vmem:[#allocation2 + $0xf9] sm:$0xff] %vm549_vm1, %v1051_v50  ;;  %v979_v54 = vadd.f32 %v10597_v53, %v14521_v16  ;;  %v973_v55 = vpop.f32.mrb[21].mxu0  ;;  %v1207_v56 = vld [vmem:[#allocation2 + $0xc0] sm:$0xff]  ;;  %v1208_v58 = vld [vmem:[#allocation2 + $0xc8] sm:$0xff] }
 0x111   : > { %1083 = vst.msk [vmem:[#allocation2 + $0xf1] sm:$0xff] %vm549_vm1, %v1050_v52  ;;  %v974_v59 = vadd.f32 %v14521_v16, %v973_v55  ;;  %v13463_v62 = vpack.i.bf16 %v14641_v51, %v1207_v56  ;;  %v13468_v63 = vpack.i.bf16 %v14647_v57, %v1208_v58  ;;  %v14659_v10 = vld [vmem:[#allocation2 + $0xc1] sm:$0xff] }
 0x112   : > { %v1053_v0 = vmax.f32 %v979_v54, 0.0 }
 0x113   : > { %v1052_v1 = vmax.f32 %v974_v59, 0.0  ;;  %v10600_v2 = vpop.f32.mrb[22].mxu0  ;;  %13464 = vrot.lane.b32.xlu1 %v13463_v62, %s14018_s28  ;;  %13469 = vrot.lane.b32.xlu0 %v13468_v63, %s14018_s28  ;;  %v14667_v24 = vld [vmem:[#allocation2 + $0xe1] sm:$0xff] }
 0x114   : > { %1086 = vst.msk [vmem:[#allocation2 + $0x111] sm:$0xff] %vm549_vm1, %v1053_v0  ;;  %v989_v5 = vadd.f32 %v10600_v2, %v14521_v16  ;;  %v983_v9 = vpop.f32.mrb[23].mxu0  ;;  %v1209_v11 = vld [vmem:[#allocation2 + $0xd8] sm:$0xff]  ;;  %v1210_v12 = vld [vmem:[#allocation2 + $0xe0] sm:$0xff] }
 0x115   : > { %1085 = vst.msk [vmem:[#allocation2 + $0x109] sm:$0xff] %vm549_vm1, %v1052_v1  ;;  %v984_v13 = vadd.f32 %v14521_v16, %v983_v9  ;;  %v13473_v14 = vpack.i.bf16 %v14659_v10, %v1209_v11  ;;  %v13478_v17 = vpack.i.bf16 %v14655_v4, %v1210_v12  ;;  %v14671_v27 = vld [vmem:[#allocation2 + $0xd9] sm:$0xff] }
 0x116   : > { %v1055_v18 = vmax.f32 %v989_v5, 0.0 }
 0x117   : > { %v1054_v22 = vmax.f32 %v984_v13, 0.0  ;;  %v10603_v23 = vpop.f32.mrb[24].mxu0  ;;  %13474 = vrot.lane.b32.xlu1 %v13473_v14, %s14018_s28  ;;  %13479 = vrot.lane.b32.xlu0 %v13478_v17, %s14018_s28  ;;  %v14679_v39 = vld [vmem:[#allocation2 + $0xf9] sm:$0xff] }
 0x118   : > { %1088 = vst.msk [vmem:[#allocation2 + $0x129] sm:$0xff] %vm549_vm1, %v1055_v18  ;;  %v999_v25 = vadd.f32 %v10603_v23, %v14521_v16  ;;  %v993_v26 = vpop.f32.mrb[25].mxu0  ;;  %v1211_v29 = vld [vmem:[#allocation2 + $0xf0] sm:$0xff]  ;;  %v1212_v30 = vld [vmem:[#allocation2 + $0xf8] sm:$0xff] }
 0x119   : > { %1087 = vst.msk [vmem:[#allocation2 + $0x121] sm:$0xff] %vm549_vm1, %v1054_v22  ;;  %v994_v34 = vadd.f32 %v14521_v16, %v993_v26  ;;  %v13483_v35 = vpack.i.bf16 %v14671_v27, %v1211_v29  ;;  %v13488_v36 = vpack.i.bf16 %v14667_v24, %v1212_v30  ;;  %v14677_v38 = vld [vmem:[#allocation2 + $0xf1] sm:$0xff] }
 0x11a   : > { %v1057_v37 = vmax.f32 %v999_v25, 0.0 }
 0x11b   : > { %v1056_v41 = vmax.f32 %v994_v34, 0.0  ;;  %v10606_v43 = vpop.f32.mrb[26].mxu0  ;;  %13484 = vrot.lane.b32.xlu1 %v13483_v35, %s14018_s28  ;;  %13489 = vrot.lane.b32.xlu0 %v13488_v36, %s14018_s28  ;;  %v14691_v55 = vld [vmem:[#allocation2 + $0x111] sm:$0xff] }
 0x11c   : > { %1090 = vst.msk [vmem:[#allocation2 + $0x141] sm:$0xff] %vm549_vm1, %v1057_v37  ;;  %v1009_v45 = vadd.f32 %v10606_v43, %v14521_v16  ;;  %v1003_v46 = vpop.f32.mrb[27].mxu0  ;;  %v1213_v47 = vld [vmem:[#allocation2 + $0x108] sm:$0xff]  ;;  %v1214_v48 = vld [vmem:[#allocation2 + $0x110] sm:$0xff] }
 0x11d   : > { %1089 = vst.msk [vmem:[#allocation2 + $0x139] sm:$0xff] %vm549_vm1, %v1056_v41  ;;  %v1004_v49 = vadd.f32 %v14521_v16, %v1003_v46  ;;  %v13493_v50 = vpack.i.bf16 %v14677_v38, %v1213_v47  ;;  %v13498_v52 = vpack.i.bf16 %v14679_v39, %v1214_v48  ;;  %v14689_v54 = vld [vmem:[#allocation2 + $0x109] sm:$0xff] }
 0x11e   : > { %v1059_v53 = vmax.f32 %v1009_v45, 0.0 }
 0x11f   : > { %v1058_v56 = vmax.f32 %v1004_v49, 0.0  ;;  %v10609_v58 = vpop.f32.mrb[28].mxu0  ;;  %13494 = vrot.lane.b32.xlu1 %v13493_v50, %s14018_s28  ;;  %13499 = vrot.lane.b32.xlu0 %v13498_v52, %s14018_s28  ;;  %v14703_v12 = vld [vmem:[#allocation2 + $0x129] sm:$0xff] }
 0x120   : > { %1092 = vst.msk [vmem:[#allocation2 + $0x159] sm:$0xff] %vm549_vm1, %v1059_v53  ;;  %v1019_v59 = vadd.f32 %v10609_v58, %v14521_v16  ;;  %v1013_v62 = vpop.f32.mrb[29].mxu0  ;;  %v1215_v63 = vld [vmem:[#allocation2 + $0x120] sm:$0xff]  ;;  %v1216_v0 = vld [vmem:[#allocation2 + $0x128] sm:$0xff] }
 0x121   : > { %1091 = vst.msk [vmem:[#allocation2 + $0x151] sm:$0xff] %vm549_vm1, %v1058_v56  ;;  %v1014_v1 = vadd.f32 %v14521_v16, %v1013_v62  ;;  %v13503_v2 = vpack.i.bf16 %v14689_v54, %v1215_v63  ;;  %v13508_v5 = vpack.i.bf16 %v14691_v55, %v1216_v0  ;;  %v14701_v11 = vld [vmem:[#allocation2 + $0x121] sm:$0xff]  ;;  %v14739_v63 = vld [vmem:[#allocation2 + $0x31] sm:$0xff] }
 0x122   : > { %v1061_v9 = vmax.f32 %v1019_v59, 0.0  ;;  %v1258_v0 = vld [vmem:[#allocation2 + $0x22] sm:$0xff] }
 0x123   : > { %v1060_v13 = vmax.f32 %v1014_v1, 0.0  ;;  %v10612_v14 = vpop.f32.mrb[30].mxu0  ;;  %13504 = vrot.lane.b32.xlu1 %v13503_v2, %s14018_s28  ;;  %13509 = vrot.lane.b32.xlu0 %v13508_v5, %s14018_s28  ;;  %v14715_v35 = vld [vmem:[#allocation2 + $0x141] sm:$0xff]  ;;  %v13558_v2 = vpack.i.bf16 %v1258_v0, %v14568_v60  ;;  %v14756_v60 = vld [vmem:[#allocation2 + $0x4a] sm:$0xff] }
 0x124   : > { %1094 = vst.msk [vmem:[#allocation2 + $0x171] sm:$0xff] %vm549_vm1, %v1061_v9  ;;  %v1029_v17 = vadd.f32 %v10612_v14, %v14521_v16  ;;  %v1023_v18 = vpop.f32.mrb[31].mxu0  ;;  %v1217_v22 = vld [vmem:[#allocation2 + $0x138] sm:$0xff]  ;;  %v1218_v23 = vld [vmem:[#allocation2 + $0x140] sm:$0xff] }
 0x125   : > { %1093 = vst.msk [vmem:[#allocation2 + $0x169] sm:$0xff] %vm549_vm1, %v1060_v13  ;;  %v1024_v25 = vadd.f32 %v14521_v16, %v1023_v18  ;;  %v13513_v26 = vpack.i.bf16 %v14701_v11, %v1217_v22  ;;  %v13518_v29 = vpack.i.bf16 %v14703_v12, %v1218_v23  ;;  %v14713_v34 = vld [vmem:[#allocation2 + $0x139] sm:$0xff]  ;;  %v13573_v23 = vpack.i.bf16 %v14756_v60, %v14599_v19 }
 0x126   : > { %v1063_v30 = vmax.f32 %v1029_v17, 0.0  ;;  %v1257_v1 = vld [vmem:[#allocation2 + $0x1a] sm:$0xff]  ;;  %v1259_v13 = vld [vmem:[#allocation2 + $0x32] sm:$0xff] }
 0x127   : > { %v1062_v36 = vmax.f32 %v1024_v25, 0.0  ;;  %13514 = vrot.lane.b32.xlu1 %v13513_v26, %s14018_s28  ;;  %13519 = vrot.lane.b32.xlu0 %v13518_v29, %s14018_s28  ;;  %v14725_v46 = vld [vmem:[#allocation2 + $0x159] sm:$0xff]  ;;  %v13553_v5 = vpack.i.bf16 %v1257_v1, %v14739_v63  ;;  %v13563_v17 = vpack.i.bf16 %v1259_v13, %v14583_v7  ;;  %v14766_v7 = vld [vmem:[#allocation2 + $0x62] sm:$0xff] }
 0x128   : > { %1096 = vst.msk [vmem:[#allocation2 + $0x189] sm:$0xff] %vm549_vm1, %v1063_v30  ;;  %v1219_v37 = vld [vmem:[#allocation2 + $0x150] sm:$0xff]  ;;  %v1220_v41 = vld [vmem:[#allocation2 + $0x158] sm:$0xff]  ;;  %v13583_v26 = vpack.i.bf16 %v14766_v7, %v14617_v31  ;;  %v14772_v29 = vld [vmem:[#allocation2 + $0x82] sm:$0xff] }
 0x129   : > { %1095 = vst.msk [vmem:[#allocation2 + $0x181] sm:$0xff] %vm549_vm1, %v1062_v36  ;;  %v13523_v16 = vpack.i.bf16 %v14713_v34, %v1219_v37  ;;  %v13528_v43 = vpack.i.bf16 %v14715_v35, %v1220_v41  ;;  %v14723_v45 = vld [vmem:[#allocation2 + $0x151] sm:$0xff]  ;;  %v14747_v9 = vld [vmem:[#allocation2 + $0x3a] sm:$0xff]  ;;  %v13598_v19 = vpack.i.bf16 %v14772_v29, %v14631_v40  ;;  %v2091_v37 = vld [vmem:[%s21409_s5 + $0x208] sm:$0xff] }
 0x12a   : > { %v13568_v14 = vpack.i.bf16 %v14747_v9, %v14577_v3  ;;  %v14754_v18 = vld [vmem:[#allocation2 + $0x52] sm:$0xff]  ;;  %v14764_v3 = vld [vmem:[#allocation2 + $0x6a] sm:$0xff]  ;;  %v2090_v31 = vld [vmem:[%s21409_s5 + $0x200] sm:$0xff] }
 0x12b   : > { %13524 = vrot.lane.b32.xlu1 %v13523_v16, %s14018_s28  ;;  %13529 = vrot.lane.b32.xlu0 %v13528_v43, %s14018_s28  ;;  %v14733_v53 = vld [vmem:[#allocation2 + $0x171] sm:$0xff]  ;;  %v13578_v22 = vpack.i.bf16 %v14754_v18, %v14595_v15  ;;  %v13588_v25 = vpack.i.bf16 %v14764_v3, %v14613_v28  ;;  %v14774_v15 = vld [vmem:[#allocation2 + $0x7a] sm:$0xff]  ;;  %v14795_v41 = vpack.c.bf16 %v2091_v37, %v2090_v31  ;;  %v14855_v31 = vld [vmem:[#allocation2 + $0x122] sm:$0xff] }
 0x12c   : > { %v1221_v47 = vld [vmem:[#allocation2 + $0x168] sm:$0xff]  ;;  %v1222_v48 = vld [vmem:[#allocation2 + $0x170] sm:$0xff]  ;;  %v13593_v30 = vpack.i.bf16 %v14774_v15, %v14635_v44  ;;  %v1193_v28 = vld [vmem:[#allocation2 + $0x18] sm:$0xff] }
 0x12d   : > { %v13533_v49 = vpack.i.bf16 %v14723_v45, %v1221_v47  ;;  %v13538_v50 = vpack.i.bf16 %v14725_v46, %v1222_v48  ;;  %v14731_v52 = vld [vmem:[#allocation2 + $0x169] sm:$0xff]  ;;  %v14782_v36 = vld [vmem:[#allocation2 + $0x92] sm:$0xff]  ;;  %v13608_v44 = vpack.i.bf16 %v1193_v28, %v14647_v57  ;;  %v1129_v16 = vld [vmem:[#allocation2 + $0x1] sm:$0xff]  ;;  %11236 = vmatprep.subr.bf16.mxu0 %v14795_v41 }
 0x12e   : > { %v13603_v40 = vpack.i.bf16 %v14782_v36, %v14641_v51  ;;  %v14797_v43 = vld [vmem:[#allocation2 + $0x9a] sm:$0xff]  ;;  %v14804_v51 = vld [vmem:[#allocation2 + $0xaa] sm:$0xff] }
 0x12f   : > { %13534 = vrot.lane.b32.xlu1 %v13533_v49, %s14018_s28  ;;  %13539 = vrot.lane.b32.xlu0 %v13538_v50, %s14018_s28  ;;  %v1194_v47 = vld [vmem:[#allocation2 + $0x20] sm:$0xff]  ;;  %v13613_v48 = vpack.i.bf16 %v1129_v16, %v14797_v43  ;;  %v1130_v50 = vld [vmem:[#allocation2 + $0x9] sm:$0xff]  ;;  %v14875_v16 = vld [vmem:[#allocation2 + $0x152] sm:$0xff] }
 0x130   : > { %v1223_v56 = vld [vmem:[#allocation2 + $0x180] sm:$0xff]  ;;  %v1224_v58 = vld [vmem:[#allocation2 + $0x188] sm:$0xff]  ;;  %v13618_v49 = vpack.i.bf16 %v1194_v47, %v14659_v10  ;;  %v1195_v57 = vld [vmem:[#allocation2 + $0x30] sm:$0xff] }
 0x131   : > { %v13543_v59 = vpack.i.bf16 %v14731_v52, %v1223_v56  ;;  %v13548_v62 = vpack.i.bf16 %v14733_v53, %v1224_v58  ;;  %v13623_v56 = vpack.i.bf16 %v1130_v50, %v14804_v51  ;;  %v13628_v58 = vpack.i.bf16 %v1195_v57, %v14655_v4  ;;  %v1131_v10 = vld [vmem:[#allocation2 + $0x19] sm:$0xff]  ;;  %v1132_v4 = vld [vmem:[#allocation2 + $0x21] sm:$0xff]  ;;  %v14891_v57 = vld [vmem:[#allocation2 + $0x16a] sm:$0xff] }
 0x132   : > { %v2059_v47 = vld [vmem:[%s21409_s5 + $0x108] sm:$0xff] }
 0x133   : > { %13544 = vrot.lane.b32.xlu1 %v13543_v59, %s14018_s28  ;;  %13549 = vrot.lane.b32.xlu0 %v13548_v62, %s14018_s28  ;;  %v14810_v59 = vld [vmem:[#allocation2 + $0xb2] sm:$0xff] }
 0x134   : > { %v1196_v62 = vld [vmem:[#allocation2 + $0x38] sm:$0xff]  ;;  %v13633_v1 = vpack.i.bf16 %v1131_v10, %v14810_v59 }
 0x135   : > { %v13638_v0 = vpack.i.bf16 %v1196_v62, %v14671_v27  ;;  %v14895_v10 = vld [vmem:[#allocation2 + $0x15a] sm:$0xff] }
 0x137   : > { %13559 = vrot.lane.b32.xlu0 %v13558_v2, %s14018_s28  ;;  %13554 = vrot.lane.b32.xlu1 %v13553_v5, %s14018_s28  ;;  %v14816_v2 = vld [vmem:[#allocation2 + $0xc2] sm:$0xff] }
 0x138   : > { %v14820_v5 = vld [vmem:[#allocation2 + $0x48] sm:$0xff] }
 0x139   : > { %v13648_v13 = vpack.i.bf16 %v14820_v5, %v14667_v24 }
 0x13b   : > { %13569 = vrot.lane.b32.xlu0 %v13568_v14, %s14018_s28  ;;  %13564 = vrot.lane.b32.xlu1 %v13563_v17, %s14018_s28  ;;  %v13643_v14 = vpack.i.bf16 %v1132_v4, %v14816_v2  ;;  %v14825_v17 = vld [vmem:[#allocation2 + $0xda] sm:$0xff] }
 0x13c   : > { %v13658_v27 = vpack.i.bf16 %v14825_v17, %v14677_v38  ;;  %v14847_v38 = vld [vmem:[#allocation2 + $0xfa] sm:$0xff] }
 0x13d   : > { %v13673_v28 = vpack.i.bf16 %v14847_v38, %v14691_v55 }
 0x13f   : > { %13579 = vrot.lane.b32.xlu0 %v13578_v22, %s14018_s28  ;;  %13574 = vrot.lane.b32.xlu1 %v13573_v23, %s14018_s28  ;;  %v14827_v22 = vld [vmem:[#allocation2 + $0xca] sm:$0xff] }
 0x140   : > { %v13653_v23 = vpack.i.bf16 %v14739_v63, %v14827_v22 }
 0x143   : > { %13589 = vrot.lane.b32.xlu0 %v13588_v25, %s14018_s28  ;;  %13584 = vrot.lane.b32.xlu1 %v13583_v26, %s14018_s28  ;;  %v14835_v25 = vld [vmem:[#allocation2 + $0xf2] sm:$0xff]  ;;  %v14837_v26 = vld [vmem:[#allocation2 + $0xe2] sm:$0xff] }
 0x144   : > { %v13668_v24 = vpack.i.bf16 %v14835_v25, %v14689_v54  ;;  %v14857_v54 = vld [vmem:[#allocation2 + $0x112] sm:$0xff] }
 0x145   : > { %v13683_v37 = vpack.i.bf16 %v14857_v54, %v14703_v12  ;;  %v2058_v12 = vld [vmem:[%s21409_s5 + $0x100] sm:$0xff] }
 0x147   : > { %13599 = vrot.lane.b32.xlu0 %v13598_v19, %s14018_s28  ;;  %13594 = vrot.lane.b32.xlu1 %v13593_v30, %s14018_s28  ;;  %v13663_v19 = vpack.i.bf16 %v14837_v26, %v14679_v39  ;;  %v14845_v30 = vld [vmem:[#allocation2 + $0x10a] sm:$0xff]  ;;  %v13688_v39 = vpack.i.bf16 %v14855_v31, %v14713_v34  ;;  %v14877_v34 = vld [vmem:[#allocation2 + $0x142] sm:$0xff] }
 0x148   : > { %v13678_v63 = vpack.i.bf16 %v14845_v30, %v14701_v11  ;;  %v14867_v11 = vld [vmem:[#allocation2 + $0x12a] sm:$0xff] }
 0x14b   : > { %13604 = vrot.lane.b32.xlu1 %v13603_v40, %s14018_s28  ;;  %13609 = vrot.lane.b32.xlu0 %v13608_v44, %s14018_s28  ;;  %v14865_v40 = vld [vmem:[#allocation2 + $0x13a] sm:$0xff]  ;;  %v13693_v44 = vpack.i.bf16 %v14867_v11, %v14715_v35  ;;  %v13708_v35 = vpack.i.bf16 %v14875_v16, %v14731_v52 }
 0x14c   : > { %v13698_v55 = vpack.i.bf16 %v14865_v40, %v14723_v45 }
 0x14f   : > { %13614 = vrot.lane.b32.xlu1 %v13613_v48, %s14018_s28  ;;  %13619 = vrot.lane.b32.xlu0 %v13618_v49, %s14018_s28  ;;  %v13703_v48 = vpack.i.bf16 %v14877_v34, %v14725_v46 }
 0x153   : > { %13624 = vrot.lane.b32.xlu1 %v13623_v56, %s14018_s28  ;;  %13629 = vrot.lane.b32.xlu0 %v13628_v58, %s14018_s28  ;;  %v1350_v56 = vld [vmem:[#allocation2 + $0x181] sm:$0xff]  ;;  %v11188_v58 = vpack.c.bf16 %v2059_v47, %v2058_v12 }
 0x154   : > { %v13718_v4 = vpack.i.bf16 %v14891_v57, %v1350_v56 }
 0x157   : > { %13639 = vrot.lane.b32.xlu0 %v13638_v0, %s14018_s28  ;;  %13634 = vrot.lane.b32.xlu1 %v13633_v1, %s14018_s28 }
 0x15b   : > { %13649 = vrot.lane.b32.xlu0 %v13648_v13, %s14018_s28  ;;  %13644 = vrot.lane.b32.xlu1 %v13643_v14, %s14018_s28  ;;  %v2060_v13 = vld [vmem:[%s21409_s5 + $0x110] sm:$0xff]  ;;  %v2061_v14 = vld [vmem:[%s21409_s5 + $0x118] sm:$0xff] }
 0x15f   : > { %13659 = vrot.lane.b32.xlu0 %v13658_v27, %s14018_s28  ;;  %13654 = vrot.lane.b32.xlu1 %v13653_v23, %s14018_s28 }
 0x163   : > { %13669 = vrot.lane.b32.xlu0 %v13668_v24, %s14018_s28  ;;  %13664 = vrot.lane.b32.xlu1 %v13663_v19, %s14018_s28  ;;  %v1352_v19 = vld [vmem:[#allocation2 + $0x199] sm:$0xff] }
 0x167   : > { %13679 = vrot.lane.b32.xlu0 %v13678_v63, %s14018_s28  ;;  %13674 = vrot.lane.b32.xlu1 %v13673_v28, %s14018_s28  ;;  %v14910_v63 = vld [vmem:[#allocation2 + $0x172] sm:$0xff]  ;;  %v1351_v28 = vld [vmem:[#allocation2 + $0x189] sm:$0xff] }
 0x16b   : > { %13689 = vrot.lane.b32.xlu0 %v13688_v39, %s14018_s28  ;;  %13684 = vrot.lane.b32.xlu1 %v13683_v37, %s14018_s28 }
 0x16f   : > { %13699 = vrot.lane.b32.xlu0 %v13698_v55, %s14018_s28  ;;  %13694 = vrot.lane.b32.xlu1 %v13693_v44, %s14018_s28  ;;  %v11191_v55 = vpack.c.bf16 %v2061_v14, %v2060_v13 }
 0x171   : > { %v13420_v45 = vpop.permute.xlu0 %13419 }
 0x172   : > { %v13422_v49 = vunpack.i.h.bf16 %v13420_v45  ;;  %v13421_v50 = vunpack.i.l.bf16 %v13420_v45  ;;  %v2062_v45 = vld [vmem:[%s21409_s5 + $0x120] sm:$0xff] }
 0x173   : > { %13709 = vrot.lane.b32.xlu0 %v13708_v35, %s14018_s28  ;;  %13704 = vrot.lane.b32.xlu1 %v13703_v48, %s14018_s28  ;;  %v2063_v35 = vld [vmem:[%s21409_s5 + $0x128] sm:$0xff]  ;;  %v13723_v48 = vpack.i.bf16 %v14910_v63, %v1351_v28 }
 0x174   : > { %v1935_v0 = vsel %vm549_vm1, %v14747_v9, %v13421_v50  ;;  %v1903_v52 = vsel %vm549_vm1, %v1196_v62, %v13422_v49  ;;  %v13713_v9 = vpack.i.bf16 %v14895_v10, %v14733_v53  ;;  %v1287_v62 = vld [vmem:[#allocation2 + $0x182] sm:$0xff]  ;;  %v1288_v49 = vld [vmem:[#allocation2 + $0x18a] sm:$0xff]  ;;  %v11194_v56 = vpack.c.bf16 %v2063_v35, %v2062_v45 }
 0x175   : > { %v13430_v1 = vpop.permute.xlu1 %13429  ;;  %2290 = vmatprep.mubr.f32.mxu1 %v1935_v0  ;;  %v13425_v46 = vpop.permute.xlu0 %13424  ;;  %v13728_v47 = vpack.i.bf16 %v1287_v62, %v1352_v19  ;;  %v1353_v50 = vld [vmem:[#allocation2 + $0x1a1] sm:$0xff] }
 0x176   : > { %v13431_v27 = vunpack.i.l.bf16 %v13430_v1  ;;  %v13427_v23 = vunpack.i.h.bf16 %v13425_v46  ;;  %v13426_v24 = vunpack.i.l.bf16 %v13425_v46  ;;  %2291 = vmatmul.mubr.f32.vlgmr.msra.gmra.mrb[0].mxu1 %v1903_v52  ;;  %v13432_v53 = vunpack.i.h.bf16 %v13430_v1  ;;  %v2065_v46 = vld [vmem:[%s21409_s5 + $0x138] sm:$0xff]  ;;  %v2066_v62 = vld [vmem:[%s21409_s5 + $0x140] sm:$0xff] }
 0x177   : > { %11189 = vmatpush1.bf16.msra.mxu1 %v11188_v58  ;;  %13719 = vrot.lane.b32.xlu0 %v13718_v4, %s14018_s28  ;;  %v13733_v14 = vpack.i.bf16 %v1288_v49, %v1353_v50 }
 0x178   : > { %13714 = vrot.lane.b32.xlu1 %v13713_v9, %s14018_s28  ;;  %v1936_v39 = vsel %vm549_vm1, %v14756_v60, %v13426_v24  ;;  %v1904_v37 = vsel %vm549_vm1, %v14820_v5, %v13427_v23  ;;  %11190 = vmatprep.subr.bf16.mxu1 %v14017_v42  ;;  %v1937_v5 = vsel %vm549_vm1, %v14754_v18, %v13431_v27  ;;  %v2064_v18 = vld [vmem:[%s21409_s5 + $0x130] sm:$0xff] }
 0x179   : > { %v13435_v44 = vpop.permute.xlu1 %13434  ;;  %v13440_v12 = vpop.permute.xlu0 %13439  ;;  %2295 = vmatprep.mubr.f32.mxu1 %v1936_v39  ;;  %v1905_v1 = vsel %vm549_vm1, %v14570_v61, %v13432_v53  ;;  %v11197_v61 = vpack.c.bf16 %v2065_v46, %v2064_v18 }
 0x17a   : > { %v13436_v60 = vunpack.i.l.bf16 %v13435_v44  ;;  %2296 = vmatmul.mubr.f32.gmra.mrb[2].mxu1 %v1904_v37  ;;  %v13437_v58 = vunpack.i.h.bf16 %v13435_v44  ;;  %v13441_v4 = vunpack.i.l.bf16 %v13440_v12  ;;  %v13442_v27 = vunpack.i.h.bf16 %v13440_v12  ;;  %v2068_v44 = vld [vmem:[%s21409_s5 + $0x150] sm:$0xff] }
 0x17b   : > { %2300 = vmatprep.mubr.f32.mxu1 %v1937_v5  ;;  %13729 = vrot.lane.b32.xlu0 %v13728_v47, %s14018_s28 }
 0x17c   : > { %13724 = vrot.lane.b32.xlu1 %v13723_v48, %s14018_s28  ;;  %11192 = vmatpush1.bf16.msra.mxu1 %v11191_v55  ;;  %v1938_v13 = vsel %vm549_vm1, %v14766_v7, %v13436_v60  ;;  %v1906_v9 = vsel %vm549_vm1, %v14585_v8, %v13437_v58  ;;  %v2067_v7 = vld [vmem:[%s21409_s5 + $0x148] sm:$0xff]  ;;  %v1939_v28 = vsel %vm549_vm1, %v14764_v3, %v13441_v4  ;;  %v2069_v3 = vld [vmem:[%s21409_s5 + $0x158] sm:$0xff]  ;;  %v2070_v48 = vld [vmem:[%s21409_s5 + $0x160] sm:$0xff] }
 0x17d   : > { %v13445_v0 = vpop.permute.xlu1 %13444  ;;  %v13450_v52 = vpop.permute.xlu0 %13449  ;;  %11193 = vmatprep.subr.bf16.mxu1 %v14017_v42  ;;  %v11200_v39 = vpack.c.bf16 %v2067_v7, %v2066_v62  ;;  %v1907_v53 = vsel %vm549_vm1, %v14581_v6, %v13442_v27  ;;  %v11203_v45 = vpack.c.bf16 %v2069_v3, %v2068_v44  ;;  %v2074_v27 = vld [vmem:[%s21409_s5 + $0x180] sm:$0xff] }
 0x17e   : > { %2301 = vmatmul.mubr.f32.gmra.mrb[4].mxu1 %v1905_v1  ;;  %v13446_v19 = vunpack.i.l.bf16 %v13445_v0  ;;  %v13447_v37 = vunpack.i.h.bf16 %v13445_v0  ;;  %v13451_v12 = vunpack.i.l.bf16 %v13450_v52  ;;  %v13452_v35 = vunpack.i.h.bf16 %v13450_v52  ;;  %v2072_v1 = vld [vmem:[%s21409_s5 + $0x170] sm:$0xff] }
 0x17f   : > { %2305 = vmatprep.mubr.f32.mxu1 %v1938_v13 }
 0x180   : > { %13734 = vrot.lane.b32.xlu1 %v13733_v14, %s14018_s28  ;;  %11195 = vmatpush1.bf16.msra.mxu1 %v11194_v56  ;;  %v1940_v47 = vsel %vm549_vm1, %v14774_v15, %v13446_v19  ;;  %v1908_v5 = vsel %vm549_vm1, %v14601_v20, %v13447_v37  ;;  %v2071_v15 = vld [vmem:[%s21409_s5 + $0x168] sm:$0xff]  ;;  %v1941_v50 = vsel %vm549_vm1, %v14772_v29, %v13451_v12  ;;  %v2073_v29 = vld [vmem:[%s21409_s5 + $0x178] sm:$0xff] }
 0x181   : > { %v13455_v23 = vpop.permute.xlu1 %13454  ;;  %v14941_v24 = vpop.permute.xlu0 %13459  ;;  %11196 = vmatprep.subr.bf16.mxu1 %v14017_v42  ;;  %v11206_v56 = vpack.c.bf16 %v2071_v15, %v2070_v48  ;;  %v1909_v52 = vsel %vm549_vm1, %v14603_v21, %v13452_v35  ;;  %v11209_v4 = vpack.c.bf16 %v2073_v29, %v2072_v1  ;;  %v15053_v35 = vld [vmem:[#allocation2 + $0xb0] sm:$0xff] }
 0x182   : > { %2306 = vmatmul.mubr.f32.gmra.mrb[6].mxu1 %v1906_v9  ;;  %v13456_v49 = vunpack.i.l.bf16 %v13455_v23  ;;  %v13457_v58 = vunpack.i.h.bf16 %v13455_v23  ;;  %v13461_v18 = vunpack.i.l.bf16 %v14941_v24  ;;  %v13462_v21 = vunpack.i.h.bf16 %v14941_v24 }
 0x183   : > { %2310 = vmatprep.mubr.f32.mxu1 %v1939_v28  ;;  %v2076_v28 = vld [vmem:[%s21409_s5 + $0x190] sm:$0xff] }
 0x184   : > { %11198 = vmatpush1.bf16.msra.mxu1 %v11197_v61  ;;  %v1942_v46 = vsel %vm549_vm1, %v14782_v36, %v13456_v49  ;;  %v1910_v61 = vsel %vm549_vm1, %v14619_v32, %v13457_v58  ;;  %v2075_v36 = vld [vmem:[%s21409_s5 + $0x188] sm:$0xff]  ;;  %v1943_v24 = vsel %vm549_vm1, %v14797_v43, %v13461_v18  ;;  %v1911_v19 = vsel %vm549_vm1, %v14621_v33, %v13462_v21  ;;  %v2077_v43 = vld [vmem:[%s21409_s5 + $0x198] sm:$0xff] }
 0x185   : > { %v14954_v8 = vpop.permute.xlu1 %13464  ;;  %v14956_v55 = vpop.permute.xlu0 %13469  ;;  %11199 = vmatprep.subr.bf16.mxu1 %v14017_v42  ;;  %v11212_v9 = vpack.c.bf16 %v2075_v36, %v2074_v27  ;;  %v11215_v33 = vpack.c.bf16 %v2077_v43, %v2076_v28  ;;  %v2083_v21 = vld [vmem:[%s21409_s5 + $0x1c8] sm:$0xff]  ;;  %v15110_v43 = vld [vmem:[#allocation2 + $0xd8] sm:$0xff] }
 0x186   : > { %2311 = vmatmul.mubr.f32.gmra.mrb[8].mxu1 %v1907_v53  ;;  %v13466_v23 = vunpack.i.l.bf16 %v14954_v8  ;;  %v13467_v32 = vunpack.i.h.bf16 %v14954_v8  ;;  %v15034_v8 = vld [vmem:[#allocation2 + $0xa8] sm:$0xff]  ;;  %v13472_v53 = vunpack.i.h.bf16 %v14956_v55 }
 0x187   : > { %2315 = vmatprep.mubr.f32.mxu1 %v1940_v47  ;;  %v2079_v47 = vld [vmem:[%s21409_s5 + $0x1a8] sm:$0xff] }
 0x188   : > { %11201 = vmatpush1.bf16.msra.mxu1 %v11200_v39  ;;  %v13471_v39 = vunpack.i.l.bf16 %v14956_v55  ;;  %v1944_v37 = vsel %vm549_vm1, %v14804_v51, %v13466_v23  ;;  %v1912_v12 = vsel %vm549_vm1, %v15034_v8, %v13467_v32  ;;  %v2078_v51 = vld [vmem:[%s21409_s5 + $0x1a0] sm:$0xff]  ;;  %v15091_v27 = vld [vmem:[#allocation2 + $0xc8] sm:$0xff] }
 0x189   : > { %v14969_v6 = vpop.permute.xlu1 %13474  ;;  %v14971_v60 = vpop.permute.xlu0 %13479  ;;  %11202 = vmatprep.subr.bf16.mxu1 %v14017_v42 }
 0x18a   : > { %2316 = vmatmul.mubr.f32.gmra.mrb[10].mxu1 %v1908_v5  ;;  %v1945_v55 = vsel %vm549_vm1, %v14810_v59, %v13471_v39  ;;  %v11218_v5 = vpack.c.bf16 %v2079_v47, %v2078_v51  ;;  %v13477_v48 = vunpack.i.h.bf16 %v14969_v6  ;;  %v2080_v59 = vld [vmem:[%s21409_s5 + $0x1b0] sm:$0xff]  ;;  %v13481_v58 = vunpack.i.l.bf16 %v14971_v60  ;;  %v2087_v51 = vld [vmem:[%s21409_s5 + $0x1e8] sm:$0xff] }
 0x18b   : > { %2320 = vmatprep.mubr.f32.mxu1 %v1941_v50  ;;  %v1913_v50 = vsel %vm549_vm1, %v15053_v35, %v13472_v53  ;;  %v13482_v29 = vunpack.i.h.bf16 %v14971_v60 }
 0x18c   : > { %11204 = vmatpush1.bf16.msra.mxu1 %v11203_v45  ;;  %v13476_v45 = vunpack.i.l.bf16 %v14969_v6  ;;  %v1947_v60 = vsel %vm549_vm1, %v14827_v22, %v13481_v58  ;;  %v2084_v22 = vld [vmem:[%s21409_s5 + $0x1d0] sm:$0xff] }
 0x18d   : > { %v14984_v20 = vpop.permute.xlu1 %13484  ;;  %v14986_v0 = vpop.permute.xlu0 %13489  ;;  %11205 = vmatprep.subr.bf16.mxu1 %v14017_v42  ;;  %v1915_v32 = vsel %vm549_vm1, %v15091_v27, %v13482_v29 }
 0x18e   : > { %2321 = vmatmul.mubr.f32.gmra.mrb[12].mxu1 %v1909_v52  ;;  %v1946_v6 = vsel %vm549_vm1, %v14816_v2, %v13476_v45  ;;  %v15072_v52 = vld [vmem:[#allocation2 + $0xc0] sm:$0xff]  ;;  %v13487_v23 = vunpack.i.h.bf16 %v14984_v20  ;;  %v13491_v28 = vunpack.i.l.bf16 %v14986_v0 }
 0x18f   : > { %2325 = vmatprep.mubr.f32.mxu1 %v1942_v46  ;;  %v2082_v2 = vld [vmem:[%s21409_s5 + $0x1c0] sm:$0xff] }
 0x190   : > { %11207 = vmatpush1.bf16.msra.mxu1 %v11206_v56  ;;  %v2081_v56 = vld [vmem:[%s21409_s5 + $0x1b8] sm:$0xff]  ;;  %v11224_v36 = vpack.c.bf16 %v2083_v21, %v2082_v2  ;;  %v15129_v45 = vld [vmem:[#allocation2 + $0xe0] sm:$0xff] }
 0x191   : > { %v15001_v13 = vpop.permute.xlu1 %13494  ;;  %v15003_v14 = vpop.permute.xlu0 %13499  ;;  %11208 = vmatprep.subr.bf16.mxu1 %v14017_v42  ;;  %v11221_v1 = vpack.c.bf16 %v2081_v56, %v2080_v59  ;;  %v2089_v56 = vld [vmem:[%s21409_s5 + $0x1f8] sm:$0xff] }
 0x192   : > { %2326 = vmatmul.mubr.f32.gmra.mrb[14].mxu1 %v1910_v61  ;;  %v13486_v61 = vunpack.i.l.bf16 %v14984_v20  ;;  %v13496_v47 = vunpack.i.l.bf16 %v15001_v13  ;;  %v13501_v58 = vunpack.i.l.bf16 %v15003_v14  ;;  %v13502_v29 = vunpack.i.h.bf16 %v15003_v14 }
 0x193   : > { %2330 = vmatprep.mubr.f32.mxu1 %v1943_v24 }
 0x194   : > { %11210 = vmatpush1.bf16.msra.mxu1 %v11209_v4  ;;  %v1914_v4 = vsel %vm549_vm1, %v15072_v52, %v13477_v48  ;;  %v1948_v20 = vsel %vm549_vm1, %v14825_v17, %v13486_v61  ;;  %v2086_v17 = vld [vmem:[%s21409_s5 + $0x1e0] sm:$0xff] }
 0x195   : > { %v15018_v62 = vpop.permute.xlu1 %13504  ;;  %v15020_v7 = vpop.permute.xlu0 %13509  ;;  %11211 = vmatprep.subr.bf16.mxu1 %v14017_v42 }
 0x196   : > { %2331 = vmatmul.mubr.f32.gmra.mrb[16].mxu1 %v1911_v19  ;;  %v2085_v19 = vld [vmem:[%s21409_s5 + $0x1d8] sm:$0xff]  ;;  %v13506_v61 = vunpack.i.l.bf16 %v15018_v62  ;;  %v13507_v14 = vunpack.i.h.bf16 %v15018_v62 }
 0x197   : > { %2335 = vmatprep.mubr.f32.mxu1 %v1944_v37  ;;  %v11227_v39 = vpack.c.bf16 %v2085_v19, %v2084_v22  ;;  %v13492_v37 = vunpack.i.h.bf16 %v14986_v0  ;;  %v1949_v0 = vsel %vm549_vm1, %v14837_v26, %v13491_v28  ;;  %v2088_v26 = vld [vmem:[%s21409_s5 + $0x1f0] sm:$0xff]  ;;  %v13511_v22 = vunpack.i.l.bf16 %v15020_v7 }
 0x198   : > { %11213 = vmatpush1.bf16.msra.mxu1 %v11212_v9  ;;  %v1952_v19 = vsel %vm549_vm1, %v14845_v30, %v13506_v61  ;;  %v13512_v28 = vunpack.i.h.bf16 %v15020_v7  ;;  %v15185_v30 = vld [vmem:[#allocation2 + $0x110] sm:$0xff] }
 0x199   : > { %v15037_v44 = vpop.permute.xlu1 %13514  ;;  %v15039_v3 = vpop.permute.xlu0 %13519  ;;  %11214 = vmatprep.subr.bf16.mxu1 %v14017_v42  ;;  %v1917_v59 = vsel %vm549_vm1, %v15129_v45, %v13492_v37 }
 0x19a   : > { %2336 = vmatmul.mubr.f32.gmra.mrb[18].mxu1 %v1912_v12  ;;  %v1916_v12 = vsel %vm549_vm1, %v15110_v43, %v13487_v23  ;;  %v13516_v37 = vunpack.i.l.bf16 %v15037_v44  ;;  %v13521_v7 = vunpack.i.l.bf16 %v15039_v3 }
 0x19b   : > { %2340 = vmatprep.mubr.f32.mxu1 %v1945_v55  ;;  %v11230_v55 = vpack.c.bf16 %v2087_v51, %v2086_v17  ;;  %v13517_v17 = vunpack.i.h.bf16 %v15037_v44 }
 0x19c   : > { %11216 = vmatpush1.bf16.msra.mxu1 %v11215_v33 }
 0x19d   : > { %v15056_v15 = vpop.permute.xlu1 %13524  ;;  %v15058_v49 = vpop.permute.xlu0 %13529  ;;  %11217 = vmatprep.subr.bf16.mxu1 %v14017_v42 }
 0x19e   : > { %2341 = vmatmul.mubr.f32.gmra.mrb[20].mxu1 %v1913_v50 }
 0x19f   : > { %2345 = vmatprep.mubr.f32.mxu1 %v1946_v6  ;;  %v15148_v6 = vld [vmem:[#allocation2 + $0xf0] sm:$0xff] }
 0x1a0   : > { %11219 = vmatpush1.bf16.msra.mxu1 %v11218_v5  ;;  %v13497_v5 = vunpack.i.h.bf16 %v15001_v13  ;;  %v1950_v13 = vsel %vm549_vm1, %v14835_v25, %v13496_v47  ;;  %v1951_v25 = vsel %vm549_vm1, %v14847_v38, %v13501_v58  ;;  %v15173_v38 = vld [vmem:[#allocation2 + $0x108] sm:$0xff]  ;;  %v1097_v58 = vld [vmem:[#allocation2] sm:$0xff] }
 0x1a1   : > { %v15075_v18 = vpop.permute.xlu1 %13534  ;;  %v15077_v46 = vpop.permute.xlu0 %13539  ;;  %11220 = vmatprep.subr.bf16.mxu1 %v14017_v42 }
 0x1a2   : > { %2346 = vmatmul.mubr.f32.gmra.mrb[22].mxu1 %v1914_v4  ;;  %v1918_v21 = vsel %vm549_vm1, %v15148_v6, %v13497_v5 }
 0x1a3   : > { %2350 = vmatprep.mubr.f32.mxu1 %v1947_v60  ;;  %v15161_v60 = vld [vmem:[#allocation2 + $0xf8] sm:$0xff] }
 0x1a4   : > { %11222 = vmatpush1.bf16.msra.mxu1 %v11221_v1  ;;  %v11233_v1 = vpack.c.bf16 %v2089_v56, %v2088_v26  ;;  %v15197_v56 = vld [vmem:[#allocation2 + $0x120] sm:$0xff] }
 0x1a5   : > { %v15094_v24 = vpop.permute.xlu1 %13544  ;;  %v15096_v9 = vpop.permute.xlu0 %13549  ;;  %11223 = vmatprep.subr.bf16.mxu1 %v14017_v42 }
 0x1a6   : > { %2351 = vmatmul.mubr.f32.gmra.mrb[24].mxu1 %v1915_v32  ;;  %v1919_v32 = vsel %vm549_vm1, %v15161_v60, %v13502_v29  ;;  %v13522_v29 = vunpack.i.h.bf16 %v15039_v3  ;;  %v13526_v3 = vunpack.i.l.bf16 %v15056_v15 }
 0x1a7   : > { %2355 = vmatprep.mubr.f32.mxu1 %v1948_v20 }
 0x1a8   : > { %11225 = vmatpush1.bf16.msra.mxu1 %v11224_v36 }
 0x1a9   : > { %v15113_v33 = vpop.permute.xlu0 %13559  ;;  %v15115_v53 = vpop.permute.xlu1 %13554  ;;  %11226 = vmatprep.subr.bf16.mxu1 %v14017_v42 }
 0x1aa   : > { %2356 = vmatmul.mubr.f32.gmra.mrb[26].mxu1 %v1916_v12  ;;  %v1953_v12 = vsel %vm549_vm1, %v14857_v54, %v13511_v22  ;;  %v1954_v54 = vsel %vm549_vm1, %v14855_v31, %v13516_v37  ;;  %v1922_v31 = vsel %vm549_vm1, %v15197_v56, %v13517_v17  ;;  %v13527_v17 = vunpack.i.h.bf16 %v15056_v15 }
 0x1ab   : > { %2360 = vmatprep.mubr.f32.mxu1 %v1949_v0  ;;  %v1921_v0 = vsel %vm549_vm1, %v15185_v30, %v13512_v28 }
 0x1ac   : > { %11228 = vmatpush1.bf16.msra.mxu1 %v11227_v39  ;;  %v1920_v39 = vsel %vm549_vm1, %v15173_v38, %v13507_v14  ;;  %v1162_v14 = vld [vmem:[#allocation2 + $0xa] sm:$0xff] }
 0x1ad   : > { %v15132_v48 = vpop.permute.xlu0 %13569  ;;  %v15134_v50 = vpop.permute.xlu1 %13564  ;;  %11229 = vmatprep.subr.bf16.mxu1 %v14017_v42 }
 0x1ae   : > { %2361 = vmatmul.mubr.f32.gmra.mrb[28].mxu1 %v1917_v59 }
 0x1af   : > { %2365 = vmatprep.mubr.f32.mxu1 %v1950_v13 }
 0x1b0   : > { %11231 = vmatpush1.bf16.msra.mxu1 %v11230_v55  ;;  %v1161_v55 = vld [vmem:[#allocation2 + $0x2] sm:$0xff] }
 0x1b1   : > { %v15151_v4 = vpop.permute.xlu0 %13579  ;;  %v15153_v2 = vpop.permute.xlu1 %13574  ;;  %11232 = vmatprep.subr.bf16.mxu1 %v14017_v42 }
 0x1b2   : > { %2366 = vmatmul.mubr.f32.gmra.mrb[30].mxu1 %v1918_v21 }
 0x1b3   : > { %2370 = vmatprep.mubr.f32.mxu1 %v1951_v25  ;;  %v1955_v25 = vsel %vm549_vm1, %v14867_v11, %v13521_v7  ;;  %v13531_v7 = vunpack.i.l.bf16 %v15058_v49 }
 0x1b4   : > { %11234 = vmatpush1.bf16.msra.mxu1 %v11233_v1 }
 0x1b5   : > { %v15164_v36 = vpop.permute.xlu0 %13589  ;;  %v15166_v23 = vpop.permute.xlu1 %13584 }
 0x1b6   : > { %2371 = vmatmul.mubr.f32.gmra.mrb[32].mxu1 %v1919_v32 }
 0x1b7   : > { %2375 = vmatprep.mubr.f32.mxu1 %v1952_v19 }
 0x1b9   : > { %v15176_v20 = vpop.permute.xlu0 %13599  ;;  %v15178_v62 = vpop.permute.xlu1 %13594 }
 0x1ba   : > { %2376 = vmatmul.mubr.f32.gmra.mrb[34].mxu1 %v1920_v39  ;;  %v15224_v39 = vld [vmem:[#allocation2 + $0x128] sm:$0xff] }
 0x1bb   : > { %2380 = vmatprep.mubr.f32.mxu1 %v1953_v12 }
 0x1bd   : > { %v15189_v51 = vpop.permute.xlu1 %13604  ;;  %v13610_v47 = vpop.permute.xlu0 %13609 }
 0x1be   : > { %v13606_v5 = vunpack.i.l.bf16 %v15189_v51  ;;  %v13612_v59 = vunpack.i.h.bf16 %v13610_v47  ;;  %v13611_v26 = vunpack.i.l.bf16 %v13610_v47  ;;  %2381 = vmatmul.mubr.f32.gmra.mrb[36].mxu1 %v1921_v0 }
 0x1bf   : > { %2385 = vmatprep.mubr.f32.mxu1 %v1954_v54 }
 0x1c0   : > { %v1930_v44 = vsel %vm549_vm1, %v1161_v55, %v13612_v59  ;;  %v15201_v13 = vsel %vm549_vm1, %v15034_v8, %v13606_v5  ;;  %v15205_v1 = vsel %vm549_vm1, %v15053_v35, %v13611_v26  ;;  %v2092_v8 = vld [vmem:[%s21409_s5 + $0x210] sm:$0xff]  ;;  %v2093_v35 = vld [vmem:[%s21409_s5 + $0x218] sm:$0xff]  ;;  %v1923_v55 = vsel %vm549_vm1, %v15224_v39, %v13522_v29  ;;  %v1098_v5 = vld [vmem:[#allocation2 + $0x8] sm:$0xff] }
 0x1c1   : > { %v15208_v21 = vpop.permute.xlu1 %13614  ;;  %v13620_v61 = vpop.permute.xlu0 %13619  ;;  %2265 = vmatprep.mubr.f32.mxu0 %v1930_v44  ;;  %v11239_v37 = vpack.c.bf16 %v2093_v35, %v2092_v8  ;;  %v2094_v59 = vld [vmem:[%s21409_s5 + $0x220] sm:$0xff]  ;;  %v1956_v44 = vsel %vm549_vm1, %v14865_v40, %v13526_v3  ;;  %v13532_v8 = vunpack.i.h.bf16 %v15058_v49  ;;  %v1957_v3 = vsel %vm549_vm1, %v14877_v34, %v13531_v7 }
 0x1c2   : > { %v13617_v32 = vunpack.i.h.bf16 %v15208_v21  ;;  %v13622_v22 = vunpack.i.h.bf16 %v13620_v61  ;;  %v13621_v19 = vunpack.i.l.bf16 %v13620_v61  ;;  %2386 = vmatmul.mubr.f32.gmra.mrb[38].mxu1 %v1922_v31  ;;  %v15248_v31 = vld [vmem:[#allocation2 + $0x138] sm:$0xff]  ;;  %v13536_v49 = vunpack.i.l.bf16 %v15075_v18 }
 0x1c3   : > { %2390 = vmatprep.mubr.f32.mxu1 %v1955_v25 }
 0x1c4   : > { %v1898_v28 = vsel %vm549_vm1, %v1097_v58, %v13617_v32  ;;  %v1931_v11 = vsel %vm549_vm1, %v1162_v14, %v13622_v22  ;;  %v15228_v12 = vsel %vm549_vm1, %v15072_v52, %v13621_v19  ;;  %v2095_v52 = vld [vmem:[%s21409_s5 + $0x228] sm:$0xff]  ;;  %v1163_v58 = vld [vmem:[#allocation2 + $0x1a] sm:$0xff]  ;;  %v2096_v32 = vld [vmem:[%s21409_s5 + $0x230] sm:$0xff] }
 0x1c5   : > { %v15232_v47 = vpop.permute.xlu1 %13624  ;;  %v13630_v0 = vpop.permute.xlu0 %13629  ;;  %2266 = vmatmul.mubr.f32.vlgmr.msra.gmra.mrb[32].mxu0 %v1898_v28  ;;  %v11243_v25 = vpack.c.bf16 %v2095_v52, %v2094_v59  ;;  %v13537_v59 = vunpack.i.h.bf16 %v15075_v18  ;;  %v13541_v52 = vunpack.i.l.bf16 %v15077_v46  ;;  %v1100_v18 = vld [vmem:[#allocation2 + $0x20] sm:$0xff] }
 0x1c6   : > { %v13627_v15 = vunpack.i.h.bf16 %v15232_v47  ;;  %v13632_v26 = vunpack.i.h.bf16 %v13630_v0  ;;  %v13631_v54 = vunpack.i.l.bf16 %v13630_v0  ;;  %2270 = vmatprep.mubr.f32.mxu0 %v1931_v11  ;;  %2391 = vmatmul.mubr.f32.gmra.mrb[40].mxu1 %v1923_v55  ;;  %v1099_v11 = vld [vmem:[#allocation2 + $0x18] sm:$0xff]  ;;  %v15271_v0 = vld [vmem:[#allocation2 + $0x140] sm:$0xff] }
 0x1c7   : > { %2395 = vmatprep.mubr.f32.mxu1 %v1956_v44  ;;  %11238 = vmatpush3.bf16.msra.mxu0 %v14795_v41  ;;  %v1924_v41 = vsel %vm549_vm1, %v15248_v31, %v13527_v17  ;;  %v1164_v17 = vld [vmem:[#allocation2 + $0x22] sm:$0xff] }
 0x1c8   : > { %v1899_v29 = vsel %vm549_vm1, %v1098_v5, %v13627_v15  ;;  %v1932_v61 = vsel %vm549_vm1, %v1163_v58, %v13632_v26  ;;  %11240 = vmatprep.subr.bf16.mxu0 %v11239_v37  ;;  %v15252_v14 = vsel %vm549_vm1, %v15091_v27, %v13631_v54  ;;  %v2097_v27 = vld [vmem:[%s21409_s5 + $0x238] sm:$0xff] }
 0x1c9   : > { %v13640_v35 = vpop.permute.xlu0 %13639  ;;  %2271 = vmatmul.mubr.f32.gmra.mrb[34].mxu0 %v1899_v29  ;;  %v15255_v40 = vpop.permute.xlu1 %13634  ;;  %v11247_v55 = vpack.c.bf16 %v2097_v27, %v2096_v32  ;;  %v1165_v29 = vld [vmem:[#allocation2 + $0x32] sm:$0xff] }
 0x1ca   : > { %v13642_v22 = vunpack.i.h.bf16 %v13640_v35  ;;  %v13641_v19 = vunpack.i.l.bf16 %v13640_v35  ;;  %v13637_v28 = vunpack.i.h.bf16 %v15255_v40  ;;  %2275 = vmatprep.mubr.f32.mxu0 %v1932_v61  ;;  %2396 = vmatmul.mubr.f32.gmra.mrb[42].mxu1 %v1924_v41  ;;  %v15288_v41 = vld [vmem:[#allocation2 + $0x150] sm:$0xff] }
 0x1cb   : > { %2400 = vmatprep.mubr.f32.mxu1 %v1957_v3  ;;  %11242 = vmatpush3.bf16.msra.mxu0 %v11239_v37  ;;  %v1925_v37 = vsel %vm549_vm1, %v15271_v0, %v13532_v8  ;;  %v13542_v3 = vunpack.i.h.bf16 %v15077_v46 }
 0x1cc   : > { %v1900_v34 = vsel %vm549_vm1, %v1099_v11, %v13637_v28  ;;  %v1933_v7 = vsel %vm549_vm1, %v1164_v17, %v13642_v22  ;;  %11244 = vmatprep.subr.bf16.mxu0 %v11243_v25  ;;  %v15275_v5 = vsel %vm549_vm1, %v15110_v43, %v13641_v19  ;;  %v1958_v43 = vsel %vm549_vm1, %v14875_v16, %v13536_v49  ;;  %v15304_v22 = vld [vmem:[#allocation2 + $0x158] sm:$0xff] }
 0x1cd   : > { %v13650_v15 = vpop.permute.xlu0 %13649  ;;  %v15279_v26 = vpop.permute.xlu1 %13644  ;;  %2276 = vmatmul.mubr.f32.gmra.mrb[36].mxu0 %v1900_v34  ;;  %v1926_v16 = vsel %vm549_vm1, %v15288_v41, %v13537_v59  ;;  %v1959_v49 = vsel %vm549_vm1, %v14895_v10, %v13541_v52  ;;  %v13547_v19 = vunpack.i.h.bf16 %v15094_v24  ;;  %v1927_v28 = vsel %vm549_vm1, %v15304_v22, %v13542_v3  ;;  %v1355_v17 = vld [vmem:[#allocation2 + $0x3a] sm:$0xff]  ;;  %v15314_v34 = vld [vmem:[#allocation2 + $0x168] sm:$0xff]  ;;  %v1357_v52 = vld [vmem:[#allocation2 + $0x52] sm:$0xff] }
 0x1ce   : > { %v13652_v54 = vunpack.i.h.bf16 %v13650_v15  ;;  %v13651_v44 = vunpack.i.l.bf16 %v13650_v15  ;;  %v13647_v58 = vunpack.i.h.bf16 %v15279_v26  ;;  %2280 = vmatprep.mubr.f32.mxu0 %v1933_v7  ;;  %2401 = vmatmul.mubr.f32.gmra.mrb[44].mxu1 %v1925_v37  ;;  %v13551_v11 = vunpack.i.l.bf16 %v15096_v9  ;;  %v15324_v15 = vld [vmem:[#allocation2 + $0x170] sm:$0xff] }
 0x1cf   : > { %2405 = vmatprep.mubr.f32.mxu1 %v1958_v43  ;;  %11246 = vmatpush3.bf16.msra.mxu0 %v11243_v25  ;;  %v13546_v25 = vunpack.i.l.bf16 %v15094_v24  ;;  %v13552_v7 = vunpack.i.h.bf16 %v15096_v9  ;;  %v1928_v24 = vsel %vm549_vm1, %v15314_v34, %v13547_v19  ;;  %v13556_v59 = vunpack.i.l.bf16 %v15115_v53  ;;  %v1225_v43 = vld [vmem:[#allocation2 + $0x19] sm:$0xff] }
 0x1d0   : > { %v1901_v61 = vsel %vm549_vm1, %v1100_v18, %v13647_v58  ;;  %v1934_v35 = vsel %vm549_vm1, %v1165_v29, %v13652_v54  ;;  %11248 = vmatprep.subr.bf16.mxu0 %v11247_v55  ;;  %v15292_v8 = vsel %vm549_vm1, %v15129_v45, %v13651_v44  ;;  %v1101_v45 = vld [vmem:[#allocation2 + $0x30] sm:$0xff]  ;;  %v13557_v9 = vunpack.i.h.bf16 %v15115_v53  ;;  %v1358_v54 = vld [vmem:[#allocation2 + $0x62] sm:$0xff] }
 0x1d1   : > { %v15295_v32 = vpop.permute.xlu1 %13654  ;;  %2281 = vmatmul.mubr.f32.gmra.mrb[38].mxu0 %v1901_v61  ;;  %v1960_v10 = vsel %vm549_vm1, %v14891_v57, %v13546_v25  ;;  %v1961_v57 = vsel %vm549_vm1, %v14910_v63, %v13551_v11  ;;  %v1929_v37 = vsel %vm549_vm1, %v15324_v15, %v13552_v7  ;;  %v13561_v44 = vunpack.i.l.bf16 %v15113_v33  ;;  %v1359_v63 = vld [vmem:[#allocation2 + $0x6a] sm:$0xff]  ;;  %v1291_v61 = vld [vmem:[#allocation2 + $0x38] sm:$0xff]  ;;  %v1226_v25 = vld [vmem:[#allocation2 + $0x21] sm:$0xff] }
 0x1d2   : > { %v13657_v27 = vunpack.i.h.bf16 %v15295_v32  ;;  %2285 = vmatprep.mubr.f32.mxu0 %v1934_v35  ;;  %2406 = vmatmul.mubr.f32.gmra.mrb[46].mxu1 %v1926_v16  ;;  %v1994_v58 = vsel %vm549_vm1, %v1101_v45, %v13556_v59  ;;  %v13562_v18 = vunpack.i.h.bf16 %v15113_v33  ;;  %v1962_v53 = vsel %vm549_vm1, %v1225_v43, %v13557_v9  ;;  %v1361_v16 = vld [vmem:[#allocation2 + $0x82] sm:$0xff]  ;;  %v1227_v11 = vld [vmem:[#allocation2 + $0x31] sm:$0xff] }
 0x1d3   : > { %2410 = vmatprep.mubr.f32.mxu1 %v1959_v49  ;;  %11250 = vmatpush3.bf16.msra.mxu0 %v11247_v55  ;;  %v1356_v55 = vld [vmem:[#allocation2 + $0x4a] sm:$0xff]  ;;  %v13566_v35 = vunpack.i.l.bf16 %v15134_v50  ;;  %v1995_v3 = vsel %vm549_vm1, %v1291_v61, %v13561_v44  ;;  %v1362_v49 = vld [vmem:[#allocation2 + $0x92] sm:$0xff]  ;;  %v1366_v9 = vld [vmem:[#allocation2 + $0xc2] sm:$0xff]  ;;  %v13582_v43 = vunpack.i.h.bf16 %v15151_v4 }
 0x1d4   : > { %v1902_v46 = vsel %vm549_vm1, %v1101_v45, %v13657_v27  ;;  %11251 = vmatprep.subr.bf16.mxu0 %v14017_v42  ;;  %v13567_v27 = vunpack.i.h.bf16 %v15134_v50  ;;  %v1963_v33 = vsel %vm549_vm1, %v1226_v25, %v13562_v18  ;;  %v1292_v45 = vld [vmem:[#allocation2 + $0x48] sm:$0xff]  ;;  %v1293_v7 = vld [vmem:[#allocation2 + $0x50] sm:$0xff]  ;;  %v1368_v18 = vld [vmem:[#allocation2 + $0xda] sm:$0xff] }
 0x1d5   : > { %2286 = vmatmul.mubr.f32.gmra.mrb[40].mxu0 %v1902_v46  ;;  %v13571_v46 = vunpack.i.l.bf16 %v15132_v48  ;;  %v1996_v19 = vsel %vm549_vm1, %v1292_v45, %v13566_v35  ;;  %v1365_v59 = vld [vmem:[#allocation2 + $0xb2] sm:$0xff]  ;;  %v1369_v35 = vld [vmem:[#allocation2 + $0xe2] sm:$0xff]  ;;  %v1371_v45 = vld [vmem:[#allocation2 + $0xfa] sm:$0xff] }
 0x1d6   : > { %2411 = vmatmul.mubr.f32.gmra.mrb[48].mxu1 %v1927_v28  ;;  %10629 = vmatprep.mubr.msk.f32.mxu0 %vm549_vm1, %v1165_v29  ;;  %v1360_v29 = vld [vmem:[#allocation2 + $0x7a] sm:$0xff]  ;;  %v1964_v50 = vsel %vm549_vm1, %v1227_v11, %v13567_v27  ;;  %v1370_v25 = vld [vmem:[#allocation2 + $0xf2] sm:$0xff] }
 0x1d7   : > { %2415 = vmatprep.mubr.f32.mxu1 %v1960_v10  ;;  %v1363_v28 = vld [vmem:[#allocation2 + $0x9a] sm:$0xff]  ;;  %v13572_v10 = vunpack.i.h.bf16 %v15132_v48 }
 0x1d8   : > { %v1296_v27 = vld [vmem:[#allocation2 + $0x78] sm:$0xff]  ;;  %v1297_v11 = vld [vmem:[#allocation2 + $0x80] sm:$0xff] }
 0x1d9   : > { %10630 = vmatmul.mubr.msk.f32.vlgmr.msra.gmra.mrb[42].mxu0 %vm549_vm1, %v1355_v17  ;;  %v1364_v17 = vld [vmem:[#allocation2 + $0xaa] sm:$0xff] }
 0x1da   : > { %2416 = vmatmul.mubr.f32.gmra.mrb[50].mxu1 %v1928_v24  ;;  %10632 = vmatprep.mubr.msk.f32.mxu0 %vm549_vm1, %v1356_v55  ;;  %v13576_v24 = vunpack.i.l.bf16 %v15153_v2  ;;  %v1997_v55 = vsel %vm549_vm1, %v1293_v7, %v13571_v46  ;;  %v1231_v46 = vld [vmem:[#allocation2 + $0x61] sm:$0xff]  ;;  %v1232_v7 = vld [vmem:[#allocation2 + $0x69] sm:$0xff] }
 0x1db   : > { %2420 = vmatprep.mubr.f32.mxu1 %v1961_v57  ;;  %v1228_v57 = vld [vmem:[#allocation2 + $0x39] sm:$0xff] }
 0x1dc   : > { %v1965_v48 = vsel %vm549_vm1, %v1228_v57, %v13572_v10  ;;  %v13596_v10 = vunpack.i.l.bf16 %v15178_v62  ;;  %v13601_v57 = vunpack.i.l.bf16 %v15176_v20 }
 0x1dd   : > { %10633 = vmatmul.mubr.msk.f32.gmra.mrb[44].mxu0 %vm549_vm1, %v1357_v52  ;;  %v13577_v52 = vunpack.i.h.bf16 %v15153_v2 }
 0x1de   : > { %2421 = vmatmul.mubr.f32.gmra.mrb[52].mxu1 %v1929_v37  ;;  %10635 = vmatprep.mubr.msk.f32.mxu0 %vm549_vm1, %v1358_v54  ;;  %v1294_v37 = vld [vmem:[#allocation2 + $0x60] sm:$0xff]  ;;  %v13581_v54 = vunpack.i.l.bf16 %v15151_v4 }
 0x1df   : > { %2490 = vmatprep.mubr.f32.mxu1 %v1994_v58  ;;  %v1998_v44 = vsel %vm549_vm1, %v1294_v37, %v13576_v24  ;;  %v1367_v58 = vld [vmem:[#allocation2 + $0xca] sm:$0xff]  ;;  %v13597_v24 = vunpack.i.h.bf16 %v15178_v62  ;;  %v13602_v37 = vunpack.i.h.bf16 %v15176_v20 }
 0x1e1   : > { %10636 = vmatmul.mubr.msk.f32.gmra.mrb[46].mxu0 %vm549_vm1, %v1359_v63  ;;  %v1229_v63 = vld [vmem:[#allocation2 + $0x49] sm:$0xff] }
 0x1e2   : > { %2491 = vmatmul.mubr.f32.vlgmr.msra.gmra.mrb[54].mxu1 %v1962_v53  ;;  %10638 = vmatprep.mubr.msk.f32.mxu0 %vm549_vm1, %v1360_v29  ;;  %v1966_v2 = vsel %vm549_vm1, %v1229_v63, %v13577_v52  ;;  %v1295_v53 = vld [vmem:[#allocation2 + $0x68] sm:$0xff]  ;;  %v13586_v29 = vunpack.i.l.bf16 %v15166_v23 }
 0x1e3   : > { %2495 = vmatprep.mubr.f32.mxu1 %v1995_v3  ;;  %v1999_v61 = vsel %vm549_vm1, %v1295_v53, %v13581_v54  ;;  %v1230_v3 = vld [vmem:[#allocation2 + $0x51] sm:$0xff]  ;;  %v1376_v54 = vld [vmem:[#allocation2 + $0x13a] sm:$0xff]  ;;  %v1377_v63 = vld [vmem:[#allocation2 + $0x142] sm:$0xff] }
 0x1e4   : > { %v1967_v4 = vsel %vm549_vm1, %v1230_v3, %v13582_v43  ;;  %v1234_v43 = vld [vmem:[#allocation2 + $0x81] sm:$0xff]  ;;  %v1380_v3 = vld [vmem:[#allocation2 + $0x16a] sm:$0xff] }
 0x1e5   : > { %10639 = vmatmul.mubr.msk.f32.gmra.mrb[48].mxu0 %vm549_vm1, %v1361_v16  ;;  %v13587_v16 = vunpack.i.h.bf16 %v15166_v23  ;;  %v1971_v20 = vsel %vm549_vm1, %v1234_v43, %v13602_v37  ;;  %v1379_v53 = vld [vmem:[#allocation2 + $0x15a] sm:$0xff] }
 0x1e6   : > { %2496 = vmatmul.mubr.f32.gmra.mrb[56].mxu1 %v1963_v33  ;;  %10641 = vmatprep.mubr.msk.f32.mxu0 %vm549_vm1, %v1362_v49  ;;  %v13591_v33 = vunpack.i.l.bf16 %v15164_v36  ;;  %v2000_v49 = vsel %vm549_vm1, %v1296_v27, %v13586_v29  ;;  %v1235_v29 = vld [vmem:[#allocation2 + $0x91] sm:$0xff]  ;;  %v1244_v43 = vld [vmem:[#allocation2 + $0xf9] sm:$0xff] }
 0x1e7   : > { %2500 = vmatprep.mubr.f32.mxu1 %v1996_v19  ;;  %v13592_v19 = vunpack.i.h.bf16 %v15164_v36  ;;  %v1968_v23 = vsel %vm549_vm1, %v1231_v46, %v13587_v16  ;;  %v1236_v16 = vld [vmem:[#allocation2 + $0x99] sm:$0xff]  ;;  %v1383_v27 = vld [vmem:[#allocation2 + $0x18a] sm:$0xff]  ;;  %v13646_v46 = vunpack.i.l.bf16 %v15279_v26 }
 0x1e9   : > { %10642 = vmatmul.mubr.msk.f32.gmra.mrb[50].mxu0 %vm549_vm1, %v1363_v28  ;;  %v1372_v28 = vld [vmem:[#allocation2 + $0x10a] sm:$0xff]  ;;  %v1969_v36 = vsel %vm549_vm1, %v1232_v7, %v13592_v19  ;;  %v13660_v19 = vpop.permute.xlu0 %13659 }
 0x1ea   : > { %2501 = vmatmul.mubr.f32.gmra.mrb[58].mxu1 %v1964_v50  ;;  %10644 = vmatprep.mubr.msk.f32.mxu0 %vm549_vm1, %v1364_v17  ;;  %v2001_v50 = vsel %vm549_vm1, %v1297_v11, %v13591_v33  ;;  %v1373_v17 = vld [vmem:[#allocation2 + $0x112] sm:$0xff]  ;;  %v1237_v33 = vld [vmem:[#allocation2 + $0xa9] sm:$0xff]  ;;  %v13661_v11 = vunpack.i.l.bf16 %v13660_v19  ;;  %v13662_v26 = vunpack.i.h.bf16 %v13660_v19 }
 0x1eb   : > { %2505 = vmatprep.mubr.f32.mxu1 %v1997_v55  ;;  %v1374_v55 = vld [vmem:[#allocation2 + $0x122] sm:$0xff] }
 0x1ec   : > { %v2010_v7 = vsel %vm549_vm1, %v15148_v6, %v13661_v11 }
 0x1ed   : > { %10645 = vmatmul.mubr.msk.f32.gmra.mrb[52].mxu0 %vm549_vm1, %v1365_v59  ;;  %v1298_v59 = vld [vmem:[#allocation2 + $0x90] sm:$0xff] }
 0x1ee   : > { %2506 = vmatmul.mubr.f32.gmra.mrb[60].mxu1 %v1965_v48  ;;  %10647 = vmatprep.mubr.msk.f32.mxu0 %vm549_vm1, %v1366_v9  ;;  %v2002_v52 = vsel %vm549_vm1, %v1298_v59, %v13596_v10  ;;  %v1375_v48 = vld [vmem:[#allocation2 + $0x12a] sm:$0xff]  ;;  %v1233_v9 = vld [vmem:[#allocation2 + $0x79] sm:$0xff]  ;;  %v13665_v10 = vpop.permute.xlu1 %13664 }
 0x1ef   : > { %2510 = vmatprep.mubr.f32.mxu1 %v1998_v44  ;;  %v1970_v62 = vsel %vm549_vm1, %v1233_v9, %v13597_v24  ;;  %v1299_v44 = vld [vmem:[#allocation2 + $0x98] sm:$0xff] }
 0x1f0   : > { %v1241_v24 = vld [vmem:[#allocation2 + $0xd9] sm:$0xff] }
 0x1f1   : > { %10648 = vmatmul.mubr.msk.f32.gmra.mrb[54].mxu0 %vm549_vm1, %v1367_v58  ;;  %v2003_v58 = vsel %vm549_vm1, %v1299_v44, %v13601_v57  ;;  %v1242_v57 = vld [vmem:[#allocation2 + $0xe1] sm:$0xff] }
 0x1f2   : > { %2511 = vmatmul.mubr.f32.gmra.mrb[62].mxu1 %v1966_v2  ;;  %10650 = vmatprep.mubr.msk.f32.mxu0 %vm549_vm1, %v1368_v18  ;;  %v13607_v2 = vunpack.i.h.bf16 %v15189_v51  ;;  %v1378_v18 = vld [vmem:[#allocation2 + $0x152] sm:$0xff]  ;;  %v13675_v59 = vpop.permute.xlu1 %13674 }
 0x1f3   : > { %2515 = vmatprep.mubr.f32.mxu1 %v1999_v61  ;;  %v13616_v61 = vunpack.i.l.bf16 %v15208_v21  ;;  %v1381_v51 = vld [vmem:[#allocation2 + $0x172] sm:$0xff]  ;;  %v1384_v21 = vld [vmem:[#allocation2 + $0x19a] sm:$0xff]  ;;  %v13676_v9 = vunpack.i.l.bf16 %v13675_v59 }
 0x1f5   : > { %10651 = vmatmul.mubr.msk.f32.gmra.mrb[56].mxu0 %vm549_vm1, %v1369_v35  ;;  %v1972_v35 = vsel %vm549_vm1, %v1235_v29, %v13607_v2  ;;  %v1245_v29 = vld [vmem:[#allocation2 + $0x109] sm:$0xff] }
 0x1f6   : > { %2516 = vmatmul.mubr.f32.gmra.mrb[0].mxu1 %v1967_v4  ;;  %10653 = vmatprep.mubr.msk.f32.mxu0 %vm549_vm1, %v1370_v25  ;;  %v13626_v4 = vunpack.i.l.bf16 %v15232_v47  ;;  %v1382_v25 = vld [vmem:[#allocation2 + $0x182] sm:$0xff] }
 0x1f7   : > { %2520 = vmatprep.mubr.f32.mxu1 %v2000_v49  ;;  %v13636_v49 = vunpack.i.l.bf16 %v15255_v40  ;;  %v1385_v47 = vld [vmem:[#allocation2 + $0x1a2] sm:$0xff] }
 0x1f8   : > { %v1239_v40 = vld [vmem:[#allocation2 + $0xc1] sm:$0xff] }
 0x1f9   : > { %10654 = vmatmul.mubr.msk.f32.gmra.mrb[58].mxu0 %vm549_vm1, %v1371_v45  ;;  %v1238_v45 = vld [vmem:[#allocation2 + $0xb1] sm:$0xff] }
 0x1fa   : > { %2521 = vmatmul.mubr.f32.gmra.mrb[2].mxu1 %v1968_v23  ;;  %10656 = vmatprep.mubr.msk.f32.mxu0 %vm549_vm1, %v1372_v28  ;;  %v13656_v23 = vunpack.i.l.bf16 %v15295_v32  ;;  %v1976_v28 = vsel %vm549_vm1, %v1239_v40, %v13646_v46  ;;  %v13667_v32 = vunpack.i.h.bf16 %v13665_v10 }
 0x1fb   : > { %2525 = vmatprep.mubr.f32.mxu1 %v2001_v50 }
 0x1fd   : > { %10657 = vmatmul.mubr.msk.f32.gmra.mrb[60].mxu0 %vm549_vm1, %v1373_v17  ;;  %v13666_v17 = vunpack.i.l.bf16 %v13665_v10 }
 0x1fe   : > { %2526 = vmatmul.mubr.f32.gmra.mrb[4].mxu1 %v1969_v36  ;;  %10659 = vmatprep.mubr.msk.f32.mxu0 %vm549_vm1, %v1374_v55  ;;  %v1978_v36 = vsel %vm549_vm1, %v1241_v24, %v13662_v26  ;;  %v1250_v26 = vld [vmem:[#allocation2 + $0x141] sm:$0xff]  ;;  %v1251_v24 = vld [vmem:[#allocation2 + $0x151] sm:$0xff] }
 0x1ff   : > { %2530 = vmatprep.mubr.f32.mxu1 %v2002_v52 }
 0x201   : > { %10660 = vmatmul.mubr.msk.f32.gmra.mrb[62].mxu0 %vm549_vm1, %v1375_v48  ;;  %v1979_v48 = vsel %vm549_vm1, %v1242_v57, %v13667_v32 }
 0x202   : > { %2531 = vmatmul.mubr.f32.gmra.mrb[6].mxu1 %v1970_v62  ;;  %10662 = vmatprep.mubr.msk.f32.mxu0 %vm549_vm1, %v1376_v54  ;;  %v1243_v62 = vld [vmem:[#allocation2 + $0xf1] sm:$0xff]  ;;  %v13677_v54 = vunpack.i.h.bf16 %v13675_v59  ;;  %v1252_v59 = vld [vmem:[#allocation2 + $0x159] sm:$0xff] }
 0x203   : > { %2535 = vmatprep.mubr.f32.mxu1 %v2003_v58 }
 0x205   : > { %10663 = vmatmul.mubr.msk.f32.gmra.mrb[64].mxu0 %vm549_vm1, %v1377_v63  ;;  %v13685_v63 = vpop.permute.xlu1 %13684 }
 0x206   : > { %2536 = vmatmul.mubr.f32.gmra.mrb[8].mxu1 %v1971_v20  ;;  %10665 = vmatprep.mubr.msk.f32.mxu0 %vm549_vm1, %v1378_v18  ;;  %v1981_v20 = vsel %vm549_vm1, %v1244_v43, %v13677_v54  ;;  %v13686_v18 = vunpack.i.l.bf16 %v13685_v63  ;;  %v1254_v43 = vld [vmem:[#allocation2 + $0x171] sm:$0xff] }
 0x207   : > { %2540 = vmatprep.mubr.f32.mxu1 %v15201_v13  ;;  %v1973_v13 = vsel %vm549_vm1, %v1236_v16, %v13616_v61  ;;  %v13687_v61 = vunpack.i.h.bf16 %v13685_v63  ;;  %v1246_v16 = vld [vmem:[#allocation2 + $0x111] sm:$0xff] }
 0x208   : > { %v1320_v63 = vld [vmem:[#allocation2 + $0x198] sm:$0xff] }
 0x209   : > { %10666 = vmatmul.mubr.msk.f32.gmra.mrb[66].mxu0 %vm549_vm1, %v1379_v53 }
 0x20a   : > { %2541 = vmatmul.mubr.f32.gmra.mrb[10].mxu1 %v1972_v35  ;;  %10668 = vmatprep.mubr.msk.f32.mxu0 %vm549_vm1, %v1380_v3 }
 0x20b   : > { %2545 = vmatprep.mubr.f32.mxu1 %v15205_v1  ;;  %v1974_v1 = vsel %vm549_vm1, %v1237_v33, %v13626_v4 }
 0x20d   : > { %10669 = vmatmul.mubr.msk.f32.gmra.mrb[68].mxu0 %vm549_vm1, %v1381_v51  ;;  %v13695_v51 = vpop.permute.xlu1 %13694 }
 0x20e   : > { %2546 = vmatmul.mubr.f32.gmra.mrb[12].mxu1 %v1973_v13  ;;  %10671 = vmatprep.mubr.msk.f32.mxu0 %vm549_vm1, %v1382_v25  ;;  %v1983_v13 = vsel %vm549_vm1, %v1246_v16, %v13687_v61  ;;  %v13696_v25 = vunpack.i.l.bf16 %v13695_v51  ;;  %v13697_v33 = vunpack.i.h.bf16 %v13695_v51 }
 0x20f   : > { %2550 = vmatprep.mubr.f32.mxu1 %v15228_v12  ;;  %v1975_v12 = vsel %vm549_vm1, %v1238_v45, %v13636_v49  ;;  %v1248_v45 = vld [vmem:[#allocation2 + $0x129] sm:$0xff] }
 0x211   : > { %10672 = vmatmul.mubr.msk.f32.gmra.mrb[70].mxu0 %vm549_vm1, %v1383_v27  ;;  %v1247_v27 = vld [vmem:[#allocation2 + $0x121] sm:$0xff] }
 0x212   : > { %2551 = vmatmul.mubr.f32.gmra.mrb[14].mxu1 %v1974_v1  ;;  %10674 = vmatprep.mubr.msk.f32.mxu0 %vm549_vm1, %v1384_v21 }
 0x213   : > { %2555 = vmatprep.mubr.f32.mxu1 %v15252_v14  ;;  %v1240_v14 = vld [vmem:[#allocation2 + $0xc9] sm:$0xff] }
 0x214   : > { %v1977_v50 = vsel %vm549_vm1, %v1240_v14, %v13656_v23  ;;  %v1249_v23 = vld [vmem:[#allocation2 + $0x139] sm:$0xff] }
 0x215   : > { %10675 = vmatmul.mubr.msk.f32.gmra.mrb[72].mxu0 %vm549_vm1, %v1385_v47  ;;  %v13705_v47 = vpop.permute.xlu1 %13704 }
 0x216   : > { %2556 = vmatmul.mubr.f32.gmra.mrb[16].mxu1 %v1975_v12  ;;  %v1985_v12 = vsel %vm549_vm1, %v1248_v45, %v13697_v33  ;;  %v13706_v19 = vunpack.i.l.bf16 %v13705_v47 }
 0x217   : > { %2560 = vmatprep.mubr.f32.mxu1 %v15275_v5  ;;  %v13670_v5 = vpop.permute.xlu0 %13669 }
 0x218   : > { %v13671_v55 = vunpack.i.l.bf16 %v13670_v5  ;;  %v13672_v52 = vunpack.i.h.bf16 %v13670_v5 }
 0x219   : > { %v13715_v14 = vpop.permute.xlu1 %13714 }
 0x21a   : > { %2561 = vmatmul.mubr.f32.gmra.mrb[18].mxu1 %v1976_v28  ;;  %v2012_v6 = vsel %vm549_vm1, %v15173_v38, %v13671_v55  ;;  %v1980_v44 = vsel %vm549_vm1, %v1243_v62, %v13672_v52  ;;  %v13707_v28 = vunpack.i.h.bf16 %v13705_v47  ;;  %v13717_v32 = vunpack.i.h.bf16 %v13715_v14 }
 0x21b   : > { %2565 = vmatprep.mubr.f32.mxu1 %v15292_v8  ;;  %v2011_v8 = vsel %vm549_vm1, %v15161_v60, %v13666_v17  ;;  %v13680_v37 = vpop.permute.xlu0 %13679  ;;  %v2013_v60 = vsel %vm549_vm1, %v15185_v30, %v13676_v9  ;;  %v2015_v30 = vsel %vm549_vm1, %v15224_v39, %v13686_v18  ;;  %v2017_v39 = vsel %vm549_vm1, %v15271_v0, %v13696_v25 }
 0x21c   : > { %v13681_v58 = vunpack.i.l.bf16 %v13680_v37  ;;  %v13682_v2 = vunpack.i.h.bf16 %v13680_v37  ;;  %v2019_v0 = vsel %vm549_vm1, %v15304_v22, %v13706_v19  ;;  %v1987_v17 = vsel %vm549_vm1, %v1250_v26, %v13707_v28  ;;  %v1253_v37 = vld [vmem:[#allocation2 + $0x169] sm:$0xff] }
 0x21d   : > { %v1989_v52 = vsel %vm549_vm1, %v1252_v59, %v13717_v32 }
 0x21e   : > { %2566 = vmatmul.mubr.f32.gmra.mrb[20].mxu1 %v1977_v50  ;;  %v2014_v38 = vsel %vm549_vm1, %v15197_v56, %v13681_v58  ;;  %v1982_v35 = vsel %vm549_vm1, %v1245_v29, %v13682_v2  ;;  %v1255_v29 = vld [vmem:[#allocation2 + $0x181] sm:$0xff] }
 0x21f   : > { %2570 = vmatprep.mubr.f32.mxu1 %v2010_v7  ;;  %v13690_v53 = vpop.permute.xlu0 %13689  ;;  %v13716_v7 = vunpack.i.l.bf16 %v13715_v14 }
 0x220   : > { %v13691_v3 = vunpack.i.l.bf16 %v13690_v53  ;;  %v13692_v4 = vunpack.i.h.bf16 %v13690_v53  ;;  %v1321_v53 = vld [vmem:[#allocation2 + $0x1a0] sm:$0xff] }
 0x221   : > { %v2021_v22 = vsel %vm549_vm1, %v15324_v15, %v13716_v7 }
 0x222   : > { %2571 = vmatmul.mubr.f32.gmra.mrb[22].mxu1 %v1978_v36  ;;  %v2016_v56 = vsel %vm549_vm1, %v15248_v31, %v13691_v3  ;;  %v1984_v49 = vsel %vm549_vm1, %v1247_v27, %v13692_v4 }
 0x223   : > { %2575 = vmatprep.mubr.f32.mxu1 %v2011_v8  ;;  %v13700_v21 = vpop.permute.xlu0 %13699  ;;  %v13725_v8 = vpop.permute.xlu1 %13724 }
 0x224   : > { %v13701_v1 = vunpack.i.l.bf16 %v13700_v21  ;;  %v13702_v46 = vunpack.i.h.bf16 %v13700_v21  ;;  %v13726_v9 = vunpack.i.l.bf16 %v13725_v8  ;;  %v13727_v62 = vunpack.i.h.bf16 %v13725_v8 }
 0x226   : > { %2576 = vmatmul.mubr.f32.gmra.mrb[24].mxu1 %v1979_v48  ;;  %v2018_v31 = vsel %vm549_vm1, %v15288_v41, %v13701_v1  ;;  %v1986_v11 = vsel %vm549_vm1, %v1249_v23, %v13702_v46  ;;  %v1318_v48 = vld [vmem:[#allocation2 + $0x180] sm:$0xff] }
 0x227   : > { %2580 = vmatprep.mubr.f32.mxu1 %v2012_v6  ;;  %v13710_v40 = vpop.permute.xlu0 %13709  ;;  %v15461_v46 = vld [vmem:[%s21410_s6] ss:$0 sm:$0xff] }
 0x228   : > { %v13711_v10 = vunpack.i.l.bf16 %v13710_v40  ;;  %v13712_v50 = vunpack.i.h.bf16 %v13710_v40 }
 0x22a   : > { %2581 = vmatmul.mubr.f32.gmra.mrb[26].mxu1 %v1980_v44  ;;  %v2020_v41 = vsel %vm549_vm1, %v15314_v34, %v13711_v10  ;;  %v1988_v36 = vsel %vm549_vm1, %v1251_v24, %v13712_v50  ;;  %v1319_v44 = vld [vmem:[#allocation2 + $0x188] sm:$0xff] }
 0x22b   : > { %2585 = vmatprep.mubr.f32.mxu1 %v2013_v60  ;;  %v13720_v5 = vpop.permute.xlu0 %13719  ;;  %v2023_v15 = vsel %vm549_vm1, %v1319_v44, %v13726_v9  ;;  %v13735_v60 = vpop.permute.xlu1 %13734 }
 0x22c   : > { %v13721_v55 = vunpack.i.l.bf16 %v13720_v5  ;;  %v13722_v57 = vunpack.i.h.bf16 %v13720_v5  ;;  %v13736_v18 = vunpack.i.l.bf16 %v13735_v60  ;;  %v13737_v61 = vunpack.i.h.bf16 %v13735_v60 }
 0x22e   : > { %2586 = vmatmul.mubr.f32.gmra.mrb[28].mxu1 %v1981_v20  ;;  %v2022_v34 = vsel %vm549_vm1, %v1318_v48, %v13721_v55  ;;  %v1990_v54 = vsel %vm549_vm1, %v1253_v37, %v13722_v57  ;;  %v1991_v20 = vsel %vm549_vm1, %v1254_v43, %v13727_v62  ;;  %v2025_v3 = vsel %vm549_vm1, %v1321_v53, %v13736_v18 }
 0x22f   : > { %2590 = vmatprep.mubr.f32.mxu1 %v2014_v38  ;;  %v13730_v6 = vpop.permute.xlu0 %13729 }
 0x230   : > { %v13731_v58 = vunpack.i.l.bf16 %v13730_v6  ;;  %v13732_v2 = vunpack.i.h.bf16 %v13730_v6 }
 0x232   : > { %2591 = vmatmul.mubr.f32.gmra.mrb[30].mxu1 %v1982_v35  ;;  %v2024_v38 = vsel %vm549_vm1, %v1320_v63, %v13731_v58  ;;  %v1992_v35 = vsel %vm549_vm1, %v1255_v29, %v13732_v2 }
 0x233   : > { %2595 = vmatprep.mubr.f32.mxu1 %v2015_v30  ;;  %v1256_v30 = vld [vmem:[#allocation2 + $0x189] sm:$0xff] }
 0x234   : > { %v1993_v51 = vsel %vm549_vm1, %v1256_v30, %v13737_v61 }
 0x236   : > { %2596 = vmatmul.mubr.f32.gmra.mrb[32].mxu1 %v1983_v13 }
 0x237   : > { %2600 = vmatprep.mubr.f32.mxu1 %v2016_v56 }
 0x23a   : > { %2601 = vmatmul.mubr.f32.gmra.mrb[34].mxu1 %v1984_v49 }
 0x23b   : > { %2605 = vmatprep.mubr.f32.mxu1 %v2017_v39 }
 0x23e   : > { %2606 = vmatmul.mubr.f32.gmra.mrb[36].mxu1 %v1985_v12 }
 0x23f   : > { %2610 = vmatprep.mubr.f32.mxu1 %v2018_v31 }
 0x242   : > { %2611 = vmatmul.mubr.f32.gmra.mrb[38].mxu1 %v1986_v11 }
 0x243   : > { %2615 = vmatprep.mubr.f32.mxu1 %v2019_v0 }
 0x246   : > { %2616 = vmatmul.mubr.f32.gmra.mrb[40].mxu1 %v1987_v17 }
 0x247   : > { %2620 = vmatprep.mubr.f32.mxu1 %v2020_v41  ;;  %v2909_v41 = vld [vmem:[%s21429_s29 + $0x8] sm:$0xff] }
 0x248   : > { %3036 = vmatprep.mubr.f32.mxu0 %v2909_v41 }
 0x24a   : > { %2621 = vmatmul.mubr.f32.gmra.mrb[42].mxu1 %v1988_v36 }
 0x24b   : > { %2625 = vmatprep.mubr.f32.mxu1 %v2021_v22 }
 0x24e   : > { %2626 = vmatmul.mubr.f32.gmra.mrb[44].mxu1 %v1989_v52 }
 0x24f   : > { %2630 = vmatprep.mubr.f32.mxu1 %v2022_v34 }
 0x252   : > { %2631 = vmatmul.mubr.f32.gmra.mrb[46].mxu1 %v1990_v54 }
 0x253   : > { %2635 = vmatprep.mubr.f32.mxu1 %v2023_v15 }
 0x256   : > { %2636 = vmatmul.mubr.f32.gmra.mrb[48].mxu1 %v1991_v20 }
 0x257   : > { %2640 = vmatprep.mubr.f32.mxu1 %v2024_v38 }
 0x25a   : > { %2641 = vmatmul.mubr.f32.gmra.mrb[50].mxu1 %v1992_v35 }
 0x25b   : > { %2645 = vmatprep.mubr.f32.mxu1 %v2025_v3 }
 0x25e   : > { %2646 = vmatmul.mubr.f32.gmra.mrb[52].mxu1 %v1993_v51 }
 0x298   : > { %v2267_v16 = vpop.f32.mrb[32].mxu0 }
 0x299   : > { %v2269_v4 = vpop.f32.mrb[33].mxu0  ;;  %v2268_v19 = vadd.f32 %v15461_v46, %v2267_v16 }
 0x29c   : > { %v2272_v13 = vpop.f32.mrb[34].mxu0 }
 0x29d   : > { %v2274_v25 = vpop.f32.mrb[35].mxu0  ;;  %v2273_v10 = vadd.f32 %v15461_v46, %v2272_v13 }
 0x2a0   : > { %v2277_v56 = vpop.f32.mrb[36].mxu0 }
 0x2a1   : > { %v2279_v21 = vpop.f32.mrb[37].mxu0  ;;  %v2278_v5 = vadd.f32 %v15461_v46, %v2277_v56 }
 0x2a4   : > { %v2282_v27 = vpop.f32.mrb[38].mxu0 }
 0x2a5   : > { %v2284_v33 = vpop.f32.mrb[39].mxu0  ;;  %v2283_v52 = vadd.f32 %v15461_v46, %v2282_v27 }
 0x2a8   : > { %v2287_v49 = vpop.f32.mrb[40].mxu0 }
 0x2a9   : > { %v2289_v1 = vpop.f32.mrb[41].mxu0  ;;  %v2288_v44 = vadd.f32 %v15461_v46, %v2287_v49 }
 0x2ac   : > { %v10631_v39 = vpop.f32.mrb[42].mxu0 }
 0x2ad   : > { %v2717_v47 = vpop.f32.mrb[43].mxu0 }
 0x2b0   : > { %v10634_v45 = vpop.f32.mrb[44].mxu0 }
 0x2b1   : > { %v2727_v12 = vpop.f32.mrb[45].mxu0 }
 0x2b4   : > { %v10637_v31 = vpop.f32.mrb[46].mxu0 }
 0x2b5   : > { %v2492_v40 = vpop.f32.mrb[54].mxu1  ;;  %v2737_v23 = vpop.f32.mrb[47].mxu0 }
 0x2b6   : > { %v2493_v28 = vadd.f32 %v2492_v40, %v2268_v19  ;;  %v2494_v11 = vpop.f32.mrb[55].mxu1 }
 0x2b8   : > { %v2718_v0 = vadd.f32 %v2717_v47, %v2493_v28  ;;  %v10640_v14 = vpop.f32.mrb[48].mxu0 }
 0x2b9   : > { %v2497_v26 = vpop.f32.mrb[56].mxu1  ;;  %v2747_v50 = vpop.f32.mrb[49].mxu0 }
 0x2ba   : > { %v2498_v17 = vadd.f32 %v2497_v26, %v2273_v10  ;;  %v2499_v7 = vpop.f32.mrb[57].mxu1  ;;  %v2876_v22 = vmax.f32 %v2718_v0, 0.0 }
 0x2bc   : > { %v2723_v24 = vadd.f32 %v10631_v39, %v2498_v17  ;;  %v15469_v32 = vpop.f32.mrb[50].mxu0 }
 0x2bd   : > { %v2502_v36 = vpop.f32.mrb[58].mxu1  ;;  %v2757_v55 = vpop.f32.mrb[51].mxu0 }
 0x2be   : > { %v2877_v8 = vmax.f32 %v2723_v24, 0.0  ;;  %v2503_v59 = vadd.f32 %v2502_v36, %v2278_v5  ;;  %v2504_v57 = vpop.f32.mrb[59].mxu1 }
 0x2c0   : > { %v11252_v48 = vpack.c.bf16 %v2877_v8, %v2876_v22  ;;  %v2728_v9 = vadd.f32 %v2727_v12, %v2503_v59  ;;  %v15472_v34 = vpop.f32.mrb[52].mxu0 }
 0x2c1   : > { %v2507_v6 = vpop.f32.mrb[60].mxu1  ;;  %v15474_v37 = vpop.f32.mrb[53].mxu0 }
 0x2c2   : > { %v2508_v62 = vadd.f32 %v2507_v6, %v2283_v52  ;;  %v2509_v54 = vpop.f32.mrb[61].mxu1  ;;  %11253 = vmatpush1.bf16.msra.mxu0 %v11252_v48  ;;  %v2878_v43 = vmax.f32 %v2728_v9, 0.0 }
 0x2c3   : > { %11254 = vmatprep.subr.bf16.mxu0 %v14017_v42 }
 0x2c4   : > { %v2733_v58 = vadd.f32 %v10634_v45, %v2508_v62  ;;  %v15478_v15 = vpop.f32.mrb[54].mxu0 }
 0x2c5   : > { %v2512_v60 = vpop.f32.mrb[62].mxu1  ;;  %v15480_v63 = vpop.f32.mrb[55].mxu0 }
 0x2c6   : > { %v2879_v2 = vmax.f32 %v2733_v58, 0.0  ;;  %v2513_v20 = vadd.f32 %v2512_v60, %v2288_v44  ;;  %v2514_v18 = vpop.f32.mrb[63].mxu1 }
 0x2c8   : > { %v11255_v38 = vpack.c.bf16 %v2879_v2, %v2878_v43  ;;  %v2738_v53 = vadd.f32 %v2737_v23, %v2513_v20  ;;  %v15482_v29 = vpop.f32.mrb[56].mxu0 }
 0x2c9   : > { %v2517_v61 = vpop.f32.mrb[0].mxu1  ;;  %v15484_v35 = vpop.f32.mrb[57].mxu0 }
 0x2ca   : > { %v13165_v3 = vadd.f32 %v15461_v46, %v2517_v61  ;;  %v2519_v30 = vpop.f32.mrb[1].mxu1  ;;  %11256 = vmatpush1.bf16.msra.mxu0 %v11255_v38  ;;  %v2880_v25 = vmax.f32 %v2738_v53, 0.0 }
 0x2cb   : > { %11257 = vmatprep.subr.bf16.mxu0 %v14017_v42 }
 0x2cc   : > { %v2743_v51 = vadd.f32 %v13165_v3, %v10637_v31  ;;  %v15488_v16 = vpop.f32.mrb[58].mxu0 }
 0x2cd   : > { %v2522_v4 = vpop.f32.mrb[2].mxu1  ;;  %v15490_v13 = vpop.f32.mrb[59].mxu0 }
 0x2ce   : > { %v2881_v56 = vmax.f32 %v2743_v51, 0.0  ;;  %v13166_v21 = vadd.f32 %v15461_v46, %v2522_v4  ;;  %v2524_v27 = vpop.f32.mrb[3].mxu1 }
 0x2d0   : > { %v11258_v33 = vpack.c.bf16 %v2881_v56, %v2880_v25  ;;  %v2748_v49 = vadd.f32 %v13166_v21, %v2747_v50  ;;  %v15493_v1 = vpop.f32.mrb[60].mxu0 }
 0x2d1   : > { %v2527_v39 = vpop.f32.mrb[4].mxu1  ;;  %v15495_v47 = vpop.f32.mrb[61].mxu0 }
 0x2d2   : > { %v13167_v45 = vadd.f32 %v15461_v46, %v2527_v39  ;;  %v2529_v12 = vpop.f32.mrb[5].mxu1  ;;  %11259 = vmatpush1.bf16.msra.mxu0 %v11258_v33  ;;  %v2882_v28 = vmax.f32 %v2748_v49, 0.0 }
 0x2d3   : > { %11260 = vmatprep.subr.bf16.mxu0 %v14017_v42 }
 0x2d4   : > { %v2753_v19 = vadd.f32 %v13167_v45, %v10640_v14  ;;  %v15499_v31 = vpop.f32.mrb[62].mxu0 }
 0x2d5   : > { %v2532_v40 = vpop.f32.mrb[6].mxu1  ;;  %v15501_v23 = vpop.f32.mrb[63].mxu0 }
 0x2d6   : > { %v2883_v11 = vmax.f32 %v2753_v19, 0.0  ;;  %v13168_v10 = vadd.f32 %v15461_v46, %v2532_v40  ;;  %v2534_v0 = vpop.f32.mrb[7].mxu1 }
 0x2d8   : > { %v11261_v26 = vpack.c.bf16 %v2883_v11, %v2882_v28  ;;  %v2758_v50 = vadd.f32 %v13168_v10, %v2757_v55  ;;  %v15504_v17 = vpop.f32.mrb[64].mxu0 }
 0x2d9   : > { %v2537_v7 = vpop.f32.mrb[8].mxu1  ;;  %v15506_v41 = vpop.f32.mrb[65].mxu0 }
 0x2da   : > { %v13169_v5 = vadd.f32 %v15461_v46, %v2537_v7  ;;  %v2539_v14 = vpop.f32.mrb[9].mxu1  ;;  %11262 = vmatpush1.bf16.msra.mxu0 %v11261_v26  ;;  %v2884_v59 = vmax.f32 %v2758_v50, 0.0 }
 0x2db   : > { %11263 = vmatprep.subr.bf16.mxu0 %v14017_v42 }
 0x2dc   : > { %v2763_v24 = vadd.f32 %v13169_v5, %v15469_v32  ;;  %v15511_v36 = vpop.f32.mrb[66].mxu0 }
 0x2dd   : > { %v2542_v22 = vpop.f32.mrb[10].mxu1  ;;  %v15513_v8 = vpop.f32.mrb[67].mxu0 }
 0x2de   : > { %v2885_v55 = vmax.f32 %v2763_v24, 0.0  ;;  %v13170_v57 = vadd.f32 %v15461_v46, %v2542_v22  ;;  %v2544_v52 = vpop.f32.mrb[11].mxu1 }
 0x2e0   : > { %v11264_v48 = vpack.c.bf16 %v2885_v55, %v2884_v59  ;;  %v2768_v9 = vadd.f32 %v13170_v57, %v15474_v37  ;;  %v15517_v6 = vpop.f32.mrb[68].mxu0 }
 0x2e1   : > { %v2547_v62 = vpop.f32.mrb[12].mxu1  ;;  %v15519_v54 = vpop.f32.mrb[69].mxu0 }
 0x2e2   : > { %v13171_v32 = vadd.f32 %v15461_v46, %v2547_v62  ;;  %v2549_v44 = vpop.f32.mrb[13].mxu1  ;;  %11265 = vmatpush1.bf16.msra.mxu0 %v11264_v48  ;;  %v2886_v20 = vmax.f32 %v2768_v9, 0.0 }
 0x2e3   : > { %11266 = vmatprep.subr.bf16.mxu0 %v14017_v42 }
 0x2e4   : > { %v2773_v58 = vadd.f32 %v13171_v32, %v15472_v34  ;;  %v15524_v60 = vpop.f32.mrb[70].mxu0 }
 0x2e5   : > { %v2552_v43 = vpop.f32.mrb[14].mxu1  ;;  %v15526_v2 = vpop.f32.mrb[71].mxu0 }
 0x2e6   : > { %v2887_v37 = vmax.f32 %v2773_v58, 0.0  ;;  %v13172_v18 = vadd.f32 %v15461_v46, %v2552_v43  ;;  %v2554_v38 = vpop.f32.mrb[15].mxu1 }
 0x2e8   : > { %v11267_v53 = vpack.c.bf16 %v2887_v37, %v2886_v20  ;;  %v2778_v61 = vadd.f32 %v13172_v18, %v15480_v63  ;;  %v15530_v3 = vpop.f32.mrb[72].mxu0 }
 0x2e9   : > { %v2557_v30 = vpop.f32.mrb[16].mxu1  ;;  %v15532_v51 = vpop.f32.mrb[73].mxu0 }
 0x2ea   : > { %v13173_v34 = vadd.f32 %v15461_v46, %v2557_v30  ;;  %v2559_v4 = vpop.f32.mrb[17].mxu1  ;;  %11268 = vmatpush1.bf16.msra.mxu0 %v11267_v53  ;;  %v2888_v21 = vmax.f32 %v2778_v61, 0.0 }
 0x2eb   : > { %11269 = vmatprep.subr.bf16.mxu0 %v14017_v42 }
 0x2ec   : > { %v2783_v25 = vadd.f32 %v13173_v34, %v15478_v15 }
 0x2ed   : > { %v2562_v56 = vpop.f32.mrb[18].mxu1 }
 0x2ee   : > { %v2889_v27 = vmax.f32 %v2783_v25, 0.0  ;;  %v13174_v33 = vadd.f32 %v15461_v46, %v2562_v56  ;;  %v2564_v49 = vpop.f32.mrb[19].mxu1 }
 0x2f0   : > { %v11270_v63 = vpack.c.bf16 %v2889_v27, %v2888_v21  ;;  %v2788_v39 = vadd.f32 %v13174_v33, %v15484_v35 }
 0x2f1   : > { %v2567_v45 = vpop.f32.mrb[20].mxu1 }
 0x2f2   : > { %v13175_v12 = vadd.f32 %v15461_v46, %v2567_v45  ;;  %v2569_v19 = vpop.f32.mrb[21].mxu1  ;;  %11271 = vmatpush1.bf16.msra.mxu0 %v11270_v63  ;;  %v2890_v15 = vmax.f32 %v2788_v39, 0.0 }
 0x2f3   : > { %11272 = vmatprep.subr.bf16.mxu0 %v14017_v42 }
 0x2f4   : > { %v2793_v40 = vadd.f32 %v13175_v12, %v15482_v29 }
 0x2f5   : > { %v2572_v28 = vpop.f32.mrb[22].mxu1 }
 0x2f6   : > { %v2891_v11 = vmax.f32 %v2793_v40, 0.0  ;;  %v13176_v10 = vadd.f32 %v15461_v46, %v2572_v28  ;;  %v2574_v0 = vpop.f32.mrb[23].mxu1 }
 0x2f8   : > { %v11273_v26 = vpack.c.bf16 %v2891_v11, %v2890_v15  ;;  %v2798_v50 = vadd.f32 %v13176_v10, %v15490_v13 }
 0x2f9   : > { %v2577_v7 = vpop.f32.mrb[24].mxu1 }
 0x2fa   : > { %v13177_v35 = vadd.f32 %v15461_v46, %v2577_v7  ;;  %v2579_v5 = vpop.f32.mrb[25].mxu1  ;;  %11274 = vmatpush1.bf16.msra.mxu0 %v11273_v26  ;;  %v2892_v29 = vmax.f32 %v2798_v50, 0.0 }
 0x2fb   : > { %11275 = vmatprep.subr.bf16.mxu0 %v14017_v42 }
 0x2fc   : > { %v2803_v14 = vadd.f32 %v13177_v35, %v15488_v16 }
 0x2fd   : > { %v2582_v24 = vpop.f32.mrb[26].mxu1 }
 0x2fe   : > { %v2893_v22 = vmax.f32 %v2803_v14, 0.0  ;;  %v13178_v59 = vadd.f32 %v15461_v46, %v2582_v24  ;;  %v2584_v55 = vpop.f32.mrb[27].mxu1 }
 0x300   : > { %v11276_v57 = vpack.c.bf16 %v2893_v22, %v2892_v29  ;;  %v2808_v52 = vadd.f32 %v13178_v59, %v15495_v47 }
 0x301   : > { %v2587_v48 = vpop.f32.mrb[28].mxu1 }
 0x302   : > { %v13179_v13 = vadd.f32 %v15461_v46, %v2587_v48  ;;  %v2589_v9 = vpop.f32.mrb[29].mxu1  ;;  %11277 = vmatpush1.bf16.msra.mxu0 %v11276_v57  ;;  %v2894_v16 = vmax.f32 %v2808_v52, 0.0 }
 0x303   : > { %11278 = vmatprep.subr.bf16.mxu0 %v14017_v42 }
 0x304   : > { %v2813_v62 = vadd.f32 %v13179_v13, %v15493_v1 }
 0x305   : > { %v2592_v32 = vpop.f32.mrb[30].mxu1 }
 0x306   : > { %v2895_v44 = vmax.f32 %v2813_v62, 0.0  ;;  %v13180_v58 = vadd.f32 %v15461_v46, %v2592_v32  ;;  %v2594_v43 = vpop.f32.mrb[31].mxu1 }
 0x308   : > { %v11279_v20 = vpack.c.bf16 %v2895_v44, %v2894_v16  ;;  %v2818_v37 = vadd.f32 %v13180_v58, %v15501_v23 }
 0x309   : > { %v2597_v18 = vpop.f32.mrb[32].mxu1 }
 0x30a   : > { %v13181_v47 = vadd.f32 %v15461_v46, %v2597_v18  ;;  %v2599_v38 = vpop.f32.mrb[33].mxu1  ;;  %11280 = vmatpush1.bf16.msra.mxu0 %v11279_v20  ;;  %v2896_v1 = vmax.f32 %v2818_v37, 0.0 }
 0x30b   : > { %11281 = vmatprep.subr.bf16.mxu0 %v14017_v42  ;;  %v2908_v38 = vld [vmem:[%s21429_s29] sm:$0xff] }
 0x30c   : > { %v2823_v53 = vadd.f32 %v13181_v47, %v15499_v31 }
 0x30d   : > { %v2602_v61 = vpop.f32.mrb[34].mxu1 }
 0x30e   : > { %v2897_v30 = vmax.f32 %v2823_v53, 0.0  ;;  %v13182_v34 = vadd.f32 %v15461_v46, %v2602_v61  ;;  %v2604_v4 = vpop.f32.mrb[35].mxu1  ;;  %v2915_v53 = vld [vmem:[%s21429_s29 + $0x38] sm:$0xff]  ;;  %v2914_v61 = vld [vmem:[%s21429_s29 + $0x30] sm:$0xff] }
 0x30f   : > { %v2918_v4 = vld [vmem:[%s21429_s29 + $0x50] sm:$0xff] }
 0x310   : > { %v11282_v25 = vpack.c.bf16 %v2897_v30, %v2896_v1  ;;  %v2828_v56 = vadd.f32 %v13182_v34, %v15506_v41  ;;  %v2917_v1 = vld [vmem:[%s21429_s29 + $0x48] sm:$0xff]  ;;  %v2916_v30 = vld [vmem:[%s21429_s29 + $0x40] sm:$0xff]  ;;  %v2919_v34 = vld [vmem:[%s21429_s29 + $0x58] sm:$0xff] }
 0x311   : > { %v2607_v21 = vpop.f32.mrb[36].mxu1 }
 0x312   : > { %v13183_v23 = vadd.f32 %v15461_v46, %v2607_v21  ;;  %v2609_v27 = vpop.f32.mrb[37].mxu1  ;;  %11283 = vmatpush1.bf16.msra.mxu0 %v11282_v25  ;;  %v2898_v31 = vmax.f32 %v2828_v56, 0.0  ;;  %v2921_v25 = vld [vmem:[%s21429_s29 + $0x68] sm:$0xff]  ;;  %v2920_v56 = vld [vmem:[%s21429_s29 + $0x60] sm:$0xff]  ;;  %v2923_v21 = vld [vmem:[%s21429_s29 + $0x78] sm:$0xff] }
 0x313   : > { %11284 = vmatprep.subr.bf16.mxu0 %v14017_v42  ;;  %v2925_v27 = vld [vmem:[%s21429_s29 + $0x88] sm:$0xff] }
 0x314   : > { %v2833_v33 = vadd.f32 %v13183_v23, %v15504_v17  ;;  %v2922_v23 = vld [vmem:[%s21429_s29 + $0x70] sm:$0xff] }
 0x315   : > { %v2612_v49 = vpop.f32.mrb[38].mxu1 }
 0x316   : > { %v2899_v63 = vmax.f32 %v2833_v33, 0.0  ;;  %v13184_v39 = vadd.f32 %v15461_v46, %v2612_v49  ;;  %v2614_v45 = vpop.f32.mrb[39].mxu1  ;;  %v2924_v33 = vld [vmem:[%s21429_s29 + $0x80] sm:$0xff]  ;;  %v2927_v49 = vld [vmem:[%s21429_s29 + $0x98] sm:$0xff] }
 0x317   : > { %v2931_v45 = vld [vmem:[%s21429_s29 + $0xb8] sm:$0xff] }
 0x318   : > { %v11285_v12 = vpack.c.bf16 %v2899_v63, %v2898_v31  ;;  %v2838_v19 = vadd.f32 %v13184_v39, %v15513_v8  ;;  %v2926_v31 = vld [vmem:[%s21429_s29 + $0x90] sm:$0xff]  ;;  %v2929_v63 = vld [vmem:[%s21429_s29 + $0xa8] sm:$0xff]  ;;  %v2928_v39 = vld [vmem:[%s21429_s29 + $0xa0] sm:$0xff] }
 0x319   : > { %v2617_v40 = vpop.f32.mrb[40].mxu1 }
 0x31a   : > { %v13185_v41 = vadd.f32 %v15461_v46, %v2617_v40  ;;  %v2619_v28 = vpop.f32.mrb[41].mxu1  ;;  %11286 = vmatpush1.bf16.msra.mxu0 %v11285_v12  ;;  %v2900_v17 = vmax.f32 %v2838_v19, 0.0  ;;  %v2930_v12 = vld [vmem:[%s21429_s29 + $0xb0] sm:$0xff]  ;;  %v2933_v19 = vld [vmem:[%s21429_s29 + $0xc8] sm:$0xff]  ;;  %v2932_v40 = vld [vmem:[%s21429_s29 + $0xc0] sm:$0xff] }
 0x31b   : > { %11287 = vmatprep.subr.bf16.mxu0 %v14017_v42  ;;  %v2934_v28 = vld [vmem:[%s21429_s29 + $0xd0] sm:$0xff] }
 0x31c   : > { %v2843_v15 = vadd.f32 %v13185_v41, %v15511_v36  ;;  %v2935_v41 = vld [vmem:[%s21429_s29 + $0xd8] sm:$0xff] }
 0x31d   : > { %v2622_v11 = vpop.f32.mrb[42].mxu1 }
 0x31e   : > { %v2901_v10 = vmax.f32 %v2843_v15, 0.0  ;;  %v13186_v0 = vadd.f32 %v15461_v46, %v2622_v11  ;;  %v2624_v26 = vpop.f32.mrb[43].mxu1  ;;  %v2937_v15 = vld [vmem:[%s21429_s29 + $0xe8] sm:$0xff]  ;;  %v2936_v11 = vld [vmem:[%s21429_s29 + $0xe0] sm:$0xff] }
 0x31f   : > { %v2940_v26 = vld [vmem:[%s21429_s29 + $0x100] sm:$0xff] }
 0x320   : > { %v11288_v50 = vpack.c.bf16 %v2901_v10, %v2900_v17  ;;  %v2848_v7 = vadd.f32 %v13186_v0, %v15519_v54  ;;  %v2939_v17 = vld [vmem:[%s21429_s29 + $0xf8] sm:$0xff]  ;;  %v2938_v10 = vld [vmem:[%s21429_s29 + $0xf0] sm:$0xff]  ;;  %v2941_v0 = vld [vmem:[%s21429_s29 + $0x108] sm:$0xff] }
 0x321   : > { %v2627_v35 = vpop.f32.mrb[44].mxu1 }
 0x322   : > { %v13187_v8 = vadd.f32 %v15461_v46, %v2627_v35  ;;  %v2629_v5 = vpop.f32.mrb[45].mxu1  ;;  %11289 = vmatpush1.bf16.msra.mxu0 %v11288_v50  ;;  %v2902_v36 = vmax.f32 %v2848_v7, 0.0  ;;  %v2943_v50 = vld [vmem:[%s21429_s29 + $0x118] sm:$0xff]  ;;  %v2942_v7 = vld [vmem:[%s21429_s29 + $0x110] sm:$0xff]  ;;  %v2945_v35 = vld [vmem:[%s21429_s29 + $0x128] sm:$0xff] }
 0x323   : > { %11290 = vmatprep.subr.bf16.mxu0 %v14017_v42  ;;  %v2947_v5 = vld [vmem:[%s21429_s29 + $0x138] sm:$0xff] }
 0x324   : > { %v2853_v14 = vadd.f32 %v13187_v8, %v15517_v6  ;;  %v2944_v8 = vld [vmem:[%s21429_s29 + $0x120] sm:$0xff] }
 0x325   : > { %v2632_v24 = vpop.f32.mrb[46].mxu1 }
 0x326   : > { %v2903_v29 = vmax.f32 %v2853_v14, 0.0  ;;  %v13188_v22 = vadd.f32 %v15461_v46, %v2632_v24  ;;  %v2634_v59 = vpop.f32.mrb[47].mxu1  ;;  %v2946_v14 = vld [vmem:[%s21429_s29 + $0x130] sm:$0xff]  ;;  %v2949_v24 = vld [vmem:[%s21429_s29 + $0x148] sm:$0xff] }
 0x327   : > { %v2953_v59 = vld [vmem:[%s21429_s29 + $0x168] sm:$0xff] }
 0x328   : > { %v11291_v55 = vpack.c.bf16 %v2903_v29, %v2902_v36  ;;  %v2858_v57 = vadd.f32 %v13188_v22, %v15526_v2  ;;  %v2948_v36 = vld [vmem:[%s21429_s29 + $0x140] sm:$0xff]  ;;  %v2951_v29 = vld [vmem:[%s21429_s29 + $0x158] sm:$0xff]  ;;  %v2950_v22 = vld [vmem:[%s21429_s29 + $0x150] sm:$0xff] }
 0x329   : > { %v2637_v52 = vpop.f32.mrb[48].mxu1 }
 0x32a   : > { %v13189_v54 = vadd.f32 %v15461_v46, %v2637_v52  ;;  %v2639_v48 = vpop.f32.mrb[49].mxu1  ;;  %11292 = vmatpush1.bf16.msra.mxu0 %v11291_v55  ;;  %v2904_v6 = vmax.f32 %v2858_v57, 0.0  ;;  %v2952_v55 = vld [vmem:[%s21429_s29 + $0x160] sm:$0xff]  ;;  %v2955_v57 = vld [vmem:[%s21429_s29 + $0x178] sm:$0xff]  ;;  %v2954_v52 = vld [vmem:[%s21429_s29 + $0x170] sm:$0xff] }
 0x32b   : > { %11293 = vmatprep.subr.bf16.mxu0 %v14017_v42  ;;  %v2956_v48 = vld [vmem:[%s21429_s29 + $0x180] sm:$0xff] }
 0x32c   : > { %v2863_v13 = vadd.f32 %v13189_v54, %v15524_v60  ;;  %v2957_v54 = vld [vmem:[%s21429_s29 + $0x188] sm:$0xff] }
 0x32d   : > { %v2642_v9 = vpop.f32.mrb[50].mxu1 }
 0x32e   : > { %v2905_v62 = vmax.f32 %v2863_v13, 0.0  ;;  %v13190_v32 = vadd.f32 %v15461_v46, %v2642_v9  ;;  %v2644_v16 = vpop.f32.mrb[51].mxu1  ;;  %v2959_v13 = vld [vmem:[%s21429_s29 + $0x198] sm:$0xff]  ;;  %v2958_v9 = vld [vmem:[%s21429_s29 + $0x190] sm:$0xff] }
 0x32f   : > { %v2962_v16 = vld [vmem:[%s21429_s29 + $0x1b0] sm:$0xff] }
 0x330   : > { %v11294_v44 = vpack.c.bf16 %v2905_v62, %v2904_v6  ;;  %v2868_v58 = vadd.f32 %v13190_v32, %v15532_v51  ;;  %v2911_v51 = vld [vmem:[%s21429_s29 + $0x18] sm:$0xff]  ;;  %v2961_v6 = vld [vmem:[%s21429_s29 + $0x1a8] sm:$0xff]  ;;  %v2960_v62 = vld [vmem:[%s21429_s29 + $0x1a0] sm:$0xff] }
 0x331   : > { %v2647_v43 = vpop.f32.mrb[52].mxu1  ;;  %v2963_v32 = vld [vmem:[%s21429_s29 + $0x1b8] sm:$0xff] }
 0x332   : > { %v13191_v2 = vadd.f32 %v15461_v46, %v2647_v43  ;;  %v2649_v20 = vpop.f32.mrb[53].mxu1  ;;  %11295 = vmatpush1.bf16.msra.mxu0 %v11294_v44  ;;  %v2906_v18 = vmax.f32 %v2868_v58, 0.0  ;;  %v2913_v46 = vld [vmem:[%s21429_s29 + $0x28] sm:$0xff]  ;;  %v2964_v58 = vld [vmem:[%s21429_s29 + $0x1c0] sm:$0xff]  ;;  %v2967_v43 = vld [vmem:[%s21429_s29 + $0x1d8] sm:$0xff] }
 0x333   : > { %11296 = vmatprep.subr.bf16.mxu0 %v14017_v42  ;;  %v2910_v42 = vld [vmem:[%s21429_s29 + $0x10] sm:$0xff]  ;;  %v2965_v44 = vld [vmem:[%s21429_s29 + $0x1c8] sm:$0xff] }
 0x334   : > { %v2873_v37 = vadd.f32 %v13191_v2, %v15530_v3  ;;  %v2912_v3 = vld [vmem:[%s21429_s29 + $0x20] sm:$0xff]  ;;  %v2966_v2 = vld [vmem:[%s21429_s29 + $0x1d0] sm:$0xff]  ;;  %v2969_v20 = vld [vmem:[%s21429_s29 + $0x1e8] sm:$0xff] }
 0x336   : > { %v2907_v60 = vmax.f32 %v2873_v37, 0.0  ;;  %v2968_v37 = vld [vmem:[%s21429_s29 + $0x1e0] sm:$0xff] }
 0x338   : > { %v11297_v47 = vpack.c.bf16 %v2907_v60, %v2906_v18  ;;  %v2971_v18 = vld [vmem:[%s21429_s29 + $0x1f8] sm:$0xff]  ;;  %v2970_v60 = vld [vmem:[%s21429_s29 + $0x1f0] sm:$0xff] }
 0x33a   : > { %11298 = vmatpush1.bf16.msra.mxu0 %v11297_v47  ;;  %v3527_v47 = vld [vmem:[%s21411_s7 + $0x200] sm:$0xff] }
 0x33d   : > { %3037 = vmatmul.mubr.f32.vlgmr.msra.gmra.mrb[74].mxu0 %v2908_v38  ;;  %v3528_v38 = vld [vmem:[%s21411_s7 + $0x208] sm:$0xff] }
 0x33e   : > { %3041 = vmatprep.mubr.f32.mxu0 %v2911_v51  ;;  %v3479_v51 = vld [vmem:[%s21411_s7 + $0x80] sm:$0xff] }
 0x341   : > { %3042 = vmatmul.mubr.f32.gmra.mrb[76].mxu0 %v2910_v42  ;;  %v11363_v42 = vpack.c.bf16 %v3528_v38, %v3527_v47  ;;  %v3492_v47 = vld [vmem:[%s21411_s7 + $0xe8] sm:$0xff] }
 0x342   : > { %3046 = vmatprep.mubr.f32.mxu0 %v2913_v46  ;;  %v3480_v46 = vld [vmem:[%s21411_s7 + $0x88] sm:$0xff] }
 0x343   : > { %11364 = vmatprep.subr.bf16.mxu1 %v11363_v42 }
 0x344   : > { %11366 = vmatpush3.bf16.msra.mxu1 %v11363_v42 }
 0x345   : > { %3047 = vmatmul.mubr.f32.gmra.mrb[78].mxu0 %v2912_v3  ;;  %v3463_v3 = vld [vmem:[%s21411_s7] sm:$0xff] }
 0x346   : > { %3051 = vmatprep.mubr.f32.mxu0 %v2915_v53  ;;  %v3464_v53 = vld [vmem:[%s21411_s7 + $0x8] sm:$0xff] }
 0x349   : > { %3052 = vmatmul.mubr.f32.gmra.mrb[80].mxu0 %v2914_v61  ;;  %v11299_v61 = vpack.c.bf16 %v3480_v46, %v3479_v51  ;;  %v3475_v46 = vld [vmem:[%s21411_s7 + $0x60] sm:$0xff] }
 0x34a   : > { %3056 = vmatprep.mubr.f32.mxu0 %v2917_v1  ;;  %v11301_v1 = vpack.c.bf16 %v3464_v53, %v3463_v3  ;;  %v3476_v3 = vld [vmem:[%s21411_s7 + $0x68] sm:$0xff] }
 0x34b   : > { %11300 = vmatprep.subr.bf16.mxu0 %v11299_v61 }
 0x34c   : > { %11302 = vmatpush3.bf16.msra.mxu0 %v11301_v1  ;;  %v3493_v1 = vld [vmem:[%s21411_s7 + $0xf0] sm:$0xff] }
 0x34d   : > { %3057 = vmatmul.mubr.f32.gmra.mrb[82].mxu0 %v2916_v30  ;;  %v3529_v30 = vld [vmem:[%s21411_s7 + $0x210] sm:$0xff] }
 0x34e   : > { %3061 = vmatprep.mubr.f32.mxu0 %v2919_v34  ;;  %v3530_v34 = vld [vmem:[%s21411_s7 + $0x218] sm:$0xff] }
 0x351   : > { %3062 = vmatmul.mubr.f32.gmra.mrb[84].mxu0 %v2918_v4  ;;  %v11367_v4 = vpack.c.bf16 %v3530_v34, %v3529_v30  ;;  %v3494_v30 = vld [vmem:[%s21411_s7 + $0xf8] sm:$0xff]  ;;  %v11325_v34 = vpack.c.bf16 %v3476_v3, %v3475_v46 }
 0x352   : > { %3066 = vmatprep.mubr.f32.mxu0 %v2921_v25  ;;  %v3531_v25 = vld [vmem:[%s21411_s7 + $0x220] sm:$0xff] }
 0x353   : > { %11368 = vmatprep.subr.bf16.mxu1 %v11367_v4 }
 0x354   : > { %11370 = vmatpush3.bf16.msra.mxu1 %v11367_v4 }
 0x355   : > { %3067 = vmatmul.mubr.f32.gmra.mrb[86].mxu0 %v2920_v56  ;;  %v3532_v56 = vld [vmem:[%s21411_s7 + $0x228] sm:$0xff] }
 0x356   : > { %3071 = vmatprep.mubr.f32.mxu0 %v2923_v21  ;;  %v11371_v21 = vpack.c.bf16 %v3532_v56, %v3531_v25  ;;  %v11327_v25 = vpack.c.bf16 %v3494_v30, %v3493_v1  ;;  %v3477_v56 = vld [vmem:[%s21411_s7 + $0x70] sm:$0xff] }
 0x358   : > { %11372 = vmatprep.subr.bf16.mxu1 %v11371_v21 }
 0x359   : > { %3072 = vmatmul.mubr.f32.gmra.mrb[88].mxu0 %v2922_v23  ;;  %11374 = vmatpush3.bf16.msra.mxu1 %v11371_v21  ;;  %v3533_v23 = vld [vmem:[%s21411_s7 + $0x230] sm:$0xff]  ;;  %v3478_v21 = vld [vmem:[%s21411_s7 + $0x78] sm:$0xff] }
 0x35a   : > { %3076 = vmatprep.mubr.f32.mxu0 %v2925_v27  ;;  %v3534_v27 = vld [vmem:[%s21411_s7 + $0x238] sm:$0xff] }
 0x35d   : > { %3077 = vmatmul.mubr.f32.gmra.mrb[90].mxu0 %v2924_v33  ;;  %v11375_v33 = vpack.c.bf16 %v3534_v27, %v3533_v23 }
 0x35e   : > { %3081 = vmatprep.mubr.f32.mxu0 %v2927_v49  ;;  %v3481_v49 = vld [vmem:[%s21411_s7 + $0x90] sm:$0xff] }
 0x35f   : > { %11376 = vmatprep.subr.bf16.mxu1 %v11375_v33 }
 0x360   : > { %11378 = vmatpush3.bf16.msra.mxu1 %v11375_v33  ;;  %v11329_v33 = vpack.c.bf16 %v3478_v21, %v3477_v56 }
 0x361   : > { %3082 = vmatmul.mubr.f32.gmra.mrb[92].mxu0 %v2926_v31  ;;  %v3482_v31 = vld [vmem:[%s21411_s7 + $0x98] sm:$0xff] }
 0x362   : > { %3086 = vmatprep.mubr.f32.mxu0 %v2929_v63  ;;  %v3465_v63 = vld [vmem:[%s21411_s7 + $0x10] sm:$0xff] }
 0x365   : > { %3087 = vmatmul.mubr.f32.gmra.mrb[94].mxu0 %v2928_v39  ;;  %v11303_v39 = vpack.c.bf16 %v3482_v31, %v3481_v49 }
 0x366   : > { %3091 = vmatprep.mubr.f32.mxu0 %v2931_v45  ;;  %v3466_v45 = vld [vmem:[%s21411_s7 + $0x18] sm:$0xff] }
 0x367   : > { %11304 = vmatprep.subr.bf16.mxu0 %v11303_v39 }
 0x369   : > { %3092 = vmatmul.mubr.f32.gmra.mrb[96].mxu0 %v2930_v12  ;;  %v11305_v12 = vpack.c.bf16 %v3466_v45, %v3465_v63 }
 0x36a   : > { %3096 = vmatprep.mubr.f32.mxu0 %v2933_v19 }
 0x36b   : > { %11306 = vmatpush3.bf16.msra.mxu0 %v11305_v12 }
 0x36d   : > { %3097 = vmatmul.mubr.f32.gmra.mrb[98].mxu0 %v2932_v40 }
 0x36e   : > { %3101 = vmatprep.mubr.f32.mxu0 %v2935_v41 }
 0x371   : > { %3102 = vmatmul.mubr.f32.gmra.mrb[100].mxu0 %v2934_v28 }
 0x372   : > { %3106 = vmatprep.mubr.f32.mxu0 %v2937_v15  ;;  %v3483_v15 = vld [vmem:[%s21411_s7 + $0xa0] sm:$0xff] }
 0x375   : > { %3107 = vmatmul.mubr.f32.gmra.mrb[102].mxu0 %v2936_v11  ;;  %v3484_v11 = vld [vmem:[%s21411_s7 + $0xa8] sm:$0xff] }
 0x376   : > { %3111 = vmatprep.mubr.f32.mxu0 %v2939_v17  ;;  %v3467_v17 = vld [vmem:[%s21411_s7 + $0x20] sm:$0xff] }
 0x379   : > { %3112 = vmatmul.mubr.f32.gmra.mrb[104].mxu0 %v2938_v10  ;;  %v11307_v10 = vpack.c.bf16 %v3484_v11, %v3483_v15 }
 0x37a   : > { %3116 = vmatprep.mubr.f32.mxu0 %v2941_v0  ;;  %v3468_v0 = vld [vmem:[%s21411_s7 + $0x28] sm:$0xff] }
 0x37b   : > { %11308 = vmatprep.subr.bf16.mxu0 %v11307_v10 }
 0x37d   : > { %3117 = vmatmul.mubr.f32.gmra.mrb[106].mxu0 %v2940_v26  ;;  %v11309_v26 = vpack.c.bf16 %v3468_v0, %v3467_v17 }
 0x37e   : > { %3121 = vmatprep.mubr.f32.mxu0 %v2943_v50 }
 0x37f   : > { %11310 = vmatpush3.bf16.msra.mxu0 %v11309_v26 }
 0x381   : > { %3122 = vmatmul.mubr.f32.gmra.mrb[108].mxu0 %v2942_v7 }
 0x382   : > { %3126 = vmatprep.mubr.f32.mxu0 %v2945_v35 }
 0x385   : > { %3127 = vmatmul.mubr.f32.gmra.mrb[110].mxu0 %v2944_v8 }
 0x386   : > { %3131 = vmatprep.mubr.f32.mxu0 %v2947_v5 }
 0x389   : > { %3132 = vmatmul.mubr.f32.gmra.mrb[112].mxu0 %v2946_v14 }
 0x38a   : > { %3136 = vmatprep.mubr.f32.mxu0 %v2949_v24  ;;  %v3485_v24 = vld [vmem:[%s21411_s7 + $0xb0] sm:$0xff] }
 0x38d   : > { %3137 = vmatmul.mubr.f32.gmra.mrb[114].mxu0 %v2948_v36  ;;  %v3486_v36 = vld [vmem:[%s21411_s7 + $0xb8] sm:$0xff] }
 0x38e   : > { %3141 = vmatprep.mubr.f32.mxu0 %v2951_v29  ;;  %v3469_v29 = vld [vmem:[%s21411_s7 + $0x30] sm:$0xff] }
 0x391   : > { %3142 = vmatmul.mubr.f32.gmra.mrb[116].mxu0 %v2950_v22 }
 0x392   : > { %3146 = vmatprep.mubr.f32.mxu0 %v2953_v59  ;;  %v11311_v59 = vpack.c.bf16 %v3486_v36, %v3485_v24 }
 0x394   : > { %11312 = vmatprep.subr.bf16.mxu0 %v11311_v59 }
 0x395   : > { %3147 = vmatmul.mubr.f32.gmra.mrb[118].mxu0 %v2952_v55  ;;  %v3470_v55 = vld [vmem:[%s21411_s7 + $0x38] sm:$0xff] }
 0x396   : > { %3151 = vmatprep.mubr.f32.mxu0 %v2955_v57 }
 0x399   : > { %3152 = vmatmul.mubr.f32.gmra.mrb[120].mxu0 %v2954_v52  ;;  %v11313_v52 = vpack.c.bf16 %v3470_v55, %v3469_v29 }
 0x39a   : > { %3156 = vmatprep.mubr.f32.mxu0 %v2957_v54 }
 0x39b   : > { %11314 = vmatpush3.bf16.msra.mxu0 %v11313_v52 }
 0x39d   : > { %3157 = vmatmul.mubr.f32.gmra.mrb[122].mxu0 %v2956_v48 }
 0x39e   : > { %3161 = vmatprep.mubr.f32.mxu0 %v2959_v13  ;;  %v3487_v13 = vld [vmem:[%s21411_s7 + $0xc0] sm:$0xff] }
 0x3a1   : > { %3162 = vmatmul.mubr.f32.gmra.mrb[124].mxu0 %v2958_v9  ;;  %v3488_v9 = vld [vmem:[%s21411_s7 + $0xc8] sm:$0xff] }
 0x3a2   : > { %3166 = vmatprep.mubr.f32.mxu0 %v2961_v6  ;;  %v3471_v6 = vld [vmem:[%s21411_s7 + $0x40] sm:$0xff] }
 0x3a5   : > { %3167 = vmatmul.mubr.f32.gmra.mrb[126].mxu0 %v2960_v62 }
 0x3a6   : > { %3171 = vmatprep.mubr.f32.mxu0 %v2963_v32  ;;  %v11315_v32 = vpack.c.bf16 %v3488_v9, %v3487_v13 }
 0x3a8   : > { %11316 = vmatprep.subr.bf16.mxu0 %v11315_v32 }
 0x3a9   : > { %3172 = vmatmul.mubr.f32.gmra.mrb[128].mxu0 %v2962_v16  ;;  %v3472_v16 = vld [vmem:[%s21411_s7 + $0x48] sm:$0xff] }
 0x3aa   : > { %3176 = vmatprep.mubr.f32.mxu0 %v2965_v44  ;;  %v3489_v44 = vld [vmem:[%s21411_s7 + $0xd0] sm:$0xff] }
 0x3ad   : > { %3177 = vmatmul.mubr.f32.gmra.mrb[130].mxu0 %v2964_v58  ;;  %v3490_v58 = vld [vmem:[%s21411_s7 + $0xd8] sm:$0xff] }
 0x3ae   : > { %3181 = vmatprep.mubr.f32.mxu0 %v2967_v43 }
 0x3b1   : > { %3182 = vmatmul.mubr.f32.gmra.mrb[132].mxu0 %v2966_v2  ;;  %v11317_v2 = vpack.c.bf16 %v3472_v16, %v3471_v6 }
 0x3b2   : > { %3186 = vmatprep.mubr.f32.mxu0 %v2969_v20  ;;  %v11319_v20 = vpack.c.bf16 %v3490_v58, %v3489_v44 }
 0x3b3   : > { %11318 = vmatpush3.bf16.msra.mxu0 %v11317_v2 }
 0x3b4   : > { %11320 = vmatprep.subr.bf16.mxu0 %v11319_v20 }
 0x3b5   : > { %3187 = vmatmul.mubr.f32.gmra.mrb[134].mxu0 %v2968_v37  ;;  %v3473_v37 = vld [vmem:[%s21411_s7 + $0x50] sm:$0xff] }
 0x3b6   : > { %3191 = vmatprep.mubr.f32.mxu0 %v2971_v18  ;;  %v3474_v18 = vld [vmem:[%s21411_s7 + $0x58] sm:$0xff] }
 0x3b7   : > { %v11321_v38 = vpack.c.bf16 %v3474_v18, %v3473_v37 }
 0x3b9   : > { %3192 = vmatmul.mubr.f32.gmra.mrb[136].mxu0 %v2970_v60  ;;  %v3491_v60 = vld [vmem:[%s21411_s7 + $0xe0] sm:$0xff] }
 0x3ba   : > { %v11323_v42 = vpack.c.bf16 %v3492_v47, %v3491_v60  ;;  %11322 = vmatpush3.bf16.msra.mxu0 %v11321_v38  ;;  %v3511_v60 = vld [vmem:[%s21411_s7 + $0x180] sm:$0xff]  ;;  %v3512_v47 = vld [vmem:[%s21411_s7 + $0x188] sm:$0xff] }
 0x3bc   : > { %11324 = vmatprep.subr.bf16.mxu0 %v11323_v42 }
 0x3be   : > { %11326 = vmatpush3.bf16.msra.mxu0 %v11325_v34 }
 0x3bf   : > { %11328 = vmatprep.subr.bf16.mxu0 %v11327_v25 }
 0x3c2   : > { %11330 = vmatpush3.bf16.msra.mxu0 %v11329_v33 }
 0x410   : > { %v15819_v19 = vpop.f32.mrb[74].mxu0 }
 0x411   : > { %v3040_v40 = vpop.f32.mrb[75].mxu0 }
 0x414   : > { %v15821_v41 = vpop.f32.mrb[76].mxu0 }
 0x415   : > { %v3045_v28 = vpop.f32.mrb[77].mxu0 }
 0x418   : > { %v15835_v50 = vpop.f32.mrb[78].mxu0 }
 0x419   : > { %v3050_v7 = vpop.f32.mrb[79].mxu0 }
 0x41c   : > { %v15837_v35 = vpop.f32.mrb[80].mxu0 }
 0x41d   : > { %v3055_v8 = vpop.f32.mrb[81].mxu0 }
 0x420   : > { %v15839_v5 = vpop.f32.mrb[82].mxu0 }
 0x421   : > { %v3060_v14 = vpop.f32.mrb[83].mxu0 }
 0x424   : > { %v15850_v22 = vpop.f32.mrb[84].mxu0 }
 0x425   : > { %v3065_v57 = vpop.f32.mrb[85].mxu0 }
 0x428   : > { %v15855_v54 = vpop.f32.mrb[86].mxu0 }
 0x429   : > { %v3070_v48 = vpop.f32.mrb[87].mxu0 }
 0x42c   : > { %v15866_v62 = vpop.f32.mrb[88].mxu0 }
 0x42d   : > { %v3075_v43 = vpop.f32.mrb[89].mxu0 }
 0x430   : > { %v3078_v51 = vpop.f32.mrb[90].mxu0 }
 0x431   : > { %v3197_v53 = vmax.f32 %v15819_v19, %v3078_v51  ;;  %v3080_v61 = vpop.f32.mrb[91].mxu0  ;;  %v11331_v51 = vpack.c.bf16 %v3512_v47, %v3511_v60 }
 0x433   : > { %11332 = vmatprep.subr.bf16.mxu0 %v11331_v51 }
 0x434   : > { %v3083_v4 = vpop.f32.mrb[92].mxu0 }
 0x435   : > { %v3198_v23 = vmax.f32 %v15821_v41, %v3083_v4  ;;  %v3085_v27 = vpop.f32.mrb[93].mxu0 }
 0x438   : > { %v3088_v49 = vpop.f32.mrb[94].mxu0 }
 0x439   : > { %v3199_v31 = vmax.f32 %v15835_v50, %v3088_v49  ;;  %v3090_v63 = vpop.f32.mrb[95].mxu0 }
 0x43c   : > { %v3093_v39 = vpop.f32.mrb[96].mxu0 }
 0x43d   : > { %v3200_v45 = vmax.f32 %v15837_v35, %v3093_v39  ;;  %v3095_v12 = vpop.f32.mrb[97].mxu0 }
 0x440   : > { %v15911_v19 = vpop.f32.mrb[98].mxu0 }
 0x441   : > { %v3201_v40 = vmax.f32 %v15839_v5, %v15911_v19  ;;  %v3100_v28 = vpop.f32.mrb[99].mxu0 }
 0x444   : > { %v15915_v41 = vpop.f32.mrb[100].mxu0 }
 0x445   : > { %v3202_v15 = vmax.f32 %v15850_v22, %v15915_v41  ;;  %v3105_v11 = vpop.f32.mrb[101].mxu0 }
 0x448   : > { %v15919_v17 = vpop.f32.mrb[102].mxu0 }
 0x449   : > { %v3203_v10 = vmax.f32 %v15855_v54, %v15919_v17  ;;  %v3110_v0 = vpop.f32.mrb[103].mxu0 }
 0x44c   : > { %v15923_v26 = vpop.f32.mrb[104].mxu0 }
 0x44d   : > { %v3204_v50 = vmax.f32 %v15866_v62, %v15923_v26  ;;  %v3115_v7 = vpop.f32.mrb[105].mxu0 }
 0x450   : > { %v3118_v35 = vpop.f32.mrb[106].mxu0 }
 0x451   : > { %v3120_v8 = vpop.f32.mrb[107].mxu0 }
 0x454   : > { %v3123_v14 = vpop.f32.mrb[108].mxu0 }
 0x455   : > { %v3125_v24 = vpop.f32.mrb[109].mxu0 }
 0x458   : > { %v3128_v36 = vpop.f32.mrb[110].mxu0 }
 0x459   : > { %v3130_v29 = vpop.f32.mrb[111].mxu0 }
 0x45c   : > { %v3133_v59 = vpop.f32.mrb[112].mxu0 }
 0x45d   : > { %v3135_v55 = vpop.f32.mrb[113].mxu0 }
 0x460   : > { %v3138_v57 = vpop.f32.mrb[114].mxu0 }
 0x461   : > { %v3140_v52 = vpop.f32.mrb[115].mxu0 }
 0x464   : > { %v3143_v48 = vpop.f32.mrb[116].mxu0 }
 0x465   : > { %v3145_v13 = vpop.f32.mrb[117].mxu0 }
 0x468   : > { %v15927_v9 = vpop.f32.mrb[118].mxu0 }
 0x469   : > { %v3150_v6 = vpop.f32.mrb[119].mxu0 }
 0x46c   : > { %v15929_v32 = vpop.f32.mrb[120].mxu0 }
 0x46d   : > { %v3155_v16 = vpop.f32.mrb[121].mxu0 }
 0x470   : > { %v3158_v44 = vpop.f32.mrb[122].mxu0 }
 0x471   : > { %v3205_v58 = vmax.f32 %v3118_v35, %v3158_v44  ;;  %v3160_v43 = vpop.f32.mrb[123].mxu0 }
 0x473   : > { %v3213_v2 = vmax.f32 %v3197_v53, %v3205_v58  ;;  %v3238_v53 = vld [vmem:[#allocation3 + $0x1] sm:$0xff] }
 0x474   : > { %v3163_v20 = vpop.f32.mrb[124].mxu0 }
 0x475   : > { %3222 = vst.msk [vmem:[#allocation3 + $0x11] sm:$0xff] %vm549_vm1, %v3213_v2  ;;  %v3206_v37 = vmax.f32 %v3123_v14, %v3163_v20  ;;  %v3165_v18 = vpop.f32.mrb[125].mxu0 }
 0x477   : > { %v3214_v38 = vmax.f32 %v3198_v23, %v3206_v37 }
 0x478   : > { %v3168_v42 = vpop.f32.mrb[126].mxu0 }
 0x479   : > { %3223 = vst.msk [vmem:[#allocation3 + $0x21] sm:$0xff] %vm549_vm1, %v3214_v38  ;;  %v3207_v46 = vmax.f32 %v3128_v36, %v3168_v42  ;;  %v3170_v3 = vpop.f32.mrb[127].mxu0  ;;  %v3294_v42 = vld [vmem:[#allocation3 + $0x91] sm:$0xff] }
 0x47a   : > { %v3302_v3 = vld [vmem:[#allocation3 + $0x92] sm:$0xff] }
 0x47b   : > { %v3215_v61 = vmax.f32 %v3199_v31, %v3207_v46 }
 0x47c   : > { %v3173_v1 = vpop.f32.mrb[128].mxu0  ;;  %v15939_v30 = vld [vmem:[#allocation3 + $0x10] sm:$0xff] }
 0x47d   : > { %3224 = vst.msk [vmem:[#allocation3 + $0x31] sm:$0xff] %vm549_vm1, %v3215_v61  ;;  %v3208_v34 = vmax.f32 %v3133_v59, %v3173_v1  ;;  %v3175_v4 = vpop.f32.mrb[129].mxu0  ;;  %v13738_v25 = vpack.i.bf16 %v3238_v53, %v15939_v30  ;;  %v15946_v27 = vld [vmem:[#allocation3 + $0x11] sm:$0xff]  ;;  %v3246_v53 = vld [vmem:[#allocation3 + $0x2] sm:$0xff] }
 0x47e   : > { %v3495_v61 = vld [vmem:[%s21411_s7 + $0x100] sm:$0xff]  ;;  %v3496_v1 = vld [vmem:[%s21411_s7 + $0x108] sm:$0xff]  ;;  %v3230_v4 = vld [vmem:[#allocation3] sm:$0xff] }
 0x47f   : > { %v3216_v56 = vmax.f32 %v3200_v45, %v3208_v34  ;;  %13739 = vrot.lane.b32.xlu0 %v13738_v25, %s14018_s28  ;;  %v3513_v25 = vld [vmem:[%s21411_s7 + $0x190] sm:$0xff] }
 0x480   : > { %v3178_v21 = vpop.f32.mrb[130].mxu0  ;;  %v15944_v23 = vld [vmem:[#allocation3 + $0x22] sm:$0xff] }
 0x481   : > { %v15948_v33 = vld [vmem:[#allocation3 + $0x20] sm:$0xff]  ;;  %3225 = vst.msk [vmem:[#allocation3 + $0x41] sm:$0xff] %vm549_vm1, %v3216_v56  ;;  %v3209_v49 = vmax.f32 %v3138_v57, %v3178_v21  ;;  %v3180_v31 = vpop.f32.mrb[131].mxu0  ;;  %10693 = vmatprep.mubr.msk.f32.mxu1 %vm549_vm1, %v15944_v23  ;;  %v3514_v56 = vld [vmem:[%s21411_s7 + $0x198] sm:$0xff] }
 0x482   : > { %v13743_v63 = vpack.i.bf16 %v15946_v27, %v15948_v33  ;;  %v15961_v28 = vld [vmem:[#allocation3 + $0x21] sm:$0xff]  ;;  %v11333_v31 = vpack.c.bf16 %v3496_v1, %v3495_v61  ;;  %v3503_v1 = vld [vmem:[%s21411_s7 + $0x140] sm:$0xff] }
 0x483   : > { %v3217_v39 = vmax.f32 %v3201_v40, %v3209_v49 }
 0x484   : > { %13744 = vrot.lane.b32.xlu1 %v13743_v63, %s14018_s28  ;;  %v3183_v45 = vpop.f32.mrb[132].mxu0  ;;  %v15959_v12 = vld [vmem:[#allocation3 + $0x32] sm:$0xff] }
 0x485   : > { %v15963_v11 = vld [vmem:[#allocation3 + $0x30] sm:$0xff]  ;;  %3226 = vst.msk [vmem:[#allocation3 + $0x51] sm:$0xff] %vm549_vm1, %v3217_v39  ;;  %v3210_v0 = vmax.f32 %v3143_v48, %v3183_v45  ;;  %v3185_v7 = vpop.f32.mrb[133].mxu0  ;;  %10694 = vmatmul.mubr.msk.f32.vlgmr.msra.gmra.mrb[64].mxu1 %vm549_vm1, %v15959_v12  ;;  %v11335_v45 = vpack.c.bf16 %v3514_v56, %v3513_v25  ;;  %v3521_v25 = vld [vmem:[%s21411_s7 + $0x1d0] sm:$0xff] }
 0x486   : > { %v13748_v5 = vpack.i.bf16 %v15961_v28, %v15963_v11  ;;  %v15976_v8 = vld [vmem:[#allocation3 + $0x31] sm:$0xff]  ;;  %v3498_v7 = vld [vmem:[%s21411_s7 + $0x118] sm:$0xff] }
 0x487   : > { %v3218_v19 = vmax.f32 %v3202_v15, %v3210_v0  ;;  %v13783_v37 = vpack.i.bf16 %v15944_v23, %v15976_v8  ;;  %v3497_v0 = vld [vmem:[%s21411_s7 + $0x110] sm:$0xff] }
 0x488   : > { %13749 = vrot.lane.b32.xlu0 %v13748_v5, %s14018_s28  ;;  %v3188_v40 = vpop.f32.mrb[134].mxu0  ;;  %v15974_v35 = vld [vmem:[#allocation3 + $0x42] sm:$0xff] }
 0x489   : > { %v15978_v14 = vld [vmem:[#allocation3 + $0x40] sm:$0xff]  ;;  %3227 = vst.msk [vmem:[#allocation3 + $0x61] sm:$0xff] %vm549_vm1, %v3218_v19  ;;  %v3211_v24 = vmax.f32 %v15927_v9, %v3188_v40  ;;  %v3190_v36 = vpop.f32.mrb[135].mxu0  ;;  %10696 = vmatprep.mubr.msk.f32.mxu1 %vm549_vm1, %v15974_v35  ;;  %v3515_v19 = vld [vmem:[%s21411_s7 + $0x1a0] sm:$0xff]  ;;  %v3516_v40 = vld [vmem:[%s21411_s7 + $0x1a8] sm:$0xff] }
 0x48a   : > { %v13753_v22 = vpack.i.bf16 %v15976_v8, %v15978_v14  ;;  %v15992_v59 = vld [vmem:[#allocation3 + $0x41] sm:$0xff] }
 0x48b   : > { %v3219_v41 = vmax.f32 %v3203_v10, %v3211_v24  ;;  %v13788_v20 = vpack.i.bf16 %v15959_v12, %v15992_v59 }
 0x48c   : > { %13754 = vrot.lane.b32.xlu1 %v13753_v22, %s14018_s28  ;;  %v3193_v15 = vpop.f32.mrb[136].mxu0  ;;  %v15990_v29 = vld [vmem:[#allocation3 + $0x52] sm:$0xff]  ;;  %v11337_v22 = vpack.c.bf16 %v3498_v7, %v3497_v0  ;;  %v3506_v0 = vld [vmem:[%s21411_s7 + $0x158] sm:$0xff] }
 0x48d   : > { %v15994_v55 = vld [vmem:[#allocation3 + $0x50] sm:$0xff]  ;;  %3228 = vst.msk [vmem:[#allocation3 + $0x71] sm:$0xff] %vm549_vm1, %v3219_v41  ;;  %v3212_v57 = vmax.f32 %v15929_v32, %v3193_v15  ;;  %v3195_v52 = vpop.f32.mrb[137].mxu0  ;;  %10697 = vmatmul.mubr.msk.f32.gmra.mrb[66].mxu1 %vm549_vm1, %v15990_v29 }
 0x48e   : > { %v13758_v54 = vpack.i.bf16 %v15992_v59, %v15994_v55  ;;  %v16008_v48 = vld [vmem:[#allocation3 + $0x51] sm:$0xff] }
 0x48f   : > { %v3220_v17 = vmax.f32 %v3204_v50, %v3212_v57  ;;  %v3270_v32 = vld [vmem:[#allocation3 + $0x12] sm:$0xff]  ;;  %v13793_v60 = vpack.i.bf16 %v15974_v35, %v16008_v48  ;;  %v11339_v57 = vpack.c.bf16 %v3516_v40, %v3515_v19 }
 0x490   : > { %13759 = vrot.lane.b32.xlu0 %v13758_v54, %s14018_s28  ;;  %v16006_v10 = vld [vmem:[#allocation3 + $0x62] sm:$0xff]  ;;  %v13778_v43 = vpack.i.bf16 %v3270_v32, %v15961_v28  ;;  %v3499_v52 = vld [vmem:[%s21411_s7 + $0x120] sm:$0xff]  ;;  %v3500_v54 = vld [vmem:[%s21411_s7 + $0x128] sm:$0xff] }
 0x491   : > { %v16010_v13 = vld [vmem:[#allocation3 + $0x60] sm:$0xff]  ;;  %3229 = vst.msk [vmem:[#allocation3 + $0x81] sm:$0xff] %vm549_vm1, %v3220_v17  ;;  %10699 = vmatprep.mubr.msk.f32.mxu1 %vm549_vm1, %v16006_v10 }
 0x492   : > { %v13763_v9 = vpack.i.bf16 %v16008_v48, %v16010_v13  ;;  %v16020_v26 = vld [vmem:[#allocation3 + $0x61] sm:$0xff] }
 0x493   : > { %v13798_v18 = vpack.i.bf16 %v15990_v29, %v16020_v26 }
 0x494   : > { %13764 = vrot.lane.b32.xlu1 %v13763_v9, %s14018_s28  ;;  %v16018_v62 = vld [vmem:[#allocation3 + $0x72] sm:$0xff]  ;;  %v3517_v9 = vld [vmem:[%s21411_s7 + $0x1b0] sm:$0xff] }
 0x495   : > { %v16022_v50 = vld [vmem:[#allocation3 + $0x70] sm:$0xff]  ;;  %10700 = vmatmul.mubr.msk.f32.gmra.mrb[68].mxu1 %vm549_vm1, %v16018_v62 }
 0x496   : > { %v13768_v6 = vpack.i.bf16 %v16020_v26, %v16022_v50  ;;  %v16029_v44 = vld [vmem:[#allocation3 + $0x71] sm:$0xff] }
 0x497   : > { %v13803_v51 = vpack.i.bf16 %v16006_v10, %v16029_v44 }
 0x498   : > { %13769 = vrot.lane.b32.xlu0 %v13768_v6, %s14018_s28  ;;  %v3301_v16 = vld [vmem:[#allocation3 + $0x82] sm:$0xff] }
 0x499   : > { %v16031_v58 = vld [vmem:[#allocation3 + $0x80] sm:$0xff]  ;;  %10702 = vmatprep.mubr.msk.f32.mxu1 %vm549_vm1, %v3301_v16  ;;  %v13813_v46 = vpack.i.bf16 %v3301_v16, %v3294_v42  ;;  %v11341_v16 = vpack.c.bf16 %v3500_v54, %v3499_v52 }
 0x49a   : > { %v13773_v2 = vpack.i.bf16 %v16029_v44, %v16031_v58  ;;  %v16049_v47 = vld [vmem:[#allocation3 + $0x81] sm:$0xff]  ;;  %10703 = vmatmul.mubr.msk.f32.gmra.mrb[70].mxu1 %vm549_vm1, %v3302_v3 }
 0x49b   : > { %v13808_v38 = vpack.i.bf16 %v16018_v62, %v16049_v47  ;;  %v3525_v54 = vld [vmem:[%s21411_s7 + $0x1f0] sm:$0xff] }
 0x49c   : > { %13779 = vrot.lane.b32.xlu0 %v13778_v43, %s14018_s28  ;;  %13774 = vrot.lane.b32.xlu1 %v13773_v2, %s14018_s28 }
 0x4a0   : > { %13789 = vrot.lane.b32.xlu0 %v13788_v20, %s14018_s28  ;;  %13784 = vrot.lane.b32.xlu1 %v13783_v37, %s14018_s28  ;;  %v3501_v37 = vld [vmem:[%s21411_s7 + $0x130] sm:$0xff] }
 0x4a4   : > { %13799 = vrot.lane.b32.xlu0 %v13798_v18, %s14018_s28  ;;  %13794 = vrot.lane.b32.xlu1 %v13793_v60, %s14018_s28  ;;  %v3502_v18 = vld [vmem:[%s21411_s7 + $0x138] sm:$0xff] }
 0x4a8   : > { %13809 = vrot.lane.b32.xlu0 %v13808_v38, %s14018_s28  ;;  %13804 = vrot.lane.b32.xlu1 %v13803_v51, %s14018_s28  ;;  %v3519_v38 = vld [vmem:[%s21411_s7 + $0x1c0] sm:$0xff] }
 0x4ac   : > { %13814 = vrot.lane.b32.xlu1 %v13813_v46, %s14018_s28  ;;  %v11345_v46 = vpack.c.bf16 %v3502_v18, %v3501_v37 }
 0x4f1   : > { %v13740_v34 = vpop.permute.xlu0 %13739 }
 0x4f2   : > { %v13742_v21 = vunpack.i.h.bf16 %v13740_v34  ;;  %v13741_v49 = vunpack.i.l.bf16 %v13740_v34  ;;  %v3504_v34 = vld [vmem:[%s21411_s7 + $0x148] sm:$0xff] }
 0x4f4   : > { %v3439_v63 = vsel %vm549_vm1, %v3246_v53, %v13741_v49  ;;  %v3431_v39 = vsel %vm549_vm1, %v3230_v4, %v13742_v21  ;;  %v11349_v49 = vpack.c.bf16 %v3504_v34, %v3503_v1 }
 0x4f5   : > { %3630 = vmatprep.mubr.f32.mxu0 %v3439_v63 }
 0x4f6   : > { %v13745_v5 = vpop.permute.xlu1 %13744  ;;  %3631 = vmatmul.mubr.f32.vlgmr.msra.gmra.mrb[138].mxu0 %v3431_v39 }
 0x4f7   : > { %v13747_v24 = vunpack.i.h.bf16 %v13745_v5  ;;  %v13746_v36 = vunpack.i.l.bf16 %v13745_v5  ;;  %11334 = vmatpush3.bf16.msra.mxu0 %v11333_v31  ;;  %v3523_v5 = vld [vmem:[%s21411_s7 + $0x1e0] sm:$0xff] }
 0x4f8   : > { %11336 = vmatprep.subr.bf16.mxu0 %v11335_v45  ;;  %v3505_v45 = vld [vmem:[%s21411_s7 + $0x150] sm:$0xff] }
 0x4f9   : > { %v3440_v41 = vsel %vm549_vm1, %v3270_v32, %v13746_v36  ;;  %v3432_v15 = vsel %vm549_vm1, %v15939_v30, %v13747_v24  ;;  %v3518_v30 = vld [vmem:[%s21411_s7 + $0x1b8] sm:$0xff]  ;;  %v11353_v24 = vpack.c.bf16 %v3506_v0, %v3505_v45 }
 0x4fa   : > { %3635 = vmatprep.mubr.f32.mxu0 %v3440_v41  ;;  %v13750_v17 = vpop.permute.xlu0 %13749  ;;  %v11343_v20 = vpack.c.bf16 %v3518_v30, %v3517_v9 }
 0x4fb   : > { %v13752_v6 = vunpack.i.h.bf16 %v13750_v17  ;;  %v13751_v32 = vunpack.i.l.bf16 %v13750_v17  ;;  %3636 = vmatmul.mubr.f32.gmra.mrb[140].mxu0 %v3432_v15  ;;  %v3507_v15 = vld [vmem:[%s21411_s7 + $0x160] sm:$0xff] }
 0x4fc   : > { %11338 = vmatpush3.bf16.msra.mxu0 %v11337_v22 }
 0x4fd   : > { %v3441_v43 = vsel %vm549_vm1, %v15944_v23, %v13751_v32  ;;  %v3433_v2 = vsel %vm549_vm1, %v15948_v33, %v13752_v6  ;;  %11340 = vmatprep.subr.bf16.mxu0 %v11339_v57  ;;  %v3520_v23 = vld [vmem:[%s21411_s7 + $0x1c8] sm:$0xff] }
 0x4fe   : > { %3640 = vmatprep.mubr.f32.mxu0 %v3441_v43  ;;  %v13755_v60 = vpop.permute.xlu1 %13754  ;;  %v11347_v61 = vpack.c.bf16 %v3520_v23, %v3519_v38  ;;  %v3508_v57 = vld [vmem:[%s21411_s7 + $0x168] sm:$0xff]  ;;  %v3509_v43 = vld [vmem:[%s21411_s7 + $0x170] sm:$0xff] }
 0x4ff   : > { %v13757_v51 = vunpack.i.h.bf16 %v13755_v60  ;;  %v13756_v42 = vunpack.i.l.bf16 %v13755_v60  ;;  %3641 = vmatmul.mubr.f32.gmra.mrb[142].mxu0 %v3433_v2  ;;  %v11357_v30 = vpack.c.bf16 %v3508_v57, %v3507_v15  ;;  %v3510_v2 = vld [vmem:[%s21411_s7 + $0x178] sm:$0xff] }
 0x500   : > { %11342 = vmatpush3.bf16.msra.mxu0 %v11341_v16 }
 0x501   : > { %v3442_v3 = vsel %vm549_vm1, %v15959_v12, %v13756_v42  ;;  %v3434_v53 = vsel %vm549_vm1, %v15963_v11, %v13757_v51  ;;  %11344 = vmatprep.subr.bf16.mxu0 %v11343_v20  ;;  %v3522_v12 = vld [vmem:[%s21411_s7 + $0x1d8] sm:$0xff] }
 0x502   : > { %3645 = vmatprep.mubr.f32.mxu0 %v3442_v3  ;;  %v13760_v4 = vpop.permute.xlu0 %13759  ;;  %v11351_v39 = vpack.c.bf16 %v3522_v12, %v3521_v25 }
 0x503   : > { %v13762_v56 = vunpack.i.h.bf16 %v13760_v4  ;;  %v13761_v21 = vunpack.i.l.bf16 %v13760_v4  ;;  %3646 = vmatmul.mubr.f32.gmra.mrb[144].mxu0 %v3434_v53 }
 0x504   : > { %11346 = vmatpush3.bf16.msra.mxu0 %v11345_v46 }
 0x505   : > { %v3443_v31 = vsel %vm549_vm1, %v15974_v35, %v13761_v21  ;;  %v3435_v63 = vsel %vm549_vm1, %v15978_v14, %v13762_v56  ;;  %11348 = vmatprep.subr.bf16.mxu0 %v11347_v61  ;;  %v3524_v35 = vld [vmem:[%s21411_s7 + $0x1e8] sm:$0xff] }
 0x506   : > { %3650 = vmatprep.mubr.f32.mxu0 %v3443_v31  ;;  %v13765_v7 = vpop.permute.xlu1 %13764  ;;  %v11355_v41 = vpack.c.bf16 %v3524_v35, %v3523_v5 }
 0x507   : > { %v13767_v19 = vunpack.i.h.bf16 %v13765_v7  ;;  %v13766_v40 = vunpack.i.l.bf16 %v13765_v7  ;;  %3651 = vmatmul.mubr.f32.gmra.mrb[146].mxu0 %v3435_v63 }
 0x508   : > { %11350 = vmatpush3.bf16.msra.mxu0 %v11349_v49 }
 0x509   : > { %v3444_v36 = vsel %vm549_vm1, %v15990_v29, %v13766_v40  ;;  %v3436_v22 = vsel %vm549_vm1, %v15994_v55, %v13767_v19  ;;  %11352 = vmatprep.subr.bf16.mxu0 %v11351_v39  ;;  %v3526_v29 = vld [vmem:[%s21411_s7 + $0x1f8] sm:$0xff] }
 0x50a   : > { %3655 = vmatprep.mubr.f32.mxu0 %v3444_v36  ;;  %v13770_v52 = vpop.permute.xlu0 %13769  ;;  %v11359_v16 = vpack.c.bf16 %v3526_v29, %v3525_v54  ;;  %v3286_v36 = vld [vmem:[#allocation3 + $0x90] sm:$0xff]  ;;  %v3933_v29 = vld [vmem:[%s21413_s9 + $0x98] sm:$0xff] }
 0x50b   : > { %v13772_v17 = vunpack.i.h.bf16 %v13770_v52  ;;  %v13771_v9 = vunpack.i.l.bf16 %v13770_v52  ;;  %3656 = vmatmul.mubr.f32.gmra.mrb[148].mxu0 %v3436_v22 }
 0x50c   : > { %11354 = vmatpush3.bf16.msra.mxu0 %v11353_v24 }
 0x50d   : > { %v3445_v6 = vsel %vm549_vm1, %v16006_v10, %v13771_v9  ;;  %v3437_v32 = vsel %vm549_vm1, %v16010_v13, %v13772_v17  ;;  %11356 = vmatprep.subr.bf16.mxu0 %v11355_v41  ;;  %v11361_v10 = vpack.c.bf16 %v3510_v2, %v3509_v43  ;;  %v3934_v9 = vld [vmem:[%s21413_s9 + $0xa0] sm:$0xff]  ;;  %v3936_v43 = vld [vmem:[%s21413_s9 + $0xb0] sm:$0xff]  ;;  %v3937_v2 = vld [vmem:[%s21413_s9 + $0xb8] sm:$0xff] }
 0x50e   : > { %v13780_v20 = vpop.permute.xlu0 %13779  ;;  %3660 = vmatprep.mubr.f32.mxu0 %v3445_v6  ;;  %v13775_v37 = vpop.permute.xlu1 %13774 }
 0x50f   : > { %v13781_v18 = vunpack.i.l.bf16 %v13780_v20  ;;  %v13777_v60 = vunpack.i.h.bf16 %v13775_v37  ;;  %v13776_v38 = vunpack.i.l.bf16 %v13775_v37  ;;  %3661 = vmatmul.mubr.f32.gmra.mrb[150].mxu0 %v3437_v32  ;;  %v13782_v42 = vunpack.i.h.bf16 %v13780_v20  ;;  %v3938_v37 = vld [vmem:[%s21413_s9 + $0xc0] sm:$0xff] }
 0x510   : > { %11358 = vmatpush3.bf16.msra.mxu0 %v11357_v30  ;;  %v3935_v30 = vld [vmem:[%s21413_s9 + $0xa8] sm:$0xff]  ;;  %v11391_v20 = vpack.c.bf16 %v3937_v2, %v3936_v43 }
 0x511   : > { %v3446_v23 = vsel %vm549_vm1, %v16018_v62, %v13776_v38  ;;  %v3438_v51 = vsel %vm549_vm1, %v16022_v50, %v13777_v60  ;;  %11360 = vmatprep.subr.bf16.mxu0 %v11359_v16  ;;  %v3455_v53 = vsel %vm549_vm1, %v15948_v33, %v13781_v18  ;;  %v3447_v34 = vsel %vm549_vm1, %v15946_v27, %v13782_v42  ;;  %v3939_v18 = vld [vmem:[%s21413_s9 + $0xc8] sm:$0xff]  ;;  %v3940_v38 = vld [vmem:[%s21413_s9 + $0xd0] sm:$0xff] }
 0x512   : > { %v13785_v46 = vpop.permute.xlu1 %13784  ;;  %3665 = vmatprep.mubr.f32.mxu0 %v3446_v23  ;;  %v13790_v61 = vpop.permute.xlu0 %13789  ;;  %v11387_v6 = vpack.c.bf16 %v3935_v30, %v3934_v9  ;;  %v11395_v60 = vpack.c.bf16 %v3939_v18, %v3938_v37  ;;  %v3943_v42 = vld [vmem:[%s21413_s9 + $0xe8] sm:$0xff] }
 0x513   : > { %v13786_v3 = vunpack.i.l.bf16 %v13785_v46  ;;  %3666 = vmatmul.mubr.f32.gmra.mrb[152].mxu0 %v3438_v51  ;;  %v13787_v1 = vunpack.i.h.bf16 %v13785_v46  ;;  %v13791_v62 = vunpack.i.l.bf16 %v13790_v61  ;;  %v13792_v12 = vunpack.i.h.bf16 %v13790_v61  ;;  %v3942_v51 = vld [vmem:[%s21413_s9 + $0xe0] sm:$0xff] }
 0x514   : > { %11362 = vmatpush3.bf16.msra.mxu0 %v11361_v10  ;;  %3735 = vmatprep.mubr.f32.mxu0 %v3455_v53  ;;  %v3941_v10 = vld [vmem:[%s21413_s9 + $0xd8] sm:$0xff]  ;;  %v11403_v46 = vpack.c.bf16 %v3943_v42, %v3942_v51 }
 0x515   : > { %v3456_v4 = vsel %vm549_vm1, %v15963_v11, %v13786_v3  ;;  %v3448_v56 = vsel %vm549_vm1, %v15961_v28, %v13787_v1  ;;  %v3457_v33 = vsel %vm549_vm1, %v15978_v14, %v13791_v62  ;;  %v3449_v27 = vsel %vm549_vm1, %v15976_v8, %v13792_v12  ;;  %v3944_v3 = vld [vmem:[%s21413_s9 + $0xf0] sm:$0xff]  ;;  %v3945_v53 = vld [vmem:[%s21413_s9 + $0xf8] sm:$0xff]  ;;  %v3907_v62 = vld [vmem:[%s21413_s9 + $0x8] sm:$0xff] }
 0x516   : > { %v13795_v25 = vpop.permute.xlu1 %13794  ;;  %v13800_v49 = vpop.permute.xlu0 %13799  ;;  %v11399_v23 = vpack.c.bf16 %v3941_v10, %v3940_v38  ;;  %v11407_v61 = vpack.c.bf16 %v3945_v53, %v3944_v3  ;;  %v3922_v1 = vld [vmem:[#allocation4 + $0x1] sm:$0xff]  ;;  %v3911_v38 = vld [vmem:[%s21413_s9 + $0x28] sm:$0xff] }
 0x517   : > { %3736 = vmatmul.mubr.f32.vlgmr.msra.gmra.mrb[154].mxu0 %v3447_v34  ;;  %v13796_v21 = vunpack.i.l.bf16 %v13795_v25  ;;  %v13797_v31 = vunpack.i.h.bf16 %v13795_v25  ;;  %v13801_v63 = vunpack.i.l.bf16 %v13800_v49  ;;  %v13802_v45 = vunpack.i.h.bf16 %v13800_v49  ;;  %v3906_v34 = vld [vmem:[%s21413_s9] sm:$0xff] }
 0x518   : > { %3740 = vmatprep.mubr.f32.mxu0 %v3456_v4  ;;  %v11411_v4 = vpack.c.bf16 %v3907_v62, %v3906_v34 }
 0x519   : > { %v3458_v11 = vsel %vm549_vm1, %v15994_v55, %v13796_v21  ;;  %v3450_v28 = vsel %vm549_vm1, %v15992_v59, %v13797_v31  ;;  %v3459_v14 = vsel %vm549_vm1, %v16010_v13, %v13801_v63  ;;  %v3451_v8 = vsel %vm549_vm1, %v16008_v48, %v13802_v45 }
 0x51a   : > { %v13805_v39 = vpop.permute.xlu1 %13804  ;;  %v13810_v7 = vpop.permute.xlu0 %13809 }
 0x51b   : > { %3741 = vmatmul.mubr.f32.gmra.mrb[156].mxu0 %v3448_v56  ;;  %v13806_v0 = vunpack.i.l.bf16 %v13805_v39  ;;  %v13807_v5 = vunpack.i.h.bf16 %v13805_v39  ;;  %v13811_v35 = vunpack.i.l.bf16 %v13810_v7  ;;  %v13812_v40 = vunpack.i.h.bf16 %v13810_v7 }
 0x51c   : > { %3745 = vmatprep.mubr.f32.mxu0 %v3457_v33 }
 0x51d   : > { %v3460_v55 = vsel %vm549_vm1, %v16022_v50, %v13806_v0  ;;  %v3452_v59 = vsel %vm549_vm1, %v16020_v26, %v13807_v5  ;;  %v3461_v13 = vsel %vm549_vm1, %v16031_v58, %v13811_v35  ;;  %v3453_v48 = vsel %vm549_vm1, %v16029_v44, %v13812_v40  ;;  %v3930_v58 = vld [vmem:[%s21413_s9 + $0x80] sm:$0xff]  ;;  %v3931_v44 = vld [vmem:[%s21413_s9 + $0x88] sm:$0xff] }
 0x51e   : > { %v13815_v19 = vpop.permute.xlu1 %13814  ;;  %v11379_v57 = vpack.c.bf16 %v3931_v44, %v3930_v58 }
 0x51f   : > { %3746 = vmatmul.mubr.f32.gmra.mrb[158].mxu0 %v3449_v27  ;;  %v13816_v24 = vunpack.i.l.bf16 %v13815_v19  ;;  %v13817_v22 = vunpack.i.h.bf16 %v13815_v19 }
 0x520   : > { %3750 = vmatprep.mubr.f32.mxu0 %v3458_v11  ;;  %11380 = vmatprep.subr.bf16.mxu0 %v11379_v57 }
 0x521   : > { %v3462_v50 = vsel %vm549_vm1, %v3286_v36, %v13816_v24  ;;  %v3454_v41 = vsel %vm549_vm1, %v16049_v47, %v13817_v22  ;;  %11382 = vmatpush3.bf16.msra.mxu0 %v11379_v57  ;;  %v3932_v47 = vld [vmem:[%s21413_s9 + $0x90] sm:$0xff]  ;;  %v16290_v22 = vld [vmem:[%s21412_s8] ss:$0 sm:$0xff] }
 0x522   : > { %v11383_v17 = vpack.c.bf16 %v3933_v29, %v3932_v47  ;;  %v3908_v29 = vld [vmem:[%s21413_s9 + $0x10] sm:$0xff] }
 0x523   : > { %3751 = vmatmul.mubr.f32.gmra.mrb[160].mxu0 %v3450_v28 }
 0x524   : > { %3755 = vmatprep.mubr.f32.mxu0 %v3459_v14  ;;  %11384 = vmatprep.subr.bf16.mxu0 %v11383_v17 }
 0x525   : > { %11386 = vmatpush3.bf16.msra.mxu0 %v11383_v17  ;;  %v3909_v17 = vld [vmem:[%s21413_s9 + $0x18] sm:$0xff] }
 0x526   : > { %11388 = vmatprep.subr.bf16.mxu0 %v11387_v6  ;;  %v11415_v37 = vpack.c.bf16 %v3909_v17, %v3908_v29 }
 0x527   : > { %3756 = vmatmul.mubr.f32.gmra.mrb[162].mxu0 %v3451_v8 }
 0x528   : > { %3760 = vmatprep.mubr.f32.mxu0 %v3460_v55 }
 0x529   : > { %11390 = vmatpush3.bf16.msra.mxu0 %v11387_v6 }
 0x52a   : > { %11392 = vmatprep.subr.bf16.mxu0 %v11391_v20 }
 0x52b   : > { %3761 = vmatmul.mubr.f32.gmra.mrb[164].mxu0 %v3452_v59 }
 0x52c   : > { %3765 = vmatprep.mubr.f32.mxu0 %v3461_v13 }
 0x52d   : > { %11394 = vmatpush3.bf16.msra.mxu0 %v11391_v20 }
 0x52e   : > { %11396 = vmatprep.subr.bf16.mxu0 %v11395_v60 }
 0x52f   : > { %3766 = vmatmul.mubr.f32.gmra.mrb[166].mxu0 %v3453_v48 }
 0x530   : > { %3770 = vmatprep.mubr.f32.mxu0 %v3462_v50 }
 0x531   : > { %11398 = vmatpush3.bf16.msra.mxu0 %v11395_v60  ;;  %v3910_v60 = vld [vmem:[%s21413_s9 + $0x20] sm:$0xff] }
 0x532   : > { %11400 = vmatprep.subr.bf16.mxu0 %v11399_v23  ;;  %v11419_v3 = vpack.c.bf16 %v3911_v38, %v3910_v60 }
 0x533   : > { %3771 = vmatmul.mubr.f32.gmra.mrb[168].mxu0 %v3454_v41 }
 0x534   : > { %10737 = vmatprep.mubr.f32.mxu0 %v3922_v1  ;;  %v3913_v1 = vld [vmem:[%s21413_s9 + $0x38] sm:$0xff] }
 0x535   : > { %11402 = vmatpush3.bf16.msra.mxu0 %v11399_v23 }
 0x536   : > { %11404 = vmatprep.subr.bf16.mxu0 %v11403_v46 }
 0x539   : > { %11406 = vmatpush3.bf16.msra.mxu0 %v11403_v46 }
 0x53a   : > { %11408 = vmatprep.subr.bf16.mxu0 %v11407_v61 }
 0x53d   : > { %11410 = vmatpush3.bf16.msra.mxu0 %v11407_v61  ;;  %v3912_v61 = vld [vmem:[%s21413_s9 + $0x30] sm:$0xff] }
 0x53e   : > { %11412 = vmatprep.subr.bf16.mxu0 %v11411_v4 }
 0x558   : > { %v16211_v26 = vpop.f32.mrb[64].mxu1 }
 0x559   : > { %v16213_v15 = vpop.f32.mrb[65].mxu1 }
 0x560   : > { %v16221_v52 = vpop.f32.mrb[66].mxu1 }
 0x561   : > { %v16223_v54 = vpop.f32.mrb[67].mxu1 }
 0x568   : > { %v16237_v32 = vpop.f32.mrb[68].mxu1 }
 0x569   : > { %v16239_v16 = vpop.f32.mrb[69].mxu1 }
 0x56d   : > { %v16277_v25 = vpop.f32.mrb[70].mxu1 }
 0x56e   : > { %v16279_v12 = vpop.f32.mrb[71].mxu1 }
 0x5c9   : > { %v10229_v56 = vpop.f32.mrb[138].mxu0 }
 0x5ca   : > { %v10230_v21 = vpop.f32.mrb[139].mxu0 }
 0x5cb   : > { %v10231_v33 = vadd.f32 %v10230_v21, %v10229_v56 }
 0x5cd   : > { %v3633_v41 = vadd.f32 %v10231_v33, %v16290_v22  ;;  %v11423_v33 = vpack.c.bf16 %v3913_v1, %v3912_v61  ;;  %v4170_v1 = vld [vmem:[%s21413_s9 + $0x130] sm:$0xff] }
 0x5ce   : > { %v10232_v49 = vpop.f32.mrb[140].mxu0 }
 0x5cf   : > { %v10233_v31 = vpop.f32.mrb[141].mxu0 }
 0x5d0   : > { %v10234_v27 = vadd.f32 %v10233_v31, %v10232_v49  ;;  %v3914_v31 = vld [vmem:[%s21413_s9 + $0x40] sm:$0xff] }
 0x5d2   : > { %v10235_v63 = vpop.f32.mrb[142].mxu0  ;;  %v3638_v9 = vadd.f32 %v10234_v27, %v16290_v22  ;;  %v3915_v27 = vld [vmem:[%s21413_s9 + $0x48] sm:$0xff] }
 0x5d3   : > { %v10236_v11 = vpop.f32.mrb[143].mxu0 }
 0x5d4   : > { %v10237_v39 = vadd.f32 %v10236_v11, %v10235_v63 }
 0x5d6   : > { %v10238_v45 = vpop.f32.mrb[144].mxu0  ;;  %v3643_v10 = vadd.f32 %v10237_v39, %v16290_v22 }
 0x5d7   : > { %v10239_v28 = vpop.f32.mrb[145].mxu0 }
 0x5d8   : > { %v10240_v0 = vadd.f32 %v10239_v28, %v10238_v45 }
 0x5da   : > { %v10241_v14 = vpop.f32.mrb[146].mxu0 }
 0x5db   : > { %v10242_v7 = vpop.f32.mrb[147].mxu0 }
 0x5dc   : > { %v10243_v5 = vadd.f32 %v10242_v7, %v10241_v14  ;;  %v3916_v7 = vld [vmem:[%s21413_s9 + $0x50] sm:$0xff] }
 0x5de   : > { %v10244_v8 = vpop.f32.mrb[148].mxu0 }
 0x5df   : > { %v10245_v35 = vpop.f32.mrb[149].mxu0 }
 0x5e0   : > { %v16281_v55 = vadd.f32 %v10245_v35, %v10244_v8 }
 0x5e2   : > { %v10247_v19 = vpop.f32.mrb[150].mxu0 }
 0x5e3   : > { %v10248_v40 = vpop.f32.mrb[151].mxu0 }
 0x5e4   : > { %v16283_v59 = vadd.f32 %v10248_v40, %v10247_v19 }
 0x5e6   : > { %v10250_v24 = vpop.f32.mrb[152].mxu0 }
 0x5e7   : > { %v10251_v13 = vpop.f32.mrb[153].mxu0 }
 0x5e8   : > { %v16285_v36 = vadd.f32 %v10251_v13, %v10250_v24 }
 0x5ea   : > { %v10285_v48 = vpop.f32.mrb[154].mxu0 }
 0x5eb   : > { %v10286_v50 = vpop.f32.mrb[155].mxu0 }
 0x5ec   : > { %v10287_v58 = vadd.f32 %v10286_v50, %v10285_v48  ;;  %v3918_v50 = vld [vmem:[%s21413_s9 + $0x60] sm:$0xff] }
 0x5ee   : > { %v3738_v44 = vadd.f32 %v10287_v58, %v3633_v41  ;;  %v10288_v57 = vpop.f32.mrb[156].mxu0 }
 0x5ef   : > { %v10289_v47 = vpop.f32.mrb[157].mxu0 }
 0x5f0   : > { %v3843_v30 = vadd.f32 %v16213_v15, %v3738_v44  ;;  %v10290_v6 = vadd.f32 %v10289_v47, %v10288_v57 }
 0x5f2   : > { %v16301_v43 = vmax.f32 %v3843_v30, 0.0  ;;  %v3743_v2 = vadd.f32 %v10290_v6, %v3638_v9  ;;  %v10291_v20 = vpop.f32.mrb[158].mxu0  ;;  %v3920_v9 = vld [vmem:[%s21413_s9 + $0x70] sm:$0xff] }
 0x5f3   : > { %v10292_v18 = vpop.f32.mrb[159].mxu0 }
 0x5f4   : > { %3890 = vst [vmem:[#allocation4 + $0x11] sm:$0xff] %v16301_v43  ;;  %v3848_v15 = vadd.f32 %v16211_v26, %v3743_v2  ;;  %v10293_v23 = vadd.f32 %v10292_v18, %v10291_v20  ;;  %10738 = vmatmul.mubr.f32.vlgmr.msra.gmra.mrb[170].mxu0 %v16301_v43  ;;  %v3648_v26 = vadd.f32 %v10240_v0, %v16290_v22  ;;  %v4164_v18 = vld [vmem:[%s21413_s9 + $0x100] sm:$0xff] }
 0x5f5   : > { %11414 = vmatpush3.bf16.msra.mxu0 %v11411_v4  ;;  %v11427_v0 = vpack.c.bf16 %v3915_v27, %v3914_v31  ;;  %v4156_v27 = vld [vmem:[#allocation4 + $0x2] sm:$0xff] }
 0x5f6   : > { %v16313_v51 = vmax.f32 %v3848_v15, 0.0  ;;  %v3748_v42 = vadd.f32 %v10293_v23, %v3643_v10  ;;  %v10294_v46 = vpop.f32.mrb[160].mxu0  ;;  %11416 = vmatprep.subr.bf16.mxu0 %v11415_v37  ;;  %v4166_v10 = vld [vmem:[%s21413_s9 + $0x110] sm:$0xff] }
 0x5f7   : > { %v10295_v53 = vpop.f32.mrb[161].mxu0 }
 0x5f8   : > { %3891 = vst [vmem:[#allocation4 + $0x21] sm:$0xff] %v16313_v51  ;;  %v3853_v34 = vadd.f32 %v16223_v54, %v3748_v42  ;;  %v10296_v62 = vadd.f32 %v10295_v53, %v10294_v46  ;;  %10740 = vmatprep.mubr.f32.mxu0 %v16313_v51  ;;  %v3653_v54 = vadd.f32 %v10243_v5, %v16290_v22  ;;  %v3917_v5 = vld [vmem:[%s21413_s9 + $0x58] sm:$0xff]  ;;  %v4168_v42 = vld [vmem:[%s21413_s9 + $0x120] sm:$0xff]  ;;  %v4169_v46 = vld [vmem:[%s21413_s9 + $0x128] sm:$0xff] }
 0x5f9   : > { %11418 = vmatpush3.bf16.msra.mxu0 %v11415_v37  ;;  %v11431_v13 = vpack.c.bf16 %v3917_v5, %v3916_v7  ;;  %v11451_v53 = vpack.c.bf16 %v4169_v46, %v4168_v42  ;;  %v4178_v7 = vld [vmem:[%s21413_s9 + $0x170] sm:$0xff]  ;;  %v4179_v5 = vld [vmem:[%s21413_s9 + $0x178] sm:$0xff]  ;;  %v4438_v46 = vld [vmem:[%s21413_s9 + $0x200] sm:$0xff] }
 0x5fa   : > { %v16325_v4 = vmax.f32 %v3853_v34, 0.0  ;;  %v3753_v56 = vadd.f32 %v10296_v62, %v3648_v26  ;;  %v10297_v21 = vpop.f32.mrb[162].mxu0  ;;  %11420 = vmatprep.subr.bf16.mxu0 %v11419_v3  ;;  %v4171_v26 = vld [vmem:[%s21413_s9 + $0x138] sm:$0xff] }
 0x5fb   : > { %v10298_v49 = vpop.f32.mrb[163].mxu0  ;;  %v16399_v23 = vld [vmem:[#allocation4 + $0x10] sm:$0xff]  ;;  %v11455_v62 = vpack.c.bf16 %v4171_v26, %v4170_v1  ;;  %v4440_v26 = vld [vmem:[%s21413_s9 + $0x210] sm:$0xff] }
 0x5fc   : > { %3892 = vst [vmem:[#allocation4 + $0x31] sm:$0xff] %v16325_v4  ;;  %v3858_v63 = vadd.f32 %v16221_v52, %v3753_v56  ;;  %v10299_v11 = vadd.f32 %v10298_v49, %v10297_v21  ;;  %10741 = vmatmul.mubr.f32.gmra.mrb[172].mxu0 %v16325_v4  ;;  %v3658_v52 = vadd.f32 %v16281_v55, %v16290_v22  ;;  %v3919_v55 = vld [vmem:[%s21413_s9 + $0x68] sm:$0xff]  ;;  %v4172_v21 = vld [vmem:[%s21413_s9 + $0x140] sm:$0xff] }
 0x5fd   : > { %11422 = vmatpush3.bf16.msra.mxu0 %v11419_v3  ;;  %v11435_v29 = vpack.c.bf16 %v3919_v55, %v3918_v50  ;;  %v16468_v50 = vld [vmem:[#allocation4 + $0x12] sm:$0xff] }
 0x5fe   : > { %v16337_v39 = vmax.f32 %v3858_v63, 0.0  ;;  %v3758_v45 = vadd.f32 %v10299_v11, %v3653_v54  ;;  %v10300_v28 = vpop.f32.mrb[164].mxu0  ;;  %11424 = vmatprep.subr.bf16.mxu0 %v11423_v33  ;;  %v4174_v63 = vld [vmem:[%s21413_s9 + $0x150] sm:$0xff]  ;;  %v4175_v11 = vld [vmem:[%s21413_s9 + $0x158] sm:$0xff]  ;;  %v4305_v55 = vld [vmem:[%s21413_s9 + $0x1a0] sm:$0xff] }
 0x5ff   : > { %v10301_v14 = vpop.f32.mrb[165].mxu0  ;;  %v16408_v3 = vld [vmem:[#allocation4 + $0x20] sm:$0xff] }
 0x600   : > { %3893 = vst [vmem:[#allocation4 + $0x41] sm:$0xff] %v16337_v39  ;;  %v3863_v8 = vadd.f32 %v16239_v16, %v3758_v45  ;;  %v10302_v35 = vadd.f32 %v10301_v14, %v10300_v28  ;;  %10743 = vmatprep.mubr.f32.mxu0 %v16337_v39  ;;  %v3663_v16 = vadd.f32 %v16283_v59, %v16290_v22  ;;  %v3921_v59 = vld [vmem:[%s21413_s9 + $0x78] sm:$0xff]  ;;  %v4176_v28 = vld [vmem:[%s21413_s9 + $0x160] sm:$0xff] }
 0x601   : > { %11426 = vmatpush3.bf16.msra.mxu0 %v11423_v33  ;;  %v11439_v37 = vpack.c.bf16 %v3921_v59, %v3920_v9  ;;  %v4173_v33 = vld [vmem:[%s21413_s9 + $0x148] sm:$0xff]  ;;  %v11463_v45 = vpack.c.bf16 %v4175_v11, %v4174_v63  ;;  %v4444_v63 = vld [vmem:[%s21413_s9 + $0x230] sm:$0xff]  ;;  %v4445_v11 = vld [vmem:[%s21413_s9 + $0x238] sm:$0xff] }
 0x602   : > { %v16350_v19 = vmax.f32 %v3863_v8, 0.0  ;;  %v3763_v40 = vadd.f32 %v10302_v35, %v3658_v52  ;;  %v10303_v24 = vpop.f32.mrb[166].mxu0  ;;  %11428 = vmatprep.subr.bf16.mxu0 %v11427_v0  ;;  %v11459_v31 = vpack.c.bf16 %v4173_v33, %v4172_v21  ;;  %v11471_v52 = vpack.c.bf16 %v4179_v5, %v4178_v7  ;;  %v4301_v8 = vld [vmem:[%s21413_s9 + $0x180] sm:$0xff]  ;;  %v4302_v35 = vld [vmem:[%s21413_s9 + $0x188] sm:$0xff]  ;;  %v4448_v5 = vld [vmem:[%s21413_s9 + $0x250] sm:$0xff] }
 0x603   : > { %v10304_v48 = vpop.f32.mrb[167].mxu0  ;;  %v16411_v61 = vld [vmem:[#allocation4 + $0x30] sm:$0xff] }
 0x604   : > { %3894 = vst [vmem:[#allocation4 + $0x51] sm:$0xff] %v16350_v19  ;;  %v3868_v41 = vadd.f32 %v16237_v32, %v3763_v40  ;;  %v10305_v58 = vadd.f32 %v10304_v48, %v10303_v24  ;;  %10744 = vmatmul.mubr.f32.gmra.mrb[174].mxu0 %v16350_v19  ;;  %v3668_v32 = vadd.f32 %v16285_v36, %v16290_v22  ;;  %v4165_v36 = vld [vmem:[%s21413_s9 + $0x108] sm:$0xff]  ;;  %v4303_v24 = vld [vmem:[%s21413_s9 + $0x190] sm:$0xff]  ;;  %v4442_v33 = vld [vmem:[%s21413_s9 + $0x220] sm:$0xff] }
 0x605   : > { %11430 = vmatpush3.bf16.msra.mxu0 %v11427_v0  ;;  %v11443_v38 = vpack.c.bf16 %v4165_v36, %v4164_v18  ;;  %v4177_v0 = vld [vmem:[%s21413_s9 + $0x168] sm:$0xff]  ;;  %v11475_v40 = vpack.c.bf16 %v4302_v35, %v4301_v8  ;;  %v4311_v18 = vld [vmem:[%s21413_s9 + $0x1d0] sm:$0xff]  ;;  %v4312_v36 = vld [vmem:[%s21413_s9 + $0x1d8] sm:$0xff] }
 0x606   : > { %v16363_v44 = vmax.f32 %v3868_v41, 0.0  ;;  %v10306_v57 = vpop.f32.mrb[168].mxu0  ;;  %v3768_v47 = vadd.f32 %v10305_v58, %v3663_v16  ;;  %11432 = vmatprep.subr.bf16.mxu0 %v11431_v13  ;;  %v11467_v14 = vpack.c.bf16 %v4177_v0, %v4176_v28  ;;  %v4306_v16 = vld [vmem:[%s21413_s9 + $0x1a8] sm:$0xff]  ;;  %v16477_v41 = vld [vmem:[#allocation4 + $0x22] sm:$0xff]  ;;  %v4446_v28 = vld [vmem:[%s21413_s9 + $0x240] sm:$0xff] }
 0x607   : > { %v10307_v17 = vpop.f32.mrb[169].mxu0  ;;  %v16420_v34 = vld [vmem:[#allocation4 + $0x40] sm:$0xff]  ;;  %v11483_v58 = vpack.c.bf16 %v4306_v16, %v4305_v55  ;;  %v4447_v0 = vld [vmem:[%s21413_s9 + $0x248] sm:$0xff]  ;;  %v4450_v35 = vld [vmem:[%s21413_s9 + $0x260] sm:$0xff] }
 0x608   : > { %3895 = vst [vmem:[#allocation4 + $0x61] sm:$0xff] %v16363_v44  ;;  %v10308_v30 = vadd.f32 %v10307_v17, %v10306_v57  ;;  %v3873_v6 = vadd.f32 %v16279_v12, %v3768_v47  ;;  %10746 = vmatprep.mubr.f32.mxu0 %v16363_v44  ;;  %v16387_v12 = vld [vmem:[#allocation4] sm:$0xff]  ;;  %v16480_v57 = vld [vmem:[#allocation4 + $0x32] sm:$0xff] }
 0x609   : > { %11434 = vmatpush3.bf16.msra.mxu0 %v11431_v13  ;;  %v4304_v13 = vld [vmem:[%s21413_s9 + $0x198] sm:$0xff]  ;;  %v4307_v47 = vld [vmem:[%s21413_s9 + $0x1b0] sm:$0xff]  ;;  %v4575_v55 = vld [vmem:[%s21413_s9 + $0x280] sm:$0xff] }
 0x60a   : > { %v3773_v2 = vadd.f32 %v10308_v30, %v3668_v32  ;;  %v16376_v20 = vmax.f32 %v3873_v6, 0.0  ;;  %11436 = vmatprep.subr.bf16.mxu0 %v11435_v29  ;;  %v11479_v48 = vpack.c.bf16 %v4304_v13, %v4303_v24  ;;  %v16489_v17 = vld [vmem:[#allocation4 + $0x42] sm:$0xff]  ;;  %v4309_v32 = vld [vmem:[%s21413_s9 + $0x1c0] sm:$0xff]  ;;  %v4310_v30 = vld [vmem:[%s21413_s9 + $0x1c8] sm:$0xff] }
 0x60b   : > { %v16423_v56 = vld [vmem:[#allocation4 + $0x50] sm:$0xff]  ;;  %v4452_v13 = vld [vmem:[%s21413_s9 + $0x270] sm:$0xff]  ;;  %v4576_v16 = vld [vmem:[%s21413_s9 + $0x288] sm:$0xff] }
 0x60c   : > { %v3878_v22 = vadd.f32 %v16277_v25, %v3773_v2  ;;  %3896 = vst [vmem:[#allocation4 + $0x71] sm:$0xff] %v16376_v20  ;;  %10747 = vmatmul.mubr.f32.gmra.mrb[176].mxu0 %v16376_v20  ;;  %v4167_v25 = vld [vmem:[%s21413_s9 + $0x118] sm:$0xff]  ;;  %v16492_v59 = vld [vmem:[#allocation4 + $0x52] sm:$0xff]  ;;  %v11491_v2 = vpack.c.bf16 %v4310_v30, %v4309_v32 }
 0x60d   : > { %11438 = vmatpush3.bf16.msra.mxu0 %v11435_v29  ;;  %10781 = vmatprep.mubr.f32.mxu0 %v16387_v12  ;;  %v11447_v15 = vpack.c.bf16 %v4167_v25, %v4166_v10  ;;  %v4308_v29 = vld [vmem:[%s21413_s9 + $0x1b8] sm:$0xff]  ;;  %v4314_v10 = vld [vmem:[%s21413_s9 + $0x1e8] sm:$0xff]  ;;  %v4579_v32 = vld [vmem:[%s21413_s9 + $0x2a0] sm:$0xff] }
 0x60e   : > { %v16390_v60 = vmax.f32 %v3878_v22, 0.0  ;;  %11440 = vmatprep.subr.bf16.mxu0 %v11439_v37  ;;  %v11487_v9 = vpack.c.bf16 %v4308_v29, %v4307_v47  ;;  %v11495_v22 = vpack.c.bf16 %v4312_v36, %v4311_v18  ;;  %v4577_v47 = vld [vmem:[%s21413_s9 + $0x290] sm:$0xff]  ;;  %v4578_v29 = vld [vmem:[%s21413_s9 + $0x298] sm:$0xff]  ;;  %v4580_v30 = vld [vmem:[%s21413_s9 + $0x2a8] sm:$0xff] }
 0x60f   : > { %v16432_v49 = vld [vmem:[#allocation4 + $0x60] sm:$0xff]  ;;  %v4582_v36 = vld [vmem:[%s21413_s9 + $0x2b8] sm:$0xff] }
 0x610   : > { %3897 = vst [vmem:[#allocation4 + $0x81] sm:$0xff] %v16390_v60  ;;  %v16501_v6 = vld [vmem:[#allocation4 + $0x62] sm:$0xff] }
 0x611   : > { %11442 = vmatpush3.bf16.msra.mxu0 %v11439_v37  ;;  %v4581_v18 = vld [vmem:[%s21413_s9 + $0x2b0] sm:$0xff] }
 0x612   : > { %11444 = vmatprep.subr.bf16.mxu0 %v11443_v38 }
 0x613   : > { %v16435_v54 = vld [vmem:[#allocation4 + $0x70] sm:$0xff] }
 0x614   : > { %10782 = vmatmul.mubr.f32.vlgmr.msra.gmra.mrb[170].mxu0 %v16399_v23  ;;  %v16504_v37 = vld [vmem:[#allocation4 + $0x72] sm:$0xff] }
 0x615   : > { %10784 = vmatprep.mubr.f32.mxu0 %v16408_v3  ;;  %11446 = vmatpush3.bf16.msra.mxu0 %v11443_v38  ;;  %v4313_v38 = vld [vmem:[%s21413_s9 + $0x1e0] sm:$0xff] }
 0x616   : > { %11448 = vmatprep.subr.bf16.mxu0 %v11447_v15  ;;  %v11499_v25 = vpack.c.bf16 %v4314_v10, %v4313_v38  ;;  %v4583_v38 = vld [vmem:[%s21413_s9 + $0x2c0] sm:$0xff]  ;;  %v4584_v10 = vld [vmem:[%s21413_s9 + $0x2c8] sm:$0xff] }
 0x617   : > { %v16562_v7 = vld [vmem:[#allocation4 + $0x80] sm:$0xff] }
 0x618   : > { %10785 = vmatmul.mubr.f32.gmra.mrb[172].mxu0 %v16411_v61 }
 0x619   : > { %10787 = vmatprep.mubr.f32.mxu0 %v16420_v34  ;;  %11450 = vmatpush3.bf16.msra.mxu0 %v11447_v15  ;;  %v4315_v15 = vld [vmem:[%s21413_s9 + $0x1f0] sm:$0xff] }
 0x61a   : > { %11452 = vmatprep.subr.bf16.mxu0 %v11451_v53 }
 0x61c   : > { %10788 = vmatmul.mubr.f32.gmra.mrb[174].mxu0 %v16423_v56 }
 0x61d   : > { %10790 = vmatprep.mubr.f32.mxu0 %v16432_v49  ;;  %11454 = vmatpush3.bf16.msra.mxu0 %v11451_v53  ;;  %v4439_v53 = vld [vmem:[%s21413_s9 + $0x208] sm:$0xff] }
 0x61e   : > { %11456 = vmatprep.subr.bf16.mxu0 %v11455_v62  ;;  %v11507_v1 = vpack.c.bf16 %v4439_v53, %v4438_v46  ;;  %v4587_v46 = vld [vmem:[%s21413_s9 + $0x2e0] sm:$0xff]  ;;  %v4588_v53 = vld [vmem:[%s21413_s9 + $0x2e8] sm:$0xff] }
 0x620   : > { %10791 = vmatmul.mubr.f32.gmra.mrb[176].mxu0 %v16435_v54 }
 0x621   : > { %11458 = vmatpush3.bf16.msra.mxu0 %v11455_v62  ;;  %10825 = vmatprep.mubr.f32.mxu0 %v4156_v27  ;;  %v4441_v62 = vld [vmem:[%s21413_s9 + $0x218] sm:$0xff] }
 0x622   : > { %11460 = vmatprep.subr.bf16.mxu0 %v11459_v31  ;;  %v11511_v21 = vpack.c.bf16 %v4441_v62, %v4440_v26  ;;  %v4589_v26 = vld [vmem:[%s21413_s9 + $0x2f0] sm:$0xff] }
 0x625   : > { %11462 = vmatpush3.bf16.msra.mxu0 %v11459_v31  ;;  %v4443_v31 = vld [vmem:[%s21413_s9 + $0x228] sm:$0xff] }
 0x626   : > { %11464 = vmatprep.subr.bf16.mxu0 %v11463_v45  ;;  %v11515_v27 = vpack.c.bf16 %v4443_v31, %v4442_v33  ;;  %v4714_v33 = vld [vmem:[%s21413_s9 + $0x308] sm:$0xff] }
 0x629   : > { %11466 = vmatpush3.bf16.msra.mxu0 %v11463_v45  ;;  %v11519_v45 = vpack.c.bf16 %v4445_v11, %v4444_v63  ;;  %v4716_v63 = vld [vmem:[%s21413_s9 + $0x318] sm:$0xff] }
 0x62a   : > { %11468 = vmatprep.subr.bf16.mxu0 %v11467_v14 }
 0x62d   : > { %11470 = vmatpush3.bf16.msra.mxu0 %v11467_v14  ;;  %v11523_v14 = vpack.c.bf16 %v4447_v0, %v4446_v28  ;;  %v4718_v28 = vld [vmem:[%s21413_s9 + $0x328] sm:$0xff] }
 0x62e   : > { %11472 = vmatprep.subr.bf16.mxu0 %v11471_v52 }
 0x631   : > { %11474 = vmatpush3.bf16.msra.mxu0 %v11471_v52  ;;  %v4449_v52 = vld [vmem:[%s21413_s9 + $0x258] sm:$0xff] }
 0x632   : > { %11476 = vmatprep.subr.bf16.mxu0 %v11475_v40  ;;  %v11527_v8 = vpack.c.bf16 %v4449_v52, %v4448_v5  ;;  %v4720_v5 = vld [vmem:[%s21413_s9 + $0x338] sm:$0xff] }
 0x634   : > { %10826 = vmatmul.mubr.f32.vlgmr.msra.gmra.mrb[170].mxu0 %v16468_v50 }
 0x635   : > { %10828 = vmatprep.mubr.f32.mxu0 %v16477_v41  ;;  %11478 = vmatpush3.bf16.msra.mxu0 %v11475_v40  ;;  %v4451_v40 = vld [vmem:[%s21413_s9 + $0x268] sm:$0xff] }
 0x636   : > { %11480 = vmatprep.subr.bf16.mxu0 %v11479_v48  ;;  %v11531_v24 = vpack.c.bf16 %v4451_v40, %v4450_v35  ;;  %v4722_v35 = vld [vmem:[%s21413_s9 + $0x348] sm:$0xff] }
 0x638   : > { %10829 = vmatmul.mubr.f32.gmra.mrb[172].mxu0 %v16480_v57 }
 0x639   : > { %10831 = vmatprep.mubr.f32.mxu0 %v16489_v17  ;;  %11482 = vmatpush3.bf16.msra.mxu0 %v11479_v48 }
 0x63a   : > { %11484 = vmatprep.subr.bf16.mxu0 %v11483_v58 }
 0x63c   : > { %10832 = vmatmul.mubr.f32.gmra.mrb[174].mxu0 %v16492_v59 }
 0x63d   : > { %10834 = vmatprep.mubr.f32.mxu0 %v16501_v6  ;;  %11486 = vmatpush3.bf16.msra.mxu0 %v11483_v58  ;;  %v11539_v58 = vpack.c.bf16 %v4576_v16, %v4575_v55  ;;  %v4725_v55 = vld [vmem:[%s21413_s9 + $0x360] sm:$0xff]  ;;  %v4726_v16 = vld [vmem:[%s21413_s9 + $0x368] sm:$0xff] }
 0x63e   : > { %11488 = vmatprep.subr.bf16.mxu0 %v11487_v9 }
 0x640   : > { %10835 = vmatmul.mubr.f32.gmra.mrb[176].mxu0 %v16504_v37 }
 0x641   : > { %11490 = vmatpush3.bf16.msra.mxu0 %v11487_v9  ;;  %10869 = vmatprep.mubr.f32.mxu0 %v16399_v23  ;;  %v4316_v23 = vld [vmem:[%s21413_s9 + $0x1f8] sm:$0xff]  ;;  %v11543_v9 = vpack.c.bf16 %v4578_v29, %v4577_v47  ;;  %v4727_v47 = vld [vmem:[%s21413_s9 + $0x370] sm:$0xff] }
 0x642   : > { %11492 = vmatprep.subr.bf16.mxu0 %v11491_v2  ;;  %v11503_v42 = vpack.c.bf16 %v4316_v23, %v4315_v15  ;;  %v4585_v15 = vld [vmem:[%s21413_s9 + $0x2d0] sm:$0xff]  ;;  %v4586_v23 = vld [vmem:[%s21413_s9 + $0x2d8] sm:$0xff] }
 0x645   : > { %11494 = vmatpush3.bf16.msra.mxu0 %v11491_v2  ;;  %v11547_v2 = vpack.c.bf16 %v4580_v30, %v4579_v32  ;;  %v4851_v32 = vld [vmem:[%s21413_s9 + $0x388] sm:$0xff] }
 0x646   : > { %11496 = vmatprep.subr.bf16.mxu0 %v11495_v22 }
 0x649   : > { %11498 = vmatpush3.bf16.msra.mxu0 %v11495_v22  ;;  %v11551_v22 = vpack.c.bf16 %v4582_v36, %v4581_v18  ;;  %v4853_v18 = vld [vmem:[%s21413_s9 + $0x398] sm:$0xff] }
 0x64a   : > { %11500 = vmatprep.subr.bf16.mxu0 %v11499_v25 }
 0x64d   : > { %11502 = vmatpush3.bf16.msra.mxu0 %v11499_v25  ;;  %v11555_v25 = vpack.c.bf16 %v4584_v10, %v4583_v38  ;;  %v4855_v38 = vld [vmem:[%s21413_s9 + $0x3a8] sm:$0xff] }
 0x64e   : > { %11504 = vmatprep.subr.bf16.mxu0 %v11503_v42 }
 0x651   : > { %11506 = vmatpush3.bf16.msra.mxu0 %v11503_v42  ;;  %v11559_v42 = vpack.c.bf16 %v4586_v23, %v4585_v15  ;;  %v4857_v15 = vld [vmem:[%s21413_s9 + $0x3b8] sm:$0xff]  ;;  %v4859_v23 = vld [vmem:[%s21413_s9 + $0x3c8] sm:$0xff] }
 0x652   : > { %11508 = vmatprep.subr.bf16.mxu0 %v11507_v1 }
 0x654   : > { %10870 = vmatmul.mubr.f32.vlgmr.msra.gmra.mrb[170].mxu0 %v16408_v3 }
 0x655   : > { %10872 = vmatprep.mubr.f32.mxu0 %v16411_v61  ;;  %11510 = vmatpush3.bf16.msra.mxu0 %v11507_v1  ;;  %v11563_v1 = vpack.c.bf16 %v4588_v53, %v4587_v46  ;;  %v4863_v46 = vld [vmem:[%s21413_s9 + $0x3e8] sm:$0xff] }
 0x656   : > { %11512 = vmatprep.subr.bf16.mxu0 %v11511_v21 }
 0x658   : > { %10873 = vmatmul.mubr.f32.gmra.mrb[172].mxu0 %v16420_v34 }
 0x659   : > { %10875 = vmatprep.mubr.f32.mxu0 %v16423_v56  ;;  %11514 = vmatpush3.bf16.msra.mxu0 %v11511_v21  ;;  %v4713_v21 = vld [vmem:[%s21413_s9 + $0x300] sm:$0xff] }
 0x65a   : > { %11516 = vmatprep.subr.bf16.mxu0 %v11515_v27  ;;  %v11571_v31 = vpack.c.bf16 %v4714_v33, %v4713_v21  ;;  %v4989_v33 = vld [vmem:[%s21413_s9 + $0x410] sm:$0xff] }
 0x65c   : > { %10876 = vmatmul.mubr.f32.gmra.mrb[174].mxu0 %v16432_v49 }
 0x65d   : > { %10878 = vmatprep.mubr.f32.mxu0 %v16435_v54  ;;  %11518 = vmatpush3.bf16.msra.mxu0 %v11515_v27  ;;  %v4715_v27 = vld [vmem:[%s21413_s9 + $0x310] sm:$0xff] }
 0x65e   : > { %11520 = vmatprep.subr.bf16.mxu0 %v11519_v45  ;;  %v11575_v11 = vpack.c.bf16 %v4716_v63, %v4715_v27  ;;  %v4991_v63 = vld [vmem:[%s21413_s9 + $0x420] sm:$0xff] }
 0x660   : > { %10879 = vmatmul.mubr.f32.gmra.mrb[176].mxu0 %v16562_v7 }
 0x661   : > { %11522 = vmatpush3.bf16.msra.mxu0 %v11519_v45  ;;  %10913 = vmatprep.mubr.f32.mxu0 %v16301_v43  ;;  %v4453_v43 = vld [vmem:[%s21413_s9 + $0x278] sm:$0xff]  ;;  %v4717_v45 = vld [vmem:[%s21413_s9 + $0x320] sm:$0xff] }
 0x662   : > { %11524 = vmatprep.subr.bf16.mxu0 %v11523_v14  ;;  %v11535_v48 = vpack.c.bf16 %v4453_v43, %v4452_v13  ;;  %v11579_v0 = vpack.c.bf16 %v4718_v28, %v4717_v45  ;;  %v4723_v13 = vld [vmem:[%s21413_s9 + $0x350] sm:$0xff]  ;;  %v4724_v43 = vld [vmem:[%s21413_s9 + $0x358] sm:$0xff] }
 0x663   : > { %v4993_v28 = vld [vmem:[%s21413_s9 + $0x430] sm:$0xff] }
 0x665   : > { %11526 = vmatpush3.bf16.msra.mxu0 %v11523_v14  ;;  %v4719_v14 = vld [vmem:[%s21413_s9 + $0x330] sm:$0xff] }
 0x666   : > { %11528 = vmatprep.subr.bf16.mxu0 %v11527_v8  ;;  %v11583_v52 = vpack.c.bf16 %v4720_v5, %v4719_v14  ;;  %v4996_v14 = vld [vmem:[%s21413_s9 + $0x448] sm:$0xff] }
 0x667   : > { %v4849_v5 = vld [vmem:[#allocation4 + $0x91] sm:$0xff] }
 0x669   : > { %11530 = vmatpush3.bf16.msra.mxu0 %v11527_v8  ;;  %v4721_v8 = vld [vmem:[%s21413_s9 + $0x340] sm:$0xff] }
 0x66a   : > { %11532 = vmatprep.subr.bf16.mxu0 %v11531_v24  ;;  %v11587_v40 = vpack.c.bf16 %v4722_v35, %v4721_v8  ;;  %v5000_v8 = vld [vmem:[%s21413_s9 + $0x468] sm:$0xff] }
 0x66d   : > { %11534 = vmatpush3.bf16.msra.mxu0 %v11531_v24  ;;  %v16676_v24 = vld [vmem:[#allocation4 + $0x82] sm:$0xff] }
 0x66e   : > { %11536 = vmatprep.subr.bf16.mxu0 %v11535_v48 }
 0x671   : > { %11538 = vmatpush3.bf16.msra.mxu0 %v11535_v48  ;;  %v11591_v48 = vpack.c.bf16 %v4724_v43, %v4723_v13  ;;  %v4986_v43 = vld [vmem:[#allocation4 + $0x92] sm:$0xff] }
 0x672   : > { %11540 = vmatprep.subr.bf16.mxu0 %v11539_v58 }
 0x674   : > { %10914 = vmatmul.mubr.f32.vlgmr.msra.gmra.mrb[170].mxu0 %v16313_v51 }
 0x675   : > { %10916 = vmatprep.mubr.f32.mxu0 %v16325_v4  ;;  %11542 = vmatpush3.bf16.msra.mxu0 %v11539_v58  ;;  %v11595_v58 = vpack.c.bf16 %v4726_v16, %v4725_v55 }
 0x676   : > { %11544 = vmatprep.subr.bf16.mxu0 %v11543_v9 }
 0x678   : > { %10917 = vmatmul.mubr.f32.gmra.mrb[172].mxu0 %v16337_v39 }
 0x679   : > { %10919 = vmatprep.mubr.f32.mxu0 %v16350_v19  ;;  %11546 = vmatpush3.bf16.msra.mxu0 %v11543_v9  ;;  %v4850_v9 = vld [vmem:[%s21413_s9 + $0x380] sm:$0xff] }
 0x67a   : > { %11548 = vmatprep.subr.bf16.mxu0 %v11547_v2  ;;  %v11603_v30 = vpack.c.bf16 %v4851_v32, %v4850_v9 }
 0x67c   : > { %10920 = vmatmul.mubr.f32.gmra.mrb[174].mxu0 %v16363_v44 }
 0x67d   : > { %10922 = vmatprep.mubr.f32.mxu0 %v16376_v20  ;;  %11550 = vmatpush3.bf16.msra.mxu0 %v11547_v2  ;;  %v4852_v2 = vld [vmem:[%s21413_s9 + $0x390] sm:$0xff] }
 0x67e   : > { %11552 = vmatprep.subr.bf16.mxu0 %v11551_v22  ;;  %v11607_v36 = vpack.c.bf16 %v4853_v18, %v4852_v2 }
 0x680   : > { %10923 = vmatmul.mubr.f32.gmra.mrb[176].mxu0 %v16390_v60 }
 0x681   : > { %11554 = vmatpush3.bf16.msra.mxu0 %v11551_v22  ;;  %10957 = vmatprep.mubr.f32.mxu0 %v16468_v50  ;;  %v4590_v50 = vld [vmem:[%s21413_s9 + $0x2f8] sm:$0xff]  ;;  %v4854_v22 = vld [vmem:[%s21413_s9 + $0x3a0] sm:$0xff] }
 0x682   : > { %11556 = vmatprep.subr.bf16.mxu0 %v11555_v25  ;;  %v11567_v62 = vpack.c.bf16 %v4590_v50, %v4589_v26  ;;  %v11611_v10 = vpack.c.bf16 %v4855_v38, %v4854_v22  ;;  %v4987_v50 = vld [vmem:[%s21413_s9 + $0x400] sm:$0xff] }
 0x685   : > { %11558 = vmatpush3.bf16.msra.mxu0 %v11555_v25  ;;  %v4856_v25 = vld [vmem:[%s21413_s9 + $0x3b0] sm:$0xff] }
 0x686   : > { %11560 = vmatprep.subr.bf16.mxu0 %v11559_v42 }
 0x689   : > { %11562 = vmatpush3.bf16.msra.mxu0 %v11559_v42  ;;  %v4861_v42 = vld [vmem:[%s21413_s9 + $0x3d8] sm:$0xff] }
 0x68a   : > { %11564 = vmatprep.subr.bf16.mxu0 %v11563_v1 }
 0x68d   : > { %11566 = vmatpush3.bf16.msra.mxu0 %v11563_v1  ;;  %v4864_v1 = vld [vmem:[%s21413_s9 + $0x3f0] sm:$0xff] }
 0x68e   : > { %11568 = vmatprep.subr.bf16.mxu0 %v11567_v62 }
 0x691   : > { %11570 = vmatpush3.bf16.msra.mxu0 %v11567_v62  ;;  %v4988_v62 = vld [vmem:[%s21413_s9 + $0x408] sm:$0xff] }
 0x692   : > { %11572 = vmatprep.subr.bf16.mxu0 %v11571_v31  ;;  %v11635_v21 = vpack.c.bf16 %v4988_v62, %v4987_v50  ;;  %v5140_v50 = vld [vmem:[%s21406_s2 + $0x8] sm:$0xff] }
 0x694   : > { %10958 = vmatmul.mubr.f32.vlgmr.msra.gmra.mrb[170].mxu0 %v16477_v41 }
 0x695   : > { %10960 = vmatprep.mubr.f32.mxu0 %v16480_v57  ;;  %11574 = vmatpush3.bf16.msra.mxu0 %v11571_v31  ;;  %v4990_v31 = vld [vmem:[%s21413_s9 + $0x418] sm:$0xff] }
 0x696   : > { %11576 = vmatprep.subr.bf16.mxu0 %v11575_v11  ;;  %v11639_v27 = vpack.c.bf16 %v4990_v31, %v4989_v33  ;;  %v5142_v31 = vld [vmem:[%s21406_s2 + $0x18] sm:$0xff] }
 0x698   : > { %10961 = vmatmul.mubr.f32.gmra.mrb[172].mxu0 %v16489_v17 }
 0x699   : > { %10963 = vmatprep.mubr.f32.mxu0 %v16492_v59  ;;  %11578 = vmatpush3.bf16.msra.mxu0 %v11575_v11  ;;  %v4992_v11 = vld [vmem:[%s21413_s9 + $0x428] sm:$0xff] }
 0x69a   : > { %11580 = vmatprep.subr.bf16.mxu0 %v11579_v0  ;;  %v11643_v45 = vpack.c.bf16 %v4992_v11, %v4991_v63  ;;  %v5144_v63 = vld [vmem:[%s21406_s2 + $0x28] sm:$0xff]  ;;  %v5145_v11 = vld [vmem:[%s21406_s2 + $0x30] sm:$0xff] }
 0x69c   : > { %10964 = vmatmul.mubr.f32.gmra.mrb[174].mxu0 %v16501_v6 }
 0x69d   : > { %10966 = vmatprep.mubr.f32.mxu0 %v16504_v37  ;;  %11582 = vmatpush3.bf16.msra.mxu0 %v11579_v0  ;;  %v4994_v0 = vld [vmem:[%s21413_s9 + $0x438] sm:$0xff] }
 0x69e   : > { %11584 = vmatprep.subr.bf16.mxu0 %v11583_v52 }
 0x6a0   : > { %10967 = vmatmul.mubr.f32.gmra.mrb[176].mxu0 %v16676_v24 }
 0x6a1   : > { %11586 = vmatpush3.bf16.msra.mxu0 %v11583_v52  ;;  %11001 = vmatprep.mubr.f32.mxu0 %v16408_v3  ;;  %v4728_v3 = vld [vmem:[%s21413_s9 + $0x378] sm:$0xff] }
 0x6a2   : > { %11588 = vmatprep.subr.bf16.mxu0 %v11587_v40  ;;  %v11599_v29 = vpack.c.bf16 %v4728_v3, %v4727_v47  ;;  %v4998_v52 = vld [vmem:[%s21413_s9 + $0x458] sm:$0xff] }
 0x6a5   : > { %11590 = vmatpush3.bf16.msra.mxu0 %v11587_v40  ;;  %v5001_v40 = vld [vmem:[%s21413_s9 + $0x470] sm:$0xff] }
 0x6a6   : > { %11592 = vmatprep.subr.bf16.mxu0 %v11591_v48 }
 0x6a9   : > { %11594 = vmatpush3.bf16.msra.mxu0 %v11591_v48  ;;  %v5139_v48 = vld [vmem:[%s21406_s2] sm:$0xff] }
 0x6aa   : > { %11596 = vmatprep.subr.bf16.mxu0 %v11595_v58  ;;  %11117 = vmatprep.mubr.msk.f32.mxu1 %vm549_vm1, %v5139_v48  ;;  %v5349_v48 = vld [vmem:[%s21415_s11 + $0x180] sm:$0xff] }
 0x6ad   : > { %11598 = vmatpush3.bf16.msra.mxu0 %v11595_v58 }
 0x6ae   : > { %11600 = vmatprep.subr.bf16.mxu0 %v11599_v29 }
 0x6b1   : > { %11602 = vmatpush3.bf16.msra.mxu0 %v11599_v29 }
 0x6b2   : > { %11604 = vmatprep.subr.bf16.mxu0 %v11603_v30 }
 0x6b4   : > { %11002 = vmatmul.mubr.f32.vlgmr.msra.gmra.mrb[170].mxu0 %v16411_v61  ;;  %v11615_v61 = vpack.c.bf16 %v4857_v15, %v4856_v25 }
 0x6b5   : > { %11004 = vmatprep.mubr.f32.mxu0 %v16420_v34  ;;  %11606 = vmatpush3.bf16.msra.mxu0 %v11603_v30  ;;  %v4858_v34 = vld [vmem:[%s21413_s9 + $0x3c0] sm:$0xff] }
 0x6b6   : > { %11608 = vmatprep.subr.bf16.mxu0 %v11607_v36 }
 0x6b8   : > { %11005 = vmatmul.mubr.f32.gmra.mrb[172].mxu0 %v16423_v56  ;;  %v11619_v56 = vpack.c.bf16 %v4859_v23, %v4858_v34 }
 0x6b9   : > { %11007 = vmatprep.mubr.f32.mxu0 %v16432_v49  ;;  %11610 = vmatpush3.bf16.msra.mxu0 %v11607_v36  ;;  %v4860_v49 = vld [vmem:[%s21413_s9 + $0x3d0] sm:$0xff] }
 0x6ba   : > { %11612 = vmatprep.subr.bf16.mxu0 %v11611_v10 }
 0x6bc   : > { %11008 = vmatmul.mubr.f32.gmra.mrb[174].mxu0 %v16435_v54  ;;  %v11623_v54 = vpack.c.bf16 %v4861_v42, %v4860_v49  ;;  %v5334_v49 = vld [vmem:[%s21415_s11 + $0x108] sm:$0xff]  ;;  %v5336_v42 = vld [vmem:[%s21415_s11 + $0x118] sm:$0xff] }
 0x6bd   : > { %11010 = vmatprep.mubr.f32.mxu0 %v16562_v7  ;;  %11614 = vmatpush3.bf16.msra.mxu0 %v11611_v10  ;;  %v4862_v7 = vld [vmem:[%s21413_s9 + $0x3e0] sm:$0xff] }
 0x6be   : > { %11616 = vmatprep.subr.bf16.mxu0 %v11615_v61  ;;  %v11627_v53 = vpack.c.bf16 %v4863_v46, %v4862_v7  ;;  %v11683_v46 = vpack.c.bf16 %v5336_v42, %v5334_v49 }
 0x6c0   : > { %11011 = vmatmul.mubr.f32.gmra.mrb[176].mxu0 %v16387_v12 }
 0x6c1   : > { %11618 = vmatpush3.bf16.msra.mxu0 %v11615_v61  ;;  %11045 = vmatprep.mubr.f32.mxu0 %v16313_v51  ;;  %v4865_v51 = vld [vmem:[%s21413_s9 + $0x3f8] sm:$0xff] }
 0x6c2   : > { %11620 = vmatprep.subr.bf16.mxu0 %v11619_v56  ;;  %v11631_v26 = vpack.c.bf16 %v4865_v51, %v4864_v1  ;;  %v5335_v1 = vld [vmem:[%s21415_s11 + $0x110] sm:$0xff]  ;;  %v5338_v51 = vld [vmem:[%s21415_s11 + $0x128] sm:$0xff] }
 0x6c5   : > { %11622 = vmatpush3.bf16.msra.mxu0 %v11619_v56 }
 0x6c6   : > { %11624 = vmatprep.subr.bf16.mxu0 %v11623_v54 }
 0x6c9   : > { %11626 = vmatpush3.bf16.msra.mxu0 %v11623_v54 }
 0x6ca   : > { %11628 = vmatprep.subr.bf16.mxu0 %v11627_v53 }
 0x6cd   : > { %11630 = vmatpush3.bf16.msra.mxu0 %v11627_v53  ;;  %v5333_v53 = vld [vmem:[%s21415_s11 + $0x100] sm:$0xff] }
 0x6ce   : > { %11632 = vmatprep.subr.bf16.mxu0 %v11631_v26  ;;  %v11685_v62 = vpack.c.bf16 %v5335_v1, %v5333_v53 }
 0x6d1   : > { %11634 = vmatpush3.bf16.msra.mxu0 %v11631_v26  ;;  %v5340_v26 = vld [vmem:[%s21415_s11 + $0x138] sm:$0xff] }
 0x6d2   : > { %11636 = vmatprep.subr.bf16.mxu0 %v11635_v21  ;;  %v11687_v33 = vpack.c.bf16 %v5340_v26, %v5338_v51 }
 0x6d4   : > { %11046 = vmatmul.mubr.f32.vlgmr.msra.gmra.mrb[170].mxu0 %v16325_v4  ;;  %v11647_v4 = vpack.c.bf16 %v4994_v0, %v4993_v28  ;;  %v5337_v28 = vld [vmem:[%s21415_s11 + $0x120] sm:$0xff]  ;;  %v5339_v0 = vld [vmem:[%s21415_s11 + $0x130] sm:$0xff] }
 0x6d5   : > { %11048 = vmatprep.mubr.f32.mxu0 %v16337_v39  ;;  %11638 = vmatpush3.bf16.msra.mxu0 %v11635_v21  ;;  %v4995_v39 = vld [vmem:[%s21413_s9 + $0x440] sm:$0xff]  ;;  %v5141_v21 = vld [vmem:[%s21406_s2 + $0x10] sm:$0xff] }
 0x6d6   : > { %11640 = vmatprep.subr.bf16.mxu0 %v11639_v27 }
 0x6d8   : > { %11049 = vmatmul.mubr.f32.gmra.mrb[172].mxu0 %v16350_v19  ;;  %v11651_v19 = vpack.c.bf16 %v4996_v14, %v4995_v39  ;;  %v5342_v39 = vld [vmem:[%s21415_s11 + $0x148] sm:$0xff]  ;;  %v5344_v14 = vld [vmem:[%s21415_s11 + $0x158] sm:$0xff] }
 0x6d9   : > { %11051 = vmatprep.mubr.f32.mxu0 %v16363_v44  ;;  %11642 = vmatpush3.bf16.msra.mxu0 %v11639_v27  ;;  %v4997_v44 = vld [vmem:[%s21413_s9 + $0x450] sm:$0xff]  ;;  %v5143_v27 = vld [vmem:[%s21406_s2 + $0x20] sm:$0xff] }
 0x6da   : > { %11644 = vmatprep.subr.bf16.mxu0 %v11643_v45 }
 0x6dc   : > { %11052 = vmatmul.mubr.f32.gmra.mrb[174].mxu0 %v16376_v20  ;;  %v11655_v20 = vpack.c.bf16 %v4998_v52, %v4997_v44  ;;  %v5346_v52 = vld [vmem:[%s21415_s11 + $0x168] sm:$0xff] }
 0x6dd   : > { %11054 = vmatprep.mubr.f32.mxu0 %v16390_v60  ;;  %11646 = vmatpush3.bf16.msra.mxu0 %v11643_v45  ;;  %v4999_v60 = vld [vmem:[%s21413_s9 + $0x460] sm:$0xff]  ;;  %v5146_v45 = vld [vmem:[%s21406_s2 + $0x38] sm:$0xff] }
 0x6de   : > { %11648 = vmatprep.subr.bf16.mxu0 %v11647_v4  ;;  %v11659_v35 = vpack.c.bf16 %v5000_v8, %v4999_v60  ;;  %v5345_v8 = vld [vmem:[%s21415_s11 + $0x160] sm:$0xff] }
 0x6e0   : > { %11055 = vmatmul.mubr.f32.gmra.mrb[176].mxu0 %v4849_v5  ;;  %v11691_v5 = vpack.c.bf16 %v5344_v14, %v5342_v39  ;;  %v5306_v39 = vld [vmem:[%s21415_s11 + $0x48] sm:$0xff]  ;;  %v5308_v14 = vld [vmem:[%s21415_s11 + $0x58] sm:$0xff] }
 0x6e1   : > { %11650 = vmatpush3.bf16.msra.mxu0 %v11647_v4  ;;  %11089 = vmatprep.mubr.f32.mxu0 %v16477_v41  ;;  %v5002_v41 = vld [vmem:[%s21413_s9 + $0x478] sm:$0xff]  ;;  %v11689_v4 = vpack.c.bf16 %v5339_v0, %v5337_v28 }
 0x6e2   : > { %11652 = vmatprep.subr.bf16.mxu0 %v11651_v19  ;;  %v11663_v13 = vpack.c.bf16 %v5002_v41, %v5001_v40  ;;  %v5350_v41 = vld [vmem:[%s21415_s11 + $0x188] sm:$0xff] }
 0x6e5   : > { %11654 = vmatpush3.bf16.msra.mxu0 %v11651_v19  ;;  %v5343_v19 = vld [vmem:[%s21415_s11 + $0x150] sm:$0xff] }
 0x6e6   : > { %11656 = vmatprep.subr.bf16.mxu0 %v11655_v20 }
 0x6e9   : > { %11658 = vmatpush3.bf16.msra.mxu0 %v11655_v20  ;;  %v5348_v20 = vld [vmem:[%s21415_s11 + $0x178] sm:$0xff] }
 0x6ea   : > { %11660 = vmatprep.subr.bf16.mxu0 %v11659_v35  ;;  %v11695_v60 = vpack.c.bf16 %v5348_v20, %v5346_v52  ;;  %v5310_v52 = vld [vmem:[%s21415_s11 + $0x68] sm:$0xff] }
 0x6ed   : > { %11662 = vmatpush3.bf16.msra.mxu0 %v11659_v35  ;;  %v5347_v35 = vld [vmem:[%s21415_s11 + $0x170] sm:$0xff] }
 0x6ee   : > { %11664 = vmatprep.subr.bf16.mxu0 %v11663_v13  ;;  %v11697_v40 = vpack.c.bf16 %v5347_v35, %v5345_v8  ;;  %v5312_v8 = vld [vmem:[%s21415_s11 + $0x78] sm:$0xff] }
 0x6f1   : > { %11666 = vmatpush3.bf16.msra.mxu0 %v11663_v13  ;;  %v5352_v13 = vld [vmem:[%s21415_s11 + $0x198] sm:$0xff] }
 0x6f4   : > { %11090 = vmatmul.mubr.f32.vlgmr.msra.gmra.mrb[170].mxu0 %v16480_v57  ;;  %v10028_v57 = vld [vmem:[%s21414_s10] ss:$0 sm:$0xff] }
 0x6f5   : > { %11092 = vmatprep.mubr.f32.mxu0 %v16489_v17 }
 0x6f8   : > { %11093 = vmatmul.mubr.f32.gmra.mrb[172].mxu0 %v16492_v59 }
 0x6f9   : > { %11095 = vmatprep.mubr.f32.mxu0 %v16501_v6 }
 0x6fc   : > { %11096 = vmatmul.mubr.f32.gmra.mrb[174].mxu0 %v16504_v37 }
 0x6fd   : > { %11098 = vmatprep.mubr.f32.mxu0 %v16676_v24 }
 0x700   : > { %11099 = vmatmul.mubr.f32.gmra.mrb[176].mxu0 %v4986_v43  ;;  %v11699_v43 = vpack.c.bf16 %v5352_v13, %v5350_v41  ;;  %v11727_v41 = vpack.c.bf16 %v5312_v8, %v5310_v52  ;;  %v5311_v13 = vld [vmem:[%s21415_s11 + $0x70] sm:$0xff] }
 0x701   : > { %v5557_v52 = vld [vmem:[%s21415_s11 + $0x290] sm:$0xff] }
 0x7c7   : > { %v11091_v17 = vpop.f32.mrb[170].mxu0 }
 0x7c8   : > { %v5124_v59 = vadd.f32 %v11091_v17, %v10028_v57  ;;  %v5069_v55 = vpop.f32.mrb[171].mxu0 }
 0x7c9   : > { %v5123_v6 = vadd.f32 %v10028_v57, %v5069_v55  ;;  %v5356_v55 = vld [vmem:[%s21415_s11 + $0x1b8] sm:$0xff] }
 0x7ca   : > { %v5132_v16 = vmax.f32 %v5124_v59, 0.0  ;;  %v5354_v59 = vld [vmem:[%s21415_s11 + $0x1a8] sm:$0xff] }
 0x7cb   : > { %v5131_v37 = vmax.f32 %v5123_v6, 0.0  ;;  %v11094_v58 = vpop.f32.mrb[172].mxu0  ;;  %v5353_v6 = vld [vmem:[%s21415_s11 + $0x1a0] sm:$0xff] }
 0x7cc   : > { %v5126_v24 = vadd.f32 %v11094_v58, %v10028_v57  ;;  %v5079_v47 = vpop.f32.mrb[173].mxu0  ;;  %v5358_v58 = vld [vmem:[%s21415_s11 + $0x1c8] sm:$0xff] }
 0x7cd   : > { %v11667_v3 = vpack.c.bf16 %v5132_v16, %v5131_v37  ;;  %v5125_v29 = vadd.f32 %v10028_v57, %v5079_v47  ;;  %v11703_v16 = vpack.c.bf16 %v5356_v55, %v5354_v59  ;;  %v5355_v37 = vld [vmem:[%s21415_s11 + $0x1b0] sm:$0xff]  ;;  %v5313_v59 = vld [vmem:[%s21415_s11 + $0x80] sm:$0xff] }
 0x7ce   : > { %v5134_v9 = vmax.f32 %v5126_v24, 0.0  ;;  %v5360_v24 = vld [vmem:[%s21415_s11 + $0x1d8] sm:$0xff]  ;;  %v11705_v47 = vpack.c.bf16 %v5355_v37, %v5353_v6  ;;  %v5315_v55 = vld [vmem:[%s21415_s11 + $0x90] sm:$0xff]  ;;  %v5318_v6 = vld [vmem:[%s21415_s11 + $0xa8] sm:$0xff] }
 0x7cf   : > { %v5133_v32 = vmax.f32 %v5125_v29, 0.0  ;;  %v11097_v30 = vpop.f32.mrb[174].mxu0  ;;  %11668 = vmatprep.subr.bf16.mxu1 %v11667_v3  ;;  %v5357_v29 = vld [vmem:[%s21415_s11 + $0x1c0] sm:$0xff]  ;;  %v11733_v37 = vpack.c.bf16 %v5315_v55, %v5313_v59  ;;  %v5565_v59 = vld [vmem:[%s21415_s11 + $0x2d0] sm:$0xff]  ;;  %v5568_v55 = vld [vmem:[%s21415_s11 + $0x2e8] sm:$0xff] }
 0x7d0   : > { %v5128_v2 = vadd.f32 %v11097_v30, %v10028_v57  ;;  %v5089_v18 = vpop.f32.mrb[175].mxu0  ;;  %11670 = vmatpush3.bf16.msra.mxu1 %v11667_v3  ;;  %v11707_v3 = vpack.c.bf16 %v5360_v24, %v5358_v58  ;;  %v5364_v30 = vld [vmem:[%s21415_s11 + $0x1f8] sm:$0xff]  ;;  %v5317_v58 = vld [vmem:[%s21415_s11 + $0xa0] sm:$0xff] }
 0x7d1   : > { %v11671_v36 = vpack.c.bf16 %v5134_v9, %v5133_v32  ;;  %v5127_v22 = vadd.f32 %v10028_v57, %v5089_v18  ;;  %v5359_v9 = vld [vmem:[%s21415_s11 + $0x1d0] sm:$0xff]  ;;  %v5362_v32 = vld [vmem:[%s21415_s11 + $0x1e8] sm:$0xff] }
 0x7d2   : > { %v5136_v38 = vmax.f32 %v5128_v2, 0.0  ;;  %v11709_v2 = vpack.c.bf16 %v5359_v9, %v5357_v29  ;;  %v11711_v18 = vpack.c.bf16 %v5364_v30, %v5362_v32  ;;  %v5324_v29 = vld [vmem:[%s21415_s11 + $0xd8] sm:$0xff]  ;;  %v5321_v32 = vld [vmem:[%s21415_s11 + $0xc0] sm:$0xff] }
 0x7d3   : > { %v5135_v10 = vmax.f32 %v5127_v22, 0.0  ;;  %v11100_v25 = vpop.f32.mrb[176].mxu0  ;;  %11672 = vmatprep.subr.bf16.mxu1 %v11671_v36  ;;  %v5363_v22 = vld [vmem:[%s21415_s11 + $0x1f0] sm:$0xff] }
 0x7d4   : > { %v5130_v15 = vadd.f32 %v11100_v25, %v10028_v57  ;;  %v5099_v61 = vpop.f32.mrb[177].mxu0  ;;  %11674 = vmatpush3.bf16.msra.mxu1 %v11671_v36  ;;  %v5361_v36 = vld [vmem:[%s21415_s11 + $0x1e0] sm:$0xff] }
 0x7d5   : > { %v11675_v34 = vpack.c.bf16 %v5136_v38, %v5135_v10  ;;  %v5129_v23 = vadd.f32 %v10028_v57, %v5099_v61  ;;  %v5351_v57 = vld [vmem:[%s21415_s11 + $0x190] sm:$0xff]  ;;  %v5298_v38 = vld [vmem:[%s21415_s11 + $0x8] sm:$0xff]  ;;  %v5300_v10 = vld [vmem:[%s21415_s11 + $0x18] sm:$0xff]  ;;  %v11713_v25 = vpack.c.bf16 %v5363_v22, %v5361_v36 }
 0x7d6   : > { %v5138_v56 = vmax.f32 %v5130_v15, 0.0  ;;  %v11701_v17 = vpack.c.bf16 %v5351_v57, %v5349_v48  ;;  %v11715_v15 = vpack.c.bf16 %v5300_v10, %v5298_v38  ;;  %v5316_v48 = vld [vmem:[%s21415_s11 + $0x98] sm:$0xff]  ;;  %v5325_v10 = vld [vmem:[%s21415_s11 + $0xe0] sm:$0xff] }
 0x7d7   : > { %v5137_v54 = vmax.f32 %v5129_v23, 0.0  ;;  %11676 = vmatprep.subr.bf16.mxu1 %v11675_v34  ;;  %v5328_v36 = vld [vmem:[%s21415_s11 + $0xf8] sm:$0xff] }
 0x7d8   : > { %11678 = vmatpush3.bf16.msra.mxu1 %v11675_v34 }
 0x7d9   : > { %v11679_v7 = vpack.c.bf16 %v5138_v56, %v5137_v54 }
 0x7db   : > { %11680 = vmatprep.subr.bf16.mxu1 %v11679_v7 }
 0x7dc   : > { %11682 = vmatpush3.bf16.msra.mxu1 %v11679_v7 }
 0x7dd   : > { %11684 = vmatprep.subr.bf16.mxu1 %v11683_v46 }
 0x7df   : > { %11118 = vmatmul.mubr.msk.f32.vlgmr.msra.gmra.mrb[72].mxu1 %vm549_vm1, %v5140_v50 }
 0x7e0   : > { %11120 = vmatprep.mubr.msk.f32.mxu1 %vm549_vm1, %v5141_v21  ;;  %11686 = vmatpush1.bf16.msra.mxu1 %v11685_v62 }
 0x7e1   : > { %11688 = vmatprep.subr.bf16.mxu1 %v11687_v33  ;;  %v5297_v33 = vld [vmem:[%s21415_s11] sm:$0xff] }
 0x7e3   : > { %11121 = vmatmul.mubr.msk.f32.gmra.mrb[74].mxu1 %vm549_vm1, %v5142_v31  ;;  %v5299_v31 = vld [vmem:[%s21415_s11 + $0x10] sm:$0xff] }
 0x7e4   : > { %11123 = vmatprep.mubr.msk.f32.mxu1 %vm549_vm1, %v5143_v27  ;;  %11690 = vmatpush1.bf16.msra.mxu1 %v11689_v4  ;;  %v5302_v27 = vld [vmem:[%s21415_s11 + $0x28] sm:$0xff]  ;;  %v11717_v28 = vpack.c.bf16 %v5299_v31, %v5297_v33  ;;  %v5547_v31 = vld [vmem:[%s21415_s11 + $0x240] sm:$0xff] }
 0x7e5   : > { %11692 = vmatprep.subr.bf16.mxu1 %v11691_v5  ;;  %v5305_v5 = vld [vmem:[%s21415_s11 + $0x40] sm:$0xff] }
 0x7e7   : > { %11124 = vmatmul.mubr.msk.f32.gmra.mrb[76].mxu1 %vm549_vm1, %v5144_v63  ;;  %v5304_v63 = vld [vmem:[%s21415_s11 + $0x38] sm:$0xff] }
 0x7e8   : > { %11126 = vmatprep.mubr.msk.f32.mxu1 %vm549_vm1, %v5145_v11  ;;  %v5301_v11 = vld [vmem:[%s21415_s11 + $0x20] sm:$0xff]  ;;  %v11719_v4 = vpack.c.bf16 %v5304_v63, %v5302_v27  ;;  %v5549_v27 = vld [vmem:[%s21415_s11 + $0x250] sm:$0xff]  ;;  %v5552_v63 = vld [vmem:[%s21415_s11 + $0x268] sm:$0xff] }
 0x7eb   : > { %11127 = vmatmul.mubr.msk.f32.gmra.mrb[78].mxu1 %vm549_vm1, %v5146_v45  ;;  %v5303_v45 = vld [vmem:[%s21415_s11 + $0x30] sm:$0xff] }
 0x7ec   : > { %5437 = vmatprep.mubr.f32.mxu1 %v16387_v12  ;;  %v5341_v12 = vld [vmem:[%s21415_s11 + $0x140] sm:$0xff] }
 0x7ed   : > { %v11693_v44 = vpack.c.bf16 %v5343_v19, %v5341_v12  ;;  %v16980_v12 = vld [vmem:[#allocation4] sm:$0xff]  ;;  %v11721_v19 = vpack.c.bf16 %v5303_v45, %v5301_v11  ;;  %v5554_v11 = vld [vmem:[%s21415_s11 + $0x278] sm:$0xff]  ;;  %v11757_v45 = vpack.c.bf16 %v5549_v27, %v5547_v31  ;;  %v5685_v27 = vld [vmem:[%s21415_s11 + $0x3a8] sm:$0xff] }
 0x7ee   : > { %v5682_v31 = vld [vmem:[%s21415_s11 + $0x390] sm:$0xff] }
 0x7ef   : > { %11694 = vmatpush1.bf16.msra.mxu1 %v11693_v44  ;;  %v5307_v44 = vld [vmem:[%s21415_s11 + $0x50] sm:$0xff] }
 0x7f0   : > { %11696 = vmatprep.subr.bf16.mxu1 %v11695_v60  ;;  %v11723_v60 = vpack.c.bf16 %v5308_v14, %v5306_v39  ;;  %v11725_v35 = vpack.c.bf16 %v5307_v44, %v5305_v5  ;;  %v5556_v39 = vld [vmem:[%s21415_s11 + $0x288] sm:$0xff]  ;;  %v5558_v14 = vld [vmem:[%s21415_s11 + $0x298] sm:$0xff]  ;;  %v5555_v44 = vld [vmem:[%s21415_s11 + $0x280] sm:$0xff] }
 0x7f1   : > { %v11765_v8 = vpack.c.bf16 %v5557_v52, %v5555_v44  ;;  %v5690_v44 = vld [vmem:[%s21415_s11 + $0x3d0] sm:$0xff]  ;;  %v5693_v52 = vld [vmem:[%s21415_s11 + $0x3e8] sm:$0xff] }
 0x7f3   : > { %11698 = vmatpush1.bf16.msra.mxu1 %v11697_v40  ;;  %v5309_v40 = vld [vmem:[%s21415_s11 + $0x60] sm:$0xff] }
 0x7f4   : > { %11700 = vmatprep.subr.bf16.mxu1 %v11699_v43  ;;  %v5314_v43 = vld [vmem:[%s21415_s11 + $0x88] sm:$0xff]  ;;  %v11729_v57 = vpack.c.bf16 %v5311_v13, %v5309_v40  ;;  %v5559_v40 = vld [vmem:[%s21415_s11 + $0x2a0] sm:$0xff] }
 0x7f5   : > { %v5564_v13 = vld [vmem:[%s21415_s11 + $0x2c8] sm:$0xff] }
 0x7f7   : > { %11702 = vmatpush1.bf16.msra.mxu1 %v11701_v17  ;;  %v11731_v17 = vpack.c.bf16 %v5316_v48, %v5314_v43  ;;  %v5566_v43 = vld [vmem:[%s21415_s11 + $0x2d8] sm:$0xff] }
 0x7f8   : > { %11704 = vmatprep.subr.bf16.mxu1 %v11703_v16  ;;  %v5320_v16 = vld [vmem:[%s21415_s11 + $0xb8] sm:$0xff] }
 0x7f9   : > { %v11735_v24 = vpack.c.bf16 %v5320_v16, %v5318_v6  ;;  %v5570_v6 = vld [vmem:[%s21415_s11 + $0x2f8] sm:$0xff] }
 0x7fb   : > { %11706 = vmatpush1.bf16.msra.mxu1 %v11705_v47  ;;  %v5319_v47 = vld [vmem:[%s21415_s11 + $0xb0] sm:$0xff] }
 0x7fc   : > { %11708 = vmatprep.subr.bf16.mxu1 %v11707_v3  ;;  %v5322_v3 = vld [vmem:[%s21415_s11 + $0xc8] sm:$0xff]  ;;  %v11737_v9 = vpack.c.bf16 %v5319_v47, %v5317_v58  ;;  %v5567_v58 = vld [vmem:[%s21415_s11 + $0x2e0] sm:$0xff] }
 0x7fd   : > { %v11739_v30 = vpack.c.bf16 %v5324_v29, %v5322_v3  ;;  %v5665_v47 = vld [vmem:[%s21415_s11 + $0x308] sm:$0xff]  ;;  %v5667_v3 = vld [vmem:[%s21415_s11 + $0x318] sm:$0xff] }
 0x7ff   : > { %11710 = vmatpush1.bf16.msra.mxu1 %v11709_v2  ;;  %v5323_v2 = vld [vmem:[%s21415_s11 + $0xd0] sm:$0xff] }
 0x800   : > { %11712 = vmatprep.subr.bf16.mxu1 %v11711_v18  ;;  %v5326_v18 = vld [vmem:[%s21415_s11 + $0xe8] sm:$0xff]  ;;  %v11741_v22 = vpack.c.bf16 %v5323_v2, %v5321_v32  ;;  %v5664_v32 = vld [vmem:[%s21415_s11 + $0x300] sm:$0xff] }
 0x801   : > { %v11743_v38 = vpack.c.bf16 %v5328_v36, %v5326_v18  ;;  %v5669_v2 = vld [vmem:[%s21415_s11 + $0x328] sm:$0xff]  ;;  %v5671_v18 = vld [vmem:[%s21415_s11 + $0x338] sm:$0xff] }
 0x803   : > { %11714 = vmatpush1.bf16.msra.mxu1 %v11713_v25  ;;  %v5327_v25 = vld [vmem:[%s21415_s11 + $0xf0] sm:$0xff] }
 0x804   : > { %11716 = vmatprep.subr.bf16.mxu1 %v11715_v15  ;;  %v5540_v15 = vld [vmem:[%s21415_s11 + $0x208] sm:$0xff] }
 0x8b2   : > { %v11119_v61 = vpop.f32.mrb[72].mxu1 }
 0x8b3   : > { %v5237_v34 = vpop.f32.mrb[73].mxu1 }
 0x8b6   : > { %v11122_v23 = vpop.f32.mrb[74].mxu1 }
 0x8b7   : > { %v5277_v56 = vmax.f32 %v11119_v61, %v11122_v23  ;;  %v5247_v49 = vpop.f32.mrb[75].mxu1  ;;  %v5542_v61 = vld [vmem:[%s21415_s11 + $0x218] sm:$0xff] }
 0x8b8   : > { %v5276_v42 = vmax.f32 %v5237_v34, %v5247_v49  ;;  %v11745_v34 = vpack.c.bf16 %v5327_v25, %v5325_v10  ;;  %v11747_v23 = vpack.c.bf16 %v5542_v61, %v5540_v15  ;;  %v5541_v49 = vld [vmem:[%s21415_s11 + $0x210] sm:$0xff]  ;;  %v5668_v10 = vld [vmem:[%s21415_s11 + $0x320] sm:$0xff]  ;;  %v5673_v15 = vld [vmem:[%s21415_s11 + $0x348] sm:$0xff] }
 0x8b9   : > { %v5670_v25 = vld [vmem:[%s21415_s11 + $0x330] sm:$0xff]  ;;  %v5675_v61 = vld [vmem:[%s21415_s11 + $0x358] sm:$0xff] }
 0x8ba   : > { %v11125_v54 = vpop.f32.mrb[76].mxu1 }
 0x8bb   : > { %v5257_v7 = vpop.f32.mrb[77].mxu1 }
 0x8be   : > { %v11128_v46 = vpop.f32.mrb[78].mxu1 }
 0x8bf   : > { %v5279_v53 = vmax.f32 %v11125_v54, %v11128_v46  ;;  %v5267_v1 = vpop.f32.mrb[79].mxu1  ;;  %v5546_v54 = vld [vmem:[%s21415_s11 + $0x238] sm:$0xff] }
 0x8c0   : > { %v5278_v51 = vmax.f32 %v5257_v7, %v5267_v1  ;;  %v5543_v1 = vld [vmem:[%s21415_s11 + $0x220] sm:$0xff] }
 0x8c1   : > { %v5281_v26 = vmax.f32 %v5277_v56, %v5279_v53  ;;  %v5539_v56 = vld [vmem:[%s21415_s11 + $0x200] sm:$0xff] }
 0x8c2   : > { %v5280_v50 = vmax.f32 %v5276_v42, %v5278_v51  ;;  %v5544_v42 = vld [vmem:[%s21415_s11 + $0x228] sm:$0xff]  ;;  %v11749_v7 = vpack.c.bf16 %v5541_v49, %v5539_v56  ;;  %v5545_v51 = vld [vmem:[%s21415_s11 + $0x230] sm:$0xff]  ;;  %v11787_v56 = vpack.c.bf16 %v5675_v61, %v5673_v15  ;;  %v5672_v49 = vld [vmem:[%s21415_s11 + $0x340] sm:$0xff] }
 0x8c3   : > { %v5285_v62 = vcombine.high %v5281_v26, %v5281_v26  ;;  %5291 = vst [vmem:[#allocation5 + $0x19] sm:$0xf] %v5281_v26  ;;  %v11751_v53 = vpack.c.bf16 %v5546_v54, %v5544_v42  ;;  %v5548_v26 = vld [vmem:[%s21415_s11 + $0x248] sm:$0xff]  ;;  %v5674_v42 = vld [vmem:[%s21415_s11 + $0x350] sm:$0xff]  ;;  %v5808_v61 = vld [vmem:[%s21415_s11 + $0x498] sm:$0xff] }
 0x8c4   : > { %v5284_v21 = vcombine.high %v5280_v50, %v5280_v50  ;;  %5289 = vst [vmem:[#allocation5 + $0x9] sm:$0xf] %v5280_v50  ;;  %v5550_v50 = vld [vmem:[%s21415_s11 + $0x258] sm:$0xff]  ;;  %v5677_v54 = vld [vmem:[%s21415_s11 + $0x368] sm:$0xff] }
 0x8c5   : > { %5292 = vst [vmem:[#allocation5 + $0x21] sm:$0xf] %v5285_v62  ;;  %v11753_v62 = vpack.c.bf16 %v5545_v51, %v5543_v1  ;;  %v11755_v33 = vpack.c.bf16 %v5550_v50, %v5548_v26  ;;  %v5676_v1 = vld [vmem:[%s21415_s11 + $0x360] sm:$0xff]  ;;  %v5678_v51 = vld [vmem:[%s21415_s11 + $0x370] sm:$0xff]  ;;  %v5681_v26 = vld [vmem:[%s21415_s11 + $0x388] sm:$0xff] }
 0x8c6   : > { %5290 = vst [vmem:[#allocation5 + $0x11] sm:$0xf] %v5284_v21  ;;  %v5683_v50 = vld [vmem:[%s21415_s11 + $0x398] sm:$0xff]  ;;  %v5806_v15 = vld [vmem:[%s21415_s11 + $0x488] sm:$0xff] }
 0x8cb   : > { %v13818_v0 = vld [vmem:[#allocation5 + $0x1] ss:$8 sps:$4 sm:$0xff]  }
 0x8cc   : > { %5438 = vmatmul.mubr.f32.vlgmr.msra.gmra.mrb[80].mxu1 %v13818_v0  ;;  %v13820_v46 = vld [vmem:[#allocation5] ss:$8 sps:$4 sm:$0xff]   ;;  %v5551_v0 = vld [vmem:[%s21415_s11 + $0x260] sm:$0xff] }
 0x8cd   : > { %11718 = vmatpush1.bf16.msra.mxu1 %v11717_v28  ;;  %5443 = vmatprep.mubr.f32.mxu1 %v16980_v12  ;;  %v13819_v20 = vld [vmem:[#allocation5 + $0x11] ss:$8 sps:$4 sm:$0xff]   ;;  %v11759_v28 = vpack.c.bf16 %v5554_v11, %v5552_v63  ;;  %v5687_v63 = vld [vmem:[%s21415_s11 + $0x3b8] sm:$0xff] }
 0x8ce   : > { %11720 = vmatprep.subr.bf16.mxu1 %v11719_v4  ;;  %v13821_v21 = vld [vmem:[#allocation5 + $0x10] ss:$8 sps:$4 sm:$0xff]   ;;  %v5553_v4 = vld [vmem:[%s21415_s11 + $0x270] sm:$0xff] }
 0x8cf   : > { %v11761_v5 = vpack.c.bf16 %v5553_v4, %v5551_v0  ;;  %v5686_v0 = vld [vmem:[%s21415_s11 + $0x3b0] sm:$0xff]  ;;  %v5689_v4 = vld [vmem:[%s21415_s11 + $0x3c8] sm:$0xff] }
 0x8d0   : > { %5444 = vmatmul.mubr.f32.gmra.mrb[82].mxu1 %v13819_v20  ;;  %v5560_v20 = vld [vmem:[%s21415_s11 + $0x2a8] sm:$0xff] }
 0x8d1   : > { %11722 = vmatpush1.bf16.msra.mxu1 %v11721_v19  ;;  %5522 = vmatprep.mubr.f32.mxu1 %v16980_v12  ;;  %v11763_v19 = vpack.c.bf16 %v5558_v14, %v5556_v39  ;;  %v5691_v39 = vld [vmem:[%s21415_s11 + $0x3d8] sm:$0xff] }
 0x8d2   : > { %11724 = vmatprep.subr.bf16.mxu1 %v11723_v60  ;;  %v5562_v60 = vld [vmem:[%s21415_s11 + $0x2b8] sm:$0xff] }
 0x8d5   : > { %11726 = vmatpush1.bf16.msra.mxu1 %v11725_v35  ;;  %v11767_v35 = vpack.c.bf16 %v5562_v60, %v5560_v20  ;;  %v5695_v20 = vld [vmem:[%s21415_s11 + $0x3f8] sm:$0xff] }
 0x8d6   : > { %11728 = vmatprep.subr.bf16.mxu1 %v11727_v41  ;;  %v5561_v41 = vld [vmem:[%s21415_s11 + $0x2b0] sm:$0xff] }
 0x8d7   : > { %v11769_v48 = vpack.c.bf16 %v5561_v41, %v5559_v40  ;;  %v5694_v40 = vld [vmem:[%s21415_s11 + $0x3f0] sm:$0xff]  ;;  %v5790_v41 = vld [vmem:[%s21415_s11 + $0x408] sm:$0xff] }
 0x8d9   : > { %11730 = vmatpush1.bf16.msra.mxu1 %v11729_v57  ;;  %v11771_v57 = vpack.c.bf16 %v5566_v43, %v5564_v13  ;;  %v5792_v13 = vld [vmem:[%s21415_s11 + $0x418] sm:$0xff] }
 0x8da   : > { %11732 = vmatprep.subr.bf16.mxu1 %v11731_v17  ;;  %v5563_v17 = vld [vmem:[%s21415_s11 + $0x2c0] sm:$0xff] }
 0x8db   : > { %v11773_v16 = vpack.c.bf16 %v5565_v59, %v5563_v17  ;;  %v5791_v17 = vld [vmem:[%s21415_s11 + $0x410] sm:$0xff]  ;;  %v5794_v59 = vld [vmem:[%s21415_s11 + $0x428] sm:$0xff] }
 0x8dd   : > { %11734 = vmatpush1.bf16.msra.mxu1 %v11733_v37  ;;  %v11775_v37 = vpack.c.bf16 %v5570_v6, %v5568_v55  ;;  %v5796_v55 = vld [vmem:[%s21415_s11 + $0x438] sm:$0xff] }
 0x8de   : > { %11736 = vmatprep.subr.bf16.mxu1 %v11735_v24  ;;  %v5569_v24 = vld [vmem:[%s21415_s11 + $0x2f0] sm:$0xff] }
 0x8df   : > { %v11777_v29 = vpack.c.bf16 %v5569_v24, %v5567_v58  ;;  %v5793_v58 = vld [vmem:[%s21415_s11 + $0x420] sm:$0xff]  ;;  %v5795_v24 = vld [vmem:[%s21415_s11 + $0x430] sm:$0xff] }
 0x8e1   : > { %11738 = vmatpush1.bf16.msra.mxu1 %v11737_v9  ;;  %v11779_v9 = vpack.c.bf16 %v5667_v3, %v5665_v47  ;;  %v5798_v47 = vld [vmem:[%s21415_s11 + $0x448] sm:$0xff]  ;;  %v5800_v3 = vld [vmem:[%s21415_s11 + $0x458] sm:$0xff] }
 0x8e2   : > { %11740 = vmatprep.subr.bf16.mxu1 %v11739_v30  ;;  %v5666_v30 = vld [vmem:[%s21415_s11 + $0x310] sm:$0xff] }
 0x8e3   : > { %v11781_v36 = vpack.c.bf16 %v5666_v30, %v5664_v32  ;;  %v11819_v32 = vpack.c.bf16 %v5800_v3, %v5798_v47  ;;  %v5797_v30 = vld [vmem:[%s21415_s11 + $0x440] sm:$0xff] }
 0x8e4   : > { %v6594_v47 = vld [vmem:[%s21417_s13 + $0x200] sm:$0xff] }
 0x8e5   : > { %11742 = vmatpush1.bf16.msra.mxu1 %v11741_v22  ;;  %v13822_v22 = vld [vmem:[#allocation5 + $0x2] ss:$8 sps:$4 sm:$0xff]  }
 0x8e6   : > { %11744 = vmatprep.subr.bf16.mxu1 %v11743_v38  ;;  %v11783_v38 = vpack.c.bf16 %v5671_v18, %v5669_v2  ;;  %v5799_v2 = vld [vmem:[%s21415_s11 + $0x450] sm:$0xff]  ;;  %v5802_v18 = vld [vmem:[%s21415_s11 + $0x468] sm:$0xff] }
 0x8e9   : > { %11746 = vmatpush1.bf16.msra.mxu1 %v11745_v34  ;;  %v11785_v34 = vpack.c.bf16 %v5670_v25, %v5668_v10  ;;  %v5801_v10 = vld [vmem:[%s21415_s11 + $0x460] sm:$0xff]  ;;  %v5803_v25 = vld [vmem:[%s21415_s11 + $0x470] sm:$0xff] }
 0x8ea   : > { %11748 = vmatprep.subr.bf16.mxu1 %v11747_v23  ;;  %v13823_v23 = vld [vmem:[#allocation5 + $0x12] ss:$8 sps:$4 sm:$0xff]  }
 0x8ec   : > { %5523 = vmatmul.mubr.f32.vlgmr.msra.gmra.mrb[80].mxu1 %v13820_v46  ;;  %v11789_v46 = vpack.c.bf16 %v5674_v42, %v5672_v49  ;;  %v5807_v49 = vld [vmem:[%s21415_s11 + $0x490] sm:$0xff]  ;;  %v5810_v42 = vld [vmem:[%s21415_s11 + $0x4a8] sm:$0xff] }
 0x8ed   : > { %11750 = vmatpush1.bf16.msra.mxu1 %v11749_v7  ;;  %5528 = vmatprep.mubr.f32.mxu1 %v16980_v12  ;;  %v5679_v7 = vld [vmem:[%s21415_s11 + $0x378] sm:$0xff] }
 0x8ee   : > { %11752 = vmatprep.subr.bf16.mxu1 %v11751_v53  ;;  %v11791_v53 = vpack.c.bf16 %v5679_v7, %v5677_v54  ;;  %v5812_v54 = vld [vmem:[%s21415_s11 + $0x4b8] sm:$0xff] }
 0x8f0   : > { %5529 = vmatmul.mubr.f32.gmra.mrb[82].mxu1 %v13821_v21  ;;  %v11795_v21 = vpack.c.bf16 %v5683_v50, %v5681_v26  ;;  %v5816_v26 = vld [vmem:[%s21415_s11 + $0x4d8] sm:$0xff] }
 0x8f1   : > { %11754 = vmatpush1.bf16.msra.mxu1 %v11753_v62  ;;  %5643 = vmatprep.mubr.f32.mxu1 %v16980_v12  ;;  %v11793_v62 = vpack.c.bf16 %v5678_v51, %v5676_v1  ;;  %v5811_v1 = vld [vmem:[%s21415_s11 + $0x4b0] sm:$0xff]  ;;  %v5814_v51 = vld [vmem:[%s21415_s11 + $0x4c8] sm:$0xff] }
 0x8f2   : > { %11756 = vmatprep.subr.bf16.mxu1 %v11755_v33  ;;  %v5680_v33 = vld [vmem:[%s21415_s11 + $0x380] sm:$0xff] }
 0x8f3   : > { %v11797_v11 = vpack.c.bf16 %v5682_v31, %v5680_v33  ;;  %v5815_v33 = vld [vmem:[%s21415_s11 + $0x4d0] sm:$0xff]  ;;  %v5818_v31 = vld [vmem:[%s21415_s11 + $0x4e8] sm:$0xff] }
 0x8f5   : > { %11758 = vmatpush1.bf16.msra.mxu1 %v11757_v45  ;;  %v11799_v45 = vpack.c.bf16 %v5687_v63, %v5685_v27  ;;  %v5820_v27 = vld [vmem:[%s21415_s11 + $0x4f8] sm:$0xff] }
 0x8f6   : > { %11760 = vmatprep.subr.bf16.mxu1 %v11759_v28  ;;  %v5684_v28 = vld [vmem:[%s21415_s11 + $0x3a0] sm:$0xff] }
 0x8f7   : > { %v11801_v14 = vpack.c.bf16 %v5686_v0, %v5684_v28  ;;  %v5819_v28 = vld [vmem:[%s21415_s11 + $0x4f0] sm:$0xff]  ;;  %v5915_v0 = vld [vmem:[%s21415_s11 + $0x508] sm:$0xff] }
 0x8f9   : > { %11762 = vmatpush1.bf16.msra.mxu1 %v11761_v5  ;;  %v11803_v5 = vpack.c.bf16 %v5691_v39, %v5689_v4  ;;  %v5917_v4 = vld [vmem:[%s21415_s11 + $0x518] sm:$0xff] }
 0x8fa   : > { %11764 = vmatprep.subr.bf16.mxu1 %v11763_v19  ;;  %v5688_v19 = vld [vmem:[%s21415_s11 + $0x3c0] sm:$0xff] }
 0x8fb   : > { %v11805_v60 = vpack.c.bf16 %v5690_v44, %v5688_v19  ;;  %v5916_v19 = vld [vmem:[%s21415_s11 + $0x510] sm:$0xff]  ;;  %v5919_v44 = vld [vmem:[%s21415_s11 + $0x528] sm:$0xff] }
 0x8fd   : > { %11766 = vmatpush1.bf16.msra.mxu1 %v11765_v8  ;;  %v11807_v8 = vpack.c.bf16 %v5695_v20, %v5693_v52  ;;  %v5921_v52 = vld [vmem:[%s21415_s11 + $0x538] sm:$0xff] }
 0x8fe   : > { %11768 = vmatprep.subr.bf16.mxu1 %v11767_v35  ;;  %v5692_v35 = vld [vmem:[%s21415_s11 + $0x3e0] sm:$0xff] }
 0x8ff   : > { %v11809_v43 = vpack.c.bf16 %v5694_v40, %v5692_v35  ;;  %v5918_v35 = vld [vmem:[%s21415_s11 + $0x520] sm:$0xff]  ;;  %v5920_v40 = vld [vmem:[%s21415_s11 + $0x530] sm:$0xff] }
 0x901   : > { %11770 = vmatpush1.bf16.msra.mxu1 %v11769_v48  ;;  %v11811_v48 = vpack.c.bf16 %v5792_v13, %v5790_v41  ;;  %v5923_v41 = vld [vmem:[%s21415_s11 + $0x548] sm:$0xff]  ;;  %v5925_v13 = vld [vmem:[%s21415_s11 + $0x558] sm:$0xff] }
 0x902   : > { %11772 = vmatprep.subr.bf16.mxu1 %v11771_v57  ;;  %v5789_v57 = vld [vmem:[%s21415_s11 + $0x400] sm:$0xff] }
 0x903   : > { %v11813_v6 = vpack.c.bf16 %v5791_v17, %v5789_v57  ;;  %v11851_v57 = vpack.c.bf16 %v5925_v13, %v5923_v41  ;;  %v5922_v17 = vld [vmem:[%s21415_s11 + $0x540] sm:$0xff]  ;;  %v5945_v41 = vld [vmem:[%s21415_s11 + $0x5f8] sm:$0xff] }
 0x905   : > { %11774 = vmatpush1.bf16.msra.mxu1 %v11773_v16  ;;  %v13824_v16 = vld [vmem:[#allocation5 + $0x8] ss:$8 sps:$4 sm:$0xff]  }
 0x906   : > { %11776 = vmatprep.subr.bf16.mxu1 %v11775_v37  ;;  %v11815_v37 = vpack.c.bf16 %v5796_v55, %v5794_v59  ;;  %v5924_v59 = vld [vmem:[%s21415_s11 + $0x550] sm:$0xff]  ;;  %v5927_v55 = vld [vmem:[%s21415_s11 + $0x568] sm:$0xff] }
 0x907   : > { %v11853_v3 = vpack.c.bf16 %v5924_v59, %v5922_v17  ;;  %v6614_v17 = vld [vmem:[%s21417_s13 + $0x2a0] sm:$0xff]  ;;  %v6616_v59 = vld [vmem:[%s21417_s13 + $0x2b0] sm:$0xff] }
 0x909   : > { %11778 = vmatpush1.bf16.msra.mxu1 %v11777_v29  ;;  %v11817_v29 = vpack.c.bf16 %v5795_v24, %v5793_v58  ;;  %v6595_v58 = vld [vmem:[%s21417_s13 + $0x208] sm:$0xff]  ;;  %v6597_v24 = vld [vmem:[%s21417_s13 + $0x218] sm:$0xff] }
 0x90a   : > { %11780 = vmatprep.subr.bf16.mxu1 %v11779_v9  ;;  %v13825_v9 = vld [vmem:[#allocation5 + $0x18] ss:$8 sps:$4 sm:$0xff]  }
 0x90c   : > { %5644 = vmatmul.mubr.f32.vlgmr.msra.gmra.mrb[80].mxu1 %v13822_v22  ;;  %v11821_v22 = vpack.c.bf16 %v5799_v2, %v5797_v30  ;;  %v6601_v30 = vld [vmem:[%s21417_s13 + $0x238] sm:$0xff] }
 0x90d   : > { %11782 = vmatpush1.bf16.msra.mxu1 %v11781_v36  ;;  %5649 = vmatprep.mubr.f32.mxu1 %v16980_v12  ;;  %v5804_v36 = vld [vmem:[%s21415_s11 + $0x478] sm:$0xff] }
 0x90e   : > { %11784 = vmatprep.subr.bf16.mxu1 %v11783_v38  ;;  %v11823_v38 = vpack.c.bf16 %v5804_v36, %v5802_v18 }
 0x910   : > { %5650 = vmatmul.mubr.f32.gmra.mrb[82].mxu1 %v13823_v23  ;;  %v11827_v23 = vpack.c.bf16 %v5808_v61, %v5806_v15  ;;  %v5933_v15 = vld [vmem:[%s21415_s11 + $0x598] sm:$0xff] }
 0x911   : > { %11786 = vmatpush1.bf16.msra.mxu1 %v11785_v34  ;;  %5768 = vmatprep.mubr.f32.mxu1 %v16980_v12  ;;  %v11825_v34 = vpack.c.bf16 %v5803_v25, %v5801_v10  ;;  %v6603_v10 = vld [vmem:[%s21417_s13 + $0x248] sm:$0xff]  ;;  %v6605_v61 = vld [vmem:[%s21417_s13 + $0x258] sm:$0xff] }
 0x912   : > { %11788 = vmatprep.subr.bf16.mxu1 %v11787_v56  ;;  %v5805_v56 = vld [vmem:[%s21415_s11 + $0x480] sm:$0xff]  ;;  %v5931_v25 = vld [vmem:[%s21415_s11 + $0x588] sm:$0xff] }
 0x913   : > { %v11829_v7 = vpack.c.bf16 %v5807_v49, %v5805_v56  ;;  %v5930_v56 = vld [vmem:[%s21415_s11 + $0x580] sm:$0xff]  ;;  %v11979_v49 = vpack.c.bf16 %v6605_v61, %v6603_v10  ;;  %v6625_v10 = vld [vmem:[%s21417_s13 + $0x2f8] sm:$0xff] }
 0x915   : > { %11790 = vmatpush1.bf16.msra.mxu1 %v11789_v46  ;;  %v11831_v46 = vpack.c.bf16 %v5812_v54, %v5810_v42  ;;  %v6602_v42 = vld [vmem:[%s21417_s13 + $0x240] sm:$0xff]  ;;  %v6604_v54 = vld [vmem:[%s21417_s13 + $0x250] sm:$0xff] }
 0x916   : > { %11792 = vmatprep.subr.bf16.mxu1 %v11791_v53  ;;  %v5809_v53 = vld [vmem:[%s21415_s11 + $0x4a0] sm:$0xff] }
 0x917   : > { %v11833_v50 = vpack.c.bf16 %v5811_v1, %v5809_v53  ;;  %v6607_v53 = vld [vmem:[%s21417_s13 + $0x268] sm:$0xff]  ;;  %v6609_v1 = vld [vmem:[%s21417_s13 + $0x278] sm:$0xff] }
 0x919   : > { %11794 = vmatpush1.bf16.msra.mxu1 %v11793_v62  ;;  %v11835_v62 = vpack.c.bf16 %v5816_v26, %v5814_v51  ;;  %v5935_v51 = vld [vmem:[%s21415_s11 + $0x5a8] sm:$0xff]  ;;  %v5937_v26 = vld [vmem:[%s21415_s11 + $0x5b8] sm:$0xff] }
 0x91a   : > { %11796 = vmatprep.subr.bf16.mxu1 %v11795_v21  ;;  %v5813_v21 = vld [vmem:[%s21415_s11 + $0x4c0] sm:$0xff] }
 0x91b   : > { %v11837_v63 = vpack.c.bf16 %v5815_v33, %v5813_v21  ;;  %v5934_v21 = vld [vmem:[%s21415_s11 + $0x5a0] sm:$0xff]  ;;  %v11983_v33 = vpack.c.bf16 %v6609_v1, %v6607_v53  ;;  %v6627_v53 = vld [vmem:[%s21417_s13 + $0x308] sm:$0xff]  ;;  %v6629_v1 = vld [vmem:[%s21417_s13 + $0x318] sm:$0xff] }
 0x91d   : > { %11798 = vmatpush1.bf16.msra.mxu1 %v11797_v11  ;;  %v11839_v11 = vpack.c.bf16 %v5820_v27, %v5818_v31  ;;  %v6606_v31 = vld [vmem:[%s21417_s13 + $0x260] sm:$0xff]  ;;  %v6608_v27 = vld [vmem:[%s21417_s13 + $0x270] sm:$0xff] }
 0x91e   : > { %11800 = vmatprep.subr.bf16.mxu1 %v11799_v45  ;;  %v5817_v45 = vld [vmem:[%s21415_s11 + $0x4e0] sm:$0xff] }
 0x91f   : > { %v11841_v39 = vpack.c.bf16 %v5819_v28, %v5817_v45  ;;  %v6611_v45 = vld [vmem:[%s21417_s13 + $0x288] sm:$0xff]  ;;  %v6613_v28 = vld [vmem:[%s21417_s13 + $0x298] sm:$0xff] }
 0x921   : > { %11802 = vmatpush1.bf16.msra.mxu1 %v11801_v14  ;;  %v11843_v14 = vpack.c.bf16 %v5917_v4, %v5915_v0  ;;  %v5939_v0 = vld [vmem:[%s21415_s11 + $0x5c8] sm:$0xff]  ;;  %v5941_v4 = vld [vmem:[%s21415_s11 + $0x5d8] sm:$0xff] }
 0x922   : > { %11804 = vmatprep.subr.bf16.mxu1 %v11803_v5  ;;  %v5914_v5 = vld [vmem:[%s21415_s11 + $0x500] sm:$0xff] }
 0x923   : > { %v11845_v20 = vpack.c.bf16 %v5916_v19, %v5914_v5  ;;  %v5938_v5 = vld [vmem:[%s21415_s11 + $0x5c0] sm:$0xff]  ;;  %v11987_v19 = vpack.c.bf16 %v6613_v28, %v6611_v45  ;;  %v6633_v45 = vld [vmem:[%s21417_s13 + $0x338] sm:$0xff]  ;;  %v6053_v28 = vld [vmem:[%s21415_s11 + $0x668] sm:$0xff] }
 0x925   : > { %11806 = vmatpush1.bf16.msra.mxu1 %v11805_v60  ;;  %v13826_v60 = vld [vmem:[#allocation5 + $0x9] ss:$8 sps:$4 sm:$0xff]  }
 0x926   : > { %11808 = vmatprep.subr.bf16.mxu1 %v11807_v8  ;;  %v11847_v8 = vpack.c.bf16 %v5921_v52, %v5919_v44  ;;  %v6610_v44 = vld [vmem:[%s21417_s13 + $0x280] sm:$0xff]  ;;  %v6612_v52 = vld [vmem:[%s21417_s13 + $0x290] sm:$0xff] }
 0x927   : > { %v11989_v13 = vpack.c.bf16 %v6612_v52, %v6610_v44  ;;  %v6052_v52 = vld [vmem:[%s21415_s11 + $0x660] sm:$0xff] }
 0x929   : > { %11810 = vmatpush1.bf16.msra.mxu1 %v11809_v43  ;;  %v11849_v43 = vpack.c.bf16 %v5920_v40, %v5918_v35  ;;  %v6617_v35 = vld [vmem:[%s21417_s13 + $0x2b8] sm:$0xff]  ;;  %v5943_v40 = vld [vmem:[%s21415_s11 + $0x5e8] sm:$0xff] }
 0x92a   : > { %11812 = vmatprep.subr.bf16.mxu1 %v11811_v48  ;;  %v13827_v48 = vld [vmem:[#allocation5 + $0x19] ss:$8 sps:$4 sm:$0xff]  }
 0x92c   : > { %5769 = vmatmul.mubr.f32.vlgmr.msra.gmra.mrb[80].mxu1 %v13824_v16  ;;  %v5926_v16 = vld [vmem:[%s21415_s11 + $0x560] sm:$0xff] }
 0x92d   : > { %11814 = vmatpush1.bf16.msra.mxu1 %v11813_v6  ;;  %5774 = vmatprep.mubr.f32.mxu1 %v16980_v12  ;;  %v5929_v6 = vld [vmem:[%s21415_s11 + $0x578] sm:$0xff] }
 0x92e   : > { %11816 = vmatprep.subr.bf16.mxu1 %v11815_v37  ;;  %v5928_v37 = vld [vmem:[%s21415_s11 + $0x570] sm:$0xff]  ;;  %v11855_v2 = vpack.c.bf16 %v5929_v6, %v5927_v55  ;;  %v11871_v55 = vpack.c.bf16 %v5945_v41, %v5943_v40  ;;  %v6056_v41 = vld [vmem:[%s21415_s11 + $0x680] sm:$0xff] }
 0x92f   : > { %v5944_v6 = vld [vmem:[%s21415_s11 + $0x5f0] sm:$0xff] }
 0x930   : > { %5775 = vmatmul.mubr.f32.gmra.mrb[82].mxu1 %v13825_v9  ;;  %v6596_v9 = vld [vmem:[%s21417_s13 + $0x210] sm:$0xff] }
 0x931   : > { %11818 = vmatpush1.bf16.msra.mxu1 %v11817_v29  ;;  %5893 = vmatprep.mubr.f32.mxu1 %v16980_v12  ;;  %v11971_v29 = vpack.c.bf16 %v6597_v24, %v6595_v58  ;;  %v11973_v18 = vpack.c.bf16 %v6596_v9, %v6594_v47  ;;  %v6041_v58 = vld [vmem:[%s21415_s11 + $0x608] sm:$0xff]  ;;  %v6043_v24 = vld [vmem:[%s21415_s11 + $0x618] sm:$0xff]  ;;  %v11993_v47 = vpack.c.bf16 %v6616_v59, %v6614_v17  ;;  %v6618_v9 = vld [vmem:[%s21417_s13 + $0x2c0] sm:$0xff] }
 0x932   : > { %11820 = vmatprep.subr.bf16.mxu1 %v11819_v32  ;;  %v6599_v32 = vld [vmem:[%s21417_s13 + $0x228] sm:$0xff]  ;;  %v6060_v59 = vld [vmem:[%s21415_s11 + $0x6a0] sm:$0xff] }
 0x933   : > { %v11975_v36 = vpack.c.bf16 %v6601_v30, %v6599_v32  ;;  %11972 = vmatprep.subr.bf16.mxu0 %v11971_v29  ;;  %v6620_v32 = vld [vmem:[%s21417_s13 + $0x2d0] sm:$0xff]  ;;  %v11875_v30 = vpack.c.bf16 %v6043_v24, %v6041_v58  ;;  %v6064_v24 = vld [vmem:[%s21415_s11 + $0x6c0] sm:$0xff] }
 0x934   : > { %11974 = vmatpush1.bf16.msra.mxu0 %v11973_v18  ;;  %v6042_v18 = vld [vmem:[%s21415_s11 + $0x610] sm:$0xff] }
 0x935   : > { %11822 = vmatpush1.bf16.msra.mxu1 %v11821_v22  ;;  %v6598_v22 = vld [vmem:[%s21417_s13 + $0x220] sm:$0xff]  ;;  %11976 = vmatprep.subr.bf16.mxu0 %v11975_v36  ;;  %v6045_v36 = vld [vmem:[%s21415_s11 + $0x628] sm:$0xff] }
 0x936   : > { %11824 = vmatprep.subr.bf16.mxu1 %v11823_v38  ;;  %v6600_v38 = vld [vmem:[%s21417_s13 + $0x230] sm:$0xff] }
 0x939   : > { %11826 = vmatpush1.bf16.msra.mxu1 %v11825_v34  ;;  %v11977_v34 = vpack.c.bf16 %v6600_v38, %v6598_v22  ;;  %v6047_v22 = vld [vmem:[%s21415_s11 + $0x638] sm:$0xff]  ;;  %v6623_v38 = vld [vmem:[%s21417_s13 + $0x2e8] sm:$0xff] }
 0x93a   : > { %11828 = vmatprep.subr.bf16.mxu1 %v11827_v23  ;;  %v11857_v23 = vpack.c.bf16 %v5928_v37, %v5926_v16  ;;  %v6619_v16 = vld [vmem:[%s21417_s13 + $0x2c8] sm:$0xff]  ;;  %v6621_v37 = vld [vmem:[%s21417_s13 + $0x2d8] sm:$0xff] }
 0x93b   : > { %11978 = vmatpush1.bf16.msra.mxu0 %v11977_v34  ;;  %v11995_v29 = vpack.c.bf16 %v6621_v37, %v6619_v16  ;;  %v6622_v34 = vld [vmem:[%s21417_s13 + $0x2e0] sm:$0xff]  ;;  %v6067_v16 = vld [vmem:[%s21415_s11 + $0x6d8] sm:$0xff] }
 0x93c   : > { %11980 = vmatprep.subr.bf16.mxu0 %v11979_v49  ;;  %v6044_v49 = vld [vmem:[%s21415_s11 + $0x620] sm:$0xff] }
 0x93d   : > { %11830 = vmatpush1.bf16.msra.mxu1 %v11829_v7  ;;  %v11859_v7 = vpack.c.bf16 %v5933_v15, %v5931_v25  ;;  %v11997_v25 = vpack.c.bf16 %v6620_v32, %v6618_v9  ;;  %v13828_v15 = vld [vmem:[#allocation5 + $0xa] ss:$8 sps:$4 sm:$0xff]  }
 0x93e   : > { %11832 = vmatprep.subr.bf16.mxu1 %v11831_v46  ;;  %v5932_v46 = vld [vmem:[%s21415_s11 + $0x590] sm:$0xff] }
 0x941   : > { %11834 = vmatpush1.bf16.msra.mxu1 %v11833_v50  ;;  %v11981_v50 = vpack.c.bf16 %v6604_v54, %v6602_v42  ;;  %v6046_v42 = vld [vmem:[%s21415_s11 + $0x630] sm:$0xff]  ;;  %v6049_v54 = vld [vmem:[%s21415_s11 + $0x648] sm:$0xff] }
 0x942   : > { %11836 = vmatprep.subr.bf16.mxu1 %v11835_v62  ;;  %v11861_v62 = vpack.c.bf16 %v5932_v46, %v5930_v56  ;;  %v11879_v56 = vpack.c.bf16 %v6047_v22, %v6045_v36  ;;  %v6051_v46 = vld [vmem:[%s21415_s11 + $0x658] sm:$0xff] }
 0x943   : > { %11982 = vmatpush1.bf16.msra.mxu0 %v11981_v50  ;;  %v11881_v50 = vpack.c.bf16 %v6046_v42, %v6044_v49  ;;  %v6168_v36 = vld [vmem:[%s21415_s11 + $0x718] sm:$0xff]  ;;  %v6169_v49 = vld [vmem:[%s21415_s11 + $0x720] sm:$0xff]  ;;  %v6171_v42 = vld [vmem:[%s21415_s11 + $0x730] sm:$0xff] }
 0x944   : > { %11984 = vmatprep.subr.bf16.mxu0 %v11983_v33  ;;  %v6628_v33 = vld [vmem:[%s21417_s13 + $0x310] sm:$0xff] }
 0x945   : > { %11838 = vmatpush1.bf16.msra.mxu1 %v11837_v63  ;;  %v11863_v63 = vpack.c.bf16 %v5937_v26, %v5935_v51  ;;  %v13829_v51 = vld [vmem:[#allocation5 + $0x1a] ss:$8 sps:$4 sm:$0xff]  }
 0x946   : > { %11840 = vmatprep.subr.bf16.mxu1 %v11839_v11  ;;  %v5936_v11 = vld [vmem:[%s21415_s11 + $0x5b0] sm:$0xff] }
 0x949   : > { %11842 = vmatpush1.bf16.msra.mxu1 %v11841_v39  ;;  %v11985_v39 = vpack.c.bf16 %v6608_v27, %v6606_v31  ;;  %v11883_v31 = vpack.c.bf16 %v6051_v46, %v6049_v54  ;;  %v6050_v27 = vld [vmem:[%s21415_s11 + $0x650] sm:$0xff]  ;;  %v6174_v54 = vld [vmem:[%s21415_s11 + $0x748] sm:$0xff] }
 0x94a   : > { %11844 = vmatprep.subr.bf16.mxu1 %v11843_v14  ;;  %v11865_v14 = vpack.c.bf16 %v5936_v11, %v5934_v21  ;;  %v6626_v21 = vld [vmem:[%s21417_s13 + $0x300] sm:$0xff]  ;;  %v6631_v11 = vld [vmem:[%s21417_s13 + $0x328] sm:$0xff]  ;;  %v17687_v46 = vld [vmem:[#allocation4] sm:$0xff] }
 0x94b   : > { %11986 = vmatpush1.bf16.msra.mxu0 %v11985_v39 }
 0x94c   : > { %5894 = vmatmul.mubr.f32.vlgmr.msra.gmra.mrb[80].mxu1 %v13826_v60  ;;  %v5940_v60 = vld [vmem:[%s21415_s11 + $0x5d0] sm:$0xff]  ;;  %11988 = vmatprep.subr.bf16.mxu0 %v11987_v19 }
 0x94d   : > { %11846 = vmatpush1.bf16.msra.mxu1 %v11845_v20  ;;  %5899 = vmatprep.mubr.f32.mxu1 %v16980_v12  ;;  %v11867_v20 = vpack.c.bf16 %v5941_v4, %v5939_v0  ;;  %v6055_v0 = vld [vmem:[%s21415_s11 + $0x678] sm:$0xff]  ;;  %v12005_v4 = vpack.c.bf16 %v6628_v33, %v6626_v21  ;;  %v6632_v19 = vld [vmem:[%s21417_s13 + $0x330] sm:$0xff] }
 0x94e   : > { %11848 = vmatprep.subr.bf16.mxu1 %v11847_v8  ;;  %v6615_v8 = vld [vmem:[%s21417_s13 + $0x2a8] sm:$0xff]  ;;  %v11887_v44 = vpack.c.bf16 %v6055_v0, %v6053_v28  ;;  %v6180_v21 = vld [vmem:[%s21415_s11 + $0x778] sm:$0xff] }
 0x94f   : > { %11990 = vmatpush1.bf16.msra.mxu0 %v11989_v13  ;;  %v6058_v13 = vld [vmem:[%s21415_s11 + $0x690] sm:$0xff] }
 0x950   : > { %5900 = vmatmul.mubr.f32.gmra.mrb[82].mxu1 %v13827_v48  ;;  %v5942_v48 = vld [vmem:[%s21415_s11 + $0x5e0] sm:$0xff] }
 0x951   : > { %11850 = vmatpush1.bf16.msra.mxu1 %v11849_v43  ;;  %6018 = vmatprep.mubr.f32.mxu1 %v16980_v12  ;;  %v11869_v43 = vpack.c.bf16 %v5940_v60, %v5938_v5  ;;  %v6630_v5 = vld [vmem:[%s21417_s13 + $0x320] sm:$0xff]  ;;  %v6059_v60 = vld [vmem:[%s21415_s11 + $0x698] sm:$0xff] }
 0x952   : > { %11852 = vmatprep.subr.bf16.mxu1 %v11851_v57  ;;  %v11991_v57 = vpack.c.bf16 %v6617_v35, %v6615_v8  ;;  %v12009_v8 = vpack.c.bf16 %v6632_v19, %v6630_v5  ;;  %v6188_v5 = vld [vmem:[%s21415_s11 + $0x7b8] sm:$0xff] }
 0x954   : > { %11992 = vmatprep.subr.bf16.mxu0 %v11991_v57  ;;  %v11893_v57 = vpack.c.bf16 %v6058_v13, %v6056_v41  ;;  %v6191_v41 = vld [vmem:[%s21415_s11 + $0x7d0] sm:$0xff]  ;;  %v6194_v13 = vld [vmem:[%s21415_s11 + $0x7e8] sm:$0xff] }
 0x955   : > { %11854 = vmatpush1.bf16.msra.mxu1 %v11853_v3  ;;  %v11873_v3 = vpack.c.bf16 %v5944_v6, %v5942_v48  ;;  %11994 = vmatpush1.bf16.msra.mxu0 %v11993_v47  ;;  %v6063_v48 = vld [vmem:[%s21415_s11 + $0x6b8] sm:$0xff]  ;;  %v6065_v6 = vld [vmem:[%s21415_s11 + $0x6c8] sm:$0xff]  ;;  %v6066_v47 = vld [vmem:[%s21415_s11 + $0x6d0] sm:$0xff] }
 0x956   : > { %11856 = vmatprep.subr.bf16.mxu1 %v11855_v2  ;;  %v6040_v2 = vld [vmem:[%s21415_s11 + $0x600] sm:$0xff]  ;;  %11996 = vmatprep.subr.bf16.mxu0 %v11995_v29  ;;  %v11899_v58 = vpack.c.bf16 %v6067_v16, %v6065_v6  ;;  %v6071_v29 = vld [vmem:[%s21415_s11 + $0x6f8] sm:$0xff]  ;;  %v11901_v9 = vpack.c.bf16 %v6066_v47, %v6064_v24  ;;  %v6292_v24 = vld [vmem:[%s21415_s11 + $0x810] sm:$0xff] }
 0x957   : > { %v11877_v61 = vpack.c.bf16 %v6042_v18, %v6040_v2  ;;  %v6070_v2 = vld [vmem:[%s21415_s11 + $0x6f0] sm:$0xff]  ;;  %v6166_v18 = vld [vmem:[%s21415_s11 + $0x708] sm:$0xff]  ;;  %v6293_v6 = vld [vmem:[%s21415_s11 + $0x818] sm:$0xff] }
 0x958   : > { %v6295_v47 = vld [vmem:[%s21415_s11 + $0x828] sm:$0xff] }
 0x959   : > { %11858 = vmatpush1.bf16.msra.mxu1 %v11857_v23  ;;  %v6624_v23 = vld [vmem:[%s21417_s13 + $0x2f0] sm:$0xff]  ;;  %11998 = vmatpush1.bf16.msra.mxu0 %v11997_v25 }
 0x95a   : > { %11860 = vmatprep.subr.bf16.mxu1 %v11859_v7  ;;  %v11999_v7 = vpack.c.bf16 %v6625_v10, %v6623_v38  ;;  %v12001_v26 = vpack.c.bf16 %v6624_v23, %v6622_v34  ;;  %v11907_v38 = vpack.c.bf16 %v6168_v36, %v6166_v18  ;;  %v6165_v10 = vld [vmem:[%s21415_s11 + $0x700] sm:$0xff]  ;;  %v6167_v25 = vld [vmem:[%s21415_s11 + $0x710] sm:$0xff]  ;;  %v6299_v18 = vld [vmem:[%s21415_s11 + $0x848] sm:$0xff] }
 0x95b   : > { %v11909_v34 = vpack.c.bf16 %v6167_v25, %v6165_v10  ;;  %v13830_v23 = vld [vmem:[#allocation5 + $0x10] ss:$8 sps:$4 sm:$0xff]   ;;  %v6301_v36 = vld [vmem:[%s21415_s11 + $0x858] sm:$0xff] }
 0x95c   : > { %12000 = vmatprep.subr.bf16.mxu0 %v11999_v7  ;;  %v6176_v7 = vld [vmem:[%s21415_s11 + $0x758] sm:$0xff]  ;;  %v11947_v10 = vpack.c.bf16 %v6301_v36, %v6299_v18  ;;  %v6298_v25 = vld [vmem:[%s21415_s11 + $0x840] sm:$0xff] }
 0x95d   : > { %11862 = vmatpush1.bf16.msra.mxu1 %v11861_v62  ;;  %v6048_v62 = vld [vmem:[%s21415_s11 + $0x640] sm:$0xff]  ;;  %12002 = vmatpush1.bf16.msra.mxu0 %v12001_v26  ;;  %v6653_v18 = vld [vmem:[%s21417_s13 + $0x3d8] sm:$0xff] }
 0x95e   : > { %11864 = vmatprep.subr.bf16.mxu1 %v11863_v63  ;;  %v12003_v63 = vpack.c.bf16 %v6629_v1, %v6627_v53  ;;  %v11885_v39 = vpack.c.bf16 %v6050_v27, %v6048_v62  ;;  %v11913_v53 = vpack.c.bf16 %v6171_v42, %v6169_v49  ;;  %v13831_v1 = vld [vmem:[#allocation5 + $0x20] ss:$8 sps:$4 sm:$0xff]   ;;  %v6173_v26 = vld [vmem:[%s21415_s11 + $0x740] sm:$0xff]  ;;  %v6178_v62 = vld [vmem:[%s21415_s11 + $0x768] sm:$0xff] }
 0x95f   : > { %v6177_v27 = vld [vmem:[%s21415_s11 + $0x760] sm:$0xff]  ;;  %v6304_v42 = vld [vmem:[%s21415_s11 + $0x870] sm:$0xff] }
 0x960   : > { %12004 = vmatprep.subr.bf16.mxu0 %v12003_v63  ;;  %v6179_v63 = vld [vmem:[%s21415_s11 + $0x770] sm:$0xff]  ;;  %v6302_v49 = vld [vmem:[%s21415_s11 + $0x860] sm:$0xff] }
 0x961   : > { %11866 = vmatpush1.bf16.msra.mxu1 %v11865_v14  ;;  %v12007_v14 = vpack.c.bf16 %v6633_v45, %v6631_v11  ;;  %12006 = vmatpush1.bf16.msra.mxu0 %v12005_v4  ;;  %v6182_v11 = vld [vmem:[%s21415_s11 + $0x788] sm:$0xff]  ;;  %v6184_v45 = vld [vmem:[%s21415_s11 + $0x798] sm:$0xff]  ;;  %v11921_v28 = vpack.c.bf16 %v6179_v63, %v6177_v27  ;;  %v6181_v4 = vld [vmem:[%s21415_s11 + $0x780] sm:$0xff] }
 0x962   : > { %11868 = vmatprep.subr.bf16.mxu1 %v11867_v20  ;;  %v6054_v20 = vld [vmem:[%s21415_s11 + $0x670] sm:$0xff]  ;;  %v11923_v0 = vpack.c.bf16 %v6184_v45, %v6182_v11  ;;  %v6315_v63 = vld [vmem:[%s21415_s11 + $0x8c8] sm:$0xff]  ;;  %v6317_v11 = vld [vmem:[%s21415_s11 + $0x8d8] sm:$0xff] }
 0x963   : > { %v11889_v35 = vpack.c.bf16 %v6054_v20, %v6052_v52  ;;  %12008 = vmatprep.subr.bf16.mxu0 %v12007_v14  ;;  %v6186_v14 = vld [vmem:[%s21415_s11 + $0x7a8] sm:$0xff]  ;;  %v6185_v52 = vld [vmem:[%s21415_s11 + $0x7a0] sm:$0xff]  ;;  %v6187_v20 = vld [vmem:[%s21415_s11 + $0x7b0] sm:$0xff] }
 0x964   : > { %v6312_v27 = vld [vmem:[%s21415_s11 + $0x8b0] sm:$0xff] }
 0x965   : > { %11870 = vmatpush1.bf16.msra.mxu1 %v11869_v43  ;;  %v6061_v43 = vld [vmem:[%s21415_s11 + $0x6a8] sm:$0xff]  ;;  %12010 = vmatpush1.bf16.msra.mxu0 %v12009_v8  ;;  %v11929_v8 = vpack.c.bf16 %v6187_v20, %v6185_v52  ;;  %v6320_v52 = vld [vmem:[%s21415_s11 + $0x8f0] sm:$0xff] }
 0x966   : > { %11872 = vmatprep.subr.bf16.mxu1 %v11871_v55  ;;  %v11895_v17 = vpack.c.bf16 %v6063_v48, %v6061_v43  ;;  %v6062_v55 = vld [vmem:[%s21415_s11 + $0x6b0] sm:$0xff]  ;;  %v6196_v43 = vld [vmem:[%s21415_s11 + $0x7f8] sm:$0xff] }
 0x967   : > { %v11897_v37 = vpack.c.bf16 %v6062_v55, %v6060_v59  ;;  %v6195_v59 = vld [vmem:[%s21415_s11 + $0x7f0] sm:$0xff]  ;;  %v6291_v55 = vld [vmem:[%s21415_s11 + $0x808] sm:$0xff] }
 0x969   : > { %11874 = vmatpush1.bf16.msra.mxu1 %v11873_v3  ;;  %v6069_v3 = vld [vmem:[%s21415_s11 + $0x6e8] sm:$0xff] }
 0x96a   : > { %11876 = vmatprep.subr.bf16.mxu1 %v11875_v30  ;;  %v11903_v32 = vpack.c.bf16 %v6071_v29, %v6069_v3  ;;  %v6068_v30 = vld [vmem:[%s21415_s11 + $0x6e0] sm:$0xff]  ;;  %v6297_v3 = vld [vmem:[%s21415_s11 + $0x838] sm:$0xff] }
 0x96b   : > { %v11905_v22 = vpack.c.bf16 %v6070_v2, %v6068_v30  ;;  %v6294_v30 = vld [vmem:[%s21415_s11 + $0x820] sm:$0xff]  ;;  %v6296_v2 = vld [vmem:[%s21415_s11 + $0x830] sm:$0xff] }
 0x96c   : > { %6019 = vmatmul.mubr.f32.vlgmr.msra.gmra.mrb[80].mxu1 %v13828_v15  ;;  %v6170_v15 = vld [vmem:[%s21415_s11 + $0x728] sm:$0xff] }
 0x96d   : > { %11878 = vmatpush1.bf16.msra.mxu1 %v11877_v61  ;;  %6024 = vmatprep.mubr.f32.mxu1 %v16980_v12  ;;  %v6172_v61 = vld [vmem:[%s21415_s11 + $0x738] sm:$0xff] }
 0x96e   : > { %11880 = vmatprep.subr.bf16.mxu1 %v11879_v56  ;;  %v11911_v56 = vpack.c.bf16 %v6172_v61, %v6170_v15  ;;  %v6300_v15 = vld [vmem:[%s21415_s11 + $0x850] sm:$0xff]  ;;  %v6303_v61 = vld [vmem:[%s21415_s11 + $0x868] sm:$0xff] }
 0x970   : > { %6025 = vmatmul.mubr.f32.gmra.mrb[82].mxu1 %v13829_v51  ;;  %v11915_v51 = vpack.c.bf16 %v6176_v7, %v6174_v54  ;;  %v6307_v54 = vld [vmem:[%s21415_s11 + $0x888] sm:$0xff]  ;;  %v6309_v7 = vld [vmem:[%s21415_s11 + $0x898] sm:$0xff] }
 0x971   : > { %11882 = vmatpush1.bf16.msra.mxu1 %v11881_v50  ;;  %6144 = vmatprep.mubr.f32.mxu1 %v16980_v12  ;;  %v6057_v12 = vld [vmem:[%s21415_s11 + $0x688] sm:$0xff]  ;;  %v6175_v50 = vld [vmem:[%s21415_s11 + $0x750] sm:$0xff] }
 0x972   : > { %11884 = vmatprep.subr.bf16.mxu1 %v11883_v31  ;;  %v11891_v40 = vpack.c.bf16 %v6059_v60, %v6057_v12  ;;  %v11917_v33 = vpack.c.bf16 %v6175_v50, %v6173_v26  ;;  %v11919_v31 = vpack.c.bf16 %v6180_v21, %v6178_v62  ;;  %v6190_v12 = vld [vmem:[%s21415_s11 + $0x7c8] sm:$0xff]  ;;  %v6192_v60 = vld [vmem:[%s21415_s11 + $0x7d8] sm:$0xff]  ;;  %v6308_v26 = vld [vmem:[%s21415_s11 + $0x890] sm:$0xff] }
 0x973   : > { %v6311_v50 = vld [vmem:[%s21415_s11 + $0x8a8] sm:$0xff]  ;;  %v6313_v62 = vld [vmem:[%s21415_s11 + $0x8b8] sm:$0xff] }
 0x975   : > { %11886 = vmatpush1.bf16.msra.mxu1 %v11885_v39  ;;  %v6183_v39 = vld [vmem:[%s21415_s11 + $0x790] sm:$0xff] }
 0x976   : > { %11888 = vmatprep.subr.bf16.mxu1 %v11887_v44  ;;  %v11925_v19 = vpack.c.bf16 %v6183_v39, %v6181_v4  ;;  %v11927_v44 = vpack.c.bf16 %v6188_v5, %v6186_v14  ;;  %v6316_v4 = vld [vmem:[%s21415_s11 + $0x8d0] sm:$0xff]  ;;  %v6319_v39 = vld [vmem:[%s21415_s11 + $0x8e8] sm:$0xff]  ;;  %v6321_v14 = vld [vmem:[%s21415_s11 + $0x8f8] sm:$0xff] }
 0x979   : > { %11890 = vmatpush1.bf16.msra.mxu1 %v11889_v35  ;;  %v11931_v35 = vpack.c.bf16 %v6192_v60, %v6190_v12  ;;  %v13834_v12 = vld [vmem:[#allocation5 + $0x12] ss:$8 sps:$4 sm:$0xff]   ;;  %v13835_v60 = vld [vmem:[#allocation5 + $0x22] ss:$8 sps:$4 sm:$0xff]  }
 0x97a   : > { %11892 = vmatprep.subr.bf16.mxu1 %v11891_v40  ;;  %v6189_v40 = vld [vmem:[%s21415_s11 + $0x7c0] sm:$0xff] }
 0x97b   : > { %v11933_v48 = vpack.c.bf16 %v6191_v41, %v6189_v40  ;;  %v6634_v40 = vld [vmem:[%s21417_s13 + $0x340] sm:$0xff] }
 0x97d   : > { %11894 = vmatpush1.bf16.msra.mxu1 %v11893_v57  ;;  %v11935_v57 = vpack.c.bf16 %v6196_v43, %v6194_v13  ;;  %v6636_v13 = vld [vmem:[%s21417_s13 + $0x350] sm:$0xff]  ;;  %v6639_v43 = vld [vmem:[%s21417_s13 + $0x368] sm:$0xff] }
 0x97e   : > { %11896 = vmatprep.subr.bf16.mxu1 %v11895_v17  ;;  %v6193_v17 = vld [vmem:[%s21415_s11 + $0x7e0] sm:$0xff] }
 0x97f   : > { %v11937_v16 = vpack.c.bf16 %v6195_v59, %v6193_v17  ;;  %v6640_v59 = vld [vmem:[%s21417_s13 + $0x370] sm:$0xff] }
 0x981   : > { %11898 = vmatpush1.bf16.msra.mxu1 %v11897_v37  ;;  %v11939_v37 = vpack.c.bf16 %v6293_v6, %v6291_v55  ;;  %v6643_v55 = vld [vmem:[%s21417_s13 + $0x388] sm:$0xff]  ;;  %v6645_v6 = vld [vmem:[%s21417_s13 + $0x398] sm:$0xff] }
 0x982   : > { %11900 = vmatprep.subr.bf16.mxu1 %v11899_v58  ;;  %v6290_v58 = vld [vmem:[%s21415_s11 + $0x800] sm:$0xff] }
 0x983   : > { %v11941_v29 = vpack.c.bf16 %v6292_v24, %v6290_v58  ;;  %v6642_v58 = vld [vmem:[%s21417_s13 + $0x380] sm:$0xff]  ;;  %v6644_v24 = vld [vmem:[%s21417_s13 + $0x390] sm:$0xff] }
 0x985   : > { %11902 = vmatpush1.bf16.msra.mxu1 %v11901_v9  ;;  %v13832_v9 = vld [vmem:[#allocation5 + $0x11] ss:$8 sps:$4 sm:$0xff]  }
 0x986   : > { %11904 = vmatprep.subr.bf16.mxu1 %v11903_v32  ;;  %v11943_v32 = vpack.c.bf16 %v6297_v3, %v6295_v47  ;;  %v6647_v47 = vld [vmem:[%s21417_s13 + $0x3a8] sm:$0xff]  ;;  %v6649_v3 = vld [vmem:[%s21417_s13 + $0x3b8] sm:$0xff] }
 0x989   : > { %11906 = vmatpush1.bf16.msra.mxu1 %v11905_v22  ;;  %v11945_v22 = vpack.c.bf16 %v6296_v2, %v6294_v30  ;;  %v6648_v30 = vld [vmem:[%s21417_s13 + $0x3b0] sm:$0xff]  ;;  %v6651_v2 = vld [vmem:[%s21417_s13 + $0x3c8] sm:$0xff] }
 0x98a   : > { %11908 = vmatprep.subr.bf16.mxu1 %v11907_v38  ;;  %v13833_v38 = vld [vmem:[#allocation5 + $0x21] ss:$8 sps:$4 sm:$0xff]  }
 0x98c   : > { %6145 = vmatmul.mubr.f32.vlgmr.msra.gmra.mrb[80].mxu1 %v13830_v23  ;;  %v11949_v23 = vpack.c.bf16 %v6300_v15, %v6298_v25  ;;  %v6655_v25 = vld [vmem:[%s21417_s13 + $0x3e8] sm:$0xff]  ;;  %v6657_v15 = vld [vmem:[%s21417_s13 + $0x3f8] sm:$0xff] }
 0x98d   : > { %11910 = vmatpush1.bf16.msra.mxu1 %v11909_v34  ;;  %6150 = vmatprep.mubr.f32.mxu1 %v17687_v46  ;;  %v6305_v34 = vld [vmem:[%s21415_s11 + $0x878] sm:$0xff] }
 0x98e   : > { %11912 = vmatprep.subr.bf16.mxu1 %v11911_v56  ;;  %v11951_v56 = vpack.c.bf16 %v6305_v34, %v6303_v61  ;;  %v12031_v34 = vpack.c.bf16 %v6657_v15, %v6655_v25 }
 0x990   : > { %6151 = vmatmul.mubr.f32.gmra.mrb[82].mxu1 %v13831_v1  ;;  %v11955_v1 = vpack.c.bf16 %v6309_v7, %v6307_v54 }
 0x991   : > { %11914 = vmatpush1.bf16.msra.mxu1 %v11913_v53  ;;  %6269 = vmatprep.mubr.f32.mxu1 %v17687_v46  ;;  %v11953_v53 = vpack.c.bf16 %v6304_v42, %v6302_v49  ;;  %v6489_v49 = vld [vmem:[%s21417_s13 + $0x8] sm:$0xff]  ;;  %v6491_v42 = vld [vmem:[%s21417_s13 + $0x18] sm:$0xff] }
 0x992   : > { %11916 = vmatprep.subr.bf16.mxu1 %v11915_v51  ;;  %v6306_v51 = vld [vmem:[%s21415_s11 + $0x880] sm:$0xff]  ;;  %v12035_v7 = vpack.c.bf16 %v6491_v42, %v6489_v49 }
 0x993   : > { %v11957_v21 = vpack.c.bf16 %v6308_v26, %v6306_v51  ;;  %v6411_v26 = vld [vmem:[%s21416_s12] sm:$0x3] }
 0x994   : > { %v6492_v49 = vld [vmem:[%s21417_s13 + $0x20] sm:$0xff] }
 0x995   : > { %11918 = vmatpush1.bf16.msra.mxu1 %v11917_v33  ;;  %v11959_v33 = vpack.c.bf16 %v6313_v62, %v6311_v50 }
 0x996   : > { %11920 = vmatprep.subr.bf16.mxu1 %v11919_v31  ;;  %v6310_v31 = vld [vmem:[%s21415_s11 + $0x8a0] sm:$0xff] }
 0x997   : > { %v11961_v45 = vpack.c.bf16 %v6312_v27, %v6310_v31 }
 0x999   : > { %11922 = vmatpush1.bf16.msra.mxu1 %v11921_v28  ;;  %v11963_v28 = vpack.c.bf16 %v6317_v11, %v6315_v63 }
 0x99a   : > { %11924 = vmatprep.subr.bf16.mxu1 %v11923_v0  ;;  %v6314_v0 = vld [vmem:[%s21415_s11 + $0x8c0] sm:$0xff] }
 0x99b   : > { %v11965_v5 = vpack.c.bf16 %v6316_v4, %v6314_v0 }
 0x99d   : > { %11926 = vmatpush1.bf16.msra.mxu1 %v11925_v19  ;;  %v11967_v19 = vpack.c.bf16 %v6321_v14, %v6319_v39 }
 0x99e   : > { %11928 = vmatprep.subr.bf16.mxu1 %v11927_v44  ;;  %v6318_v44 = vld [vmem:[%s21415_s11 + $0x8e0] sm:$0xff] }
 0x99f   : > { %v11969_v20 = vpack.c.bf16 %v6320_v52, %v6318_v44 }
 0x9a1   : > { %11930 = vmatpush1.bf16.msra.mxu1 %v11929_v8  ;;  %v6635_v8 = vld [vmem:[%s21417_s13 + $0x348] sm:$0xff] }
 0x9a2   : > { %11932 = vmatprep.subr.bf16.mxu1 %v11931_v35  ;;  %v6637_v35 = vld [vmem:[%s21417_s13 + $0x358] sm:$0xff] }
 0x9a3   : > { %v12011_v41 = vpack.c.bf16 %v6637_v35, %v6635_v8 }
 0x9a5   : > { %11934 = vmatpush1.bf16.msra.mxu1 %v11933_v48  ;;  %12012 = vmatprep.subr.bf16.mxu0 %v12011_v41  ;;  %v6641_v48 = vld [vmem:[%s21417_s13 + $0x378] sm:$0xff] }
 0x9a6   : > { %11936 = vmatprep.subr.bf16.mxu1 %v11935_v57  ;;  %v6638_v57 = vld [vmem:[%s21417_s13 + $0x360] sm:$0xff]  ;;  %v12015_v17 = vpack.c.bf16 %v6641_v48, %v6639_v43 }
 0x9a7   : > { %v13836_v43 = vld [vmem:[#allocation6] ss:$8 sps:$4 sm:$0xee]   ;;  %v13838_v48 = vld [vmem:[#allocation6 + $0x4] ss:$8 sps:$4 sm:$0x11]  }
 0x9a9   : > { %11938 = vmatpush1.bf16.msra.mxu1 %v11937_v16  ;;  %v12017_v16 = vpack.c.bf16 %v6640_v59, %v6638_v57 }
 0x9aa   : > { %11940 = vmatprep.subr.bf16.mxu1 %v11939_v37  ;;  %v12019_v37 = vpack.c.bf16 %v6645_v6, %v6643_v55 }
 0x9ac   : > { %6270 = vmatmul.mubr.f32.vlgmr.msra.gmra.mrb[80].mxu1 %v13832_v9  ;;  %v12023_v9 = vpack.c.bf16 %v6649_v3, %v6647_v47  ;;  %v6488_v47 = vld [vmem:[%s21417_s13] sm:$0xff] }
 0x9ad   : > { %11942 = vmatpush1.bf16.msra.mxu1 %v11941_v29  ;;  %6275 = vmatprep.mubr.f32.mxu1 %v17687_v46  ;;  %v12021_v29 = vpack.c.bf16 %v6644_v24, %v6642_v58 }
 0x9ae   : > { %11944 = vmatprep.subr.bf16.mxu1 %v11943_v32  ;;  %v6646_v32 = vld [vmem:[%s21417_s13 + $0x3a0] sm:$0xff] }
 0x9af   : > { %v12025_v36 = vpack.c.bf16 %v6648_v30, %v6646_v32  ;;  %v6490_v30 = vld [vmem:[%s21417_s13 + $0x10] sm:$0xff] }
 0x9b0   : > { %6276 = vmatmul.mubr.f32.gmra.mrb[82].mxu1 %v13833_v38  ;;  %v6650_v38 = vld [vmem:[%s21417_s13 + $0x3c0] sm:$0xff] }
 0x9b1   : > { %11946 = vmatpush1.bf16.msra.mxu1 %v11945_v22  ;;  %6394 = vmatprep.mubr.f32.mxu1 %v17687_v46  ;;  %v12027_v22 = vpack.c.bf16 %v6653_v18, %v6651_v2  ;;  %v6493_v18 = vld [vmem:[%s21417_s13 + $0x28] sm:$0xff] }
 0x9b2   : > { %11948 = vmatprep.subr.bf16.mxu1 %v11947_v10  ;;  %v6652_v10 = vld [vmem:[%s21417_s13 + $0x3d0] sm:$0xff] }
 0x9b3   : > { %v12029_v61 = vpack.c.bf16 %v6652_v10, %v6650_v38 }
 0x9b5   : > { %11950 = vmatpush1.bf16.msra.mxu1 %v11949_v23  ;;  %v6654_v23 = vld [vmem:[%s21417_s13 + $0x3e0] sm:$0xff] }
 0x9b6   : > { %11952 = vmatprep.subr.bf16.mxu1 %v11951_v56  ;;  %v6656_v56 = vld [vmem:[%s21417_s13 + $0x3f0] sm:$0xff] }
 0x9b7   : > { %v12033_v54 = vpack.c.bf16 %v6656_v56, %v6654_v23 }
 0x9b9   : > { %11954 = vmatpush1.bf16.msra.mxu1 %v11953_v53  ;;  %v6413_v53 = vlaneseq }
 0x9ba   : > { %11956 = vmatprep.subr.bf16.mxu1 %v11955_v1 }
 0x9bb   : > { %v6414_v1 = vshrl.u32 %v6413_v53, 7  ;;  %v6497_v53 = vld [vmem:[%s21417_s13 + $0x48] sm:$0xff] }
 0x9bd   : > { %11958 = vmatpush1.bf16.msra.mxu1 %v11957_v21  ;;  %v17934_v51 = vsub.s32 0, %v6414_v1  ;;  %v17939_v50 = vsub.s32 1, %v6414_v1  ;;  %v6499_v1 = vld [vmem:[%s21417_s13 + $0x58] sm:$0xff] }
 0x9be   : > { %11960 = vmatprep.subr.bf16.mxu1 %v11959_v33 }
 0x9bf   : > { %v6416_v62 = vrot.slane %v6411_v26, %v17934_v51  ;;  %v6420_v21 = vrot.slane %v6411_v26, %v17939_v50 }
 0x9c1   : > { %11962 = vmatpush1.bf16.msra.mxu1 %v11961_v45 }
 0x9c2   : > { %11964 = vmatprep.subr.bf16.mxu1 %v11963_v28 }
 0x9c5   : > { %11966 = vmatpush1.bf16.msra.mxu1 %v11965_v5 }
 0x9c6   : > { %11968 = vmatprep.subr.bf16.mxu1 %v11967_v19 }
 0x9c9   : > { %11970 = vmatpush1.bf16.msra.mxu1 %v11969_v20 }
 0x9cc   : > { %6395 = vmatmul.mubr.f32.vlgmr.msra.gmra.mrb[80].mxu1 %v13834_v12 }
 0x9cd   : > { %6400 = vmatprep.mubr.f32.mxu1 %v17687_v46  ;;  %v12013_v46 = vpack.c.bf16 %v6636_v13, %v6634_v40 }
 0x9cf   : > { %12014 = vmatpush1.bf16.msra.mxu0 %v12013_v46 }
 0x9d0   : > { %6401 = vmatmul.mubr.f32.gmra.mrb[82].mxu1 %v13835_v60  ;;  %12016 = vmatprep.subr.bf16.mxu0 %v12015_v17 }
 0x9d3   : > { %12018 = vmatpush1.bf16.msra.mxu0 %v12017_v16  ;;  %v10041_v16 = vrot.slane %v13836_v43, 9  ;;  %v6513_v43 = vld [vmem:[%s21417_s13 + $0xc8] sm:$0xff] }
 0x9d4   : > { %12020 = vmatprep.subr.bf16.mxu0 %v12019_v37  ;;  %v6580_v37 = vrot.slane %v13838_v48, 5  ;;  %v6515_v48 = vld [vmem:[%s21417_s13 + $0xd8] sm:$0xff] }
 0x9d7   : > { %12022 = vmatpush1.bf16.msra.mxu0 %v12021_v29  ;;  %v6581_v29 = vsel %vm17945_vm7, %v10041_v16, %v6580_v37  ;;  %v6517_v16 = vld [vmem:[%s21417_s13 + $0xe8] sm:$0xff]  ;;  %v6519_v37 = vld [vmem:[%s21417_s13 + $0xf8] sm:$0xff] }
 0x9d8   : > { %12024 = vmatprep.subr.bf16.mxu0 %v12023_v9 }
 0x9db   : > { %12026 = vmatpush1.bf16.msra.mxu0 %v12025_v36  ;;  %v6495_v36 = vld [vmem:[%s21417_s13 + $0x38] sm:$0xff] }
 0x9dc   : > { %12028 = vmatprep.subr.bf16.mxu0 %v12027_v22  ;;  %v12039_v56 = vpack.c.bf16 %v6495_v36, %v6493_v18  ;;  %v6522_v18 = vld [vmem:[%s21417_s13 + $0x110] sm:$0xff]  ;;  %v6525_v36 = vld [vmem:[%s21417_s13 + $0x128] sm:$0xff] }
 0x9df   : > { %12030 = vmatpush1.bf16.msra.mxu0 %v12029_v61  ;;  %v12037_v61 = vpack.c.bf16 %v6490_v30, %v6488_v47  ;;  %v12063_v47 = vpack.c.bf16 %v6519_v37, %v6517_v16  ;;  %v6871_v37 = vld [vmem:[%s21417_s13 + $0x400] sm:$0xff] }
 0x9e0   : > { %12032 = vmatprep.subr.bf16.mxu0 %v12031_v34 }
 0x9e3   : > { %12034 = vmatpush1.bf16.msra.mxu0 %v12033_v54 }
 0x9e4   : > { %12036 = vmatprep.subr.bf16.mxu0 %v12035_v7  ;;  %v6494_v7 = vld [vmem:[%s21417_s13 + $0x30] sm:$0xff] }
 0xa9f   : > { %v6396_v33 = vpop.f32.mrb[80].mxu1 }
 0xaa0   : > { %v6423_v31 = vadd.f32 %v6416_v62, %v6396_v33  ;;  %v6398_v27 = vpop.f32.mrb[81].mxu1 }
 0xaa1   : > { %v6424_v63 = vadd.f32 %v6420_v21, %v6398_v27  ;;  %v6496_v27 = vld [vmem:[%s21417_s13 + $0x40] sm:$0xff] }
 0xaa2   : > { %v6427_v11 = vmax.f32 %v6423_v31, 0.0  ;;  %v12041_v31 = vpack.c.bf16 %v6494_v7, %v6492_v49  ;;  %v6528_v49 = vld [vmem:[%s21417_s13 + $0x140] sm:$0xff]  ;;  %v6535_v7 = vld [vmem:[%s21417_s13 + $0x178] sm:$0xff] }
 0xaa3   : > { %v6428_v45 = vmax.f32 %v6424_v63, 0.0  ;;  %v6402_v28 = vpop.f32.mrb[82].mxu1  ;;  %v12043_v63 = vpack.c.bf16 %v6499_v1, %v6497_v53 }
 0xaa4   : > { %v6425_v0 = vadd.f32 %v6416_v62, %v6402_v28  ;;  %v6404_v4 = vpop.f32.mrb[83].mxu1  ;;  %v6503_v28 = vld [vmem:[%s21417_s13 + $0x78] sm:$0xff] }
 0xaa5   : > { %v6435_v39 = vcombine.low %v6427_v11, %v6428_v45  ;;  %v6436_v14 = vcombine.high %v6427_v11, %v6428_v45  ;;  %v10037_v5 = vcombine.low %v6428_v45, %v6428_v45  ;;  %v10038_v19 = vcombine.high %v6428_v45, %v6428_v45  ;;  %v6498_v11 = vld [vmem:[%s21417_s13 + $0x50] sm:$0xff]  ;;  %v6501_v45 = vld [vmem:[%s21417_s13 + $0x68] sm:$0xff] }
 0xaa6   : > { %v6429_v44 = vmax.f32 %v6425_v0, 0.0  ;;  %v6426_v52 = vadd.f32 %v6420_v21, %v6404_v4  ;;  %v12045_v4 = vpack.c.bf16 %v6498_v11, %v6496_v27  ;;  %v6538_v11 = vld [vmem:[%s21417_s13 + $0x190] sm:$0xff] }
 0xaa7   : > { %v6443_v20 = vrot.slane %v6435_v39, 7  ;;  %v6444_v12 = vrot.slane %v10037_v5, 7  ;;  %v6445_v60 = vrot.slane %v6436_v14, 7  ;;  %v6446_v8 = vrot.slane %v10038_v19, 7  ;;  %v6500_v14 = vld [vmem:[%s21417_s13 + $0x60] sm:$0xff]  ;;  %v6502_v5 = vld [vmem:[%s21417_s13 + $0x70] sm:$0xff] }
 0xaa8   : > { %v6430_v35 = vmax.f32 %v6426_v52, 0.0  ;;  %v12047_v39 = vpack.c.bf16 %v6503_v28, %v6501_v45  ;;  %v6505_v19 = vld [vmem:[%s21417_s13 + $0x88] sm:$0xff]  ;;  %v12049_v52 = vpack.c.bf16 %v6502_v5, %v6500_v14  ;;  %v6543_v28 = vld [vmem:[%s21417_s13 + $0x1b8] sm:$0xff]  ;;  %v6542_v14 = vld [vmem:[%s21417_s13 + $0x1b0] sm:$0xff] }
 0xaa9   : > { %6460 = vst [vmem:[#allocation6 + $0x10] sm:$0x1e] %v6443_v20  ;;  %6461 = vst [vmem:[#allocation6 + $0x18] sm:$0x1e] %v6444_v12  ;;  %v6504_v12 = vld [vmem:[%s21417_s13 + $0x80] sm:$0xff]  ;;  %v6541_v45 = vld [vmem:[%s21417_s13 + $0x1a8] sm:$0xff] }
 0xaaa   : > { %6462 = vst [vmem:[#allocation6 + $0x20] sm:$0x1e] %v6445_v60  ;;  %6463 = vst [vmem:[#allocation6 + $0x28] sm:$0x1e] %v6446_v8  ;;  %v6437_v40 = vcombine.low %v6429_v44, %v6430_v35  ;;  %v6438_v41 = vcombine.high %v6429_v44, %v6430_v35  ;;  %v10039_v13 = vcombine.low %v6430_v35, %v6430_v35  ;;  %v6507_v44 = vld [vmem:[%s21417_s13 + $0x98] sm:$0xff]  ;;  %v6506_v60 = vld [vmem:[%s21417_s13 + $0x90] sm:$0xff] }
 0xaab   : > { %v10040_v46 = vcombine.high %v6430_v35, %v6430_v35  ;;  %v12051_v20 = vpack.c.bf16 %v6507_v44, %v6505_v19  ;;  %v6509_v8 = vld [vmem:[%s21417_s13 + $0xa8] sm:$0xff]  ;;  %v6511_v35 = vld [vmem:[%s21417_s13 + $0xb8] sm:$0xff] }
 0xaac   : > { %v6447_v57 = vrot.slane %v6437_v40, 7  ;;  %v6448_v17 = vrot.slane %v10039_v13, 7  ;;  %v6449_v59 = vrot.slane %v6438_v41, 7  ;;  %v12053_v40 = vpack.c.bf16 %v6506_v60, %v6504_v12  ;;  %v6508_v41 = vld [vmem:[%s21417_s13 + $0xa0] sm:$0xff]  ;;  %v6545_v5 = vld [vmem:[%s21417_s13 + $0x1c8] sm:$0xff]  ;;  %v6547_v19 = vld [vmem:[%s21417_s13 + $0x1d8] sm:$0xff] }
 0xaad   : > { %v6450_v55 = vrot.slane %v10040_v46, 7  ;;  %v12055_v13 = vpack.c.bf16 %v6511_v35, %v6509_v8  ;;  %v6510_v46 = vld [vmem:[%s21417_s13 + $0xb0] sm:$0xff]  ;;  %v6549_v60 = vld [vmem:[%s21417_s13 + $0x1e8] sm:$0xff]  ;;  %v6551_v8 = vld [vmem:[%s21417_s13 + $0x1f8] sm:$0xff] }
 0xaae   : > { %6464 = vst [vmem:[#allocation6 + $0x30] sm:$0x1e] %v6447_v57  ;;  %6465 = vst [vmem:[#allocation6 + $0x38] sm:$0x1e] %v6448_v17  ;;  %v12057_v57 = vpack.c.bf16 %v6510_v46, %v6508_v41  ;;  %v12059_v17 = vpack.c.bf16 %v6515_v48, %v6513_v43  ;;  %v6546_v12 = vld [vmem:[%s21417_s13 + $0x1d0] sm:$0xff]  ;;  %v12095_v41 = vpack.c.bf16 %v6551_v8, %v6549_v60  ;;  %v6872_v46 = vld [vmem:[%s21417_s13 + $0x408] sm:$0xff] }
 0xaaf   : > { %6466 = vst [vmem:[#allocation6 + $0x40] sm:$0x1e] %v6449_v59  ;;  %6467 = vst [vmem:[#allocation6 + $0x48] sm:$0x1e] %v6450_v55  ;;  %v6512_v59 = vld [vmem:[%s21417_s13 + $0xc0] sm:$0xff]  ;;  %v6514_v55 = vld [vmem:[%s21417_s13 + $0xd0] sm:$0xff] }
 0xab0   : > { %v13839_v58 = vld [vmem:[#allocation6 + $0x10] ss:$8 sps:$4 sm:$0xee]   ;;  %v13841_v24 = vld [vmem:[#allocation6 + $0x14] ss:$8 sps:$4 sm:$0x11]  }
 0xab1   : > { %v13842_v3 = vld [vmem:[#allocation6 + $0x20] ss:$8 sps:$4 sm:$0xee]   ;;  %v10042_v9 = vrot.slane %v13839_v58, 9  ;;  %v6584_v32 = vrot.slane %v13841_v24, 5  ;;  %v12061_v58 = vpack.c.bf16 %v6514_v55, %v6512_v59  ;;  %v6874_v43 = vld [vmem:[%s21417_s13 + $0x418] sm:$0xff] }
 0xab2   : > { %v13844_v2 = vld [vmem:[#allocation6 + $0x24] ss:$8 sps:$4 sm:$0x11]   ;;  %v10043_v38 = vrot.slane %v13842_v3, 9  ;;  %v13848_v0 = vld [vmem:[#allocation6 + $0x8] ss:$16 sps:$4 sm:$0xff]   ;;  %v12099_v16 = vpack.c.bf16 %v6874_v43, %v6872_v46 }
 0xab3   : > { %v6585_v22 = vsel %vm17945_vm7, %v10042_v9, %v6584_v32  ;;  %v6588_v10 = vrot.slane %v13844_v2, 5  ;;  %v6516_v24 = vld [vmem:[%s21417_s13 + $0xe0] sm:$0xff]  ;;  %v6518_v3 = vld [vmem:[%s21417_s13 + $0xf0] sm:$0xff]  ;;  %v6523_v9 = vld [vmem:[%s21417_s13 + $0x118] sm:$0xff] }
 0xab4   : > { %v6658_v25 = vcombine.low %v6581_v29, %v6585_v22  ;;  %v6659_v15 = vcombine.high %v6581_v29, %v6585_v22  ;;  %v6521_v29 = vld [vmem:[%s21417_s13 + $0x108] sm:$0xff]  ;;  %v12065_v32 = vpack.c.bf16 %v6518_v3, %v6516_v24  ;;  %v6520_v2 = vld [vmem:[%s21417_s13 + $0x100] sm:$0xff]  ;;  %v6527_v22 = vld [vmem:[%s21417_s13 + $0x138] sm:$0xff] }
 0xab5   : > { %v13845_v34 = vld [vmem:[#allocation6 + $0x30] ss:$8 sps:$4 sm:$0xee]   ;;  %v13847_v23 = vld [vmem:[#allocation6 + $0x34] ss:$8 sps:$4 sm:$0x11]   ;;  %v6589_v26 = vsel %vm17945_vm7, %v10043_v38, %v6588_v10  ;;  %v12067_v30 = vpack.c.bf16 %v6523_v9, %v6521_v29  ;;  %v12069_v38 = vpack.c.bf16 %v6522_v18, %v6520_v2  ;;  %v12071_v10 = vpack.c.bf16 %v6527_v22, %v6525_v36 }
 0xab6   : > { %6730 = vmatprep.mubr.f32.mxu0 %v6659_v15  ;;  %v10044_v42 = vrot.slane %v13845_v34, 9  ;;  %v6592_v54 = vrot.slane %v13847_v23, 5  ;;  %v6526_v15 = vld [vmem:[%s21417_s13 + $0x130] sm:$0xff]  ;;  %v6531_v34 = vld [vmem:[%s21417_s13 + $0x158] sm:$0xff]  ;;  %v6876_v24 = vld [vmem:[%s21417_s13 + $0x428] sm:$0xff] }
 0xab7   : > { %6731 = vmatmul.mubr.f32.vlgmr.msra.gmra.mrb[178].mxu0 %v6658_v25  ;;  %v6524_v25 = vld [vmem:[%s21417_s13 + $0x120] sm:$0xff]  ;;  %v13857_v59 = vld [vmem:[#allocation6 + $0x14] ss:$8 sps:$4 sm:$0x33]  }
 0xab8   : > { %12038 = vmatpush1.bf16.msra.mxu0 %v12037_v61  ;;  %v6593_v62 = vsel %vm17945_vm7, %v10044_v42, %v6592_v54  ;;  %v6529_v61 = vld [vmem:[%s21417_s13 + $0x148] sm:$0xff]  ;;  %v12073_v23 = vpack.c.bf16 %v6526_v15, %v6524_v25  ;;  %v6530_v42 = vld [vmem:[%s21417_s13 + $0x150] sm:$0xff]  ;;  %v6875_v22 = vld [vmem:[%s21417_s13 + $0x420] sm:$0xff] }
 0xab9   : > { %v6661_v21 = vcombine.high %v6589_v26, %v6593_v62  ;;  %12040 = vmatprep.subr.bf16.mxu0 %v12039_v56  ;;  %v6660_v33 = vcombine.low %v6589_v26, %v6593_v62  ;;  %v12075_v56 = vpack.c.bf16 %v6531_v34, %v6529_v61  ;;  %v6533_v54 = vld [vmem:[%s21417_s13 + $0x168] sm:$0xff]  ;;  %v12077_v53 = vpack.c.bf16 %v6530_v42, %v6528_v49  ;;  %v6532_v26 = vld [vmem:[%s21417_s13 + $0x160] sm:$0xff]  ;;  %v6534_v62 = vld [vmem:[%s21417_s13 + $0x170] sm:$0xff] }
 0xaba   : > { %v12079_v1 = vpack.c.bf16 %v6535_v7, %v6533_v54  ;;  %v13852_v48 = vld [vmem:[#allocation6] ss:$8 sps:$4 sm:$0xcc]   ;;  %v6882_v15 = vld [vmem:[%s21417_s13 + $0x458] sm:$0xff]  ;;  %v6881_v54 = vld [vmem:[%s21417_s13 + $0x450] sm:$0xff] }
 0xabb   : > { %6736 = vmatprep.mubr.f32.mxu0 %v6661_v21  ;;  %v6537_v21 = vld [vmem:[%s21417_s13 + $0x188] sm:$0xff]  ;;  %v10049_v3 = vrot.slane %v13852_v48, 10  ;;  %v13849_v18 = vld [vmem:[#allocation6] ss:$16 sps:$4 sm:$0xff]  }
 0xabc   : > { %6737 = vmatmul.mubr.f32.gmra.mrb[180].mxu0 %v6660_v33  ;;  %v6539_v33 = vld [vmem:[%s21417_s13 + $0x198] sm:$0xff]  ;;  %v6880_v25 = vld [vmem:[%s21417_s13 + $0x448] sm:$0xff]  ;;  %v6879_v42 = vld [vmem:[%s21417_s13 + $0x440] sm:$0xff] }
 0xabd   : > { %12042 = vmatpush1.bf16.msra.mxu0 %v12041_v31  ;;  %6815 = vmatprep.mubr.f32.mxu0 %v13848_v0  ;;  %v12081_v31 = vpack.c.bf16 %v6534_v62, %v6532_v26  ;;  %v12083_v27 = vpack.c.bf16 %v6539_v33, %v6537_v21  ;;  %v12107_v49 = vpack.c.bf16 %v6882_v15, %v6880_v25  ;;  %v6883_v21 = vld [vmem:[%s21417_s13 + $0x460] sm:$0xff]  ;;  %v6885_v33 = vld [vmem:[%s21417_s13 + $0x470] sm:$0xff]  ;;  %v6904_v48 = vld [vmem:[%s21417_s13 + $0x508] sm:$0xff] }
 0xabe   : > { %12044 = vmatprep.subr.bf16.mxu0 %v12043_v63  ;;  %v6536_v63 = vld [vmem:[%s21417_s13 + $0x180] sm:$0xff]  ;;  %v12109_v26 = vpack.c.bf16 %v6881_v54, %v6879_v42  ;;  %v6897_v8 = vld [vmem:[%s21417_s13 + $0x4d0] sm:$0xff]  ;;  %v6922_v42 = vld [vmem:[%s21417_s13 + $0x598] sm:$0xff] }
 0xabf   : > { %v12085_v0 = vpack.c.bf16 %v6538_v11, %v6536_v63  ;;  %v12113_v63 = vpack.c.bf16 %v6885_v33, %v6883_v21  ;;  %v6895_v60 = vld [vmem:[%s21417_s13 + $0x4c0] sm:$0xff]  ;;  %v6901_v43 = vld [vmem:[%s21417_s13 + $0x4f0] sm:$0xff] }
 0xac0   : > { %v6899_v46 = vld [vmem:[%s21417_s13 + $0x4e0] sm:$0xff] }
 0xac1   : > { %12046 = vmatpush1.bf16.msra.mxu0 %v12045_v4  ;;  %v12087_v4 = vpack.c.bf16 %v6543_v28, %v6541_v45  ;;  %v6887_v45 = vld [vmem:[%s21417_s13 + $0x480] sm:$0xff]  ;;  %v6889_v28 = vld [vmem:[%s21417_s13 + $0x490] sm:$0xff] }
 0xac2   : > { %12048 = vmatprep.subr.bf16.mxu0 %v12047_v39  ;;  %v6540_v39 = vld [vmem:[%s21417_s13 + $0x1a0] sm:$0xff] }
 0xac3   : > { %v12089_v44 = vpack.c.bf16 %v6542_v14, %v6540_v39  ;;  %v12117_v39 = vpack.c.bf16 %v6889_v28, %v6887_v45 }
 0xac5   : > { %12050 = vmatpush1.bf16.msra.mxu0 %v12049_v52  ;;  %v12091_v52 = vpack.c.bf16 %v6547_v19, %v6545_v5  ;;  %v6891_v5 = vld [vmem:[%s21417_s13 + $0x4a0] sm:$0xff]  ;;  %v6893_v19 = vld [vmem:[%s21417_s13 + $0x4b0] sm:$0xff] }
 0xac6   : > { %12052 = vmatprep.subr.bf16.mxu0 %v12051_v20  ;;  %v6544_v20 = vld [vmem:[%s21417_s13 + $0x1c0] sm:$0xff] }
 0xac7   : > { %v12093_v35 = vpack.c.bf16 %v6546_v12, %v6544_v20  ;;  %v12121_v20 = vpack.c.bf16 %v6893_v19, %v6891_v5  ;;  %v13861_v5 = vld [vmem:[#allocation6 + $0x30] ss:$8 sps:$4 sm:$0xcc]   ;;  %v13863_v19 = vld [vmem:[#allocation6 + $0x34] ss:$8 sps:$4 sm:$0x33]  }
 0xac9   : > { %12054 = vmatpush1.bf16.msra.mxu0 %v12053_v40  ;;  %v6548_v40 = vld [vmem:[%s21417_s13 + $0x1e0] sm:$0xff] }
 0xaca   : > { %12056 = vmatprep.subr.bf16.mxu0 %v12055_v13  ;;  %v6550_v13 = vld [vmem:[%s21417_s13 + $0x1f0] sm:$0xff] }
 0xacb   : > { %v12097_v55 = vpack.c.bf16 %v6550_v13, %v6548_v40  ;;  %v6902_v40 = vld [vmem:[%s21417_s13 + $0x4f8] sm:$0xff] }
 0xacd   : > { %12058 = vmatpush1.bf16.msra.mxu0 %v12057_v57  ;;  %v13854_v57 = vld [vmem:[#allocation6 + $0x4] ss:$8 sps:$4 sm:$0x33]  }
 0xace   : > { %12060 = vmatprep.subr.bf16.mxu0 %v12059_v17  ;;  %v13855_v17 = vld [vmem:[#allocation6 + $0x10] ss:$8 sps:$4 sm:$0xcc]   ;;  %v6857_v29 = vrot.slane %v13854_v57, 6 }
 0xacf   : > { %v10050_v9 = vrot.slane %v13855_v17, 10  ;;  %v6906_v57 = vld [vmem:[%s21417_s13 + $0x518] sm:$0xff]  ;;  %v12129_v17 = vpack.c.bf16 %v6901_v43, %v6899_v46 }
 0xad0   : > { %v18179_v61 = vsel %vm18161_vm10, %v10049_v3, %v6857_v29  ;;  %v6907_v3 = vld [vmem:[%s21417_s13 + $0x520] sm:$0xff]  ;;  %v6909_v29 = vld [vmem:[%s21417_s13 + $0x530] sm:$0xff] }
 0xad1   : > { %12062 = vmatpush1.bf16.msra.mxu0 %v12061_v58  ;;  %v6873_v58 = vld [vmem:[%s21417_s13 + $0x410] sm:$0xff] }
 0xad2   : > { %12064 = vmatprep.subr.bf16.mxu0 %v12063_v47  ;;  %v6878_v47 = vld [vmem:[%s21417_s13 + $0x438] sm:$0xff] }
 0xad3   : > { %v12103_v36 = vpack.c.bf16 %v6878_v47, %v6876_v24 }
 0xad5   : > { %12066 = vmatpush1.bf16.msra.mxu0 %v12065_v32  ;;  %v6861_v32 = vrot.slane %v13857_v59, 6  ;;  %v12131_v59 = vpack.c.bf16 %v6906_v57, %v6904_v48 }
 0xad6   : > { %12068 = vmatprep.subr.bf16.mxu0 %v12067_v30  ;;  %v12101_v30 = vpack.c.bf16 %v6873_v58, %v6871_v37  ;;  %v6908_v37 = vld [vmem:[%s21417_s13 + $0x528] sm:$0xff]  ;;  %v6910_v58 = vld [vmem:[%s21417_s13 + $0x538] sm:$0xff] }
 0xad7   : > { %v18183_v34 = vsel %vm18161_vm10, %v10050_v9, %v6861_v32  ;;  %v12135_v47 = vpack.c.bf16 %v6910_v58, %v6908_v37  ;;  %v6912_v9 = vld [vmem:[%s21417_s13 + $0x548] sm:$0xff]  ;;  %v6914_v32 = vld [vmem:[%s21417_s13 + $0x558] sm:$0xff] }
 0xad8   : > { %v6936_v7 = vcombine.high %v18179_v61, %v18183_v34 }
 0xad9   : > { %12070 = vmatpush1.bf16.msra.mxu0 %v12069_v38  ;;  %v6877_v38 = vld [vmem:[%s21417_s13 + $0x430] sm:$0xff] }
 0xada   : > { %12072 = vmatprep.subr.bf16.mxu0 %v12071_v10  ;;  %v13850_v10 = vld [vmem:[#allocation6 + $0x28] ss:$16 sps:$4 sm:$0xff]  }
 0xadd   : > { %12074 = vmatpush1.bf16.msra.mxu0 %v12073_v23  ;;  %v12105_v23 = vpack.c.bf16 %v6877_v38, %v6875_v22  ;;  %v6913_v22 = vld [vmem:[%s21417_s13 + $0x550] sm:$0xff]  ;;  %v6916_v38 = vld [vmem:[%s21417_s13 + $0x568] sm:$0xff] }
 0xade   : > { %12076 = vmatprep.subr.bf16.mxu0 %v12075_v56  ;;  %v13851_v56 = vld [vmem:[#allocation6 + $0x20] ss:$16 sps:$4 sm:$0xff]  }
 0xae1   : > { %12078 = vmatpush1.bf16.msra.mxu0 %v12077_v53  ;;  %v6884_v53 = vld [vmem:[%s21417_s13 + $0x468] sm:$0xff] }
 0xae2   : > { %12080 = vmatprep.subr.bf16.mxu0 %v12079_v1  ;;  %v6886_v1 = vld [vmem:[%s21417_s13 + $0x478] sm:$0xff] }
 0xae3   : > { %v12111_v62 = vpack.c.bf16 %v6886_v1, %v6884_v53  ;;  %v6919_v53 = vld [vmem:[%s21417_s13 + $0x580] sm:$0xff]  ;;  %v6921_v1 = vld [vmem:[%s21417_s13 + $0x590] sm:$0xff] }
 0xae4   : > { %v12149_v21 = vpack.c.bf16 %v6921_v1, %v6919_v53 }
 0xae5   : > { %12082 = vmatpush1.bf16.msra.mxu0 %v12081_v31  ;;  %v6888_v31 = vld [vmem:[%s21417_s13 + $0x488] sm:$0xff] }
 0xae6   : > { %12084 = vmatprep.subr.bf16.mxu0 %v12083_v27  ;;  %v6890_v27 = vld [vmem:[%s21417_s13 + $0x498] sm:$0xff] }
 0xae7   : > { %v12115_v11 = vpack.c.bf16 %v6890_v27, %v6888_v31  ;;  %v6923_v31 = vld [vmem:[%s21417_s13 + $0x5a0] sm:$0xff]  ;;  %v6925_v27 = vld [vmem:[%s21417_s13 + $0x5b0] sm:$0xff] }
 0xae8   : > { %v12153_v45 = vpack.c.bf16 %v6925_v27, %v6923_v31 }
 0xae9   : > { %12086 = vmatpush1.bf16.msra.mxu0 %v12085_v0  ;;  %v6892_v0 = vld [vmem:[%s21417_s13 + $0x4a8] sm:$0xff] }
 0xaea   : > { %12088 = vmatprep.subr.bf16.mxu0 %v12087_v4  ;;  %v6894_v4 = vld [vmem:[%s21417_s13 + $0x4b8] sm:$0xff] }
 0xaeb   : > { %v12119_v14 = vpack.c.bf16 %v6894_v4, %v6892_v0  ;;  %v6927_v0 = vld [vmem:[%s21417_s13 + $0x5c0] sm:$0xff]  ;;  %v6929_v4 = vld [vmem:[%s21417_s13 + $0x5d0] sm:$0xff] }
 0xaed   : > { %12090 = vmatpush1.bf16.msra.mxu0 %v12089_v44  ;;  %v6896_v44 = vld [vmem:[%s21417_s13 + $0x4c8] sm:$0xff] }
 0xaee   : > { %12092 = vmatprep.subr.bf16.mxu0 %v12091_v52  ;;  %v6898_v52 = vld [vmem:[%s21417_s13 + $0x4d8] sm:$0xff] }
 0xaef   : > { %v12123_v12 = vpack.c.bf16 %v6898_v52, %v6896_v44  ;;  %v12157_v44 = vpack.c.bf16 %v6929_v4, %v6927_v0  ;;  %v6931_v52 = vld [vmem:[%s21417_s13 + $0x5e0] sm:$0xff] }
 0xaf1   : > { %12094 = vmatpush1.bf16.msra.mxu0 %v12093_v35  ;;  %v6900_v35 = vld [vmem:[%s21417_s13 + $0x4e8] sm:$0xff] }
 0xaf2   : > { %12096 = vmatprep.subr.bf16.mxu0 %v12095_v41  ;;  %v12125_v41 = vpack.c.bf16 %v6897_v8, %v6895_v60  ;;  %v12127_v13 = vpack.c.bf16 %v6902_v40, %v6900_v35  ;;  %v13858_v60 = vld [vmem:[#allocation6 + $0x20] ss:$8 sps:$4 sm:$0xcc]   ;;  %v13860_v8 = vld [vmem:[#allocation6 + $0x24] ss:$8 sps:$4 sm:$0x33]  }
 0xaf3   : > { %v7045_v35 = vld [vmem:[%s21417_s13 + $0x608] sm:$0xff]  ;;  %v7047_v40 = vld [vmem:[%s21417_s13 + $0x618] sm:$0xff]  ;;  %v10051_v48 = vrot.slane %v13858_v60, 10  ;;  %v6865_v57 = vrot.slane %v13860_v8, 6 }
 0xaf4   : > { %v12163_v43 = vpack.c.bf16 %v7047_v40, %v7045_v35  ;;  %v7077_v60 = vld [vmem:[%s21417_s13 + $0x708] sm:$0xff]  ;;  %v7079_v8 = vld [vmem:[%s21417_s13 + $0x718] sm:$0xff] }
 0xaf5   : > { %12098 = vmatpush1.bf16.msra.mxu0 %v12097_v55  ;;  %v6903_v55 = vld [vmem:[%s21417_s13 + $0x500] sm:$0xff]  ;;  %v12195_v40 = vpack.c.bf16 %v7079_v8, %v7077_v60 }
 0xaf6   : > { %12100 = vmatprep.subr.bf16.mxu0 %v12099_v16  ;;  %v6905_v16 = vld [vmem:[%s21417_s13 + $0x510] sm:$0xff] }
 0xaf7   : > { %v12133_v24 = vpack.c.bf16 %v6905_v16, %v6903_v55  ;;  %v7049_v55 = vld [vmem:[%s21417_s13 + $0x628] sm:$0xff]  ;;  %v7051_v16 = vld [vmem:[%s21417_s13 + $0x638] sm:$0xff] }
 0xaf8   : > { %6816 = vmatmul.mubr.f32.vlgmr.msra.gmra.mrb[178].mxu0 %v13849_v18  ;;  %v12139_v18 = vpack.c.bf16 %v6914_v32, %v6912_v9  ;;  %v7050_v9 = vld [vmem:[%s21417_s13 + $0x630] sm:$0xff] }
 0xaf9   : > { %6821 = vmatprep.mubr.f32.mxu0 %v13850_v10  ;;  %12102 = vmatpush1.bf16.msra.mxu0 %v12101_v30  ;;  %v12137_v30 = vpack.c.bf16 %v6909_v29, %v6907_v3  ;;  %v6918_v10 = vld [vmem:[%s21417_s13 + $0x578] sm:$0xff]  ;;  %v12167_v3 = vpack.c.bf16 %v7051_v16, %v7049_v55  ;;  %v7048_v29 = vld [vmem:[%s21417_s13 + $0x620] sm:$0xff]  ;;  %v7085_v55 = vld [vmem:[%s21417_s13 + $0x748] sm:$0xff] }
 0xafa   : > { %12104 = vmatprep.subr.bf16.mxu0 %v12103_v36  ;;  %v6911_v36 = vld [vmem:[%s21417_s13 + $0x540] sm:$0xff]  ;;  %v12143_v15 = vpack.c.bf16 %v6918_v10, %v6916_v38  ;;  %v7054_v38 = vld [vmem:[%s21417_s13 + $0x650] sm:$0xff]  ;;  %v13864_v10 = vld [vmem:[#allocation6 + $0x18] ss:$16 sps:$4 sm:$0xff]  }
 0xafb   : > { %v12141_v25 = vpack.c.bf16 %v6913_v22, %v6911_v36  ;;  %v7052_v22 = vld [vmem:[%s21417_s13 + $0x640] sm:$0xff]  ;;  %v7087_v16 = vld [vmem:[%s21417_s13 + $0x758] sm:$0xff] }
 0xafc   : > { %6822 = vmatmul.mubr.f32.gmra.mrb[180].mxu0 %v13851_v56  ;;  %v6917_v56 = vld [vmem:[%s21417_s13 + $0x570] sm:$0xff] }
 0xafd   : > { %12106 = vmatpush1.bf16.msra.mxu0 %v12105_v23  ;;  %7007 = vmatprep.mubr.f32.mxu0 %v6936_v7  ;;  %v6915_v23 = vld [vmem:[%s21417_s13 + $0x560] sm:$0xff] }
 0xafe   : > { %12108 = vmatprep.subr.bf16.mxu0 %v12107_v49  ;;  %v6920_v49 = vld [vmem:[%s21417_s13 + $0x588] sm:$0xff]  ;;  %v12145_v54 = vpack.c.bf16 %v6917_v56, %v6915_v23  ;;  %v12173_v23 = vpack.c.bf16 %v7054_v38, %v7052_v22  ;;  %v7092_v38 = vld [vmem:[%s21417_s13 + $0x780] sm:$0xff] }
 0xaff   : > { %v12147_v7 = vpack.c.bf16 %v6922_v42, %v6920_v49  ;;  %v7056_v49 = vld [vmem:[%s21417_s13 + $0x660] sm:$0xff]  ;;  %v7058_v42 = vld [vmem:[%s21417_s13 + $0x670] sm:$0xff] }
 0xb00   : > { %v12177_v53 = vpack.c.bf16 %v7058_v42, %v7056_v49  ;;  %v7096_v49 = vld [vmem:[%s21417_s13 + $0x7a0] sm:$0xff]  ;;  %v7098_v42 = vld [vmem:[%s21417_s13 + $0x7b0] sm:$0xff] }
 0xb01   : > { %12110 = vmatpush1.bf16.msra.mxu0 %v12109_v26  ;;  %v6924_v26 = vld [vmem:[%s21417_s13 + $0x5a8] sm:$0xff] }
 0xb02   : > { %12112 = vmatprep.subr.bf16.mxu0 %v12111_v62  ;;  %v6926_v62 = vld [vmem:[%s21417_s13 + $0x5b8] sm:$0xff] }
 0xb03   : > { %v12151_v33 = vpack.c.bf16 %v6926_v62, %v6924_v26  ;;  %v7060_v26 = vld [vmem:[%s21417_s13 + $0x680] sm:$0xff]  ;;  %v7062_v62 = vld [vmem:[%s21417_s13 + $0x690] sm:$0xff] }
 0xb04   : > { %v12181_v31 = vpack.c.bf16 %v7062_v62, %v7060_v26  ;;  %v7100_v26 = vld [vmem:[%s21417_s13 + $0x7c0] sm:$0xff]  ;;  %v7102_v62 = vld [vmem:[%s21417_s13 + $0x7d0] sm:$0xff] }
 0xb05   : > { %12114 = vmatpush1.bf16.msra.mxu0 %v12113_v63  ;;  %v6928_v63 = vld [vmem:[%s21417_s13 + $0x5c8] sm:$0xff] }
 0xb06   : > { %12116 = vmatprep.subr.bf16.mxu0 %v12115_v11  ;;  %v6930_v11 = vld [vmem:[%s21417_s13 + $0x5d8] sm:$0xff] }
 0xb07   : > { %v12155_v28 = vpack.c.bf16 %v6930_v11, %v6928_v63  ;;  %v7064_v63 = vld [vmem:[%s21417_s13 + $0x6a0] sm:$0xff]  ;;  %v7066_v11 = vld [vmem:[%s21417_s13 + $0x6b0] sm:$0xff] }
 0xb08   : > { %v12185_v0 = vpack.c.bf16 %v7066_v11, %v7064_v63  ;;  %v7104_v63 = vld [vmem:[%s21417_s13 + $0x7e0] sm:$0xff]  ;;  %v7106_v11 = vld [vmem:[%s21417_s13 + $0x7f0] sm:$0xff] }
 0xb09   : > { %12118 = vmatpush1.bf16.msra.mxu0 %v12117_v39  ;;  %v6932_v39 = vld [vmem:[%s21417_s13 + $0x5e8] sm:$0xff] }
 0xb0a   : > { %12120 = vmatprep.subr.bf16.mxu0 %v12119_v14  ;;  %v6934_v14 = vld [vmem:[%s21417_s13 + $0x5f8] sm:$0xff] }
 0xb0d   : > { %12122 = vmatpush1.bf16.msra.mxu0 %v12121_v20  ;;  %v6933_v20 = vld [vmem:[%s21417_s13 + $0x5f0] sm:$0xff] }
 0xb0e   : > { %12124 = vmatprep.subr.bf16.mxu0 %v12123_v12  ;;  %v12159_v12 = vpack.c.bf16 %v6934_v14, %v6932_v39  ;;  %v12161_v46 = vpack.c.bf16 %v6933_v20, %v6931_v52  ;;  %v7068_v39 = vld [vmem:[%s21417_s13 + $0x6c0] sm:$0xff]  ;;  %v7070_v14 = vld [vmem:[%s21417_s13 + $0x6d0] sm:$0xff] }
 0xb0f   : > { %v7072_v20 = vld [vmem:[%s21417_s13 + $0x6e0] sm:$0xff] }
 0xb11   : > { %12126 = vmatpush1.bf16.msra.mxu0 %v12125_v41  ;;  %v10052_v41 = vrot.slane %v13861_v5, 10  ;;  %v7073_v5 = vld [vmem:[%s21417_s13 + $0x6e8] sm:$0xff] }
 0xb12   : > { %12128 = vmatprep.subr.bf16.mxu0 %v12127_v13  ;;  %v6869_v13 = vrot.slane %v13863_v19, 6  ;;  %v7075_v19 = vld [vmem:[%s21417_s13 + $0x6f8] sm:$0xff] }
 0xb13   : > { %v12191_v52 = vpack.c.bf16 %v7075_v19, %v7073_v5  ;;  %v12225_v5 = vpack.c.bf16 %v7106_v11, %v7104_v63 }
 0xb14   : > { %v6870_v37 = vsel %vm18161_vm10, %v10052_v41, %v6869_v13  ;;  %v7076_v41 = vld [vmem:[%s21417_s13 + $0x700] sm:$0xff]  ;;  %v7078_v13 = vld [vmem:[%s21417_s13 + $0x710] sm:$0xff] }
 0xb15   : > { %12130 = vmatpush1.bf16.msra.mxu0 %v12129_v17  ;;  %v7044_v17 = vld [vmem:[%s21417_s13 + $0x600] sm:$0xff] }
 0xb16   : > { %12132 = vmatprep.subr.bf16.mxu0 %v12131_v59  ;;  %v7046_v59 = vld [vmem:[%s21417_s13 + $0x610] sm:$0xff] }
 0xb17   : > { %v12165_v58 = vpack.c.bf16 %v7046_v59, %v7044_v17  ;;  %v7080_v17 = vld [vmem:[%s21417_s13 + $0x720] sm:$0xff]  ;;  %v7082_v59 = vld [vmem:[%s21417_s13 + $0x730] sm:$0xff] }
 0xb19   : > { %12134 = vmatpush1.bf16.msra.mxu0 %v12133_v24  ;;  %v6935_v24 = vcombine.low %v18179_v61, %v18183_v34  ;;  %v7055_v61 = vld [vmem:[%s21417_s13 + $0x658] sm:$0xff]  ;;  %v12169_v34 = vpack.c.bf16 %v7050_v9, %v7048_v29 }
 0xb1a   : > { %12136 = vmatprep.subr.bf16.mxu0 %v12135_v47  ;;  %v6866_v47 = vsel %vm18161_vm10, %v10051_v48, %v6865_v57  ;;  %v12197_v48 = vpack.c.bf16 %v7078_v13, %v7076_v41  ;;  %v7091_v29 = vld [vmem:[%s21417_s13 + $0x778] sm:$0xff]  ;;  %v13865_v13 = vld [vmem:[#allocation6 + $0x10] ss:$16 sps:$4 sm:$0xff]  }
 0xb1b   : > { %v6938_v32 = vcombine.high %v6866_v47, %v6870_v37 }
 0xb1d   : > { %12138 = vmatpush1.bf16.msra.mxu0 %v12137_v30  ;;  %v7053_v30 = vld [vmem:[%s21417_s13 + $0x648] sm:$0xff] }
 0xb1e   : > { %12140 = vmatprep.subr.bf16.mxu0 %v12139_v18  ;;  %v6937_v18 = vcombine.low %v6866_v47, %v6870_v37  ;;  %v12171_v36 = vpack.c.bf16 %v7055_v61, %v7053_v30  ;;  %v12201_v37 = vpack.c.bf16 %v7082_v59, %v7080_v17  ;;  %v7086_v47 = vld [vmem:[%s21417_s13 + $0x750] sm:$0xff]  ;;  %v7088_v30 = vld [vmem:[%s21417_s13 + $0x760] sm:$0xff]  ;;  %v7246_v17 = vld [vmem:[%s21417_s13 + $0x848] sm:$0xff] }
 0xb1f   : > { %v7090_v61 = vld [vmem:[%s21417_s13 + $0x770] sm:$0xff]  ;;  %v7248_v59 = vld [vmem:[%s21417_s13 + $0x858] sm:$0xff] }
 0xb21   : > { %12142 = vmatpush1.bf16.msra.mxu0 %v12141_v25  ;;  %v7057_v25 = vld [vmem:[%s21417_s13 + $0x668] sm:$0xff] }
 0xb22   : > { %12144 = vmatprep.subr.bf16.mxu0 %v12143_v15  ;;  %v7059_v15 = vld [vmem:[%s21417_s13 + $0x678] sm:$0xff] }
 0xb23   : > { %v12175_v56 = vpack.c.bf16 %v7059_v15, %v7057_v25  ;;  %v7097_v25 = vld [vmem:[%s21417_s13 + $0x7a8] sm:$0xff]  ;;  %v7099_v15 = vld [vmem:[%s21417_s13 + $0x7b8] sm:$0xff] }
 0xb25   : > { %12146 = vmatpush1.bf16.msra.mxu0 %v12145_v54  ;;  %v7061_v54 = vld [vmem:[%s21417_s13 + $0x688] sm:$0xff] }
 0xb26   : > { %12148 = vmatprep.subr.bf16.mxu0 %v12147_v7  ;;  %v7063_v7 = vld [vmem:[%s21417_s13 + $0x698] sm:$0xff] }
 0xb27   : > { %v12179_v1 = vpack.c.bf16 %v7063_v7, %v7061_v54  ;;  %v7101_v54 = vld [vmem:[%s21417_s13 + $0x7c8] sm:$0xff]  ;;  %v7103_v7 = vld [vmem:[%s21417_s13 + $0x7d8] sm:$0xff] }
 0xb29   : > { %12150 = vmatpush1.bf16.msra.mxu0 %v12149_v21  ;;  %v7065_v21 = vld [vmem:[%s21417_s13 + $0x6a8] sm:$0xff] }
 0xb2a   : > { %12152 = vmatprep.subr.bf16.mxu0 %v12151_v33  ;;  %v7067_v33 = vld [vmem:[%s21417_s13 + $0x6b8] sm:$0xff] }
 0xb2b   : > { %v12183_v27 = vpack.c.bf16 %v7067_v33, %v7065_v21  ;;  %v7105_v21 = vld [vmem:[%s21417_s13 + $0x7e8] sm:$0xff]  ;;  %v7107_v33 = vld [vmem:[%s21417_s13 + $0x7f8] sm:$0xff] }
 0xb2d   : > { %12154 = vmatpush1.bf16.msra.mxu0 %v12153_v45  ;;  %v7069_v45 = vld [vmem:[%s21417_s13 + $0x6c8] sm:$0xff] }
 0xb2e   : > { %12156 = vmatprep.subr.bf16.mxu0 %v12155_v28  ;;  %v7071_v28 = vld [vmem:[%s21417_s13 + $0x6d8] sm:$0xff] }
 0xb2f   : > { %v12187_v4 = vpack.c.bf16 %v7071_v28, %v7069_v45  ;;  %v13868_v45 = vld [vmem:[#allocation6 + $0x10] ss:$8 sps:$4 sm:$0xee]   ;;  %v7238_v28 = vld [vmem:[%s21417_s13 + $0x808] sm:$0xff] }
 0xb30   : > { %v10057_v60 = vrot.slane %v13868_v45, 9  ;;  %v7265_v45 = vld [vmem:[%s21417_s13 + $0x8e0] sm:$0xff] }
 0xb31   : > { %12158 = vmatpush1.bf16.msra.mxu0 %v12157_v44  ;;  %v12189_v44 = vpack.c.bf16 %v7070_v14, %v7068_v39  ;;  %v13871_v39 = vld [vmem:[#allocation6 + $0x20] ss:$8 sps:$4 sm:$0xee]   ;;  %v13873_v14 = vld [vmem:[#allocation6 + $0x24] ss:$8 sps:$4 sm:$0x11]  }
 0xb32   : > { %12160 = vmatprep.subr.bf16.mxu0 %v12159_v12  ;;  %v7074_v12 = vld [vmem:[%s21417_s13 + $0x6f0] sm:$0xff] }
 0xb33   : > { %v12193_v35 = vpack.c.bf16 %v7074_v12, %v7072_v20  ;;  %v7242_v20 = vld [vmem:[%s21417_s13 + $0x828] sm:$0xff]  ;;  %v7244_v12 = vld [vmem:[%s21417_s13 + $0x838] sm:$0xff] }
 0xb35   : > { %12162 = vmatpush1.bf16.msra.mxu0 %v12161_v46  ;;  %v7081_v46 = vld [vmem:[%s21417_s13 + $0x728] sm:$0xff] }
 0xb36   : > { %12164 = vmatprep.subr.bf16.mxu0 %v12163_v43  ;;  %v7083_v43 = vld [vmem:[%s21417_s13 + $0x738] sm:$0xff] }
 0xb37   : > { %v12199_v57 = vpack.c.bf16 %v7083_v43, %v7081_v46  ;;  %v12231_v46 = vpack.c.bf16 %v7244_v12, %v7242_v20  ;;  %v7241_v43 = vld [vmem:[%s21417_s13 + $0x820] sm:$0xff] }
 0xb38   : > { %7008 = vmatmul.mubr.f32.vlgmr.msra.gmra.mrb[178].mxu0 %v6935_v24  ;;  %v7084_v24 = vld [vmem:[%s21417_s13 + $0x740] sm:$0xff] }
 0xb39   : > { %7013 = vmatprep.mubr.f32.mxu0 %v6938_v32  ;;  %12166 = vmatpush1.bf16.msra.mxu0 %v12165_v58  ;;  %v12203_v58 = vpack.c.bf16 %v7087_v16, %v7085_v55  ;;  %v12205_v9 = vpack.c.bf16 %v7086_v47, %v7084_v24  ;;  %v12235_v24 = vpack.c.bf16 %v7248_v59, %v7246_v17  ;;  %v7245_v47 = vld [vmem:[%s21417_s13 + $0x840] sm:$0xff] }
 0xb3a   : > { %12168 = vmatprep.subr.bf16.mxu0 %v12167_v3  ;;  %v7089_v3 = vld [vmem:[%s21417_s13 + $0x768] sm:$0xff] }
 0xb3b   : > { %v12207_v32 = vpack.c.bf16 %v7091_v29, %v7089_v3  ;;  %v7247_v3 = vld [vmem:[%s21417_s13 + $0x850] sm:$0xff] }
 0xb3c   : > { %7014 = vmatmul.mubr.f32.gmra.mrb[180].mxu0 %v6937_v18  ;;  %v7095_v18 = vld [vmem:[%s21417_s13 + $0x798] sm:$0xff] }
 0xb3d   : > { %12170 = vmatpush1.bf16.msra.mxu0 %v12169_v34  ;;  %7180 = vmatprep.mubr.f32.mxu0 %v13864_v10  ;;  %v7093_v34 = vld [vmem:[%s21417_s13 + $0x788] sm:$0xff]  ;;  %v7094_v10 = vld [vmem:[%s21417_s13 + $0x790] sm:$0xff] }
 0xb3e   : > { %12172 = vmatprep.subr.bf16.mxu0 %v12171_v36  ;;  %v12209_v36 = vpack.c.bf16 %v7090_v61, %v7088_v30  ;;  %v12211_v22 = vpack.c.bf16 %v7095_v18, %v7093_v34  ;;  %v12237_v30 = vpack.c.bf16 %v7247_v3, %v7245_v47  ;;  %v7249_v34 = vld [vmem:[%s21417_s13 + $0x860] sm:$0xff]  ;;  %v7251_v18 = vld [vmem:[%s21417_s13 + $0x870] sm:$0xff]  ;;  %v7288_v47 = vld [vmem:[%s21417_s13 + $0x998] sm:$0xff] }
 0xb41   : > { %12174 = vmatpush1.bf16.msra.mxu0 %v12173_v23  ;;  %v12213_v23 = vpack.c.bf16 %v7094_v10, %v7092_v38  ;;  %v12241_v38 = vpack.c.bf16 %v7251_v18, %v7249_v34 }
 0xb42   : > { %12176 = vmatprep.subr.bf16.mxu0 %v12175_v56  ;;  %v12215_v56 = vpack.c.bf16 %v7099_v15, %v7097_v25  ;;  %v7253_v25 = vld [vmem:[%s21417_s13 + $0x880] sm:$0xff]  ;;  %v7255_v15 = vld [vmem:[%s21417_s13 + $0x890] sm:$0xff] }
 0xb45   : > { %12178 = vmatpush1.bf16.msra.mxu0 %v12177_v53  ;;  %v12217_v53 = vpack.c.bf16 %v7098_v42, %v7096_v49  ;;  %v12245_v49 = vpack.c.bf16 %v7255_v15, %v7253_v25  ;;  %v13874_v15 = vld [vmem:[#allocation6 + $0x30] ss:$8 sps:$4 sm:$0xee]  }
 0xb46   : > { %12180 = vmatprep.subr.bf16.mxu0 %v12179_v1  ;;  %v12219_v1 = vpack.c.bf16 %v7103_v7, %v7101_v54  ;;  %v7257_v54 = vld [vmem:[%s21417_s13 + $0x8a0] sm:$0xff]  ;;  %v7259_v7 = vld [vmem:[%s21417_s13 + $0x8b0] sm:$0xff] }
 0xb49   : > { %12182 = vmatpush1.bf16.msra.mxu0 %v12181_v31  ;;  %v12221_v31 = vpack.c.bf16 %v7102_v62, %v7100_v26  ;;  %v12249_v26 = vpack.c.bf16 %v7259_v7, %v7257_v54  ;;  %v13877_v54 = vld [vmem:[#allocation6 + $0x40] ss:$8 sps:$4 sm:$0xee]  }
 0xb4a   : > { %12184 = vmatprep.subr.bf16.mxu0 %v12183_v27  ;;  %v12223_v27 = vpack.c.bf16 %v7107_v33, %v7105_v21  ;;  %v7261_v21 = vld [vmem:[%s21417_s13 + $0x8c0] sm:$0xff]  ;;  %v7263_v33 = vld [vmem:[%s21417_s13 + $0x8d0] sm:$0xff]  ;;  %v7298_v7 = vld [vmem:[%s21417_s13 + $0x9e8] sm:$0xff] }
 0xb4b   : > { %v12253_v63 = vpack.c.bf16 %v7263_v33, %v7261_v21 }
 0xb4d   : > { %12186 = vmatpush1.bf16.msra.mxu0 %v12185_v0  ;;  %v7240_v0 = vld [vmem:[%s21417_s13 + $0x818] sm:$0xff] }
 0xb4e   : > { %12188 = vmatprep.subr.bf16.mxu0 %v12187_v4  ;;  %v13870_v4 = vld [vmem:[#allocation6 + $0x14] ss:$8 sps:$4 sm:$0x11]   ;;  %v12227_v19 = vpack.c.bf16 %v7240_v0, %v7238_v28  ;;  %v7270_v0 = vld [vmem:[%s21417_s13 + $0x908] sm:$0xff] }
 0xb4f   : > { %v7223_v8 = vrot.slane %v13870_v4, 5  ;;  %v7267_v28 = vld [vmem:[%s21417_s13 + $0x8f0] sm:$0xff]  ;;  %v7272_v4 = vld [vmem:[%s21417_s13 + $0x918] sm:$0xff] }
 0xb51   : > { %12190 = vmatpush1.bf16.msra.mxu0 %v12189_v44  ;;  %v7237_v44 = vld [vmem:[%s21417_s13 + $0x800] sm:$0xff]  ;;  %v18579_v55 = vsel %vm17945_vm7, %v10057_v60, %v7223_v8  ;;  %v7275_v8 = vld [vmem:[%s21417_s13 + $0x930] sm:$0xff] }
 0xb52   : > { %12192 = vmatprep.subr.bf16.mxu0 %v12191_v52  ;;  %v7239_v52 = vld [vmem:[%s21417_s13 + $0x810] sm:$0xff]  ;;  %v7273_v60 = vld [vmem:[%s21417_s13 + $0x920] sm:$0xff] }
 0xb53   : > { %v12229_v41 = vpack.c.bf16 %v7239_v52, %v7237_v44  ;;  %v7274_v44 = vld [vmem:[%s21417_s13 + $0x928] sm:$0xff]  ;;  %v7276_v52 = vld [vmem:[%s21417_s13 + $0x938] sm:$0xff] }
 0xb54   : > { %v12263_v12 = vpack.c.bf16 %v7276_v52, %v7274_v44  ;;  %v7430_v44 = vld [vmem:[%s21417_s13 + $0xa00] sm:$0xff]  ;;  %v7432_v52 = vld [vmem:[%s21417_s13 + $0xa10] sm:$0xff] }
 0xb55   : > { %12194 = vmatpush1.bf16.msra.mxu0 %v12193_v35  ;;  %v10058_v35 = vrot.slane %v13871_v39, 9  ;;  %v12257_v39 = vpack.c.bf16 %v7267_v28, %v7265_v45  ;;  %v7431_v45 = vld [vmem:[%s21417_s13 + $0xa08] sm:$0xff]  ;;  %v7433_v28 = vld [vmem:[%s21417_s13 + $0xa18] sm:$0xff] }
 0xb56   : > { %12196 = vmatprep.subr.bf16.mxu0 %v12195_v40  ;;  %v7227_v40 = vrot.slane %v13873_v14, 5  ;;  %v12259_v14 = vpack.c.bf16 %v7272_v4, %v7270_v0  ;;  %v13882_v4 = vld [vmem:[#allocation6 + $0x14] ss:$8 sps:$4 sm:$0x33]  }
 0xb58   : > { %v18583_v16 = vsel %vm17945_vm7, %v10058_v35, %v7227_v40  ;;  %v7278_v35 = vld [vmem:[%s21417_s13 + $0x948] sm:$0xff]  ;;  %v7280_v40 = vld [vmem:[%s21417_s13 + $0x958] sm:$0xff] }
 0xb59   : > { %12198 = vmatpush1.bf16.msra.mxu0 %v12197_v48  ;;  %v7243_v48 = vld [vmem:[%s21417_s13 + $0x830] sm:$0xff]  ;;  %v7302_v29 = vcombine.high %v18579_v55, %v18583_v16 }
 0xb5a   : > { %12200 = vmatprep.subr.bf16.mxu0 %v12199_v57  ;;  %v13866_v57 = vld [vmem:[#allocation6 + $0x38] ss:$16 sps:$4 sm:$0xff]  }
 0xb5d   : > { %12202 = vmatpush1.bf16.msra.mxu0 %v12201_v37  ;;  %v12233_v37 = vpack.c.bf16 %v7243_v48, %v7241_v43  ;;  %v7279_v43 = vld [vmem:[%s21417_s13 + $0x950] sm:$0xff]  ;;  %v7282_v48 = vld [vmem:[%s21417_s13 + $0x968] sm:$0xff] }
 0xb5e   : > { %12204 = vmatprep.subr.bf16.mxu0 %v12203_v58  ;;  %v13867_v58 = vld [vmem:[#allocation6 + $0x30] ss:$16 sps:$4 sm:$0xff]  }
 0xb61   : > { %12206 = vmatpush1.bf16.msra.mxu0 %v12205_v9  ;;  %v7250_v9 = vld [vmem:[%s21417_s13 + $0x868] sm:$0xff] }
 0xb62   : > { %12208 = vmatprep.subr.bf16.mxu0 %v12207_v32  ;;  %v7252_v32 = vld [vmem:[%s21417_s13 + $0x878] sm:$0xff] }
 0xb63   : > { %v12239_v61 = vpack.c.bf16 %v7252_v32, %v7250_v9  ;;  %v7285_v9 = vld [vmem:[%s21417_s13 + $0x980] sm:$0xff]  ;;  %v7287_v32 = vld [vmem:[%s21417_s13 + $0x990] sm:$0xff] }
 0xb64   : > { %v12277_v34 = vpack.c.bf16 %v7287_v32, %v7285_v9  ;;  %v7440_v9 = vld [vmem:[%s21417_s13 + $0xa50] sm:$0xff] }
 0xb65   : > { %12210 = vmatpush1.bf16.msra.mxu0 %v12209_v36  ;;  %v7254_v36 = vld [vmem:[%s21417_s13 + $0x888] sm:$0xff] }
 0xb66   : > { %12212 = vmatprep.subr.bf16.mxu0 %v12211_v22  ;;  %v7256_v22 = vld [vmem:[%s21417_s13 + $0x898] sm:$0xff] }
 0xb67   : > { %v12243_v10 = vpack.c.bf16 %v7256_v22, %v7254_v36  ;;  %v7289_v36 = vld [vmem:[%s21417_s13 + $0x9a0] sm:$0xff]  ;;  %v7291_v22 = vld [vmem:[%s21417_s13 + $0x9b0] sm:$0xff] }
 0xb68   : > { %v12281_v25 = vpack.c.bf16 %v7291_v22, %v7289_v36  ;;  %v7442_v36 = vld [vmem:[%s21417_s13 + $0xa60] sm:$0xff]  ;;  %v7444_v22 = vld [vmem:[%s21417_s13 + $0xa70] sm:$0xff] }
 0xb69   : > { %12214 = vmatpush1.bf16.msra.mxu0 %v12213_v23  ;;  %v7258_v23 = vld [vmem:[%s21417_s13 + $0x8a8] sm:$0xff] }
 0xb6a   : > { %12216 = vmatprep.subr.bf16.mxu0 %v12215_v56  ;;  %v7260_v56 = vld [vmem:[%s21417_s13 + $0x8b8] sm:$0xff] }
 0xb6b   : > { %v12247_v42 = vpack.c.bf16 %v7260_v56, %v7258_v23  ;;  %v13876_v23 = vld [vmem:[#allocation6 + $0x34] ss:$8 sps:$4 sm:$0x11]  }
 0xb6c   : > { %v7231_v21 = vrot.slane %v13876_v23, 5  ;;  %v7446_v23 = vld [vmem:[%s21417_s13 + $0xa80] sm:$0xff] }
 0xb6d   : > { %12218 = vmatpush1.bf16.msra.mxu0 %v12217_v53  ;;  %v7262_v53 = vld [vmem:[%s21417_s13 + $0x8c8] sm:$0xff] }
 0xb6e   : > { %12220 = vmatprep.subr.bf16.mxu0 %v12219_v1  ;;  %v7264_v1 = vld [vmem:[%s21417_s13 + $0x8d8] sm:$0xff] }
 0xb6f   : > { %v12251_v62 = vpack.c.bf16 %v7264_v1, %v7262_v53  ;;  %v7300_v53 = vld [vmem:[%s21417_s13 + $0x9f8] sm:$0xff]  ;;  %v13879_v1 = vld [vmem:[#allocation6 + $0x44] ss:$8 sps:$4 sm:$0x11]  }
 0xb70   : > { %v12287_v33 = vpack.c.bf16 %v7300_v53, %v7298_v7  ;;  %v7235_v0 = vrot.slane %v13879_v1, 5  ;;  %v7450_v53 = vld [vmem:[%s21417_s13 + $0xaa0] sm:$0xff]  ;;  %v7452_v1 = vld [vmem:[%s21417_s13 + $0xab0] sm:$0xff] }
 0xb71   : > { %12222 = vmatpush1.bf16.msra.mxu0 %v12221_v31  ;;  %v7266_v31 = vld [vmem:[%s21417_s13 + $0x8e8] sm:$0xff] }
 0xb72   : > { %12224 = vmatprep.subr.bf16.mxu0 %v12223_v27  ;;  %v7268_v27 = vld [vmem:[%s21417_s13 + $0x8f8] sm:$0xff] }
 0xb73   : > { %v12255_v11 = vpack.c.bf16 %v7268_v27, %v7266_v31  ;;  %v7297_v31 = vld [vmem:[%s21417_s13 + $0x9e0] sm:$0xff]  ;;  %v7299_v27 = vld [vmem:[%s21417_s13 + $0x9f0] sm:$0xff] }
 0xb75   : > { %12226 = vmatpush1.bf16.msra.mxu0 %v12225_v5  ;;  %v7269_v5 = vld [vmem:[%s21417_s13 + $0x900] sm:$0xff] }
 0xb76   : > { %12228 = vmatprep.subr.bf16.mxu0 %v12227_v19  ;;  %v7271_v19 = vld [vmem:[%s21417_s13 + $0x910] sm:$0xff] }
 0xb77   : > { %v12261_v20 = vpack.c.bf16 %v7271_v19, %v7269_v5  ;;  %v12289_v5 = vpack.c.bf16 %v7299_v27, %v7297_v31  ;;  %v12291_v19 = vpack.c.bf16 %v7433_v28, %v7431_v45  ;;  %v7454_v31 = vld [vmem:[%s21417_s13 + $0xac0] sm:$0xff]  ;;  %v7456_v27 = vld [vmem:[%s21417_s13 + $0xad0] sm:$0xff] }
 0xb78   : > { %7181 = vmatmul.mubr.f32.vlgmr.msra.gmra.mrb[178].mxu0 %v13865_v13  ;;  %v12267_v13 = vpack.c.bf16 %v7280_v40, %v7278_v35  ;;  %v7416_v40 = vrot.slane %v13882_v4, 6  ;;  %v12317_v45 = vpack.c.bf16 %v7456_v27, %v7454_v31  ;;  %v7460_v4 = vld [vmem:[%s21417_s13 + $0xaf0] sm:$0xff]  ;;  %v7490_v31 = vld [vmem:[%s21417_s13 + $0xbe0] sm:$0xff] }
 0xb79   : > { %7186 = vmatprep.mubr.f32.mxu0 %v13866_v57  ;;  %12230 = vmatpush1.bf16.msra.mxu0 %v12229_v41  ;;  %v12265_v41 = vpack.c.bf16 %v7275_v8, %v7273_v60  ;;  %v7284_v57 = vld [vmem:[%s21417_s13 + $0x978] sm:$0xff]  ;;  %v7435_v60 = vld [vmem:[%s21417_s13 + $0xa28] sm:$0xff]  ;;  %v7492_v27 = vld [vmem:[%s21417_s13 + $0xbf0] sm:$0xff] }
 0xb7a   : > { %12232 = vmatprep.subr.bf16.mxu0 %v12231_v46  ;;  %v7277_v46 = vld [vmem:[%s21417_s13 + $0x940] sm:$0xff]  ;;  %v12271_v59 = vpack.c.bf16 %v7284_v57, %v7282_v48  ;;  %v7437_v8 = vld [vmem:[%s21417_s13 + $0xa38] sm:$0xff] }
 0xb7b   : > { %v12269_v17 = vpack.c.bf16 %v7279_v43, %v7277_v46  ;;  %v12293_v46 = vpack.c.bf16 %v7432_v52, %v7430_v44  ;;  %v7301_v43 = vcombine.low %v18579_v55, %v18583_v16  ;;  %v12295_v48 = vpack.c.bf16 %v7437_v8, %v7435_v60  ;;  %v7434_v57 = vld [vmem:[%s21417_s13 + $0xa20] sm:$0xff]  ;;  %v7464_v52 = vld [vmem:[%s21417_s13 + $0xb10] sm:$0xff] }
 0xb7c   : > { %7187 = vmatmul.mubr.f32.gmra.mrb[180].mxu0 %v13867_v58  ;;  %v7283_v58 = vld [vmem:[%s21417_s13 + $0x970] sm:$0xff]  ;;  %v7462_v44 = vld [vmem:[%s21417_s13 + $0xb00] sm:$0xff] }
 0xb7d   : > { %12234 = vmatpush1.bf16.msra.mxu0 %v12233_v37  ;;  %7373 = vmatprep.mubr.f32.mxu0 %v7302_v29  ;;  %v7281_v37 = vld [vmem:[%s21417_s13 + $0x960] sm:$0xff]  ;;  %v12325_v60 = vpack.c.bf16 %v7464_v52, %v7462_v44  ;;  %v7609_v44 = vld [vmem:[%s21417_s13 + $0xc28] sm:$0xff]  ;;  %v7611_v52 = vld [vmem:[%s21417_s13 + $0xc38] sm:$0xff] }
 0xb7e   : > { %12236 = vmatprep.subr.bf16.mxu0 %v12235_v24  ;;  %v7286_v24 = vld [vmem:[%s21417_s13 + $0x988] sm:$0xff]  ;;  %v12273_v3 = vpack.c.bf16 %v7283_v58, %v7281_v37  ;;  %v7441_v58 = vld [vmem:[%s21417_s13 + $0xa58] sm:$0xff] }
 0xb7f   : > { %v12275_v29 = vpack.c.bf16 %v7288_v47, %v7286_v24  ;;  %v7439_v37 = vld [vmem:[%s21417_s13 + $0xa48] sm:$0xff] }
 0xb81   : > { %12238 = vmatpush1.bf16.msra.mxu0 %v12237_v30  ;;  %v7290_v30 = vld [vmem:[%s21417_s13 + $0x9a8] sm:$0xff] }
 0xb82   : > { %12240 = vmatprep.subr.bf16.mxu0 %v12239_v61  ;;  %v7292_v61 = vld [vmem:[%s21417_s13 + $0x9b8] sm:$0xff] }
 0xb83   : > { %v12279_v18 = vpack.c.bf16 %v7292_v61, %v7290_v30  ;;  %v7443_v30 = vld [vmem:[%s21417_s13 + $0xa68] sm:$0xff]  ;;  %v7445_v61 = vld [vmem:[%s21417_s13 + $0xa78] sm:$0xff] }
 0xb85   : > { %12242 = vmatpush1.bf16.msra.mxu0 %v12241_v38  ;;  %v7294_v38 = vld [vmem:[%s21417_s13 + $0x9c8] sm:$0xff] }
 0xb86   : > { %12244 = vmatprep.subr.bf16.mxu0 %v12243_v10  ;;  %v7296_v10 = vld [vmem:[%s21417_s13 + $0x9d8] sm:$0xff] }
 0xb87   : > { %v12283_v56 = vpack.c.bf16 %v7296_v10, %v7294_v38  ;;  %v7447_v38 = vld [vmem:[%s21417_s13 + $0xa88] sm:$0xff]  ;;  %v7449_v10 = vld [vmem:[%s21417_s13 + $0xa98] sm:$0xff] }
 0xb89   : > { %12246 = vmatpush1.bf16.msra.mxu0 %v12245_v49  ;;  %v7293_v49 = vld [vmem:[%s21417_s13 + $0x9c0] sm:$0xff] }
 0xb8a   : > { %12248 = vmatprep.subr.bf16.mxu0 %v12247_v42  ;;  %v7295_v42 = vld [vmem:[%s21417_s13 + $0x9d0] sm:$0xff] }
 0xb8d   : > { %12250 = vmatpush1.bf16.msra.mxu0 %v12249_v26  ;;  %v12285_v26 = vpack.c.bf16 %v7295_v42, %v7293_v49  ;;  %v7451_v49 = vld [vmem:[%s21417_s13 + $0xaa8] sm:$0xff]  ;;  %v7453_v42 = vld [vmem:[%s21417_s13 + $0xab8] sm:$0xff] }
 0xb8e   : > { %12252 = vmatprep.subr.bf16.mxu0 %v12251_v62  ;;  %v10059_v62 = vrot.slane %v13874_v15, 9  ;;  %v12307_v15 = vpack.c.bf16 %v7449_v10, %v7447_v38  ;;  %v12311_v7 = vpack.c.bf16 %v7453_v42, %v7451_v49  ;;  %v7482_v38 = vld [vmem:[%s21417_s13 + $0xba0] sm:$0xff]  ;;  %v7484_v10 = vld [vmem:[%s21417_s13 + $0xbb0] sm:$0xff] }
 0xb8f   : > { %v7486_v49 = vld [vmem:[%s21417_s13 + $0xbc0] sm:$0xff]  ;;  %v7488_v42 = vld [vmem:[%s21417_s13 + $0xbd0] sm:$0xff] }
 0xb91   : > { %12254 = vmatpush1.bf16.msra.mxu0 %v12253_v63  ;;  %v10060_v63 = vrot.slane %v13877_v54, 9 }
 0xb92   : > { %12256 = vmatprep.subr.bf16.mxu0 %v12255_v11  ;;  %v13880_v11 = vld [vmem:[#allocation6 + $0x10] ss:$8 sps:$4 sm:$0xcc]  }
 0xb93   : > { %v10061_v35 = vrot.slane %v13880_v11, 10  ;;  %v7461_v11 = vld [vmem:[%s21417_s13 + $0xaf8] sm:$0xff] }
 0xb95   : > { %12258 = vmatpush1.bf16.msra.mxu0 %v12257_v39  ;;  %v13883_v39 = vld [vmem:[#allocation6 + $0x20] ss:$8 sps:$4 sm:$0xcc]   ;;  %v18787_v55 = vsel %vm18161_vm10, %v10061_v35, %v7416_v40  ;;  %v7468_v40 = vld [vmem:[%s21417_s13 + $0xb30] sm:$0xff] }
 0xb96   : > { %12260 = vmatprep.subr.bf16.mxu0 %v12259_v14  ;;  %v13885_v14 = vld [vmem:[#allocation6 + $0x24] ss:$8 sps:$4 sm:$0x33]  }
 0xb97   : > { %v7466_v35 = vld [vmem:[%s21417_s13 + $0xb20] sm:$0xff] }
 0xb99   : > { %12262 = vmatpush1.bf16.msra.mxu0 %v12261_v20  ;;  %v7232_v20 = vsel %vm17945_vm7, %v10059_v62, %v7231_v21  ;;  %v7457_v62 = vld [vmem:[%s21417_s13 + $0xad8] sm:$0xff]  ;;  %v12313_v21 = vpack.c.bf16 %v7452_v1, %v7450_v53 }
 0xb9a   : > { %12264 = vmatprep.subr.bf16.mxu0 %v12263_v12  ;;  %v7236_v12 = vsel %vm17945_vm7, %v10060_v63, %v7235_v0  ;;  %v7459_v63 = vld [vmem:[%s21417_s13 + $0xae8] sm:$0xff]  ;;  %v7458_v0 = vld [vmem:[%s21417_s13 + $0xae0] sm:$0xff]  ;;  %v7493_v53 = vld [vmem:[%s21417_s13 + $0xbf8] sm:$0xff] }
 0xb9b   : > { %v7303_v47 = vcombine.low %v7232_v20, %v7236_v12  ;;  %v12319_v28 = vpack.c.bf16 %v7461_v11, %v7459_v63  ;;  %v13888_v1 = vld [vmem:[#allocation6 + $0x34] ss:$8 sps:$4 sm:$0x33]   ;;  %v7605_v63 = vld [vmem:[%s21417_s13 + $0xc08] sm:$0xff] }
 0xb9c   : > { %v7607_v11 = vld [vmem:[%s21417_s13 + $0xc18] sm:$0xff] }
 0xb9d   : > { %12266 = vmatpush1.bf16.msra.mxu0 %v12265_v41  ;;  %v10062_v41 = vrot.slane %v13883_v39, 10  ;;  %v7463_v39 = vld [vmem:[%s21417_s13 + $0xb08] sm:$0xff] }
 0xb9e   : > { %12268 = vmatprep.subr.bf16.mxu0 %v12267_v13  ;;  %v7420_v13 = vrot.slane %v13885_v14, 6  ;;  %v7465_v14 = vld [vmem:[%s21417_s13 + $0xb18] sm:$0xff] }
 0xba0   : > { %v18791_v16 = vsel %vm18161_vm10, %v10062_v41, %v7420_v13  ;;  %v7471_v41 = vld [vmem:[%s21417_s13 + $0xb48] sm:$0xff]  ;;  %v7473_v13 = vld [vmem:[%s21417_s13 + $0xb58] sm:$0xff] }
 0xba1   : > { %12270 = vmatpush1.bf16.msra.mxu0 %v12269_v17  ;;  %v7436_v17 = vld [vmem:[%s21417_s13 + $0xa30] sm:$0xff]  ;;  %v7495_v32 = vcombine.high %v18787_v55, %v18791_v16 }
 0xba2   : > { %12272 = vmatprep.subr.bf16.mxu0 %v12271_v59  ;;  %v7304_v59 = vcombine.high %v7232_v20, %v7236_v12  ;;  %v12297_v24 = vpack.c.bf16 %v7436_v17, %v7434_v57  ;;  %v7467_v20 = vld [vmem:[%s21417_s13 + $0xb28] sm:$0xff]  ;;  %v7469_v12 = vld [vmem:[%s21417_s13 + $0xb38] sm:$0xff]  ;;  %v7472_v57 = vld [vmem:[%s21417_s13 + $0xb50] sm:$0xff] }
 0xba3   : > { %v12327_v8 = vpack.c.bf16 %v7469_v12, %v7467_v20  ;;  %v7475_v17 = vld [vmem:[%s21417_s13 + $0xb68] sm:$0xff] }
 0xba5   : > { %12274 = vmatpush1.bf16.msra.mxu0 %v12273_v3  ;;  %v12299_v3 = vpack.c.bf16 %v7441_v58, %v7439_v37 }
 0xba6   : > { %12276 = vmatprep.subr.bf16.mxu0 %v12275_v29  ;;  %v7438_v29 = vld [vmem:[%s21417_s13 + $0xa40] sm:$0xff] }
 0xba9   : > { %12278 = vmatpush1.bf16.msra.mxu0 %v12277_v34  ;;  %v12301_v34 = vpack.c.bf16 %v7440_v9, %v7438_v29  ;;  %v7481_v29 = vld [vmem:[%s21417_s13 + $0xb98] sm:$0xff] }
 0xbaa   : > { %12280 = vmatprep.subr.bf16.mxu0 %v12279_v18  ;;  %v12303_v18 = vpack.c.bf16 %v7445_v61, %v7443_v30  ;;  %v7478_v30 = vld [vmem:[%s21417_s13 + $0xb80] sm:$0xff]  ;;  %v7480_v61 = vld [vmem:[%s21417_s13 + $0xb90] sm:$0xff] }
 0xbad   : > { %12282 = vmatpush1.bf16.msra.mxu0 %v12281_v25  ;;  %v12305_v25 = vpack.c.bf16 %v7444_v22, %v7442_v36  ;;  %v12341_v36 = vpack.c.bf16 %v7480_v61, %v7478_v30 }
 0xbae   : > { %12284 = vmatprep.subr.bf16.mxu0 %v12283_v56  ;;  %v7448_v56 = vld [vmem:[%s21417_s13 + $0xa90] sm:$0xff] }
 0xbaf   : > { %v12309_v54 = vpack.c.bf16 %v7448_v56, %v7446_v23  ;;  %v12345_v23 = vpack.c.bf16 %v7484_v10, %v7482_v38 }
 0xbb1   : > { %12286 = vmatpush1.bf16.msra.mxu0 %v12285_v26  ;;  %v7455_v26 = vld [vmem:[%s21417_s13 + $0xac8] sm:$0xff] }
 0xbb2   : > { %12288 = vmatprep.subr.bf16.mxu0 %v12287_v33  ;;  %v12315_v33 = vpack.c.bf16 %v7457_v62, %v7455_v26  ;;  %v13889_v26 = vld [vmem:[#allocation6 + $0x40] ss:$8 sps:$4 sm:$0xcc]   ;;  %v13891_v62 = vld [vmem:[#allocation6 + $0x44] ss:$8 sps:$4 sm:$0x33]  }
 0xbb5   : > { %12290 = vmatpush1.bf16.msra.mxu0 %v12289_v5  ;;  %v12321_v5 = vpack.c.bf16 %v7460_v4, %v7458_v0  ;;  %v10064_v0 = vrot.slane %v13889_v26, 10  ;;  %v7428_v4 = vrot.slane %v13891_v62, 6 }
 0xbb6   : > { %12292 = vmatprep.subr.bf16.mxu0 %v12291_v19  ;;  %v12323_v19 = vpack.c.bf16 %v7465_v14, %v7463_v39  ;;  %v12353_v39 = vpack.c.bf16 %v7492_v27, %v7490_v31  ;;  %v12355_v14 = vpack.c.bf16 %v7607_v11, %v7605_v63  ;;  %v7637_v31 = vld [vmem:[%s21417_s13 + $0xd08] sm:$0xff]  ;;  %v7639_v27 = vld [vmem:[%s21417_s13 + $0xd18] sm:$0xff] }
 0xbb7   : > { %v7429_v12 = vsel %vm18161_vm10, %v10064_v0, %v7428_v4  ;;  %v12387_v11 = vpack.c.bf16 %v7639_v27, %v7637_v31  ;;  %v7641_v0 = vld [vmem:[%s21417_s13 + $0xd28] sm:$0xff]  ;;  %v7643_v4 = vld [vmem:[%s21417_s13 + $0xd38] sm:$0xff] }
 0xbb8   : > { %7374 = vmatmul.mubr.f32.vlgmr.msra.gmra.mrb[178].mxu0 %v7301_v43  ;;  %v12331_v43 = vpack.c.bf16 %v7473_v13, %v7471_v41  ;;  %v7610_v41 = vld [vmem:[%s21417_s13 + $0xc30] sm:$0xff] }
 0xbb9   : > { %7379 = vmatprep.mubr.f32.mxu0 %v7304_v59  ;;  %12294 = vmatpush1.bf16.msra.mxu0 %v12293_v46  ;;  %v12329_v46 = vpack.c.bf16 %v7468_v40, %v7466_v35  ;;  %v7477_v59 = vld [vmem:[%s21417_s13 + $0xb78] sm:$0xff]  ;;  %v12359_v35 = vpack.c.bf16 %v7611_v52, %v7609_v44  ;;  %v7608_v40 = vld [vmem:[%s21417_s13 + $0xc20] sm:$0xff]  ;;  %v7645_v44 = vld [vmem:[%s21417_s13 + $0xd48] sm:$0xff] }
 0xbba   : > { %12296 = vmatprep.subr.bf16.mxu0 %v12295_v48  ;;  %v7470_v48 = vld [vmem:[%s21417_s13 + $0xb40] sm:$0xff]  ;;  %v12335_v58 = vpack.c.bf16 %v7477_v59, %v7475_v17  ;;  %v7614_v17 = vld [vmem:[%s21417_s13 + $0xc50] sm:$0xff]  ;;  %v13892_v59 = vld [vmem:[#allocation6 + $0x28] ss:$16 sps:$4 sm:$0xff]  }
 0xbbb   : > { %v12333_v37 = vpack.c.bf16 %v7472_v57, %v7470_v48  ;;  %v7612_v57 = vld [vmem:[%s21417_s13 + $0xc40] sm:$0xff]  ;;  %v7647_v52 = vld [vmem:[%s21417_s13 + $0xd58] sm:$0xff] }
 0xbbc   : > { %7380 = vmatmul.mubr.f32.gmra.mrb[180].mxu0 %v7303_v47  ;;  %v7476_v47 = vld [vmem:[%s21417_s13 + $0xb70] sm:$0xff] }
 0xbbd   : > { %12298 = vmatpush1.bf16.msra.mxu0 %v12297_v24  ;;  %7566 = vmatprep.mubr.f32.mxu0 %v7495_v32  ;;  %v7474_v24 = vld [vmem:[%s21417_s13 + $0xb60] sm:$0xff] }
 0xbbe   : > { %12300 = vmatprep.subr.bf16.mxu0 %v12299_v3  ;;  %v7479_v3 = vld [vmem:[%s21417_s13 + $0xb88] sm:$0xff]  ;;  %v12337_v9 = vpack.c.bf16 %v7476_v47, %v7474_v24  ;;  %v12365_v24 = vpack.c.bf16 %v7614_v17, %v7612_v57  ;;  %v7652_v17 = vld [vmem:[%s21417_s13 + $0xd80] sm:$0xff] }
 0xbbf   : > { %v12339_v32 = vpack.c.bf16 %v7481_v29, %v7479_v3  ;;  %v7616_v3 = vld [vmem:[%s21417_s13 + $0xc60] sm:$0xff]  ;;  %v7618_v29 = vld [vmem:[%s21417_s13 + $0xc70] sm:$0xff] }
 0xbc0   : > { %v12369_v30 = vpack.c.bf16 %v7618_v29, %v7616_v3  ;;  %v7656_v3 = vld [vmem:[%s21417_s13 + $0xda0] sm:$0xff]  ;;  %v7658_v29 = vld [vmem:[%s21417_s13 + $0xdb0] sm:$0xff] }
 0xbc1   : > { %12302 = vmatpush1.bf16.msra.mxu0 %v12301_v34  ;;  %v7483_v34 = vld [vmem:[%s21417_s13 + $0xba8] sm:$0xff] }
 0xbc2   : > { %12304 = vmatprep.subr.bf16.mxu0 %v12303_v18  ;;  %v7485_v18 = vld [vmem:[%s21417_s13 + $0xbb8] sm:$0xff] }
 0xbc3   : > { %v12343_v22 = vpack.c.bf16 %v7485_v18, %v7483_v34  ;;  %v7620_v34 = vld [vmem:[%s21417_s13 + $0xc80] sm:$0xff]  ;;  %v7622_v18 = vld [vmem:[%s21417_s13 + $0xc90] sm:$0xff] }
 0xbc4   : > { %v12373_v38 = vpack.c.bf16 %v7622_v18, %v7620_v34  ;;  %v7660_v34 = vld [vmem:[%s21417_s13 + $0xdc0] sm:$0xff]  ;;  %v7662_v18 = vld [vmem:[%s21417_s13 + $0xdd0] sm:$0xff] }
 0xbc5   : > { %12306 = vmatpush1.bf16.msra.mxu0 %v12305_v25  ;;  %v7487_v25 = vld [vmem:[%s21417_s13 + $0xbc8] sm:$0xff] }
 0xbc6   : > { %12308 = vmatprep.subr.bf16.mxu0 %v12307_v15  ;;  %v7489_v15 = vld [vmem:[%s21417_s13 + $0xbd8] sm:$0xff] }
 0xbc7   : > { %v12347_v56 = vpack.c.bf16 %v7489_v15, %v7487_v25  ;;  %v7624_v25 = vld [vmem:[%s21417_s13 + $0xca0] sm:$0xff]  ;;  %v7626_v15 = vld [vmem:[%s21417_s13 + $0xcb0] sm:$0xff] }
 0xbc9   : > { %12310 = vmatpush1.bf16.msra.mxu0 %v12309_v54  ;;  %v13886_v54 = vld [vmem:[#allocation6 + $0x30] ss:$8 sps:$4 sm:$0xcc]  }
 0xbca   : > { %12312 = vmatprep.subr.bf16.mxu0 %v12311_v7  ;;  %v7491_v7 = vld [vmem:[%s21417_s13 + $0xbe8] sm:$0xff] }
 0xbcd   : > { %12314 = vmatpush1.bf16.msra.mxu0 %v12313_v21  ;;  %v12349_v21 = vpack.c.bf16 %v7488_v42, %v7486_v49  ;;  %v12377_v49 = vpack.c.bf16 %v7626_v15, %v7624_v25  ;;  %v7664_v25 = vld [vmem:[%s21417_s13 + $0xde0] sm:$0xff]  ;;  %v7666_v15 = vld [vmem:[%s21417_s13 + $0xdf0] sm:$0xff] }
 0xbce   : > { %12316 = vmatprep.subr.bf16.mxu0 %v12315_v33  ;;  %v12351_v33 = vpack.c.bf16 %v7493_v53, %v7491_v7  ;;  %v7630_v7 = vld [vmem:[%s21417_s13 + $0xcd0] sm:$0xff]  ;;  %v7633_v53 = vld [vmem:[%s21417_s13 + $0xce8] sm:$0xff] }
 0xbd1   : > { %12318 = vmatpush1.bf16.msra.mxu0 %v12317_v45  ;;  %v10063_v45 = vrot.slane %v13886_v54, 10  ;;  %v7628_v54 = vld [vmem:[%s21417_s13 + $0xcc0] sm:$0xff] }
 0xbd2   : > { %12320 = vmatprep.subr.bf16.mxu0 %v12319_v28  ;;  %v7424_v28 = vrot.slane %v13888_v1, 6  ;;  %v7635_v1 = vld [vmem:[%s21417_s13 + $0xcf8] sm:$0xff]  ;;  %v12381_v26 = vpack.c.bf16 %v7630_v7, %v7628_v54  ;;  %v12417_v54 = vpack.c.bf16 %v7666_v15, %v7664_v25  ;;  %v13896_v7 = vld [vmem:[#allocation6 + $0x20] ss:$8 sps:$4 sm:$0xee]   ;;  %v8333_v25 = vld [vmem:[%s21419_s15 + $0x250] sm:$0xff] }
 0xbd3   : > { %v12383_v62 = vpack.c.bf16 %v7635_v1, %v7633_v53  ;;  %v7797_v1 = vld [vmem:[%s21417_s13 + $0xe00] sm:$0xff] }
 0xbd4   : > { %v7425_v20 = vsel %vm18161_vm10, %v10063_v45, %v7424_v28  ;;  %v7636_v45 = vld [vmem:[%s21417_s13 + $0xd00] sm:$0xff]  ;;  %v7638_v28 = vld [vmem:[%s21417_s13 + $0xd10] sm:$0xff] }
 0xbd5   : > { %12322 = vmatpush1.bf16.msra.mxu0 %v12321_v5  ;;  %v7604_v5 = vld [vmem:[%s21417_s13 + $0xc00] sm:$0xff]  ;;  %v7497_v13 = vcombine.high %v7425_v20, %v7429_v12 }
 0xbd6   : > { %12324 = vmatprep.subr.bf16.mxu0 %v12323_v19  ;;  %v7606_v19 = vld [vmem:[%s21417_s13 + $0xc10] sm:$0xff] }
 0xbd9   : > { %12326 = vmatpush1.bf16.msra.mxu0 %v12325_v60  ;;  %v12357_v60 = vpack.c.bf16 %v7606_v19, %v7604_v5  ;;  %v7640_v5 = vld [vmem:[%s21417_s13 + $0xd20] sm:$0xff]  ;;  %v7642_v19 = vld [vmem:[%s21417_s13 + $0xd30] sm:$0xff] }
 0xbda   : > { %12328 = vmatprep.subr.bf16.mxu0 %v12327_v8  ;;  %v7494_v8 = vcombine.low %v18787_v55, %v18791_v16  ;;  %v12361_v55 = vpack.c.bf16 %v7610_v41, %v7608_v40  ;;  %v7496_v16 = vcombine.low %v7425_v20, %v7429_v12  ;;  %v12393_v20 = vpack.c.bf16 %v7642_v19, %v7640_v5  ;;  %v7651_v40 = vld [vmem:[%s21417_s13 + $0xd78] sm:$0xff]  ;;  %v7806_v5 = vld [vmem:[%s21417_s13 + $0xe48] sm:$0xff] }
 0xbdb   : > { %v12395_v12 = vpack.c.bf16 %v7647_v52, %v7645_v44  ;;  %v7808_v19 = vld [vmem:[%s21417_s13 + $0xe58] sm:$0xff] }
 0xbdd   : > { %12330 = vmatpush1.bf16.msra.mxu0 %v12329_v46  ;;  %v7613_v46 = vld [vmem:[%s21417_s13 + $0xc48] sm:$0xff] }
 0xbde   : > { %12332 = vmatprep.subr.bf16.mxu0 %v12331_v43  ;;  %v7615_v43 = vld [vmem:[%s21417_s13 + $0xc58] sm:$0xff] }
 0xbdf   : > { %v12363_v48 = vpack.c.bf16 %v7615_v43, %v7613_v46  ;;  %v7648_v46 = vld [vmem:[%s21417_s13 + $0xd60] sm:$0xff]  ;;  %v7650_v43 = vld [vmem:[%s21417_s13 + $0xd70] sm:$0xff] }
 0xbe1   : > { %12334 = vmatpush1.bf16.msra.mxu0 %v12333_v37  ;;  %v7617_v37 = vld [vmem:[%s21417_s13 + $0xc68] sm:$0xff] }
 0xbe2   : > { %12336 = vmatprep.subr.bf16.mxu0 %v12335_v58  ;;  %v7619_v58 = vld [vmem:[%s21417_s13 + $0xc78] sm:$0xff] }
 0xbe3   : > { %v12367_v47 = vpack.c.bf16 %v7619_v58, %v7617_v37  ;;  %v7657_v37 = vld [vmem:[%s21417_s13 + $0xda8] sm:$0xff]  ;;  %v7659_v58 = vld [vmem:[%s21417_s13 + $0xdb8] sm:$0xff] }
 0xbe5   : > { %12338 = vmatpush1.bf16.msra.mxu0 %v12337_v9  ;;  %v7621_v9 = vld [vmem:[%s21417_s13 + $0xc88] sm:$0xff] }
 0xbe6   : > { %12340 = vmatprep.subr.bf16.mxu0 %v12339_v32  ;;  %v7623_v32 = vld [vmem:[%s21417_s13 + $0xc98] sm:$0xff] }
 0xbe7   : > { %v12371_v61 = vpack.c.bf16 %v7623_v32, %v7621_v9  ;;  %v7661_v9 = vld [vmem:[%s21417_s13 + $0xdc8] sm:$0xff]  ;;  %v7663_v32 = vld [vmem:[%s21417_s13 + $0xdd8] sm:$0xff] }
 0xbe9   : > { %12342 = vmatpush1.bf16.msra.mxu0 %v12341_v36  ;;  %v7625_v36 = vld [vmem:[%s21417_s13 + $0xca8] sm:$0xff] }
 0xbea   : > { %12344 = vmatprep.subr.bf16.mxu0 %v12343_v22  ;;  %v7627_v22 = vld [vmem:[%s21417_s13 + $0xcb8] sm:$0xff] }
 0xbeb   : > { %v12375_v10 = vpack.c.bf16 %v7627_v22, %v7625_v36  ;;  %v7665_v36 = vld [vmem:[%s21417_s13 + $0xde8] sm:$0xff]  ;;  %v7667_v22 = vld [vmem:[%s21417_s13 + $0xdf8] sm:$0xff] }
 0xbed   : > { %12346 = vmatpush1.bf16.msra.mxu0 %v12345_v23  ;;  %v7629_v23 = vld [vmem:[%s21417_s13 + $0xcc8] sm:$0xff] }
 0xbee   : > { %12348 = vmatprep.subr.bf16.mxu0 %v12347_v56  ;;  %v7631_v56 = vld [vmem:[%s21417_s13 + $0xcd8] sm:$0xff] }
 0xbef   : > { %v12379_v42 = vpack.c.bf16 %v7631_v56, %v7629_v23  ;;  %v7798_v23 = vld [vmem:[%s21417_s13 + $0xe08] sm:$0xff]  ;;  %v7800_v56 = vld [vmem:[%s21417_s13 + $0xe18] sm:$0xff] }
 0xbf0   : > { %v12419_v53 = vpack.c.bf16 %v7800_v56, %v7798_v23  ;;  %v7815_v23 = vld [vmem:[%s21417_s13 + $0xe90] sm:$0xff]  ;;  %v8336_v56 = vld [vmem:[%s21419_s15 + $0x268] sm:$0xff] }
 0xbf1   : > { %12350 = vmatpush1.bf16.msra.mxu0 %v12349_v21  ;;  %v7632_v21 = vld [vmem:[%s21417_s13 + $0xce0] sm:$0xff] }
 0xbf2   : > { %12352 = vmatprep.subr.bf16.mxu0 %v12351_v33  ;;  %v7634_v33 = vld [vmem:[%s21417_s13 + $0xcf0] sm:$0xff] }
 0xbf3   : > { %v12385_v63 = vpack.c.bf16 %v7634_v33, %v7632_v21  ;;  %v7802_v21 = vld [vmem:[%s21417_s13 + $0xe28] sm:$0xff]  ;;  %v7804_v33 = vld [vmem:[%s21417_s13 + $0xe38] sm:$0xff] }
 0xbf5   : > { %12354 = vmatpush1.bf16.msra.mxu0 %v12353_v39  ;;  %v12389_v39 = vpack.c.bf16 %v7638_v28, %v7636_v45  ;;  %v12423_v45 = vpack.c.bf16 %v7804_v33, %v7802_v21  ;;  %v7801_v28 = vld [vmem:[%s21417_s13 + $0xe20] sm:$0xff]  ;;  %v8337_v21 = vld [vmem:[%s21419_s15 + $0x270] sm:$0xff] }
 0xbf6   : > { %12356 = vmatprep.subr.bf16.mxu0 %v12355_v14  ;;  %v12391_v14 = vpack.c.bf16 %v7643_v4, %v7641_v0  ;;  %v7803_v0 = vld [vmem:[%s21417_s13 + $0xe30] sm:$0xff]  ;;  %v10069_v4 = vrot.slane %v13896_v7, 9 }
 0xbf7   : > { %v12425_v52 = vpack.c.bf16 %v7803_v0, %v7801_v28 }
 0xbf8   : > { %7567 = vmatmul.mubr.f32.vlgmr.msra.gmra.mrb[178].mxu0 %v7494_v8  ;;  %v7646_v8 = vld [vmem:[%s21417_s13 + $0xd50] sm:$0xff] }
 0xbf9   : > { %7572 = vmatprep.mubr.f32.mxu0 %v7497_v13  ;;  %12358 = vmatpush1.bf16.msra.mxu0 %v12357_v60  ;;  %v7644_v60 = vld [vmem:[%s21417_s13 + $0xd40] sm:$0xff] }
 0xbfa   : > { %12360 = vmatprep.subr.bf16.mxu0 %v12359_v35  ;;  %v7649_v35 = vld [vmem:[%s21417_s13 + $0xd68] sm:$0xff]  ;;  %v12397_v41 = vpack.c.bf16 %v7646_v8, %v7644_v60  ;;  %v12427_v60 = vpack.c.bf16 %v7808_v19, %v7806_v5  ;;  %v7805_v8 = vld [vmem:[%s21417_s13 + $0xe40] sm:$0xff]  ;;  %v8341_v5 = vld [vmem:[%s21419_s15 + $0x290] sm:$0xff] }
 0xbfb   : > { %v12399_v13 = vpack.c.bf16 %v7651_v40, %v7649_v35  ;;  %v7807_v35 = vld [vmem:[%s21417_s13 + $0xe50] sm:$0xff] }
 0xbfc   : > { %7573 = vmatmul.mubr.f32.gmra.mrb[180].mxu0 %v7496_v16  ;;  %v7655_v16 = vld [vmem:[%s21417_s13 + $0xd98] sm:$0xff] }
 0xbfd   : > { %12362 = vmatpush1.bf16.msra.mxu0 %v12361_v55  ;;  %7740 = vmatprep.mubr.f32.mxu0 %v13892_v59  ;;  %v7653_v55 = vld [vmem:[%s21417_s13 + $0xd88] sm:$0xff]  ;;  %v7654_v59 = vld [vmem:[%s21417_s13 + $0xd90] sm:$0xff] }
 0xbfe   : > { %12364 = vmatprep.subr.bf16.mxu0 %v12363_v48  ;;  %v12401_v48 = vpack.c.bf16 %v7650_v43, %v7648_v46  ;;  %v12403_v57 = vpack.c.bf16 %v7655_v16, %v7653_v55  ;;  %v7809_v46 = vld [vmem:[%s21417_s13 + $0xe60] sm:$0xff]  ;;  %v7811_v43 = vld [vmem:[%s21417_s13 + $0xe70] sm:$0xff]  ;;  %v8324_v55 = vld [vmem:[%s21419_s15 + $0x208] sm:$0xff] }
 0xbff   : > { %v8326_v16 = vld [vmem:[%s21419_s15 + $0x218] sm:$0xff] }
 0xc01   : > { %12366 = vmatpush1.bf16.msra.mxu0 %v12365_v24  ;;  %v12405_v24 = vpack.c.bf16 %v7654_v59, %v7652_v17  ;;  %v12547_v17 = vpack.c.bf16 %v8326_v16, %v8324_v55  ;;  %v8325_v59 = vld [vmem:[%s21419_s15 + $0x210] sm:$0xff] }
 0xc02   : > { %12368 = vmatprep.subr.bf16.mxu0 %v12367_v47  ;;  %v12407_v47 = vpack.c.bf16 %v7659_v58, %v7657_v37  ;;  %v8328_v37 = vld [vmem:[%s21419_s15 + $0x228] sm:$0xff]  ;;  %v8330_v58 = vld [vmem:[%s21419_s15 + $0x238] sm:$0xff]  ;;  %v8345_v55 = vld [vmem:[%s21419_s15 + $0x2b0] sm:$0xff] }
 0xc03   : > { %12548 = vmatprep.subr.bf16.mxu1 %v12547_v17  ;;  %v8350_v17 = vld [vmem:[%s21419_s15 + $0x2d8] sm:$0xff] }
 0xc05   : > { %12370 = vmatpush1.bf16.msra.mxu0 %v12369_v30  ;;  %v12409_v30 = vpack.c.bf16 %v7658_v29, %v7656_v3  ;;  %v12551_v3 = vpack.c.bf16 %v8330_v58, %v8328_v37  ;;  %v8327_v29 = vld [vmem:[%s21419_s15 + $0x220] sm:$0xff]  ;;  %v7832_v37 = vld [vmem:[%s21417_s13 + $0xf18] sm:$0xff] }
 0xc06   : > { %12372 = vmatprep.subr.bf16.mxu0 %v12371_v61  ;;  %v12411_v61 = vpack.c.bf16 %v7663_v32, %v7661_v9  ;;  %v8329_v9 = vld [vmem:[%s21419_s15 + $0x230] sm:$0xff]  ;;  %v8332_v32 = vld [vmem:[%s21419_s15 + $0x248] sm:$0xff] }
 0xc09   : > { %12374 = vmatpush1.bf16.msra.mxu0 %v12373_v38  ;;  %v12413_v38 = vpack.c.bf16 %v7662_v18, %v7660_v34  ;;  %v8334_v34 = vld [vmem:[%s21419_s15 + $0x258] sm:$0xff]  ;;  %v12553_v18 = vpack.c.bf16 %v8329_v9, %v8327_v29  ;;  %v8347_v29 = vld [vmem:[%s21419_s15 + $0x2c0] sm:$0xff]  ;;  %v8349_v9 = vld [vmem:[%s21419_s15 + $0x2d0] sm:$0xff] }
 0xc0a   : > { %12376 = vmatprep.subr.bf16.mxu0 %v12375_v10  ;;  %v12415_v10 = vpack.c.bf16 %v7667_v22, %v7665_v36  ;;  %v12433_v36 = vpack.c.bf16 %v7811_v43, %v7809_v46  ;;  %v7813_v22 = vld [vmem:[%s21417_s13 + $0xe80] sm:$0xff] }
 0xc0b   : > { %v8343_v43 = vld [vmem:[%s21419_s15 + $0x2a0] sm:$0xff] }
 0xc0c   : > { %v12569_v58 = vpack.c.bf16 %v8345_v55, %v8343_v43  ;;  %v7847_v43 = vld [vmem:[%s21417_s13 + $0xf90] sm:$0xff]  ;;  %v7850_v55 = vld [vmem:[%s21417_s13 + $0xfa8] sm:$0xff] }
 0xc0d   : > { %12378 = vmatpush1.bf16.msra.mxu0 %v12377_v49  ;;  %v13899_v49 = vld [vmem:[#allocation6 + $0x30] ss:$8 sps:$4 sm:$0xee]  }
 0xc0e   : > { %12380 = vmatprep.subr.bf16.mxu0 %v12379_v42  ;;  %v13901_v42 = vld [vmem:[#allocation6 + $0x34] ss:$8 sps:$4 sm:$0x11]   ;;  %v10070_v31 = vrot.slane %v13899_v49, 9 }
 0xc0f   : > { %v7787_v27 = vrot.slane %v13901_v42, 5  ;;  %v8338_v49 = vld [vmem:[%s21419_s15 + $0x278] sm:$0xff]  ;;  %v7818_v42 = vld [vmem:[%s21417_s13 + $0xea8] sm:$0xff] }
 0xc11   : > { %12382 = vmatpush1.bf16.msra.mxu0 %v12381_v26  ;;  %v7799_v26 = vld [vmem:[%s21417_s13 + $0xe10] sm:$0xff]  ;;  %v19187_v44 = vsel %vm17945_vm7, %v10070_v31, %v7787_v27  ;;  %v8340_v27 = vld [vmem:[%s21419_s15 + $0x288] sm:$0xff] }
 0xc12   : > { %12384 = vmatprep.subr.bf16.mxu0 %v12383_v62  ;;  %v13898_v62 = vld [vmem:[#allocation6 + $0x24] ss:$8 sps:$4 sm:$0x11]   ;;  %v7819_v31 = vld [vmem:[%s21417_s13 + $0xeb0] sm:$0xff] }
 0xc15   : > { %12386 = vmatpush1.bf16.msra.mxu0 %v12385_v63  ;;  %v12421_v63 = vpack.c.bf16 %v7799_v26, %v7797_v1  ;;  %v7817_v1 = vld [vmem:[%s21417_s13 + $0xea0] sm:$0xff]  ;;  %v12559_v26 = vpack.c.bf16 %v8338_v49, %v8336_v56  ;;  %v7835_v49 = vld [vmem:[%s21417_s13 + $0xf30] sm:$0xff] }
 0xc16   : > { %12388 = vmatprep.subr.bf16.mxu0 %v12387_v11  ;;  %v13893_v11 = vld [vmem:[#allocation6 + $0x20] ss:$16 sps:$4 sm:$0xff]   ;;  %v12441_v0 = vpack.c.bf16 %v7819_v31, %v7817_v1 }
 0xc17   : > { %v8357_v31 = vld [vmem:[%s21419_s15 + $0x310] sm:$0xff] }
 0xc19   : > { %12390 = vmatpush1.bf16.msra.mxu0 %v12389_v39  ;;  %v7783_v39 = vrot.slane %v13898_v62, 5  ;;  %v8335_v62 = vld [vmem:[%s21419_s15 + $0x260] sm:$0xff] }
 0xc1a   : > { %12392 = vmatprep.subr.bf16.mxu0 %v12391_v14  ;;  %v13894_v14 = vld [vmem:[#allocation6 + $0x48] ss:$16 sps:$4 sm:$0xff]   ;;  %v12561_v28 = vpack.c.bf16 %v8337_v21, %v8335_v62  ;;  %v7837_v62 = vld [vmem:[%s21417_s13 + $0xf40] sm:$0xff] }
 0xc1d   : > { %12394 = vmatpush1.bf16.msra.mxu0 %v12393_v20  ;;  %v13895_v20 = vld [vmem:[#allocation6 + $0x40] ss:$16 sps:$4 sm:$0xff]  }
 0xc1e   : > { %12396 = vmatprep.subr.bf16.mxu0 %v12395_v12  ;;  %v19191_v12 = vsel %vm17945_vm7, %v10069_v4, %v7783_v39  ;;  %v7821_v4 = vld [vmem:[%s21417_s13 + $0xec0] sm:$0xff] }
 0xc1f   : > { %v7862_v40 = vcombine.high %v19191_v12, %v19187_v44 }
 0xc21   : > { %12398 = vmatpush1.bf16.msra.mxu0 %v12397_v41  ;;  %v7810_v41 = vld [vmem:[%s21417_s13 + $0xe68] sm:$0xff] }
 0xc22   : > { %12400 = vmatprep.subr.bf16.mxu0 %v12399_v13  ;;  %v7812_v13 = vld [vmem:[%s21417_s13 + $0xe78] sm:$0xff] }
 0xc25   : > { %12402 = vmatpush1.bf16.msra.mxu0 %v12401_v48  ;;  %v8323_v48 = vld [vmem:[%s21419_s15 + $0x200] sm:$0xff] }
 0xc26   : > { %12404 = vmatprep.subr.bf16.mxu0 %v12403_v57  ;;  %v12429_v57 = vpack.c.bf16 %v7807_v35, %v7805_v8  ;;  %v7826_v8 = vld [vmem:[%s21417_s13 + $0xee8] sm:$0xff]  ;;  %v7828_v35 = vld [vmem:[%s21417_s13 + $0xef8] sm:$0xff] }
 0xc27   : > { %v12447_v16 = vpack.c.bf16 %v7828_v35, %v7826_v8  ;;  %v7846_v8 = vld [vmem:[%s21417_s13 + $0xf88] sm:$0xff]  ;;  %v7848_v35 = vld [vmem:[%s21417_s13 + $0xf98] sm:$0xff] }
 0xc29   : > { %12406 = vmatpush1.bf16.msra.mxu0 %v12405_v24  ;;  %v12431_v24 = vpack.c.bf16 %v7812_v13, %v7810_v41  ;;  %v7825_v13 = vld [vmem:[%s21417_s13 + $0xee0] sm:$0xff] }
 0xc2a   : > { %12408 = vmatprep.subr.bf16.mxu0 %v12407_v47  ;;  %v12549_v47 = vpack.c.bf16 %v8325_v59, %v8323_v48  ;;  %v7827_v48 = vld [vmem:[%s21417_s13 + $0xef0] sm:$0xff]  ;;  %v7830_v59 = vld [vmem:[%s21417_s13 + $0xf08] sm:$0xff] }
 0xc2c   : > { %12550 = vmatpush1.bf16.msra.mxu1 %v12549_v47  ;;  %v7829_v47 = vld [vmem:[%s21417_s13 + $0xf00] sm:$0xff] }
 0xc2d   : > { %12410 = vmatpush1.bf16.msra.mxu0 %v12409_v30  ;;  %v7814_v30 = vld [vmem:[%s21417_s13 + $0xe88] sm:$0xff]  ;;  %12552 = vmatprep.subr.bf16.mxu1 %v12551_v3 }
 0xc2e   : > { %12412 = vmatprep.subr.bf16.mxu0 %v12411_v61  ;;  %v7816_v61 = vld [vmem:[%s21417_s13 + $0xe98] sm:$0xff] }
 0xc2f   : > { %v12435_v15 = vpack.c.bf16 %v7816_v61, %v7814_v30  ;;  %v7831_v30 = vld [vmem:[%s21417_s13 + $0xf10] sm:$0xff]  ;;  %v8352_v61 = vld [vmem:[%s21419_s15 + $0x2e8] sm:$0xff] }
 0xc30   : > { %12554 = vmatpush1.bf16.msra.mxu1 %v12553_v18  ;;  %v7834_v18 = vld [vmem:[%s21417_s13 + $0xf28] sm:$0xff] }
 0xc31   : > { %12414 = vmatpush1.bf16.msra.mxu0 %v12413_v38  ;;  %v12555_v38 = vpack.c.bf16 %v8334_v34, %v8332_v32  ;;  %v12451_v32 = vpack.c.bf16 %v7832_v37, %v7830_v59  ;;  %v8354_v34 = vld [vmem:[%s21419_s15 + $0x2f8] sm:$0xff]  ;;  %v7851_v59 = vld [vmem:[%s21417_s13 + $0xfb0] sm:$0xff]  ;;  %v7854_v37 = vld [vmem:[%s21417_s13 + $0xfc8] sm:$0xff] }
 0xc32   : > { %12416 = vmatprep.subr.bf16.mxu0 %v12415_v10  ;;  %v8331_v10 = vld [vmem:[%s21419_s15 + $0x240] sm:$0xff] }
 0xc33   : > { %v12557_v7 = vpack.c.bf16 %v8333_v25, %v8331_v10  ;;  %12556 = vmatprep.subr.bf16.mxu1 %v12555_v38  ;;  %v12453_v38 = vpack.c.bf16 %v7831_v30, %v7829_v47  ;;  %v7833_v10 = vld [vmem:[%s21417_s13 + $0xf20] sm:$0xff]  ;;  %v12575_v25 = vpack.c.bf16 %v8354_v34, %v8352_v61  ;;  %v13905_v47 = vld [vmem:[#allocation6 + $0x50] ss:$8 sps:$4 sm:$0xee]   ;;  %v7858_v61 = vld [vmem:[%s21417_s13 + $0xfe8] sm:$0xff] }
 0xc34   : > { %v13902_v30 = vld [vmem:[#allocation6 + $0x40] ss:$8 sps:$4 sm:$0xee]   ;;  %v7860_v34 = vld [vmem:[%s21417_s13 + $0xff8] sm:$0xff] }
 0xc35   : > { %12418 = vmatpush1.bf16.msra.mxu0 %v12417_v54  ;;  %v7820_v54 = vld [vmem:[%s21417_s13 + $0xeb8] sm:$0xff]  ;;  %12558 = vmatpush1.bf16.msra.mxu1 %v12557_v7  ;;  %v7838_v7 = vld [vmem:[%s21417_s13 + $0xf48] sm:$0xff] }
 0xc36   : > { %12420 = vmatprep.subr.bf16.mxu0 %v12419_v53  ;;  %v12437_v53 = vpack.c.bf16 %v7815_v23, %v7813_v22  ;;  %v12439_v33 = vpack.c.bf16 %v7820_v54, %v7818_v42  ;;  %12560 = vmatprep.subr.bf16.mxu1 %v12559_v26  ;;  %v12573_v22 = vpack.c.bf16 %v8349_v9, %v8347_v29  ;;  %v8353_v23 = vld [vmem:[%s21419_s15 + $0x2f0] sm:$0xff]  ;;  %v8356_v42 = vld [vmem:[%s21419_s15 + $0x308] sm:$0xff]  ;;  %v8358_v54 = vld [vmem:[%s21419_s15 + $0x318] sm:$0xff] }
 0xc37   : > { %v12457_v26 = vpack.c.bf16 %v7835_v49, %v7833_v10  ;;  %v12579_v21 = vpack.c.bf16 %v8358_v54, %v8356_v42  ;;  %v7853_v9 = vld [vmem:[%s21417_s13 + $0xfc0] sm:$0xff]  ;;  %v7859_v10 = vld [vmem:[%s21417_s13 + $0xff0] sm:$0xff]  ;;  %v10072_v49 = vrot.slane %v13905_v47, 9 }
 0xc38   : > { %7741 = vmatmul.mubr.f32.vlgmr.msra.gmra.mrb[178].mxu0 %v13893_v11  ;;  %v7822_v11 = vld [vmem:[%s21417_s13 + $0xec8] sm:$0xff]  ;;  %v13911_v54 = vld [vmem:[#allocation6 + $0x30] ss:$8 sps:$4 sm:$0xcc]  }
 0xc39   : > { %7746 = vmatprep.mubr.f32.mxu0 %v13894_v14  ;;  %12422 = vmatpush1.bf16.msra.mxu0 %v12421_v63  ;;  %v8342_v63 = vld [vmem:[%s21419_s15 + $0x298] sm:$0xff]  ;;  %v8339_v14 = vld [vmem:[%s21419_s15 + $0x280] sm:$0xff] }
 0xc3a   : > { %12424 = vmatprep.subr.bf16.mxu0 %v12423_v45  ;;  %v7824_v45 = vld [vmem:[%s21417_s13 + $0xed8] sm:$0xff]  ;;  %v12563_v39 = vpack.c.bf16 %v8342_v63, %v8340_v27  ;;  %12562 = vmatpush1.bf16.msra.mxu1 %v12561_v28  ;;  %v7839_v63 = vld [vmem:[%s21417_s13 + $0xf50] sm:$0xff]  ;;  %v7842_v28 = vld [vmem:[%s21417_s13 + $0xf68] sm:$0xff] }
 0xc3b   : > { %v12443_v19 = vpack.c.bf16 %v7824_v45, %v7822_v11  ;;  %v8360_v11 = vld [vmem:[%s21419_s15 + $0x328] sm:$0xff]  ;;  %v8362_v45 = vld [vmem:[%s21419_s15 + $0x338] sm:$0xff] }
 0xc3c   : > { %7747 = vmatmul.mubr.f32.gmra.mrb[180].mxu0 %v13895_v20  ;;  %v8344_v20 = vld [vmem:[%s21419_s15 + $0x2a8] sm:$0xff]  ;;  %12564 = vmatprep.subr.bf16.mxu1 %v12563_v39  ;;  %v12461_v39 = vpack.c.bf16 %v7839_v63, %v7837_v62  ;;  %v7990_v62 = vld [vmem:[%s21417_s13 + $0x1000] sm:$0xff] }
 0xc3d   : > { %12426 = vmatpush1.bf16.msra.mxu0 %v12425_v52  ;;  %7933 = vmatprep.mubr.f32.mxu0 %v7862_v40  ;;  %v7823_v52 = vld [vmem:[%s21417_s13 + $0xed0] sm:$0xff]  ;;  %v12565_v40 = vpack.c.bf16 %v8341_v5, %v8339_v14  ;;  %v12583_v14 = vpack.c.bf16 %v8362_v45, %v8360_v11  ;;  %v8359_v5 = vld [vmem:[%s21419_s15 + $0x320] sm:$0xff]  ;;  %v10074_v45 = vrot.slane %v13911_v54, 10 }
 0xc3e   : > { %12428 = vmatprep.subr.bf16.mxu0 %v12427_v60  ;;  %v8346_v60 = vld [vmem:[%s21419_s15 + $0x2b8] sm:$0xff]  ;;  %v12445_v41 = vpack.c.bf16 %v7823_v52, %v7821_v4  ;;  %v8018_v54 = vld [vmem:[%s21417_s13 + $0x10e0] sm:$0xff] }
 0xc3f   : > { %v12567_v46 = vpack.c.bf16 %v8346_v60, %v8344_v20  ;;  %12566 = vmatpush1.bf16.msra.mxu1 %v12565_v40  ;;  %v7841_v20 = vld [vmem:[%s21417_s13 + $0xf60] sm:$0xff]  ;;  %v7843_v60 = vld [vmem:[%s21417_s13 + $0xf70] sm:$0xff] }
 0xc41   : > { %12430 = vmatpush1.bf16.msra.mxu0 %v12429_v57  ;;  %v8348_v57 = vld [vmem:[%s21419_s15 + $0x2c8] sm:$0xff]  ;;  %12568 = vmatprep.subr.bf16.mxu1 %v12567_v46  ;;  %v7845_v46 = vld [vmem:[%s21417_s13 + $0xf80] sm:$0xff] }
 0xc42   : > { %12432 = vmatprep.subr.bf16.mxu0 %v12431_v24  ;;  %v12449_v24 = vpack.c.bf16 %v7827_v48, %v7825_v13  ;;  %v12571_v3 = vpack.c.bf16 %v8350_v17, %v8348_v57  ;;  %v12467_v13 = vpack.c.bf16 %v7848_v35, %v7846_v8  ;;  %v12469_v48 = vpack.c.bf16 %v7847_v43, %v7845_v46  ;;  %v7849_v17 = vld [vmem:[%s21417_s13 + $0xfa0] sm:$0xff]  ;;  %v8000_v46 = vld [vmem:[%s21417_s13 + $0x1050] sm:$0xff] }
 0xc43   : > { %12570 = vmatpush1.bf16.msra.mxu1 %v12569_v58  ;;  %v7856_v58 = vld [vmem:[%s21417_s13 + $0xfd8] sm:$0xff] }
 0xc44   : > { %12572 = vmatprep.subr.bf16.mxu1 %v12571_v3  ;;  %v13907_v3 = vld [vmem:[#allocation6 + $0x54] ss:$8 sps:$4 sm:$0x11]   ;;  %v12475_v29 = vpack.c.bf16 %v7856_v58, %v7854_v37  ;;  %v8007_v37 = vld [vmem:[%s21417_s13 + $0x1088] sm:$0xff] }
 0xc45   : > { %12434 = vmatpush1.bf16.msra.mxu0 %v12433_v36  ;;  %v7836_v36 = vld [vmem:[%s21417_s13 + $0xf38] sm:$0xff]  ;;  %v7795_v42 = vrot.slane %v13907_v3, 5  ;;  %v8006_v3 = vld [vmem:[%s21417_s13 + $0x1080] sm:$0xff] }
 0xc46   : > { %12436 = vmatprep.subr.bf16.mxu0 %v12435_v15  ;;  %v8351_v15 = vld [vmem:[%s21419_s15 + $0x2e0] sm:$0xff]  ;;  %v12455_v56 = vpack.c.bf16 %v7836_v36, %v7834_v18  ;;  %v8009_v58 = vld [vmem:[%s21417_s13 + $0x1098] sm:$0xff] }
 0xc47   : > { %12574 = vmatpush1.bf16.msra.mxu1 %v12573_v22  ;;  %v12577_v1 = vpack.c.bf16 %v8353_v23, %v8351_v15  ;;  %v13904_v18 = vld [vmem:[#allocation6 + $0x44] ss:$8 sps:$4 sm:$0x11]   ;;  %v12479_v22 = vpack.c.bf16 %v7860_v34, %v7858_v61  ;;  %v7993_v15 = vld [vmem:[%s21417_s13 + $0x1018] sm:$0xff]  ;;  %v10071_v23 = vrot.slane %v13902_v30, 9  ;;  %v7796_v11 = vsel %vm17945_vm7, %v10072_v49, %v7795_v42 }
 0xc48   : > { %12576 = vmatprep.subr.bf16.mxu1 %v12575_v25  ;;  %v7991_v25 = vld [vmem:[%s21417_s13 + $0x1008] sm:$0xff]  ;;  %v12499_v47 = vpack.c.bf16 %v8009_v58, %v8007_v37  ;;  %v8010_v34 = vld [vmem:[%s21417_s13 + $0x10a0] sm:$0xff]  ;;  %v8044_v58 = vld [vmem:[%s21417_s13 + $0x11b0] sm:$0xff] }
 0xc49   : > { %12438 = vmatpush1.bf16.msra.mxu0 %v12437_v53  ;;  %v7840_v53 = vld [vmem:[%s21417_s13 + $0xf58] sm:$0xff]  ;;  %v8042_v37 = vld [vmem:[%s21417_s13 + $0x11a0] sm:$0xff] }
 0xc4a   : > { %12440 = vmatprep.subr.bf16.mxu0 %v12439_v33  ;;  %v8355_v33 = vld [vmem:[%s21419_s15 + $0x300] sm:$0xff]  ;;  %v12459_v27 = vpack.c.bf16 %v7840_v53, %v7838_v7  ;;  %v13913_v7 = vld [vmem:[#allocation6 + $0x34] ss:$8 sps:$4 sm:$0x33]  }
 0xc4b   : > { %12578 = vmatpush1.bf16.msra.mxu1 %v12577_v1  ;;  %v12581_v4 = vpack.c.bf16 %v8357_v31, %v8355_v33  ;;  %v13908_v1 = vld [vmem:[#allocation6 + $0x20] ss:$8 sps:$4 sm:$0xcc]   ;;  %v13910_v33 = vld [vmem:[#allocation6 + $0x24] ss:$8 sps:$4 sm:$0x33]  }
 0xc4c   : > { %12580 = vmatprep.subr.bf16.mxu1 %v12579_v21  ;;  %v7992_v21 = vld [vmem:[%s21417_s13 + $0x1010] sm:$0xff]  ;;  %v7995_v31 = vld [vmem:[%s21417_s13 + $0x1028] sm:$0xff] }
 0xc4d   : > { %12442 = vmatpush1.bf16.msra.mxu0 %v12441_v0  ;;  %v7844_v0 = vld [vmem:[%s21417_s13 + $0xf78] sm:$0xff] }
 0xc4e   : > { %12444 = vmatprep.subr.bf16.mxu0 %v12443_v19  ;;  %v8361_v19 = vld [vmem:[%s21419_s15 + $0x330] sm:$0xff]  ;;  %v12463_v52 = vpack.c.bf16 %v7844_v0, %v7842_v28  ;;  %v7980_v28 = vrot.slane %v13913_v7, 6  ;;  %v12485_v0 = vpack.c.bf16 %v7992_v21, %v7990_v62  ;;  %v8022_v21 = vld [vmem:[%s21417_s13 + $0x1100] sm:$0xff] }
 0xc4f   : > { %12582 = vmatpush1.bf16.msra.mxu1 %v12581_v4  ;;  %v12585_v40 = vpack.c.bf16 %v8361_v19, %v8359_v5  ;;  %v7861_v4 = vcombine.low %v19191_v12, %v19187_v44  ;;  %v7996_v5 = vld [vmem:[%s21417_s13 + $0x1030] sm:$0xff]  ;;  %v10073_v19 = vrot.slane %v13908_v1, 10  ;;  %v8001_v44 = vld [vmem:[%s21417_s13 + $0x1058] sm:$0xff] }
 0xc50   : > { %12584 = vmatprep.subr.bf16.mxu1 %v12583_v14  ;;  %v7994_v14 = vld [vmem:[%s21417_s13 + $0x1020] sm:$0xff]  ;;  %v19515_v12 = vsel %vm18161_vm10, %v10074_v45, %v7980_v28  ;;  %v8020_v7 = vld [vmem:[%s21417_s13 + $0x10f0] sm:$0xff]  ;;  %v8025_v1 = vld [vmem:[%s21417_s13 + $0x1118] sm:$0xff] }
 0xc51   : > { %12446 = vmatpush1.bf16.msra.mxu0 %v12445_v41  ;;  %v12465_v41 = vpack.c.bf16 %v7843_v60, %v7841_v20  ;;  %v7999_v60 = vld [vmem:[%s21417_s13 + $0x1048] sm:$0xff]  ;;  %v12489_v8 = vpack.c.bf16 %v7996_v5, %v7994_v14  ;;  %v8026_v45 = vld [vmem:[%s21417_s13 + $0x1120] sm:$0xff]  ;;  %v8028_v28 = vld [vmem:[%s21417_s13 + $0x1130] sm:$0xff] }
 0xc52   : > { %12448 = vmatprep.subr.bf16.mxu0 %v12447_v16  ;;  %v7852_v16 = vld [vmem:[%s21417_s13 + $0xfb8] sm:$0xff]  ;;  %v8030_v5 = vld [vmem:[%s21417_s13 + $0x1140] sm:$0xff] }
 0xc53   : > { %12586 = vmatpush1.bf16.msra.mxu1 %v12585_v40  ;;  %v12471_v57 = vpack.c.bf16 %v7852_v16, %v7850_v55  ;;  %v8003_v55 = vld [vmem:[%s21417_s13 + $0x1068] sm:$0xff]  ;;  %v8005_v16 = vld [vmem:[%s21417_s13 + $0x1078] sm:$0xff] }
 0xc55   : > { %12450 = vmatpush1.bf16.msra.mxu0 %v12449_v24  ;;  %v12473_v24 = vpack.c.bf16 %v7851_v59, %v7849_v17  ;;  %v8002_v17 = vld [vmem:[%s21417_s13 + $0x1060] sm:$0xff]  ;;  %v8004_v59 = vld [vmem:[%s21417_s13 + $0x1070] sm:$0xff] }
 0xc56   : > { %12452 = vmatprep.subr.bf16.mxu0 %v12451_v32  ;;  %v7855_v32 = vld [vmem:[%s21417_s13 + $0xfd0] sm:$0xff] }
 0xc57   : > { %v12477_v36 = vpack.c.bf16 %v7855_v32, %v7853_v9  ;;  %v8011_v9 = vld [vmem:[%s21417_s13 + $0x10a8] sm:$0xff]  ;;  %v8013_v32 = vld [vmem:[%s21417_s13 + $0x10b8] sm:$0xff] }
 0xc58   : > { %v12503_v61 = vpack.c.bf16 %v8013_v32, %v8011_v9  ;;  %v8046_v9 = vld [vmem:[%s21417_s13 + $0x11c0] sm:$0xff]  ;;  %v8048_v32 = vld [vmem:[%s21417_s13 + $0x11d0] sm:$0xff] }
 0xc59   : > { %12454 = vmatpush1.bf16.msra.mxu0 %v12453_v38  ;;  %v7857_v38 = vld [vmem:[%s21417_s13 + $0xfe0] sm:$0xff] }
 0xc5a   : > { %12456 = vmatprep.subr.bf16.mxu0 %v12455_v56  ;;  %v7791_v56 = vrot.slane %v13904_v18, 5  ;;  %v12481_v53 = vpack.c.bf16 %v7859_v10, %v7857_v38  ;;  %v8012_v18 = vld [vmem:[%s21417_s13 + $0x10b0] sm:$0xff] }
 0xc5b   : > { %v12505_v38 = vpack.c.bf16 %v8012_v18, %v8010_v34  ;;  %v8053_v34 = vld [vmem:[%s21417_s13 + $0x11f8] sm:$0xff] }
 0xc5c   : > { %v7792_v63 = vsel %vm17945_vm7, %v10071_v23, %v7791_v56  ;;  %v8019_v23 = vld [vmem:[%s21417_s13 + $0x10e8] sm:$0xff]  ;;  %v8021_v56 = vld [vmem:[%s21417_s13 + $0x10f8] sm:$0xff] }
 0xc5d   : > { %12458 = vmatpush1.bf16.msra.mxu0 %v12457_v26  ;;  %v12483_v26 = vpack.c.bf16 %v7993_v15, %v7991_v25  ;;  %v7864_v20 = vcombine.high %v7792_v63, %v7796_v11  ;;  %v7863_v35 = vcombine.low %v7792_v63, %v7796_v11  ;;  %v8014_v25 = vld [vmem:[%s21417_s13 + $0x10c0] sm:$0xff]  ;;  %v8016_v15 = vld [vmem:[%s21417_s13 + $0x10d0] sm:$0xff]  ;;  %v12511_v42 = vpack.c.bf16 %v8021_v56, %v8019_v23 }
 0xc5e   : > { %12460 = vmatprep.subr.bf16.mxu0 %v12459_v27  ;;  %v7997_v27 = vld [vmem:[%s21417_s13 + $0x1038] sm:$0xff]  ;;  %v12509_v49 = vpack.c.bf16 %v8016_v15, %v8014_v25  ;;  %v8050_v25 = vld [vmem:[%s21417_s13 + $0x11e0] sm:$0xff]  ;;  %v8052_v15 = vld [vmem:[%s21417_s13 + $0x11f0] sm:$0xff] }
 0xc5f   : > { %v13919_v18 = vld [vmem:[#allocation6 + $0x54] ss:$8 sps:$4 sm:$0x33]  }
 0xc61   : > { %12462 = vmatpush1.bf16.msra.mxu0 %v12461_v39  ;;  %v12487_v39 = vpack.c.bf16 %v7997_v27, %v7995_v31  ;;  %v8027_v31 = vld [vmem:[%s21417_s13 + $0x1128] sm:$0xff]  ;;  %v8029_v27 = vld [vmem:[%s21417_s13 + $0x1138] sm:$0xff] }
 0xc62   : > { %12464 = vmatprep.subr.bf16.mxu0 %v12463_v52  ;;  %v7976_v52 = vrot.slane %v13910_v33, 6  ;;  %v8024_v33 = vld [vmem:[%s21417_s13 + $0x1110] sm:$0xff]  ;;  %v12519_v11 = vpack.c.bf16 %v8029_v27, %v8027_v31  ;;  %v8363_v31 = vld [vmem:[%s21419_s15 + $0x340] sm:$0xff] }
 0xc63   : > { %v12517_v63 = vpack.c.bf16 %v8024_v33, %v8022_v21  ;;  %v8364_v21 = vld [vmem:[%s21419_s15 + $0x348] sm:$0xff]  ;;  %v8366_v33 = vld [vmem:[%s21419_s15 + $0x358] sm:$0xff] }
 0xc64   : > { %v19519_v40 = vsel %vm18161_vm10, %v10073_v19, %v7976_v52  ;;  %v8032_v19 = vld [vmem:[%s21417_s13 + $0x1150] sm:$0xff]  ;;  %v8035_v52 = vld [vmem:[%s21417_s13 + $0x1168] sm:$0xff]  ;;  %v12587_v27 = vpack.c.bf16 %v8366_v33, %v8364_v21 }
 0xc65   : > { %12466 = vmatpush1.bf16.msra.mxu0 %v12465_v41  ;;  %v12491_v41 = vpack.c.bf16 %v8001_v44, %v7999_v60  ;;  %v8055_v43 = vcombine.high %v19519_v40, %v19515_v12  ;;  %v12525_v60 = vpack.c.bf16 %v8032_v19, %v8030_v5  ;;  %v8371_v19 = vld [vmem:[%s21419_s15 + $0x380] sm:$0xff] }
 0xc66   : > { %12468 = vmatprep.subr.bf16.mxu0 %v12467_v13  ;;  %v7998_v13 = vld [vmem:[%s21417_s13 + $0x1040] sm:$0xff]  ;;  %12588 = vmatprep.subr.bf16.mxu1 %v12587_v27 }
 0xc69   : > { %12470 = vmatpush1.bf16.msra.mxu0 %v12469_v48  ;;  %v12493_v48 = vpack.c.bf16 %v8000_v46, %v7998_v13  ;;  %v8041_v13 = vld [vmem:[%s21417_s13 + $0x1198] sm:$0xff] }
 0xc6a   : > { %12472 = vmatprep.subr.bf16.mxu0 %v12471_v57  ;;  %v12495_v57 = vpack.c.bf16 %v8005_v16, %v8003_v55  ;;  %v8038_v55 = vld [vmem:[%s21417_s13 + $0x1180] sm:$0xff]  ;;  %v8040_v16 = vld [vmem:[%s21417_s13 + $0x1190] sm:$0xff] }
 0xc6d   : > { %12474 = vmatpush1.bf16.msra.mxu0 %v12473_v24  ;;  %v12497_v24 = vpack.c.bf16 %v8004_v59, %v8002_v17  ;;  %v12533_v17 = vpack.c.bf16 %v8040_v16, %v8038_v55  ;;  %v8379_v16 = vld [vmem:[%s21419_s15 + $0x3c0] sm:$0xff] }
 0xc6e   : > { %12476 = vmatprep.subr.bf16.mxu0 %v12475_v29  ;;  %v8008_v29 = vld [vmem:[%s21417_s13 + $0x1090] sm:$0xff] }
 0xc6f   : > { %v12501_v30 = vpack.c.bf16 %v8008_v29, %v8006_v3  ;;  %v12537_v3 = vpack.c.bf16 %v8044_v58, %v8042_v37  ;;  %v8383_v58 = vld [vmem:[%s21419_s15 + $0x3e0] sm:$0xff] }
 0xc71   : > { %12478 = vmatpush1.bf16.msra.mxu0 %v12477_v36  ;;  %v8015_v36 = vld [vmem:[%s21417_s13 + $0x10c8] sm:$0xff] }
 0xc72   : > { %12480 = vmatprep.subr.bf16.mxu0 %v12479_v22  ;;  %v8017_v22 = vld [vmem:[%s21417_s13 + $0x10d8] sm:$0xff] }
 0xc73   : > { %v12507_v10 = vpack.c.bf16 %v8017_v22, %v8015_v36  ;;  %v13914_v36 = vld [vmem:[#allocation6 + $0x40] ss:$8 sps:$4 sm:$0xcc]   ;;  %v13916_v22 = vld [vmem:[#allocation6 + $0x44] ss:$8 sps:$4 sm:$0x33]  }
 0xc74   : > { %v10075_v23 = vrot.slane %v13914_v36, 10  ;;  %v7984_v56 = vrot.slane %v13916_v22, 6 }
 0xc75   : > { %12482 = vmatpush1.bf16.msra.mxu0 %v12481_v53  ;;  %v8023_v53 = vld [vmem:[%s21417_s13 + $0x1108] sm:$0xff] }
 0xc76   : > { %12484 = vmatprep.subr.bf16.mxu0 %v12483_v26  ;;  %v12513_v26 = vpack.c.bf16 %v8020_v7, %v8018_v54  ;;  %v12515_v62 = vpack.c.bf16 %v8025_v1, %v8023_v53  ;;  %v12545_v54 = vpack.c.bf16 %v8052_v15, %v8050_v25  ;;  %v7985_v7 = vsel %vm18161_vm10, %v10075_v23, %v7984_v56 }
 0xc77   : > { %v8054_v1 = vcombine.low %v19519_v40, %v19515_v12  ;;  %v8365_v12 = vld [vmem:[%s21419_s15 + $0x350] sm:$0xff] }
 0xc78   : > { %7934 = vmatmul.mubr.f32.vlgmr.msra.gmra.mrb[178].mxu0 %v7861_v4  ;;  %v8033_v4 = vld [vmem:[%s21417_s13 + $0x1158] sm:$0xff]  ;;  %v12589_v40 = vpack.c.bf16 %v8365_v12, %v8363_v31 }
 0xc79   : > { %7939 = vmatprep.mubr.f32.mxu0 %v7864_v20  ;;  %12486 = vmatpush1.bf16.msra.mxu0 %v12485_v0  ;;  %v8031_v0 = vld [vmem:[%s21417_s13 + $0x1148] sm:$0xff]  ;;  %v8037_v20 = vld [vmem:[%s21417_s13 + $0x1178] sm:$0xff] }
 0xc7a   : > { %12488 = vmatprep.subr.bf16.mxu0 %v12487_v39  ;;  %v12521_v39 = vpack.c.bf16 %v8028_v28, %v8026_v45  ;;  %v12523_v14 = vpack.c.bf16 %v8033_v4, %v8031_v0  ;;  %v12527_v44 = vpack.c.bf16 %v8037_v20, %v8035_v52  ;;  %12590 = vmatpush1.bf16.msra.mxu1 %v12589_v40  ;;  %v8367_v45 = vld [vmem:[%s21419_s15 + $0x360] sm:$0xff]  ;;  %v8369_v0 = vld [vmem:[%s21419_s15 + $0x370] sm:$0xff]  ;;  %v8372_v4 = vld [vmem:[%s21419_s15 + $0x388] sm:$0xff] }
 0xc7b   : > { %v8373_v52 = vld [vmem:[%s21419_s15 + $0x390] sm:$0xff]  ;;  %v8376_v20 = vld [vmem:[%s21419_s15 + $0x3a8] sm:$0xff] }
 0xc7c   : > { %7940 = vmatmul.mubr.f32.gmra.mrb[180].mxu0 %v7863_v35  ;;  %v8036_v35 = vld [vmem:[%s21417_s13 + $0x1170] sm:$0xff] }
 0xc7d   : > { %12490 = vmatpush1.bf16.msra.mxu0 %v12489_v8  ;;  %8126 = vmatprep.mubr.f32.mxu0 %v8055_v43  ;;  %v8034_v8 = vld [vmem:[%s21417_s13 + $0x1160] sm:$0xff] }
 0xc7e   : > { %12492 = vmatprep.subr.bf16.mxu0 %v12491_v41  ;;  %v8039_v41 = vld [vmem:[%s21417_s13 + $0x1188] sm:$0xff]  ;;  %v12529_v46 = vpack.c.bf16 %v8036_v35, %v8034_v8  ;;  %v8375_v35 = vld [vmem:[%s21419_s15 + $0x3a0] sm:$0xff] }
 0xc7f   : > { %v12531_v43 = vpack.c.bf16 %v8041_v13, %v8039_v41  ;;  %v8377_v41 = vld [vmem:[%s21419_s15 + $0x3b0] sm:$0xff]  ;;  %v8380_v13 = vld [vmem:[%s21419_s15 + $0x3c8] sm:$0xff] }
 0xc81   : > { %12494 = vmatpush1.bf16.msra.mxu0 %v12493_v48  ;;  %v8043_v48 = vld [vmem:[%s21417_s13 + $0x11a8] sm:$0xff] }
 0xc82   : > { %12496 = vmatprep.subr.bf16.mxu0 %v12495_v57  ;;  %v8045_v57 = vld [vmem:[%s21417_s13 + $0x11b8] sm:$0xff] }
 0xc83   : > { %v12535_v59 = vpack.c.bf16 %v8045_v57, %v8043_v48  ;;  %v8381_v48 = vld [vmem:[%s21419_s15 + $0x3d0] sm:$0xff]  ;;  %v8384_v57 = vld [vmem:[%s21419_s15 + $0x3e8] sm:$0xff] }
 0xc85   : > { %12498 = vmatpush1.bf16.msra.mxu0 %v12497_v24  ;;  %v8047_v24 = vld [vmem:[%s21417_s13 + $0x11c8] sm:$0xff] }
 0xc86   : > { %12500 = vmatprep.subr.bf16.mxu0 %v12499_v47  ;;  %v8049_v47 = vld [vmem:[%s21417_s13 + $0x11d8] sm:$0xff] }
 0xc87   : > { %v12539_v29 = vpack.c.bf16 %v8049_v47, %v8047_v24  ;;  %v8385_v24 = vld [vmem:[%s21419_s15 + $0x3f0] sm:$0xff]  ;;  %v8220_v47 = vld [vmem:[%s21419_s15 + $0x8] sm:$0xff] }
 0xc89   : > { %12502 = vmatpush1.bf16.msra.mxu0 %v12501_v30  ;;  %v13917_v30 = vld [vmem:[#allocation6 + $0x50] ss:$8 sps:$4 sm:$0xcc]  }
 0xc8a   : > { %12504 = vmatprep.subr.bf16.mxu0 %v12503_v61  ;;  %v8051_v61 = vld [vmem:[%s21417_s13 + $0x11e8] sm:$0xff] }
 0xc8d   : > { %12506 = vmatpush1.bf16.msra.mxu0 %v12505_v38  ;;  %v12541_v38 = vpack.c.bf16 %v8048_v32, %v8046_v9  ;;  %v8143_v32 = vld [vmem:[%s21418_s14] sm:$0x3] }
 0xc8e   : > { %12508 = vmatprep.subr.bf16.mxu0 %v12507_v10  ;;  %v12543_v10 = vpack.c.bf16 %v8053_v34, %v8051_v61  ;;  %v8152_v61 = vrot.slane %v8143_v32, %v17939_v50 }
 0xc91   : > { %12510 = vmatpush1.bf16.msra.mxu0 %v12509_v49  ;;  %v10076_v49 = vrot.slane %v13917_v30, 10  ;;  %v8148_v30 = vrot.slane %v8143_v32, %v17934_v51  ;;  %v8230_v32 = vld [vmem:[%s21419_s15 + $0x58] sm:$0xff] }
 0xc92   : > { %12512 = vmatprep.subr.bf16.mxu0 %v12511_v42  ;;  %v7988_v42 = vrot.slane %v13919_v18, 6 }
 0xc94   : > { %v7989_v53 = vsel %vm18161_vm10, %v10076_v49, %v7988_v42 }
 0xc95   : > { %12514 = vmatpush1.bf16.msra.mxu0 %v12513_v26  ;;  %v8057_v26 = vcombine.high %v7985_v7, %v7989_v53 }
 0xc96   : > { %12516 = vmatprep.subr.bf16.mxu0 %v12515_v62  ;;  %v8056_v62 = vcombine.low %v7985_v7, %v7989_v53 }
 0xc99   : > { %12518 = vmatpush1.bf16.msra.mxu0 %v12517_v63  ;;  %v8368_v63 = vld [vmem:[%s21419_s15 + $0x368] sm:$0xff] }
 0xc9a   : > { %12520 = vmatprep.subr.bf16.mxu0 %v12519_v11  ;;  %v8370_v11 = vld [vmem:[%s21419_s15 + $0x378] sm:$0xff] }
 0xc9b   : > { %v12591_v28 = vpack.c.bf16 %v8370_v11, %v8368_v63  ;;  %v13920_v63 = vld [vmem:[#allocation6] ss:$8 sps:$4 sm:$0xee]   ;;  %v13922_v11 = vld [vmem:[#allocation6 + $0x4] ss:$8 sps:$4 sm:$0x11]  }
 0xc9d   : > { %12522 = vmatpush1.bf16.msra.mxu0 %v12521_v39  ;;  %v8374_v39 = vld [vmem:[%s21419_s15 + $0x398] sm:$0xff]  ;;  %12592 = vmatprep.subr.bf16.mxu1 %v12591_v28 }
 0xc9e   : > { %12524 = vmatprep.subr.bf16.mxu0 %v12523_v14  ;;  %v12593_v14 = vpack.c.bf16 %v8369_v0, %v8367_v45  ;;  %v12595_v5 = vpack.c.bf16 %v8374_v39, %v8372_v4  ;;  %v10081_v39 = vrot.slane %v13920_v63, 9  ;;  %v8241_v63 = vld [vmem:[%s21419_s15 + $0xb0] sm:$0xff] }
 0xca0   : > { %12594 = vmatpush1.bf16.msra.mxu1 %v12593_v14  ;;  %v8309_v14 = vrot.slane %v13922_v11, 5  ;;  %v8244_v11 = vld [vmem:[%s21419_s15 + $0xc8] sm:$0xff] }
 0xca1   : > { %12526 = vmatpush1.bf16.msra.mxu0 %v12525_v60  ;;  %v8378_v60 = vld [vmem:[%s21419_s15 + $0x3b8] sm:$0xff]  ;;  %12596 = vmatprep.subr.bf16.mxu1 %v12595_v5 }
 0xca2   : > { %12528 = vmatprep.subr.bf16.mxu0 %v12527_v44  ;;  %v12597_v44 = vpack.c.bf16 %v8373_v52, %v8371_v19  ;;  %v12599_v8 = vpack.c.bf16 %v8378_v60, %v8376_v20  ;;  %v8219_v52 = vld [vmem:[%s21419_s15] sm:$0xff]  ;;  %v8310_v60 = vsel %vm17945_vm7, %v10081_v39, %v8309_v14  ;;  %v8245_v39 = vld [vmem:[%s21419_s15 + $0xd0] sm:$0xff]  ;;  %v8248_v14 = vld [vmem:[%s21419_s15 + $0xe8] sm:$0xff] }
 0xca4   : > { %12598 = vmatpush1.bf16.msra.mxu1 %v12597_v44 }
 0xca5   : > { %12530 = vmatpush1.bf16.msra.mxu0 %v12529_v46  ;;  %v8382_v46 = vld [vmem:[%s21419_s15 + $0x3d8] sm:$0xff]  ;;  %12600 = vmatprep.subr.bf16.mxu1 %v12599_v8 }
 0xca6   : > { %12532 = vmatprep.subr.bf16.mxu0 %v12531_v43  ;;  %v12601_v43 = vpack.c.bf16 %v8377_v41, %v8375_v35  ;;  %v12603_v55 = vpack.c.bf16 %v8382_v46, %v8380_v13  ;;  %v8221_v35 = vld [vmem:[%s21419_s15 + $0x10] sm:$0xff]  ;;  %v8224_v13 = vld [vmem:[%s21419_s15 + $0x28] sm:$0xff]  ;;  %v8226_v46 = vld [vmem:[%s21419_s15 + $0x38] sm:$0xff] }
 0xca8   : > { %12602 = vmatpush1.bf16.msra.mxu1 %v12601_v43 }
 0xca9   : > { %12534 = vmatpush1.bf16.msra.mxu0 %v12533_v17  ;;  %v8386_v17 = vld [vmem:[%s21419_s15 + $0x3f8] sm:$0xff]  ;;  %12604 = vmatprep.subr.bf16.mxu1 %v12603_v55 }
 0xcaa   : > { %12536 = vmatprep.subr.bf16.mxu0 %v12535_v59  ;;  %v12605_v59 = vpack.c.bf16 %v8381_v48, %v8379_v16  ;;  %v12607_v37 = vpack.c.bf16 %v8386_v17, %v8384_v57  ;;  %v12613_v17 = vpack.c.bf16 %v8221_v35, %v8219_v52  ;;  %v8247_v52 = vld [vmem:[%s21419_s15 + $0xe0] sm:$0xff] }
 0xcac   : > { %12606 = vmatpush1.bf16.msra.mxu1 %v12605_v59 }
 0xcad   : > { %12538 = vmatpush1.bf16.msra.mxu0 %v12537_v3  ;;  %v8222_v3 = vld [vmem:[%s21419_s15 + $0x18] sm:$0xff]  ;;  %12608 = vmatprep.subr.bf16.mxu1 %v12607_v37 }
 0xcae   : > { %12540 = vmatprep.subr.bf16.mxu0 %v12539_v29  ;;  %v12609_v29 = vpack.c.bf16 %v8385_v24, %v8383_v58  ;;  %v12611_v9 = vpack.c.bf16 %v8222_v3, %v8220_v47  ;;  %v12615_v58 = vpack.c.bf16 %v8226_v46, %v8224_v13  ;;  %v8223_v24 = vld [vmem:[%s21419_s15 + $0x20] sm:$0xff]  ;;  %v8253_v46 = vld [vmem:[%s21419_s15 + $0x110] sm:$0xff] }
 0xcaf   : > { %v8251_v13 = vld [vmem:[%s21419_s15 + $0x100] sm:$0xff] }
 0xcb0   : > { %12610 = vmatpush1.bf16.msra.mxu1 %v12609_v29  ;;  %v8225_v29 = vld [vmem:[%s21419_s15 + $0x30] sm:$0xff] }
 0xcb1   : > { %12542 = vmatpush1.bf16.msra.mxu0 %v12541_v38  ;;  %12612 = vmatprep.subr.bf16.mxu1 %v12611_v9  ;;  %v8228_v9 = vld [vmem:[%s21419_s15 + $0x48] sm:$0xff] }
 0xcb2   : > { %12544 = vmatprep.subr.bf16.mxu0 %v12543_v10 }
 0xcb5   : > { %12546 = vmatpush1.bf16.msra.mxu0 %v12545_v54 }
 0xcb8   : > { %8127 = vmatmul.mubr.f32.vlgmr.msra.gmra.mrb[178].mxu0 %v8054_v1 }
 0xcb9   : > { %8132 = vmatprep.mubr.f32.mxu0 %v8057_v26 }
 0xcbc   : > { %8133 = vmatmul.mubr.f32.gmra.mrb[180].mxu0 %v8056_v62 }
 0xd8b   : > { %v8128_v34 = vpop.f32.mrb[178].mxu0 }
 0xd8c   : > { %v8155_v18 = vadd.f32 %v8148_v30, %v8128_v34  ;;  %v8130_v36 = vpop.f32.mrb[179].mxu0 }
 0xd8d   : > { %v8156_v22 = vadd.f32 %v8152_v61, %v8130_v36  ;;  %v12617_v36 = vpack.c.bf16 %v8225_v29, %v8223_v24  ;;  %v8264_v29 = vld [vmem:[%s21419_s15 + $0x168] sm:$0xff] }
 0xd8e   : > { %v8159_v38 = vmax.f32 %v8155_v18, 0.0 }
 0xd8f   : > { %v8160_v10 = vmax.f32 %v8156_v22, 0.0  ;;  %v8134_v25 = vpop.f32.mrb[180].mxu0  ;;  %v8227_v22 = vld [vmem:[%s21419_s15 + $0x40] sm:$0xff] }
 0xd90   : > { %v8157_v15 = vadd.f32 %v8148_v30, %v8134_v25  ;;  %v8136_v23 = vpop.f32.mrb[181].mxu0  ;;  %v8232_v25 = vld [vmem:[%s21419_s15 + $0x68] sm:$0xff] }
 0xd91   : > { %v8167_v56 = vcombine.low %v8159_v38, %v8160_v10  ;;  %v8168_v49 = vcombine.high %v8159_v38, %v8160_v10  ;;  %v10077_v42 = vcombine.low %v8160_v10, %v8160_v10  ;;  %v10078_v54 = vcombine.high %v8160_v10, %v8160_v10  ;;  %v8229_v10 = vld [vmem:[%s21419_s15 + $0x50] sm:$0xff] }
 0xd92   : > { %v8161_v7 = vmax.f32 %v8157_v15, 0.0  ;;  %v8158_v53 = vadd.f32 %v8152_v61, %v8136_v23  ;;  %v12619_v38 = vpack.c.bf16 %v8230_v32, %v8228_v9  ;;  %v8234_v15 = vld [vmem:[%s21419_s15 + $0x78] sm:$0xff] }
 0xd93   : > { %v8175_v1 = vrot.slane %v8167_v56, 7  ;;  %v8176_v26 = vrot.slane %v10077_v42, 7  ;;  %v8177_v62 = vrot.slane %v8168_v49, 7  ;;  %v8178_v21 = vrot.slane %v10078_v54, 7  ;;  %v8231_v42 = vld [vmem:[%s21419_s15 + $0x60] sm:$0xff]  ;;  %v8233_v54 = vld [vmem:[%s21419_s15 + $0x70] sm:$0xff] }
 0xd94   : > { %v8162_v33 = vmax.f32 %v8158_v53, 0.0  ;;  %v12621_v56 = vpack.c.bf16 %v8229_v10, %v8227_v22  ;;  %v12623_v49 = vpack.c.bf16 %v8234_v15, %v8232_v25  ;;  %v8238_v53 = vld [vmem:[%s21419_s15 + $0x98] sm:$0xff]  ;;  %v8267_v10 = vld [vmem:[%s21419_s15 + $0x180] sm:$0xff]  ;;  %v8269_v25 = vld [vmem:[%s21419_s15 + $0x190] sm:$0xff] }
 0xd95   : > { %8191 = vst [vmem:[#allocation6 + $0x10] sm:$0x1e] %v8175_v1  ;;  %8192 = vst [vmem:[#allocation6 + $0x18] sm:$0x1e] %v8176_v26  ;;  %v12625_v1 = vpack.c.bf16 %v8233_v54, %v8231_v42  ;;  %v8266_v9 = vld [vmem:[%s21419_s15 + $0x178] sm:$0xff]  ;;  %v8272_v15 = vld [vmem:[%s21419_s15 + $0x1a8] sm:$0xff] }
 0xd96   : > { %8193 = vst [vmem:[#allocation6 + $0x20] sm:$0x1e] %v8177_v62  ;;  %8194 = vst [vmem:[#allocation6 + $0x28] sm:$0x1e] %v8178_v21  ;;  %v8169_v31 = vcombine.low %v8161_v7, %v8162_v33  ;;  %v8170_v27 = vcombine.high %v8161_v7, %v8162_v33  ;;  %v10079_v12 = vcombine.low %v8162_v33, %v8162_v33  ;;  %v8236_v7 = vld [vmem:[%s21419_s15 + $0x88] sm:$0xff]  ;;  %v8235_v62 = vld [vmem:[%s21419_s15 + $0x80] sm:$0xff] }
 0xd97   : > { %v10080_v40 = vcombine.high %v8162_v33, %v8162_v33  ;;  %v12627_v26 = vpack.c.bf16 %v8238_v53, %v8236_v7  ;;  %v8237_v21 = vld [vmem:[%s21419_s15 + $0x90] sm:$0xff]  ;;  %v8240_v33 = vld [vmem:[%s21419_s15 + $0xa8] sm:$0xff]  ;;  %v8271_v42 = vld [vmem:[%s21419_s15 + $0x1a0] sm:$0xff] }
 0xd98   : > { %v8179_v45 = vrot.slane %v8169_v31, 7  ;;  %v8180_v28 = vrot.slane %v10079_v12, 7  ;;  %v8181_v0 = vrot.slane %v8170_v27, 7  ;;  %v8242_v31 = vld [vmem:[%s21419_s15 + $0xb8] sm:$0xff]  ;;  %v12629_v27 = vpack.c.bf16 %v8237_v21, %v8235_v62  ;;  %v8239_v12 = vld [vmem:[%s21419_s15 + $0xa0] sm:$0xff]  ;;  %v8273_v54 = vld [vmem:[%s21419_s15 + $0x1b0] sm:$0xff] }
 0xd99   : > { %v8182_v4 = vrot.slane %v10080_v40, 7  ;;  %v12631_v40 = vpack.c.bf16 %v8242_v31, %v8240_v33  ;;  %v8276_v7 = vld [vmem:[%s21419_s15 + $0x1c8] sm:$0xff]  ;;  %v8278_v53 = vld [vmem:[%s21419_s15 + $0x1d8] sm:$0xff]  ;;  %v8275_v62 = vld [vmem:[%s21419_s15 + $0x1c0] sm:$0xff] }
 0xd9a   : > { %8195 = vst [vmem:[#allocation6 + $0x30] sm:$0x1e] %v8179_v45  ;;  %8196 = vst [vmem:[#allocation6 + $0x38] sm:$0x1e] %v8180_v28  ;;  %v8246_v45 = vld [vmem:[%s21419_s15 + $0xd8] sm:$0xff]  ;;  %v12633_v28 = vpack.c.bf16 %v8241_v63, %v8239_v12  ;;  %v8277_v21 = vld [vmem:[%s21419_s15 + $0x1d0] sm:$0xff] }
 0xd9b   : > { %8197 = vst [vmem:[#allocation6 + $0x40] sm:$0x1e] %v8181_v0  ;;  %8198 = vst [vmem:[#allocation6 + $0x48] sm:$0x1e] %v8182_v4  ;;  %v12635_v0 = vpack.c.bf16 %v8246_v45, %v8244_v11  ;;  %v8243_v4 = vld [vmem:[%s21419_s15 + $0xc0] sm:$0xff]  ;;  %v8280_v33 = vld [vmem:[%s21419_s15 + $0x1e8] sm:$0xff] }
 0xd9c   : > { %v13923_v5 = vld [vmem:[#allocation6 + $0x10] ss:$8 sps:$4 sm:$0xee]   ;;  %v13925_v19 = vld [vmem:[#allocation6 + $0x14] ss:$8 sps:$4 sm:$0x11]  }
 0xd9d   : > { %v13926_v20 = vld [vmem:[#allocation6 + $0x20] ss:$8 sps:$4 sm:$0xee]   ;;  %v10082_v44 = vrot.slane %v13923_v5, 9  ;;  %v8313_v8 = vrot.slane %v13925_v19, 5  ;;  %v8250_v5 = vld [vmem:[%s21419_s15 + $0xf8] sm:$0xff]  ;;  %v12637_v19 = vpack.c.bf16 %v8245_v39, %v8243_v4 }
 0xd9e   : > { %v13928_v41 = vld [vmem:[#allocation6 + $0x24] ss:$8 sps:$4 sm:$0x11]   ;;  %v10083_v55 = vrot.slane %v13926_v20, 9  ;;  %v13932_v23 = vld [vmem:[#allocation6 + $0x8] ss:$16 sps:$4 sm:$0xff]   ;;  %v12639_v20 = vpack.c.bf16 %v8250_v5, %v8248_v14 }
 0xd9f   : > { %v8314_v43 = vsel %vm17945_vm7, %v10082_v44, %v8313_v8  ;;  %v8317_v16 = vrot.slane %v13928_v41, 5  ;;  %v8252_v44 = vld [vmem:[%s21419_s15 + $0x108] sm:$0xff]  ;;  %v8254_v8 = vld [vmem:[%s21419_s15 + $0x118] sm:$0xff]  ;;  %v8279_v12 = vld [vmem:[%s21419_s15 + $0x1e0] sm:$0xff] }
 0xda0   : > { %v8387_v48 = vcombine.low %v8310_v60, %v8314_v43  ;;  %v8388_v57 = vcombine.high %v8310_v60, %v8314_v43  ;;  %v8249_v60 = vld [vmem:[%s21419_s15 + $0xf0] sm:$0xff]  ;;  %v12643_v41 = vpack.c.bf16 %v8254_v8, %v8252_v44  ;;  %v8256_v43 = vld [vmem:[%s21419_s15 + $0x128] sm:$0xff]  ;;  %v8282_v31 = vld [vmem:[%s21419_s15 + $0x1f8] sm:$0xff] }
 0xda1   : > { %v13929_v59 = vld [vmem:[#allocation6 + $0x30] ss:$8 sps:$4 sm:$0xee]   ;;  %v13931_v37 = vld [vmem:[#allocation6 + $0x34] ss:$8 sps:$4 sm:$0x11]   ;;  %v8318_v30 = vsel %vm17945_vm7, %v10083_v55, %v8317_v16  ;;  %v12641_v35 = vpack.c.bf16 %v8249_v60, %v8247_v52  ;;  %v12645_v16 = vpack.c.bf16 %v8253_v46, %v8251_v13 }
 0xda2   : > { %8459 = vmatprep.mubr.f32.mxu1 %v8388_v57  ;;  %v10084_v47 = vrot.slane %v13929_v59, 9  ;;  %v8321_v3 = vrot.slane %v13931_v37, 5  ;;  %v8258_v55 = vld [vmem:[%s21419_s15 + $0x138] sm:$0xff]  ;;  %v8255_v57 = vld [vmem:[%s21419_s15 + $0x120] sm:$0xff]  ;;  %v8260_v59 = vld [vmem:[%s21419_s15 + $0x148] sm:$0xff] }
 0xda3   : > { %8460 = vmatmul.mubr.f32.vlgmr.msra.gmra.mrb[84].mxu1 %v8387_v48  ;;  %v12647_v48 = vpack.c.bf16 %v8258_v55, %v8256_v43  ;;  %v8262_v37 = vld [vmem:[%s21419_s15 + $0x158] sm:$0xff]  ;;  %v8281_v63 = vld [vmem:[%s21419_s15 + $0x1f0] sm:$0xff]  ;;  %v8598_v11 = vld [vmem:[%s21419_s15 + $0x408] sm:$0xff] }
 0xda4   : > { %12614 = vmatpush1.bf16.msra.mxu1 %v12613_v17  ;;  %v8322_v61 = vsel %vm17945_vm7, %v10084_v47, %v8321_v3  ;;  %v8257_v17 = vld [vmem:[%s21419_s15 + $0x130] sm:$0xff]  ;;  %v12651_v24 = vpack.c.bf16 %v8262_v37, %v8260_v59  ;;  %v8259_v47 = vld [vmem:[%s21419_s15 + $0x140] sm:$0xff]  ;;  %v8600_v45 = vld [vmem:[%s21419_s15 + $0x418] sm:$0xff]  ;;  %v12673_v14 = vpack.c.bf16 %v8281_v63, %v8279_v12 }
 0xda5   : > { %v8390_v34 = vcombine.high %v8318_v30, %v8322_v61  ;;  %12616 = vmatprep.subr.bf16.mxu1 %v12615_v58  ;;  %v8389_v18 = vcombine.low %v8318_v30, %v8322_v61  ;;  %v12649_v58 = vpack.c.bf16 %v8257_v17, %v8255_v57  ;;  %v8261_v3 = vld [vmem:[%s21419_s15 + $0x150] sm:$0xff]  ;;  %v12655_v30 = vpack.c.bf16 %v8266_v9, %v8264_v29  ;;  %v8263_v61 = vld [vmem:[%s21419_s15 + $0x160] sm:$0xff]  ;;  %v8604_v60 = vld [vmem:[%s21419_s15 + $0x438] sm:$0xff] }
 0xda6   : > { %v12653_v32 = vpack.c.bf16 %v8261_v3, %v8259_v47  ;;  %v13939_v4 = vld [vmem:[#allocation6 + $0x10] ss:$8 sps:$4 sm:$0xcc]   ;;  %v13941_v39 = vld [vmem:[#allocation6 + $0x14] ss:$8 sps:$4 sm:$0x33]   ;;  %v12675_v5 = vpack.c.bf16 %v8600_v45, %v8598_v11 }
 0xda7   : > { %8465 = vmatprep.mubr.f32.mxu1 %v8390_v34  ;;  %v8265_v34 = vld [vmem:[%s21419_s15 + $0x170] sm:$0xff]  ;;  %v8601_v55 = vld [vmem:[%s21419_s15 + $0x420] sm:$0xff]  ;;  %v8606_v57 = vld [vmem:[%s21419_s15 + $0x448] sm:$0xff] }
 0xda8   : > { %8466 = vmatmul.mubr.f32.gmra.mrb[86].mxu1 %v8389_v18  ;;  %v8268_v18 = vld [vmem:[%s21419_s15 + $0x188] sm:$0xff]  ;;  %v12657_v22 = vpack.c.bf16 %v8265_v34, %v8263_v61  ;;  %v8599_v52 = vld [vmem:[%s21419_s15 + $0x410] sm:$0xff]  ;;  %v8608_v17 = vld [vmem:[%s21419_s15 + $0x458] sm:$0xff] }
 0xda9   : > { %12618 = vmatpush1.bf16.msra.mxu1 %v12617_v36  ;;  %8544 = vmatprep.mubr.f32.mxu1 %v13932_v23  ;;  %v8270_v36 = vld [vmem:[%s21419_s15 + $0x198] sm:$0xff]  ;;  %v13933_v46 = vld [vmem:[#allocation6] ss:$16 sps:$4 sm:$0xff]   ;;  %v12683_v47 = vpack.c.bf16 %v8608_v17, %v8606_v57 }
 0xdaa   : > { %12620 = vmatprep.subr.bf16.mxu1 %v12619_v38  ;;  %v12659_v38 = vpack.c.bf16 %v8270_v36, %v8268_v18  ;;  %v8274_v23 = vld [vmem:[%s21419_s15 + $0x1b8] sm:$0xff]  ;;  %v8605_v3 = vld [vmem:[%s21419_s15 + $0x440] sm:$0xff]  ;;  %v8607_v29 = vld [vmem:[%s21419_s15 + $0x450] sm:$0xff] }
 0xdab   : > { %v12685_v61 = vpack.c.bf16 %v8607_v29, %v8605_v3  ;;  %v8609_v18 = vld [vmem:[%s21419_s15 + $0x460] sm:$0xff]  ;;  %v8611_v36 = vld [vmem:[%s21419_s15 + $0x470] sm:$0xff]  ;;  %v8628_v12 = vld [vmem:[%s21419_s15 + $0x4f8] sm:$0xff] }
 0xdac   : > { %v8625_v11 = vld [vmem:[%s21419_s15 + $0x4e0] sm:$0xff]  ;;  %v8627_v45 = vld [vmem:[%s21419_s15 + $0x4f0] sm:$0xff]  ;;  %v8648_v3 = vld [vmem:[%s21419_s15 + $0x598] sm:$0xff] }
 0xdad   : > { %12622 = vmatpush1.bf16.msra.mxu1 %v12621_v56  ;;  %v12661_v56 = vpack.c.bf16 %v8269_v25, %v8267_v10  ;;  %v12689_v10 = vpack.c.bf16 %v8611_v36, %v8609_v18 }
 0xdae   : > { %12624 = vmatprep.subr.bf16.mxu1 %v12623_v49  ;;  %v12663_v49 = vpack.c.bf16 %v8274_v23, %v8272_v15  ;;  %v8613_v15 = vld [vmem:[%s21419_s15 + $0x480] sm:$0xff]  ;;  %v8615_v23 = vld [vmem:[%s21419_s15 + $0x490] sm:$0xff] }
 0xdb1   : > { %12626 = vmatpush1.bf16.msra.mxu1 %v12625_v1  ;;  %v12665_v1 = vpack.c.bf16 %v8273_v54, %v8271_v42  ;;  %v12693_v42 = vpack.c.bf16 %v8615_v23, %v8613_v15 }
 0xdb2   : > { %12628 = vmatprep.subr.bf16.mxu1 %v12627_v26  ;;  %v12667_v26 = vpack.c.bf16 %v8278_v53, %v8276_v7  ;;  %v8617_v7 = vld [vmem:[%s21419_s15 + $0x4a0] sm:$0xff]  ;;  %v8619_v53 = vld [vmem:[%s21419_s15 + $0x4b0] sm:$0xff] }
 0xdb5   : > { %12630 = vmatpush1.bf16.msra.mxu1 %v12629_v27  ;;  %v12669_v27 = vpack.c.bf16 %v8277_v21, %v8275_v62  ;;  %v12697_v62 = vpack.c.bf16 %v8619_v53, %v8617_v7  ;;  %v13945_v7 = vld [vmem:[#allocation6 + $0x30] ss:$8 sps:$4 sm:$0xcc]   ;;  %v13947_v53 = vld [vmem:[#allocation6 + $0x34] ss:$8 sps:$4 sm:$0x33]  }
 0xdb6   : > { %12632 = vmatprep.subr.bf16.mxu1 %v12631_v40  ;;  %v12671_v40 = vpack.c.bf16 %v8282_v31, %v8280_v33  ;;  %v8621_v33 = vld [vmem:[%s21419_s15 + $0x4c0] sm:$0xff]  ;;  %v8623_v31 = vld [vmem:[%s21419_s15 + $0x4d0] sm:$0xff] }
 0xdb9   : > { %12634 = vmatpush1.bf16.msra.mxu1 %v12633_v28  ;;  %v13936_v28 = vld [vmem:[#allocation6] ss:$8 sps:$4 sm:$0xcc]  }
 0xdba   : > { %12636 = vmatprep.subr.bf16.mxu1 %v12635_v0  ;;  %v13938_v0 = vld [vmem:[#allocation6 + $0x4] ss:$8 sps:$4 sm:$0x33]   ;;  %v10089_v44 = vrot.slane %v13936_v28, 10 }
 0xdbb   : > { %v8583_v8 = vrot.slane %v13938_v0, 6  ;;  %v8630_v28 = vld [vmem:[%s21419_s15 + $0x508] sm:$0xff]  ;;  %v8632_v0 = vld [vmem:[%s21419_s15 + $0x518] sm:$0xff] }
 0xdbd   : > { %12638 = vmatpush1.bf16.msra.mxu1 %v12637_v19  ;;  %v8597_v19 = vld [vmem:[%s21419_s15 + $0x400] sm:$0xff]  ;;  %v20000_v59 = vsel %vm18161_vm10, %v10089_v44, %v8583_v8  ;;  %v8635_v8 = vld [vmem:[%s21419_s15 + $0x530] sm:$0xff] }
 0xdbe   : > { %12640 = vmatprep.subr.bf16.mxu1 %v12639_v20  ;;  %v8602_v20 = vld [vmem:[%s21419_s15 + $0x428] sm:$0xff]  ;;  %v12677_v13 = vpack.c.bf16 %v8599_v52, %v8597_v19  ;;  %v8636_v52 = vld [vmem:[%s21419_s15 + $0x538] sm:$0xff]  ;;  %v8633_v44 = vld [vmem:[%s21419_s15 + $0x520] sm:$0xff] }
 0xdbf   : > { %v12679_v43 = vpack.c.bf16 %v8604_v60, %v8602_v20  ;;  %v8634_v19 = vld [vmem:[%s21419_s15 + $0x528] sm:$0xff] }
 0xdc0   : > { %v12711_v60 = vpack.c.bf16 %v8636_v52, %v8634_v19 }
 0xdc1   : > { %12642 = vmatpush1.bf16.msra.mxu1 %v12641_v35  ;;  %v10090_v35 = vrot.slane %v13939_v4, 10  ;;  %v12705_v4 = vpack.c.bf16 %v8627_v45, %v8625_v11 }
 0xdc2   : > { %12644 = vmatprep.subr.bf16.mxu1 %v12643_v41  ;;  %v8587_v41 = vrot.slane %v13941_v39, 6  ;;  %v12707_v39 = vpack.c.bf16 %v8632_v0, %v8630_v28 }
 0xdc4   : > { %v20004_v37 = vsel %vm18161_vm10, %v10090_v35, %v8587_v41  ;;  %v8638_v35 = vld [vmem:[%s21419_s15 + $0x548] sm:$0xff]  ;;  %v8640_v41 = vld [vmem:[%s21419_s15 + $0x558] sm:$0xff] }
 0xdc5   : > { %12646 = vmatpush1.bf16.msra.mxu1 %v12645_v16  ;;  %v8603_v16 = vld [vmem:[%s21419_s15 + $0x430] sm:$0xff]  ;;  %v8662_v9 = vcombine.high %v20000_v59, %v20004_v37 }
 0xdc6   : > { %12648 = vmatprep.subr.bf16.mxu1 %v12647_v48  ;;  %v13934_v48 = vld [vmem:[#allocation6 + $0x28] ss:$16 sps:$4 sm:$0xff]  }
 0xdc9   : > { %12650 = vmatpush1.bf16.msra.mxu1 %v12649_v58  ;;  %v12681_v58 = vpack.c.bf16 %v8603_v16, %v8601_v55  ;;  %v8639_v55 = vld [vmem:[%s21419_s15 + $0x550] sm:$0xff]  ;;  %v8642_v16 = vld [vmem:[%s21419_s15 + $0x568] sm:$0xff] }
 0xdca   : > { %12652 = vmatprep.subr.bf16.mxu1 %v12651_v24  ;;  %v13935_v24 = vld [vmem:[#allocation6 + $0x20] ss:$16 sps:$4 sm:$0xff]  }
 0xdcd   : > { %12654 = vmatpush1.bf16.msra.mxu1 %v12653_v32  ;;  %v8610_v32 = vld [vmem:[%s21419_s15 + $0x468] sm:$0xff] }
 0xdce   : > { %12656 = vmatprep.subr.bf16.mxu1 %v12655_v30  ;;  %v8612_v30 = vld [vmem:[%s21419_s15 + $0x478] sm:$0xff] }
 0xdcf   : > { %v12687_v34 = vpack.c.bf16 %v8612_v30, %v8610_v32  ;;  %v8645_v32 = vld [vmem:[%s21419_s15 + $0x580] sm:$0xff]  ;;  %v8647_v30 = vld [vmem:[%s21419_s15 + $0x590] sm:$0xff] }
 0xdd0   : > { %v12725_v18 = vpack.c.bf16 %v8647_v30, %v8645_v32 }
 0xdd1   : > { %12658 = vmatpush1.bf16.msra.mxu1 %v12657_v22  ;;  %v8614_v22 = vld [vmem:[%s21419_s15 + $0x488] sm:$0xff] }
 0xdd2   : > { %12660 = vmatprep.subr.bf16.mxu1 %v12659_v38  ;;  %v8616_v38 = vld [vmem:[%s21419_s15 + $0x498] sm:$0xff] }
 0xdd3   : > { %v12691_v25 = vpack.c.bf16 %v8616_v38, %v8614_v22  ;;  %v8649_v22 = vld [vmem:[%s21419_s15 + $0x5a0] sm:$0xff]  ;;  %v8651_v38 = vld [vmem:[%s21419_s15 + $0x5b0] sm:$0xff] }
 0xdd4   : > { %v12729_v15 = vpack.c.bf16 %v8651_v38, %v8649_v22 }
 0xdd5   : > { %12662 = vmatpush1.bf16.msra.mxu1 %v12661_v56  ;;  %v8618_v56 = vld [vmem:[%s21419_s15 + $0x4a8] sm:$0xff] }
 0xdd6   : > { %12664 = vmatprep.subr.bf16.mxu1 %v12663_v49  ;;  %v8620_v49 = vld [vmem:[%s21419_s15 + $0x4b8] sm:$0xff] }
 0xdd7   : > { %v12695_v54 = vpack.c.bf16 %v8620_v49, %v8618_v56  ;;  %v8653_v56 = vld [vmem:[%s21419_s15 + $0x5c0] sm:$0xff]  ;;  %v8655_v49 = vld [vmem:[%s21419_s15 + $0x5d0] sm:$0xff] }
 0xdd9   : > { %12666 = vmatpush1.bf16.msra.mxu1 %v12665_v1  ;;  %v8622_v1 = vld [vmem:[%s21419_s15 + $0x4c8] sm:$0xff] }
 0xdda   : > { %12668 = vmatprep.subr.bf16.mxu1 %v12667_v26  ;;  %v8624_v26 = vld [vmem:[%s21419_s15 + $0x4d8] sm:$0xff] }
 0xddb   : > { %v12699_v21 = vpack.c.bf16 %v8624_v26, %v8622_v1  ;;  %v12733_v1 = vpack.c.bf16 %v8655_v49, %v8653_v56  ;;  %v8657_v26 = vld [vmem:[%s21419_s15 + $0x5e0] sm:$0xff] }
 0xddd   : > { %12670 = vmatpush1.bf16.msra.mxu1 %v12669_v27  ;;  %v8626_v27 = vld [vmem:[%s21419_s15 + $0x4e8] sm:$0xff] }
 0xdde   : > { %12672 = vmatprep.subr.bf16.mxu1 %v12671_v40  ;;  %v12701_v40 = vpack.c.bf16 %v8623_v31, %v8621_v33  ;;  %v12703_v63 = vpack.c.bf16 %v8628_v12, %v8626_v27  ;;  %v13942_v33 = vld [vmem:[#allocation6 + $0x20] ss:$8 sps:$4 sm:$0xcc]   ;;  %v13944_v31 = vld [vmem:[#allocation6 + $0x24] ss:$8 sps:$4 sm:$0x33]  }
 0xddf   : > { %v8771_v27 = vld [vmem:[%s21419_s15 + $0x608] sm:$0xff]  ;;  %v8773_v12 = vld [vmem:[%s21419_s15 + $0x618] sm:$0xff]  ;;  %v10091_v28 = vrot.slane %v13942_v33, 10  ;;  %v8591_v0 = vrot.slane %v13944_v31, 6 }
 0xde0   : > { %v12739_v45 = vpack.c.bf16 %v8773_v12, %v8771_v27  ;;  %v8803_v33 = vld [vmem:[%s21419_s15 + $0x708] sm:$0xff]  ;;  %v8805_v31 = vld [vmem:[%s21419_s15 + $0x718] sm:$0xff] }
 0xde1   : > { %12674 = vmatpush1.bf16.msra.mxu1 %v12673_v14  ;;  %v8629_v14 = vld [vmem:[%s21419_s15 + $0x500] sm:$0xff]  ;;  %v12771_v12 = vpack.c.bf16 %v8805_v31, %v8803_v33 }
 0xde2   : > { %12676 = vmatprep.subr.bf16.mxu1 %v12675_v5  ;;  %v8631_v5 = vld [vmem:[%s21419_s15 + $0x510] sm:$0xff] }
 0xde3   : > { %v12709_v20 = vpack.c.bf16 %v8631_v5, %v8629_v14  ;;  %v8775_v14 = vld [vmem:[%s21419_s15 + $0x628] sm:$0xff]  ;;  %v8777_v5 = vld [vmem:[%s21419_s15 + $0x638] sm:$0xff] }
 0xde4   : > { %8545 = vmatmul.mubr.f32.vlgmr.msra.gmra.mrb[84].mxu1 %v13933_v46  ;;  %v12715_v46 = vpack.c.bf16 %v8640_v41, %v8638_v35  ;;  %v8776_v35 = vld [vmem:[%s21419_s15 + $0x630] sm:$0xff] }
 0xde5   : > { %8550 = vmatprep.mubr.f32.mxu1 %v13934_v48  ;;  %12678 = vmatpush1.bf16.msra.mxu1 %v12677_v13  ;;  %v12713_v13 = vpack.c.bf16 %v8635_v8, %v8633_v44  ;;  %v8644_v48 = vld [vmem:[%s21419_s15 + $0x578] sm:$0xff]  ;;  %v12743_v44 = vpack.c.bf16 %v8777_v5, %v8775_v14  ;;  %v8774_v8 = vld [vmem:[%s21419_s15 + $0x620] sm:$0xff]  ;;  %v8811_v14 = vld [vmem:[%s21419_s15 + $0x748] sm:$0xff] }
 0xde6   : > { %12680 = vmatprep.subr.bf16.mxu1 %v12679_v43  ;;  %v8637_v43 = vld [vmem:[%s21419_s15 + $0x540] sm:$0xff]  ;;  %v12719_v17 = vpack.c.bf16 %v8644_v48, %v8642_v16  ;;  %v8780_v16 = vld [vmem:[%s21419_s15 + $0x650] sm:$0xff]  ;;  %v13948_v48 = vld [vmem:[#allocation6 + $0x18] ss:$16 sps:$4 sm:$0xff]  }
 0xde7   : > { %v12717_v57 = vpack.c.bf16 %v8639_v55, %v8637_v43  ;;  %v8778_v55 = vld [vmem:[%s21419_s15 + $0x640] sm:$0xff]  ;;  %v8813_v5 = vld [vmem:[%s21419_s15 + $0x758] sm:$0xff] }
 0xde8   : > { %8551 = vmatmul.mubr.f32.gmra.mrb[86].mxu1 %v13935_v24  ;;  %v8643_v24 = vld [vmem:[%s21419_s15 + $0x570] sm:$0xff] }
 0xde9   : > { %12682 = vmatpush1.bf16.msra.mxu1 %v12681_v58  ;;  %8733 = vmatprep.mubr.f32.mxu1 %v8662_v9  ;;  %v8641_v58 = vld [vmem:[%s21419_s15 + $0x560] sm:$0xff] }
 0xdea   : > { %12684 = vmatprep.subr.bf16.mxu1 %v12683_v47  ;;  %v8646_v47 = vld [vmem:[%s21419_s15 + $0x588] sm:$0xff]  ;;  %v12721_v29 = vpack.c.bf16 %v8643_v24, %v8641_v58  ;;  %v12749_v58 = vpack.c.bf16 %v8780_v16, %v8778_v55  ;;  %v8818_v16 = vld [vmem:[%s21419_s15 + $0x780] sm:$0xff] }
 0xdeb   : > { %v12723_v9 = vpack.c.bf16 %v8648_v3, %v8646_v47  ;;  %v8782_v47 = vld [vmem:[%s21419_s15 + $0x660] sm:$0xff]  ;;  %v8784_v3 = vld [vmem:[%s21419_s15 + $0x670] sm:$0xff] }
 0xdec   : > { %v12753_v32 = vpack.c.bf16 %v8784_v3, %v8782_v47  ;;  %v8822_v47 = vld [vmem:[%s21419_s15 + $0x7a0] sm:$0xff]  ;;  %v8824_v3 = vld [vmem:[%s21419_s15 + $0x7b0] sm:$0xff] }
 0xded   : > { %12686 = vmatpush1.bf16.msra.mxu1 %v12685_v61  ;;  %v8650_v61 = vld [vmem:[%s21419_s15 + $0x5a8] sm:$0xff] }
 0xdee   : > { %12688 = vmatprep.subr.bf16.mxu1 %v12687_v34  ;;  %v8652_v34 = vld [vmem:[%s21419_s15 + $0x5b8] sm:$0xff] }
 0xdef   : > { %v12727_v36 = vpack.c.bf16 %v8652_v34, %v8650_v61  ;;  %v8786_v61 = vld [vmem:[%s21419_s15 + $0x680] sm:$0xff]  ;;  %v8788_v34 = vld [vmem:[%s21419_s15 + $0x690] sm:$0xff] }
 0xdf0   : > { %v12757_v22 = vpack.c.bf16 %v8788_v34, %v8786_v61  ;;  %v8826_v61 = vld [vmem:[%s21419_s15 + $0x7c0] sm:$0xff]  ;;  %v8828_v34 = vld [vmem:[%s21419_s15 + $0x7d0] sm:$0xff] }
 0xdf1   : > { %12690 = vmatpush1.bf16.msra.mxu1 %v12689_v10  ;;  %v8654_v10 = vld [vmem:[%s21419_s15 + $0x5c8] sm:$0xff] }
 0xdf2   : > { %12692 = vmatprep.subr.bf16.mxu1 %v12691_v25  ;;  %v8656_v25 = vld [vmem:[%s21419_s15 + $0x5d8] sm:$0xff] }
 0xdf3   : > { %v12731_v23 = vpack.c.bf16 %v8656_v25, %v8654_v10  ;;  %v8790_v10 = vld [vmem:[%s21419_s15 + $0x6a0] sm:$0xff]  ;;  %v8792_v25 = vld [vmem:[%s21419_s15 + $0x6b0] sm:$0xff] }
 0xdf4   : > { %v12761_v56 = vpack.c.bf16 %v8792_v25, %v8790_v10  ;;  %v8830_v10 = vld [vmem:[%s21419_s15 + $0x7e0] sm:$0xff]  ;;  %v8832_v25 = vld [vmem:[%s21419_s15 + $0x7f0] sm:$0xff] }
 0xdf5   : > { %12694 = vmatpush1.bf16.msra.mxu1 %v12693_v42  ;;  %v8658_v42 = vld [vmem:[%s21419_s15 + $0x5e8] sm:$0xff] }
 0xdf6   : > { %12696 = vmatprep.subr.bf16.mxu1 %v12695_v54  ;;  %v8660_v54 = vld [vmem:[%s21419_s15 + $0x5f8] sm:$0xff] }
 0xdf9   : > { %12698 = vmatpush1.bf16.msra.mxu1 %v12697_v62  ;;  %v8659_v62 = vld [vmem:[%s21419_s15 + $0x5f0] sm:$0xff] }
 0xdfa   : > { %12700 = vmatprep.subr.bf16.mxu1 %v12699_v21  ;;  %v12735_v21 = vpack.c.bf16 %v8660_v54, %v8658_v42  ;;  %v12737_v11 = vpack.c.bf16 %v8659_v62, %v8657_v26  ;;  %v8794_v42 = vld [vmem:[%s21419_s15 + $0x6c0] sm:$0xff]  ;;  %v8796_v54 = vld [vmem:[%s21419_s15 + $0x6d0] sm:$0xff] }
 0xdfb   : > { %v8798_v62 = vld [vmem:[%s21419_s15 + $0x6e0] sm:$0xff] }
 0xdfd   : > { %12702 = vmatpush1.bf16.msra.mxu1 %v12701_v40  ;;  %v10092_v40 = vrot.slane %v13945_v7, 10  ;;  %v8799_v7 = vld [vmem:[%s21419_s15 + $0x6e8] sm:$0xff] }
 0xdfe   : > { %12704 = vmatprep.subr.bf16.mxu1 %v12703_v63  ;;  %v8595_v63 = vrot.slane %v13947_v53, 6  ;;  %v8801_v53 = vld [vmem:[%s21419_s15 + $0x6f8] sm:$0xff] }
 0xdff   : > { %v12767_v26 = vpack.c.bf16 %v8801_v53, %v8799_v7  ;;  %v12801_v7 = vpack.c.bf16 %v8832_v25, %v8830_v10 }
 0xe00   : > { %v8596_v19 = vsel %vm18161_vm10, %v10092_v40, %v8595_v63  ;;  %v8802_v40 = vld [vmem:[%s21419_s15 + $0x700] sm:$0xff]  ;;  %v8804_v63 = vld [vmem:[%s21419_s15 + $0x710] sm:$0xff] }
 0xe01   : > { %12706 = vmatpush1.bf16.msra.mxu1 %v12705_v4  ;;  %v8770_v4 = vld [vmem:[%s21419_s15 + $0x600] sm:$0xff] }
 0xe02   : > { %12708 = vmatprep.subr.bf16.mxu1 %v12707_v39  ;;  %v8772_v39 = vld [vmem:[%s21419_s15 + $0x610] sm:$0xff] }
 0xe03   : > { %v12741_v52 = vpack.c.bf16 %v8772_v39, %v8770_v4  ;;  %v8806_v4 = vld [vmem:[%s21419_s15 + $0x720] sm:$0xff]  ;;  %v8808_v39 = vld [vmem:[%s21419_s15 + $0x730] sm:$0xff] }
 0xe05   : > { %12710 = vmatpush1.bf16.msra.mxu1 %v12709_v20  ;;  %v8661_v20 = vcombine.low %v20000_v59, %v20004_v37  ;;  %v8781_v59 = vld [vmem:[%s21419_s15 + $0x658] sm:$0xff]  ;;  %v12745_v37 = vpack.c.bf16 %v8776_v35, %v8774_v8 }
 0xe06   : > { %12712 = vmatprep.subr.bf16.mxu1 %v12711_v60  ;;  %v8592_v60 = vsel %vm18161_vm10, %v10091_v28, %v8591_v0  ;;  %v12773_v28 = vpack.c.bf16 %v8804_v63, %v8802_v40  ;;  %v8817_v8 = vld [vmem:[%s21419_s15 + $0x778] sm:$0xff]  ;;  %v13949_v63 = vld [vmem:[#allocation6 + $0x10] ss:$16 sps:$4 sm:$0xff]  }
 0xe07   : > { %v8664_v41 = vcombine.high %v8592_v60, %v8596_v19 }
 0xe09   : > { %12714 = vmatpush1.bf16.msra.mxu1 %v12713_v13  ;;  %v8779_v13 = vld [vmem:[%s21419_s15 + $0x648] sm:$0xff] }
 0xe0a   : > { %12716 = vmatprep.subr.bf16.mxu1 %v12715_v46  ;;  %v8663_v46 = vcombine.low %v8592_v60, %v8596_v19  ;;  %v12747_v43 = vpack.c.bf16 %v8781_v59, %v8779_v13  ;;  %v12777_v19 = vpack.c.bf16 %v8808_v39, %v8806_v4  ;;  %v8812_v60 = vld [vmem:[%s21419_s15 + $0x750] sm:$0xff]  ;;  %v8814_v13 = vld [vmem:[%s21419_s15 + $0x760] sm:$0xff]  ;;  %v8972_v4 = vld [vmem:[%s21419_s15 + $0x848] sm:$0xff] }
 0xe0b   : > { %v8816_v59 = vld [vmem:[%s21419_s15 + $0x770] sm:$0xff]  ;;  %v8974_v39 = vld [vmem:[%s21419_s15 + $0x858] sm:$0xff] }
 0xe0d   : > { %12718 = vmatpush1.bf16.msra.mxu1 %v12717_v57  ;;  %v8783_v57 = vld [vmem:[%s21419_s15 + $0x668] sm:$0xff] }
 0xe0e   : > { %12720 = vmatprep.subr.bf16.mxu1 %v12719_v17  ;;  %v8785_v17 = vld [vmem:[%s21419_s15 + $0x678] sm:$0xff] }
 0xe0f   : > { %v12751_v24 = vpack.c.bf16 %v8785_v17, %v8783_v57  ;;  %v8823_v57 = vld [vmem:[%s21419_s15 + $0x7a8] sm:$0xff]  ;;  %v8825_v17 = vld [vmem:[%s21419_s15 + $0x7b8] sm:$0xff] }
 0xe11   : > { %12722 = vmatpush1.bf16.msra.mxu1 %v12721_v29  ;;  %v8787_v29 = vld [vmem:[%s21419_s15 + $0x688] sm:$0xff] }
 0xe12   : > { %12724 = vmatprep.subr.bf16.mxu1 %v12723_v9  ;;  %v8789_v9 = vld [vmem:[%s21419_s15 + $0x698] sm:$0xff] }
 0xe13   : > { %v12755_v30 = vpack.c.bf16 %v8789_v9, %v8787_v29  ;;  %v8827_v29 = vld [vmem:[%s21419_s15 + $0x7c8] sm:$0xff]  ;;  %v8829_v9 = vld [vmem:[%s21419_s15 + $0x7d8] sm:$0xff] }
 0xe15   : > { %12726 = vmatpush1.bf16.msra.mxu1 %v12725_v18  ;;  %v8791_v18 = vld [vmem:[%s21419_s15 + $0x6a8] sm:$0xff] }
 0xe16   : > { %12728 = vmatprep.subr.bf16.mxu1 %v12727_v36  ;;  %v8793_v36 = vld [vmem:[%s21419_s15 + $0x6b8] sm:$0xff] }
 0xe17   : > { %v12759_v38 = vpack.c.bf16 %v8793_v36, %v8791_v18  ;;  %v8831_v18 = vld [vmem:[%s21419_s15 + $0x7e8] sm:$0xff]  ;;  %v8833_v36 = vld [vmem:[%s21419_s15 + $0x7f8] sm:$0xff] }
 0xe19   : > { %12730 = vmatpush1.bf16.msra.mxu1 %v12729_v15  ;;  %v8795_v15 = vld [vmem:[%s21419_s15 + $0x6c8] sm:$0xff] }
 0xe1a   : > { %12732 = vmatprep.subr.bf16.mxu1 %v12731_v23  ;;  %v8797_v23 = vld [vmem:[%s21419_s15 + $0x6d8] sm:$0xff] }
 0xe1b   : > { %v12763_v49 = vpack.c.bf16 %v8797_v23, %v8795_v15  ;;  %v13952_v15 = vld [vmem:[#allocation6 + $0x10] ss:$8 sps:$4 sm:$0xee]   ;;  %v8964_v23 = vld [vmem:[%s21419_s15 + $0x808] sm:$0xff] }
 0xe1c   : > { %v10097_v33 = vrot.slane %v13952_v15, 9  ;;  %v8991_v15 = vld [vmem:[%s21419_s15 + $0x8e0] sm:$0xff] }
 0xe1d   : > { %12734 = vmatpush1.bf16.msra.mxu1 %v12733_v1  ;;  %v12765_v1 = vpack.c.bf16 %v8796_v54, %v8794_v42  ;;  %v13955_v42 = vld [vmem:[#allocation6 + $0x20] ss:$8 sps:$4 sm:$0xee]   ;;  %v13957_v54 = vld [vmem:[#allocation6 + $0x24] ss:$8 sps:$4 sm:$0x11]  }
 0xe1e   : > { %12736 = vmatprep.subr.bf16.mxu1 %v12735_v21  ;;  %v8800_v21 = vld [vmem:[%s21419_s15 + $0x6f0] sm:$0xff] }
 0xe1f   : > { %v12769_v27 = vpack.c.bf16 %v8800_v21, %v8798_v62  ;;  %v8968_v62 = vld [vmem:[%s21419_s15 + $0x828] sm:$0xff]  ;;  %v8970_v21 = vld [vmem:[%s21419_s15 + $0x838] sm:$0xff] }
 0xe21   : > { %12738 = vmatpush1.bf16.msra.mxu1 %v12737_v11  ;;  %v8807_v11 = vld [vmem:[%s21419_s15 + $0x728] sm:$0xff] }
 0xe22   : > { %12740 = vmatprep.subr.bf16.mxu1 %v12739_v45  ;;  %v8809_v45 = vld [vmem:[%s21419_s15 + $0x738] sm:$0xff] }
 0xe23   : > { %v12775_v0 = vpack.c.bf16 %v8809_v45, %v8807_v11  ;;  %v12807_v11 = vpack.c.bf16 %v8970_v21, %v8968_v62  ;;  %v8967_v45 = vld [vmem:[%s21419_s15 + $0x820] sm:$0xff] }
 0xe24   : > { %8734 = vmatmul.mubr.f32.vlgmr.msra.gmra.mrb[84].mxu1 %v8661_v20  ;;  %v8810_v20 = vld [vmem:[%s21419_s15 + $0x740] sm:$0xff] }
 0xe25   : > { %8739 = vmatprep.mubr.f32.mxu1 %v8664_v41  ;;  %12742 = vmatpush1.bf16.msra.mxu1 %v12741_v52  ;;  %v12779_v52 = vpack.c.bf16 %v8813_v5, %v8811_v14  ;;  %v12781_v35 = vpack.c.bf16 %v8812_v60, %v8810_v20  ;;  %v12811_v20 = vpack.c.bf16 %v8974_v39, %v8972_v4  ;;  %v8971_v60 = vld [vmem:[%s21419_s15 + $0x840] sm:$0xff] }
 0xe26   : > { %12744 = vmatprep.subr.bf16.mxu1 %v12743_v44  ;;  %v8815_v44 = vld [vmem:[%s21419_s15 + $0x768] sm:$0xff] }
 0xe27   : > { %v12783_v41 = vpack.c.bf16 %v8817_v8, %v8815_v44  ;;  %v8973_v44 = vld [vmem:[%s21419_s15 + $0x850] sm:$0xff] }
 0xe28   : > { %8740 = vmatmul.mubr.f32.gmra.mrb[86].mxu1 %v8663_v46  ;;  %v8821_v46 = vld [vmem:[%s21419_s15 + $0x798] sm:$0xff] }
 0xe29   : > { %12746 = vmatpush1.bf16.msra.mxu1 %v12745_v37  ;;  %8906 = vmatprep.mubr.f32.mxu1 %v13948_v48  ;;  %v8819_v37 = vld [vmem:[%s21419_s15 + $0x788] sm:$0xff]  ;;  %v8820_v48 = vld [vmem:[%s21419_s15 + $0x790] sm:$0xff] }
 0xe2a   : > { %12748 = vmatprep.subr.bf16.mxu1 %v12747_v43  ;;  %v12785_v43 = vpack.c.bf16 %v8816_v59, %v8814_v13  ;;  %v12787_v55 = vpack.c.bf16 %v8821_v46, %v8819_v37  ;;  %v12813_v13 = vpack.c.bf16 %v8973_v44, %v8971_v60  ;;  %v8975_v37 = vld [vmem:[%s21419_s15 + $0x860] sm:$0xff]  ;;  %v8977_v46 = vld [vmem:[%s21419_s15 + $0x870] sm:$0xff]  ;;  %v9014_v60 = vld [vmem:[%s21419_s15 + $0x998] sm:$0xff] }
 0xe2d   : > { %12750 = vmatpush1.bf16.msra.mxu1 %v12749_v58  ;;  %v12789_v58 = vpack.c.bf16 %v8820_v48, %v8818_v16  ;;  %v12817_v16 = vpack.c.bf16 %v8977_v46, %v8975_v37 }
 0xe2e   : > { %12752 = vmatprep.subr.bf16.mxu1 %v12751_v24  ;;  %v12791_v24 = vpack.c.bf16 %v8825_v17, %v8823_v57  ;;  %v8979_v57 = vld [vmem:[%s21419_s15 + $0x880] sm:$0xff]  ;;  %v8981_v17 = vld [vmem:[%s21419_s15 + $0x890] sm:$0xff] }
 0xe31   : > { %12754 = vmatpush1.bf16.msra.mxu1 %v12753_v32  ;;  %v12793_v32 = vpack.c.bf16 %v8824_v3, %v8822_v47  ;;  %v12821_v47 = vpack.c.bf16 %v8981_v17, %v8979_v57  ;;  %v13958_v17 = vld [vmem:[#allocation6 + $0x30] ss:$8 sps:$4 sm:$0xee]  }
 0xe32   : > { %12756 = vmatprep.subr.bf16.mxu1 %v12755_v30  ;;  %v12795_v30 = vpack.c.bf16 %v8829_v9, %v8827_v29  ;;  %v8983_v29 = vld [vmem:[%s21419_s15 + $0x8a0] sm:$0xff]  ;;  %v8985_v9 = vld [vmem:[%s21419_s15 + $0x8b0] sm:$0xff] }
 0xe35   : > { %12758 = vmatpush1.bf16.msra.mxu1 %v12757_v22  ;;  %v12797_v22 = vpack.c.bf16 %v8828_v34, %v8826_v61  ;;  %v12825_v61 = vpack.c.bf16 %v8985_v9, %v8983_v29  ;;  %v13961_v29 = vld [vmem:[#allocation6 + $0x40] ss:$8 sps:$4 sm:$0xee]  }
 0xe36   : > { %12760 = vmatprep.subr.bf16.mxu1 %v12759_v38  ;;  %v12799_v38 = vpack.c.bf16 %v8833_v36, %v8831_v18  ;;  %v8987_v18 = vld [vmem:[%s21419_s15 + $0x8c0] sm:$0xff]  ;;  %v8989_v36 = vld [vmem:[%s21419_s15 + $0x8d0] sm:$0xff]  ;;  %v9024_v9 = vld [vmem:[%s21419_s15 + $0x9e8] sm:$0xff] }
 0xe37   : > { %v12829_v10 = vpack.c.bf16 %v8989_v36, %v8987_v18 }
 0xe39   : > { %12762 = vmatpush1.bf16.msra.mxu1 %v12761_v56  ;;  %v8966_v56 = vld [vmem:[%s21419_s15 + $0x818] sm:$0xff] }
 0xe3a   : > { %12764 = vmatprep.subr.bf16.mxu1 %v12763_v49  ;;  %v13954_v49 = vld [vmem:[#allocation6 + $0x14] ss:$8 sps:$4 sm:$0x11]   ;;  %v12803_v53 = vpack.c.bf16 %v8966_v56, %v8964_v23  ;;  %v8996_v56 = vld [vmem:[%s21419_s15 + $0x908] sm:$0xff] }
 0xe3b   : > { %v8949_v31 = vrot.slane %v13954_v49, 5  ;;  %v8993_v23 = vld [vmem:[%s21419_s15 + $0x8f0] sm:$0xff]  ;;  %v8998_v49 = vld [vmem:[%s21419_s15 + $0x918] sm:$0xff] }
 0xe3d   : > { %12766 = vmatpush1.bf16.msra.mxu1 %v12765_v1  ;;  %v8963_v1 = vld [vmem:[%s21419_s15 + $0x800] sm:$0xff]  ;;  %v20400_v14 = vsel %vm17945_vm7, %v10097_v33, %v8949_v31  ;;  %v9001_v31 = vld [vmem:[%s21419_s15 + $0x930] sm:$0xff] }
 0xe3e   : > { %12768 = vmatprep.subr.bf16.mxu1 %v12767_v26  ;;  %v8965_v26 = vld [vmem:[%s21419_s15 + $0x810] sm:$0xff]  ;;  %v8999_v33 = vld [vmem:[%s21419_s15 + $0x920] sm:$0xff] }
 0xe3f   : > { %v12805_v40 = vpack.c.bf16 %v8965_v26, %v8963_v1  ;;  %v9000_v1 = vld [vmem:[%s21419_s15 + $0x928] sm:$0xff]  ;;  %v9002_v26 = vld [vmem:[%s21419_s15 + $0x938] sm:$0xff] }
 0xe40   : > { %v12839_v21 = vpack.c.bf16 %v9002_v26, %v9000_v1  ;;  %v9156_v1 = vld [vmem:[%s21419_s15 + $0xa00] sm:$0xff]  ;;  %v9158_v26 = vld [vmem:[%s21419_s15 + $0xa10] sm:$0xff] }
 0xe41   : > { %12770 = vmatpush1.bf16.msra.mxu1 %v12769_v27  ;;  %v10098_v27 = vrot.slane %v13955_v42, 9  ;;  %v12833_v42 = vpack.c.bf16 %v8993_v23, %v8991_v15  ;;  %v9157_v15 = vld [vmem:[%s21419_s15 + $0xa08] sm:$0xff]  ;;  %v9159_v23 = vld [vmem:[%s21419_s15 + $0xa18] sm:$0xff] }
 0xe42   : > { %12772 = vmatprep.subr.bf16.mxu1 %v12771_v12  ;;  %v8953_v12 = vrot.slane %v13957_v54, 5  ;;  %v12835_v54 = vpack.c.bf16 %v8998_v49, %v8996_v56  ;;  %v13966_v49 = vld [vmem:[#allocation6 + $0x14] ss:$8 sps:$4 sm:$0x33]  }
 0xe44   : > { %v20404_v5 = vsel %vm17945_vm7, %v10098_v27, %v8953_v12  ;;  %v9004_v27 = vld [vmem:[%s21419_s15 + $0x948] sm:$0xff]  ;;  %v9006_v12 = vld [vmem:[%s21419_s15 + $0x958] sm:$0xff] }
 0xe45   : > { %12774 = vmatpush1.bf16.msra.mxu1 %v12773_v28  ;;  %v8969_v28 = vld [vmem:[%s21419_s15 + $0x830] sm:$0xff]  ;;  %v9028_v8 = vcombine.high %v20400_v14, %v20404_v5 }
 0xe46   : > { %12776 = vmatprep.subr.bf16.mxu1 %v12775_v0  ;;  %v13950_v0 = vld [vmem:[#allocation6 + $0x38] ss:$16 sps:$4 sm:$0xff]  }
 0xe49   : > { %12778 = vmatpush1.bf16.msra.mxu1 %v12777_v19  ;;  %v12809_v19 = vpack.c.bf16 %v8969_v28, %v8967_v45  ;;  %v9005_v45 = vld [vmem:[%s21419_s15 + $0x950] sm:$0xff]  ;;  %v9008_v28 = vld [vmem:[%s21419_s15 + $0x968] sm:$0xff] }
 0xe4a   : > { %12780 = vmatprep.subr.bf16.mxu1 %v12779_v52  ;;  %v13951_v52 = vld [vmem:[#allocation6 + $0x30] ss:$16 sps:$4 sm:$0xff]  }
 0xe4d   : > { %12782 = vmatpush1.bf16.msra.mxu1 %v12781_v35  ;;  %v8976_v35 = vld [vmem:[%s21419_s15 + $0x868] sm:$0xff] }
 0xe4e   : > { %12784 = vmatprep.subr.bf16.mxu1 %v12783_v41  ;;  %v8978_v41 = vld [vmem:[%s21419_s15 + $0x878] sm:$0xff] }
 0xe4f   : > { %v12815_v59 = vpack.c.bf16 %v8978_v41, %v8976_v35  ;;  %v9011_v35 = vld [vmem:[%s21419_s15 + $0x980] sm:$0xff]  ;;  %v9013_v41 = vld [vmem:[%s21419_s15 + $0x990] sm:$0xff] }
 0xe50   : > { %v12853_v37 = vpack.c.bf16 %v9013_v41, %v9011_v35  ;;  %v9166_v35 = vld [vmem:[%s21419_s15 + $0xa50] sm:$0xff] }
 0xe51   : > { %12786 = vmatpush1.bf16.msra.mxu1 %v12785_v43  ;;  %v8980_v43 = vld [vmem:[%s21419_s15 + $0x888] sm:$0xff] }
 0xe52   : > { %12788 = vmatprep.subr.bf16.mxu1 %v12787_v55  ;;  %v8982_v55 = vld [vmem:[%s21419_s15 + $0x898] sm:$0xff] }
 0xe53   : > { %v12819_v48 = vpack.c.bf16 %v8982_v55, %v8980_v43  ;;  %v9015_v43 = vld [vmem:[%s21419_s15 + $0x9a0] sm:$0xff]  ;;  %v9017_v55 = vld [vmem:[%s21419_s15 + $0x9b0] sm:$0xff] }
 0xe54   : > { %v12857_v57 = vpack.c.bf16 %v9017_v55, %v9015_v43  ;;  %v9168_v43 = vld [vmem:[%s21419_s15 + $0xa60] sm:$0xff]  ;;  %v9170_v55 = vld [vmem:[%s21419_s15 + $0xa70] sm:$0xff] }
 0xe55   : > { %12790 = vmatpush1.bf16.msra.mxu1 %v12789_v58  ;;  %v8984_v58 = vld [vmem:[%s21419_s15 + $0x8a8] sm:$0xff] }
 0xe56   : > { %12792 = vmatprep.subr.bf16.mxu1 %v12791_v24  ;;  %v8986_v24 = vld [vmem:[%s21419_s15 + $0x8b8] sm:$0xff] }
 0xe57   : > { %v12823_v3 = vpack.c.bf16 %v8986_v24, %v8984_v58  ;;  %v13960_v58 = vld [vmem:[#allocation6 + $0x34] ss:$8 sps:$4 sm:$0x11]  }
 0xe58   : > { %v8957_v18 = vrot.slane %v13960_v58, 5  ;;  %v9172_v58 = vld [vmem:[%s21419_s15 + $0xa80] sm:$0xff] }
 0xe59   : > { %12794 = vmatpush1.bf16.msra.mxu1 %v12793_v32  ;;  %v8988_v32 = vld [vmem:[%s21419_s15 + $0x8c8] sm:$0xff] }
 0xe5a   : > { %12796 = vmatprep.subr.bf16.mxu1 %v12795_v30  ;;  %v8990_v30 = vld [vmem:[%s21419_s15 + $0x8d8] sm:$0xff] }
 0xe5b   : > { %v12827_v34 = vpack.c.bf16 %v8990_v30, %v8988_v32  ;;  %v9026_v32 = vld [vmem:[%s21419_s15 + $0x9f8] sm:$0xff]  ;;  %v13963_v30 = vld [vmem:[#allocation6 + $0x44] ss:$8 sps:$4 sm:$0x11]  }
 0xe5c   : > { %v12863_v36 = vpack.c.bf16 %v9026_v32, %v9024_v9  ;;  %v8961_v56 = vrot.slane %v13963_v30, 5  ;;  %v9176_v32 = vld [vmem:[%s21419_s15 + $0xaa0] sm:$0xff]  ;;  %v9178_v30 = vld [vmem:[%s21419_s15 + $0xab0] sm:$0xff] }
 0xe5d   : > { %12798 = vmatpush1.bf16.msra.mxu1 %v12797_v22  ;;  %v8992_v22 = vld [vmem:[%s21419_s15 + $0x8e8] sm:$0xff] }
 0xe5e   : > { %12800 = vmatprep.subr.bf16.mxu1 %v12799_v38  ;;  %v8994_v38 = vld [vmem:[%s21419_s15 + $0x8f8] sm:$0xff] }
 0xe5f   : > { %v12831_v25 = vpack.c.bf16 %v8994_v38, %v8992_v22  ;;  %v9023_v22 = vld [vmem:[%s21419_s15 + $0x9e0] sm:$0xff]  ;;  %v9025_v38 = vld [vmem:[%s21419_s15 + $0x9f0] sm:$0xff] }
 0xe61   : > { %12802 = vmatpush1.bf16.msra.mxu1 %v12801_v7  ;;  %v8995_v7 = vld [vmem:[%s21419_s15 + $0x900] sm:$0xff] }
 0xe62   : > { %12804 = vmatprep.subr.bf16.mxu1 %v12803_v53  ;;  %v8997_v53 = vld [vmem:[%s21419_s15 + $0x910] sm:$0xff] }
 0xe63   : > { %v12837_v62 = vpack.c.bf16 %v8997_v53, %v8995_v7  ;;  %v12865_v7 = vpack.c.bf16 %v9025_v38, %v9023_v22  ;;  %v12867_v53 = vpack.c.bf16 %v9159_v23, %v9157_v15  ;;  %v9180_v22 = vld [vmem:[%s21419_s15 + $0xac0] sm:$0xff]  ;;  %v9182_v38 = vld [vmem:[%s21419_s15 + $0xad0] sm:$0xff] }
 0xe64   : > { %8907 = vmatmul.mubr.f32.vlgmr.msra.gmra.mrb[84].mxu1 %v13949_v63  ;;  %v12843_v63 = vpack.c.bf16 %v9006_v12, %v9004_v27  ;;  %v9142_v12 = vrot.slane %v13966_v49, 6  ;;  %v12893_v15 = vpack.c.bf16 %v9182_v38, %v9180_v22  ;;  %v9186_v49 = vld [vmem:[%s21419_s15 + $0xaf0] sm:$0xff]  ;;  %v9216_v22 = vld [vmem:[%s21419_s15 + $0xbe0] sm:$0xff] }
 0xe65   : > { %8912 = vmatprep.mubr.f32.mxu1 %v13950_v0  ;;  %12806 = vmatpush1.bf16.msra.mxu1 %v12805_v40  ;;  %v12841_v40 = vpack.c.bf16 %v9001_v31, %v8999_v33  ;;  %v9010_v0 = vld [vmem:[%s21419_s15 + $0x978] sm:$0xff]  ;;  %v9161_v33 = vld [vmem:[%s21419_s15 + $0xa28] sm:$0xff]  ;;  %v9218_v38 = vld [vmem:[%s21419_s15 + $0xbf0] sm:$0xff] }
 0xe66   : > { %12808 = vmatprep.subr.bf16.mxu1 %v12807_v11  ;;  %v9003_v11 = vld [vmem:[%s21419_s15 + $0x940] sm:$0xff]  ;;  %v12847_v39 = vpack.c.bf16 %v9010_v0, %v9008_v28  ;;  %v9163_v31 = vld [vmem:[%s21419_s15 + $0xa38] sm:$0xff] }
 0xe67   : > { %v12845_v4 = vpack.c.bf16 %v9005_v45, %v9003_v11  ;;  %v12869_v11 = vpack.c.bf16 %v9158_v26, %v9156_v1  ;;  %v9027_v45 = vcombine.low %v20400_v14, %v20404_v5  ;;  %v12871_v28 = vpack.c.bf16 %v9163_v31, %v9161_v33  ;;  %v9160_v0 = vld [vmem:[%s21419_s15 + $0xa20] sm:$0xff]  ;;  %v9190_v26 = vld [vmem:[%s21419_s15 + $0xb10] sm:$0xff] }
 0xe68   : > { %8913 = vmatmul.mubr.f32.gmra.mrb[86].mxu1 %v13951_v52  ;;  %v9009_v52 = vld [vmem:[%s21419_s15 + $0x970] sm:$0xff]  ;;  %v9188_v1 = vld [vmem:[%s21419_s15 + $0xb00] sm:$0xff] }
 0xe69   : > { %12810 = vmatpush1.bf16.msra.mxu1 %v12809_v19  ;;  %9099 = vmatprep.mubr.f32.mxu1 %v9028_v8  ;;  %v9007_v19 = vld [vmem:[%s21419_s15 + $0x960] sm:$0xff]  ;;  %v12901_v33 = vpack.c.bf16 %v9190_v26, %v9188_v1  ;;  %v9334_v1 = vld [vmem:[%s21419_s15 + $0xc28] sm:$0xff]  ;;  %v9336_v26 = vld [vmem:[%s21419_s15 + $0xc38] sm:$0xff] }
 0xe6a   : > { %12812 = vmatprep.subr.bf16.mxu1 %v12811_v20  ;;  %v9012_v20 = vld [vmem:[%s21419_s15 + $0x988] sm:$0xff]  ;;  %v12849_v44 = vpack.c.bf16 %v9009_v52, %v9007_v19  ;;  %v9167_v52 = vld [vmem:[%s21419_s15 + $0xa58] sm:$0xff] }
 0xe6b   : > { %v12851_v8 = vpack.c.bf16 %v9014_v60, %v9012_v20  ;;  %v9165_v19 = vld [vmem:[%s21419_s15 + $0xa48] sm:$0xff] }
 0xe6d   : > { %12814 = vmatpush1.bf16.msra.mxu1 %v12813_v13  ;;  %v9016_v13 = vld [vmem:[%s21419_s15 + $0x9a8] sm:$0xff] }
 0xe6e   : > { %12816 = vmatprep.subr.bf16.mxu1 %v12815_v59  ;;  %v9018_v59 = vld [vmem:[%s21419_s15 + $0x9b8] sm:$0xff] }
 0xe6f   : > { %v12855_v46 = vpack.c.bf16 %v9018_v59, %v9016_v13  ;;  %v9169_v13 = vld [vmem:[%s21419_s15 + $0xa68] sm:$0xff]  ;;  %v9171_v59 = vld [vmem:[%s21419_s15 + $0xa78] sm:$0xff] }
 0xe71   : > { %12818 = vmatpush1.bf16.msra.mxu1 %v12817_v16  ;;  %v9020_v16 = vld [vmem:[%s21419_s15 + $0x9c8] sm:$0xff] }
 0xe72   : > { %12820 = vmatprep.subr.bf16.mxu1 %v12819_v48  ;;  %v9022_v48 = vld [vmem:[%s21419_s15 + $0x9d8] sm:$0xff] }
 0xe73   : > { %v12859_v24 = vpack.c.bf16 %v9022_v48, %v9020_v16  ;;  %v9173_v16 = vld [vmem:[%s21419_s15 + $0xa88] sm:$0xff]  ;;  %v9175_v48 = vld [vmem:[%s21419_s15 + $0xa98] sm:$0xff] }
 0xe75   : > { %12822 = vmatpush1.bf16.msra.mxu1 %v12821_v47  ;;  %v9019_v47 = vld [vmem:[%s21419_s15 + $0x9c0] sm:$0xff] }
 0xe76   : > { %12824 = vmatprep.subr.bf16.mxu1 %v12823_v3  ;;  %v9021_v3 = vld [vmem:[%s21419_s15 + $0x9d0] sm:$0xff] }
 0xe79   : > { %12826 = vmatpush1.bf16.msra.mxu1 %v12825_v61  ;;  %v12861_v61 = vpack.c.bf16 %v9021_v3, %v9019_v47  ;;  %v9177_v47 = vld [vmem:[%s21419_s15 + $0xaa8] sm:$0xff]  ;;  %v9179_v3 = vld [vmem:[%s21419_s15 + $0xab8] sm:$0xff] }
 0xe7a   : > { %12828 = vmatprep.subr.bf16.mxu1 %v12827_v34  ;;  %v10099_v34 = vrot.slane %v13958_v17, 9  ;;  %v12883_v17 = vpack.c.bf16 %v9175_v48, %v9173_v16  ;;  %v12887_v9 = vpack.c.bf16 %v9179_v3, %v9177_v47  ;;  %v9208_v16 = vld [vmem:[%s21419_s15 + $0xba0] sm:$0xff]  ;;  %v9210_v48 = vld [vmem:[%s21419_s15 + $0xbb0] sm:$0xff] }
 0xe7b   : > { %v9212_v47 = vld [vmem:[%s21419_s15 + $0xbc0] sm:$0xff]  ;;  %v9214_v3 = vld [vmem:[%s21419_s15 + $0xbd0] sm:$0xff] }
 0xe7d   : > { %12830 = vmatpush1.bf16.msra.mxu1 %v12829_v10  ;;  %v10100_v10 = vrot.slane %v13961_v29, 9 }
 0xe7e   : > { %12832 = vmatprep.subr.bf16.mxu1 %v12831_v25  ;;  %v13964_v25 = vld [vmem:[#allocation6 + $0x10] ss:$8 sps:$4 sm:$0xcc]  }
 0xe7f   : > { %v10101_v27 = vrot.slane %v13964_v25, 10  ;;  %v9187_v25 = vld [vmem:[%s21419_s15 + $0xaf8] sm:$0xff] }
 0xe81   : > { %12834 = vmatpush1.bf16.msra.mxu1 %v12833_v42  ;;  %v13967_v42 = vld [vmem:[#allocation6 + $0x20] ss:$8 sps:$4 sm:$0xcc]   ;;  %v20608_v14 = vsel %vm18161_vm10, %v10101_v27, %v9142_v12  ;;  %v9194_v12 = vld [vmem:[%s21419_s15 + $0xb30] sm:$0xff] }
 0xe82   : > { %12836 = vmatprep.subr.bf16.mxu1 %v12835_v54  ;;  %v13969_v54 = vld [vmem:[#allocation6 + $0x24] ss:$8 sps:$4 sm:$0x33]  }
 0xe83   : > { %v9192_v27 = vld [vmem:[%s21419_s15 + $0xb20] sm:$0xff] }
 0xe85   : > { %12838 = vmatpush1.bf16.msra.mxu1 %v12837_v62  ;;  %v8958_v62 = vsel %vm17945_vm7, %v10099_v34, %v8957_v18  ;;  %v9183_v34 = vld [vmem:[%s21419_s15 + $0xad8] sm:$0xff]  ;;  %v12889_v18 = vpack.c.bf16 %v9178_v30, %v9176_v32 }
 0xe86   : > { %12840 = vmatprep.subr.bf16.mxu1 %v12839_v21  ;;  %v8962_v21 = vsel %vm17945_vm7, %v10100_v10, %v8961_v56  ;;  %v9185_v10 = vld [vmem:[%s21419_s15 + $0xae8] sm:$0xff]  ;;  %v9184_v56 = vld [vmem:[%s21419_s15 + $0xae0] sm:$0xff]  ;;  %v9219_v32 = vld [vmem:[%s21419_s15 + $0xbf8] sm:$0xff] }
 0xe87   : > { %v9029_v60 = vcombine.low %v8958_v62, %v8962_v21  ;;  %v12895_v23 = vpack.c.bf16 %v9187_v25, %v9185_v10  ;;  %v13972_v30 = vld [vmem:[#allocation6 + $0x34] ss:$8 sps:$4 sm:$0x33]   ;;  %v9330_v10 = vld [vmem:[%s21419_s15 + $0xc08] sm:$0xff] }
 0xe88   : > { %v9332_v25 = vld [vmem:[%s21419_s15 + $0xc18] sm:$0xff] }
 0xe89   : > { %12842 = vmatpush1.bf16.msra.mxu1 %v12841_v40  ;;  %v10102_v40 = vrot.slane %v13967_v42, 10  ;;  %v9189_v42 = vld [vmem:[%s21419_s15 + $0xb08] sm:$0xff] }
 0xe8a   : > { %12844 = vmatprep.subr.bf16.mxu1 %v12843_v63  ;;  %v9146_v63 = vrot.slane %v13969_v54, 6  ;;  %v9191_v54 = vld [vmem:[%s21419_s15 + $0xb18] sm:$0xff] }
 0xe8c   : > { %v20612_v5 = vsel %vm18161_vm10, %v10102_v40, %v9146_v63  ;;  %v9197_v40 = vld [vmem:[%s21419_s15 + $0xb48] sm:$0xff]  ;;  %v9199_v63 = vld [vmem:[%s21419_s15 + $0xb58] sm:$0xff] }
 0xe8d   : > { %12846 = vmatpush1.bf16.msra.mxu1 %v12845_v4  ;;  %v9162_v4 = vld [vmem:[%s21419_s15 + $0xa30] sm:$0xff]  ;;  %v9221_v41 = vcombine.high %v20608_v14, %v20612_v5 }
 0xe8e   : > { %12848 = vmatprep.subr.bf16.mxu1 %v12847_v39  ;;  %v9030_v39 = vcombine.high %v8958_v62, %v8962_v21  ;;  %v12873_v20 = vpack.c.bf16 %v9162_v4, %v9160_v0  ;;  %v9193_v62 = vld [vmem:[%s21419_s15 + $0xb28] sm:$0xff]  ;;  %v9195_v21 = vld [vmem:[%s21419_s15 + $0xb38] sm:$0xff]  ;;  %v9198_v0 = vld [vmem:[%s21419_s15 + $0xb50] sm:$0xff] }
 0xe8f   : > { %v12903_v31 = vpack.c.bf16 %v9195_v21, %v9193_v62  ;;  %v9201_v4 = vld [vmem:[%s21419_s15 + $0xb68] sm:$0xff] }
 0xe91   : > { %12850 = vmatpush1.bf16.msra.mxu1 %v12849_v44  ;;  %v12875_v44 = vpack.c.bf16 %v9167_v52, %v9165_v19 }
 0xe92   : > { %12852 = vmatprep.subr.bf16.mxu1 %v12851_v8  ;;  %v9164_v8 = vld [vmem:[%s21419_s15 + $0xa40] sm:$0xff] }
 0xe95   : > { %12854 = vmatpush1.bf16.msra.mxu1 %v12853_v37  ;;  %v12877_v37 = vpack.c.bf16 %v9166_v35, %v9164_v8  ;;  %v9207_v8 = vld [vmem:[%s21419_s15 + $0xb98] sm:$0xff] }
 0xe96   : > { %12856 = vmatprep.subr.bf16.mxu1 %v12855_v46  ;;  %v12879_v46 = vpack.c.bf16 %v9171_v59, %v9169_v13  ;;  %v9204_v13 = vld [vmem:[%s21419_s15 + $0xb80] sm:$0xff]  ;;  %v9206_v59 = vld [vmem:[%s21419_s15 + $0xb90] sm:$0xff] }
 0xe99   : > { %12858 = vmatpush1.bf16.msra.mxu1 %v12857_v57  ;;  %v12881_v57 = vpack.c.bf16 %v9170_v55, %v9168_v43  ;;  %v12917_v43 = vpack.c.bf16 %v9206_v59, %v9204_v13 }
 0xe9a   : > { %12860 = vmatprep.subr.bf16.mxu1 %v12859_v24  ;;  %v9174_v24 = vld [vmem:[%s21419_s15 + $0xa90] sm:$0xff] }
 0xe9b   : > { %v12885_v29 = vpack.c.bf16 %v9174_v24, %v9172_v58  ;;  %v12921_v58 = vpack.c.bf16 %v9210_v48, %v9208_v16 }
 0xe9d   : > { %12862 = vmatpush1.bf16.msra.mxu1 %v12861_v61  ;;  %v9181_v61 = vld [vmem:[%s21419_s15 + $0xac8] sm:$0xff] }
 0xe9e   : > { %12864 = vmatprep.subr.bf16.mxu1 %v12863_v36  ;;  %v12891_v36 = vpack.c.bf16 %v9183_v34, %v9181_v61  ;;  %v13973_v61 = vld [vmem:[#allocation6 + $0x40] ss:$8 sps:$4 sm:$0xcc]   ;;  %v13975_v34 = vld [vmem:[#allocation6 + $0x44] ss:$8 sps:$4 sm:$0x33]  }
 0xea1   : > { %12866 = vmatpush1.bf16.msra.mxu1 %v12865_v7  ;;  %v12897_v7 = vpack.c.bf16 %v9186_v49, %v9184_v56  ;;  %v10104_v56 = vrot.slane %v13973_v61, 10  ;;  %v9154_v49 = vrot.slane %v13975_v34, 6 }
 0xea2   : > { %12868 = vmatprep.subr.bf16.mxu1 %v12867_v53  ;;  %v12899_v53 = vpack.c.bf16 %v9191_v54, %v9189_v42  ;;  %v12929_v42 = vpack.c.bf16 %v9218_v38, %v9216_v22  ;;  %v12931_v54 = vpack.c.bf16 %v9332_v25, %v9330_v10  ;;  %v9362_v22 = vld [vmem:[%s21419_s15 + $0xd08] sm:$0xff]  ;;  %v9364_v38 = vld [vmem:[%s21419_s15 + $0xd18] sm:$0xff] }
 0xea3   : > { %v9155_v21 = vsel %vm18161_vm10, %v10104_v56, %v9154_v49  ;;  %v12963_v25 = vpack.c.bf16 %v9364_v38, %v9362_v22  ;;  %v9366_v56 = vld [vmem:[%s21419_s15 + $0xd28] sm:$0xff]  ;;  %v9368_v49 = vld [vmem:[%s21419_s15 + $0xd38] sm:$0xff] }
 0xea4   : > { %9100 = vmatmul.mubr.f32.vlgmr.msra.gmra.mrb[84].mxu1 %v9027_v45  ;;  %v12907_v45 = vpack.c.bf16 %v9199_v63, %v9197_v40  ;;  %v9335_v40 = vld [vmem:[%s21419_s15 + $0xc30] sm:$0xff] }
 0xea5   : > { %9105 = vmatprep.mubr.f32.mxu1 %v9030_v39  ;;  %12870 = vmatpush1.bf16.msra.mxu1 %v12869_v11  ;;  %v12905_v11 = vpack.c.bf16 %v9194_v12, %v9192_v27  ;;  %v9203_v39 = vld [vmem:[%s21419_s15 + $0xb78] sm:$0xff]  ;;  %v12935_v27 = vpack.c.bf16 %v9336_v26, %v9334_v1  ;;  %v9333_v12 = vld [vmem:[%s21419_s15 + $0xc20] sm:$0xff]  ;;  %v9370_v1 = vld [vmem:[%s21419_s15 + $0xd48] sm:$0xff] }
 0xea6   : > { %12872 = vmatprep.subr.bf16.mxu1 %v12871_v28  ;;  %v9196_v28 = vld [vmem:[%s21419_s15 + $0xb40] sm:$0xff]  ;;  %v12911_v52 = vpack.c.bf16 %v9203_v39, %v9201_v4  ;;  %v9339_v4 = vld [vmem:[%s21419_s15 + $0xc50] sm:$0xff]  ;;  %v13976_v39 = vld [vmem:[#allocation6 + $0x28] ss:$16 sps:$4 sm:$0xff]  }
 0xea7   : > { %v12909_v19 = vpack.c.bf16 %v9198_v0, %v9196_v28  ;;  %v9337_v0 = vld [vmem:[%s21419_s15 + $0xc40] sm:$0xff]  ;;  %v9372_v26 = vld [vmem:[%s21419_s15 + $0xd58] sm:$0xff] }
 0xea8   : > { %9106 = vmatmul.mubr.f32.gmra.mrb[86].mxu1 %v9029_v60  ;;  %v9202_v60 = vld [vmem:[%s21419_s15 + $0xb70] sm:$0xff] }
 0xea9   : > { %12874 = vmatpush1.bf16.msra.mxu1 %v12873_v20  ;;  %9292 = vmatprep.mubr.f32.mxu1 %v9221_v41  ;;  %v9200_v20 = vld [vmem:[%s21419_s15 + $0xb60] sm:$0xff] }
 0xeaa   : > { %12876 = vmatprep.subr.bf16.mxu1 %v12875_v44  ;;  %v9205_v44 = vld [vmem:[%s21419_s15 + $0xb88] sm:$0xff]  ;;  %v12913_v35 = vpack.c.bf16 %v9202_v60, %v9200_v20  ;;  %v12941_v20 = vpack.c.bf16 %v9339_v4, %v9337_v0  ;;  %v9377_v4 = vld [vmem:[%s21419_s15 + $0xd80] sm:$0xff] }
 0xeab   : > { %v12915_v41 = vpack.c.bf16 %v9207_v8, %v9205_v44  ;;  %v9341_v44 = vld [vmem:[%s21419_s15 + $0xc60] sm:$0xff]  ;;  %v9343_v8 = vld [vmem:[%s21419_s15 + $0xc70] sm:$0xff] }
 0xeac   : > { %v12945_v13 = vpack.c.bf16 %v9343_v8, %v9341_v44  ;;  %v9381_v44 = vld [vmem:[%s21419_s15 + $0xda0] sm:$0xff]  ;;  %v9383_v8 = vld [vmem:[%s21419_s15 + $0xdb0] sm:$0xff] }
 0xead   : > { %12878 = vmatpush1.bf16.msra.mxu1 %v12877_v37  ;;  %v9209_v37 = vld [vmem:[%s21419_s15 + $0xba8] sm:$0xff] }
 0xeae   : > { %12880 = vmatprep.subr.bf16.mxu1 %v12879_v46  ;;  %v9211_v46 = vld [vmem:[%s21419_s15 + $0xbb8] sm:$0xff] }
 0xeaf   : > { %v12919_v55 = vpack.c.bf16 %v9211_v46, %v9209_v37  ;;  %v9345_v37 = vld [vmem:[%s21419_s15 + $0xc80] sm:$0xff]  ;;  %v9347_v46 = vld [vmem:[%s21419_s15 + $0xc90] sm:$0xff] }
 0xeb0   : > { %v12949_v16 = vpack.c.bf16 %v9347_v46, %v9345_v37  ;;  %v9385_v37 = vld [vmem:[%s21419_s15 + $0xdc0] sm:$0xff]  ;;  %v9387_v46 = vld [vmem:[%s21419_s15 + $0xdd0] sm:$0xff] }
 0xeb1   : > { %12882 = vmatpush1.bf16.msra.mxu1 %v12881_v57  ;;  %v9213_v57 = vld [vmem:[%s21419_s15 + $0xbc8] sm:$0xff] }
 0xeb2   : > { %12884 = vmatprep.subr.bf16.mxu1 %v12883_v17  ;;  %v9215_v17 = vld [vmem:[%s21419_s15 + $0xbd8] sm:$0xff] }
 0xeb3   : > { %v12923_v24 = vpack.c.bf16 %v9215_v17, %v9213_v57  ;;  %v9349_v57 = vld [vmem:[%s21419_s15 + $0xca0] sm:$0xff]  ;;  %v9351_v17 = vld [vmem:[%s21419_s15 + $0xcb0] sm:$0xff] }
 0xeb5   : > { %12886 = vmatpush1.bf16.msra.mxu1 %v12885_v29  ;;  %v13970_v29 = vld [vmem:[#allocation6 + $0x30] ss:$8 sps:$4 sm:$0xcc]  }
 0xeb6   : > { %12888 = vmatprep.subr.bf16.mxu1 %v12887_v9  ;;  %v9217_v9 = vld [vmem:[%s21419_s15 + $0xbe8] sm:$0xff] }
 0xeb9   : > { %12890 = vmatpush1.bf16.msra.mxu1 %v12889_v18  ;;  %v12925_v18 = vpack.c.bf16 %v9214_v3, %v9212_v47  ;;  %v12953_v47 = vpack.c.bf16 %v9351_v17, %v9349_v57  ;;  %v9389_v57 = vld [vmem:[%s21419_s15 + $0xde0] sm:$0xff]  ;;  %v9391_v17 = vld [vmem:[%s21419_s15 + $0xdf0] sm:$0xff] }
 0xeba   : > { %12892 = vmatprep.subr.bf16.mxu1 %v12891_v36  ;;  %v12927_v36 = vpack.c.bf16 %v9219_v32, %v9217_v9  ;;  %v9355_v9 = vld [vmem:[%s21419_s15 + $0xcd0] sm:$0xff]  ;;  %v9358_v32 = vld [vmem:[%s21419_s15 + $0xce8] sm:$0xff] }
 0xebd   : > { %12894 = vmatpush1.bf16.msra.mxu1 %v12893_v15  ;;  %v10103_v15 = vrot.slane %v13970_v29, 10  ;;  %v9353_v29 = vld [vmem:[%s21419_s15 + $0xcc0] sm:$0xff] }
 0xebe   : > { %12896 = vmatprep.subr.bf16.mxu1 %v12895_v23  ;;  %v9150_v23 = vrot.slane %v13972_v30, 6  ;;  %v9360_v30 = vld [vmem:[%s21419_s15 + $0xcf8] sm:$0xff]  ;;  %v12957_v61 = vpack.c.bf16 %v9355_v9, %v9353_v29  ;;  %v12993_v29 = vpack.c.bf16 %v9391_v17, %v9389_v57  ;;  %v13980_v9 = vld [vmem:[#allocation6 + $0x20] ss:$8 sps:$4 sm:$0xee]  }
 0xebf   : > { %v12959_v34 = vpack.c.bf16 %v9360_v30, %v9358_v32  ;;  %v9522_v30 = vld [vmem:[%s21419_s15 + $0xe00] sm:$0xff] }
 0xec0   : > { %v9151_v62 = vsel %vm18161_vm10, %v10103_v15, %v9150_v23  ;;  %v9361_v15 = vld [vmem:[%s21419_s15 + $0xd00] sm:$0xff]  ;;  %v9363_v23 = vld [vmem:[%s21419_s15 + $0xd10] sm:$0xff] }
 0xec1   : > { %12898 = vmatpush1.bf16.msra.mxu1 %v12897_v7  ;;  %v9329_v7 = vld [vmem:[%s21419_s15 + $0xc00] sm:$0xff]  ;;  %v9223_v63 = vcombine.high %v9151_v62, %v9155_v21 }
 0xec2   : > { %12900 = vmatprep.subr.bf16.mxu1 %v12899_v53  ;;  %v9331_v53 = vld [vmem:[%s21419_s15 + $0xc10] sm:$0xff] }
 0xec5   : > { %12902 = vmatpush1.bf16.msra.mxu1 %v12901_v33  ;;  %v12933_v33 = vpack.c.bf16 %v9331_v53, %v9329_v7  ;;  %v9365_v7 = vld [vmem:[%s21419_s15 + $0xd20] sm:$0xff]  ;;  %v9367_v53 = vld [vmem:[%s21419_s15 + $0xd30] sm:$0xff] }
 0xec6   : > { %12904 = vmatprep.subr.bf16.mxu1 %v12903_v31  ;;  %v9220_v31 = vcombine.low %v20608_v14, %v20612_v5  ;;  %v12937_v14 = vpack.c.bf16 %v9335_v40, %v9333_v12  ;;  %v9222_v5 = vcombine.low %v9151_v62, %v9155_v21  ;;  %v12969_v62 = vpack.c.bf16 %v9367_v53, %v9365_v7  ;;  %v9376_v12 = vld [vmem:[%s21419_s15 + $0xd78] sm:$0xff]  ;;  %v9531_v7 = vld [vmem:[%s21419_s15 + $0xe48] sm:$0xff] }
 0xec7   : > { %v12971_v21 = vpack.c.bf16 %v9372_v26, %v9370_v1  ;;  %v9533_v53 = vld [vmem:[%s21419_s15 + $0xe58] sm:$0xff] }
 0xec9   : > { %12906 = vmatpush1.bf16.msra.mxu1 %v12905_v11  ;;  %v9338_v11 = vld [vmem:[%s21419_s15 + $0xc48] sm:$0xff] }
 0xeca   : > { %12908 = vmatprep.subr.bf16.mxu1 %v12907_v45  ;;  %v9340_v45 = vld [vmem:[%s21419_s15 + $0xc58] sm:$0xff] }
 0xecb   : > { %v12939_v28 = vpack.c.bf16 %v9340_v45, %v9338_v11  ;;  %v9373_v11 = vld [vmem:[%s21419_s15 + $0xd60] sm:$0xff]  ;;  %v9375_v45 = vld [vmem:[%s21419_s15 + $0xd70] sm:$0xff] }
 0xecd   : > { %12910 = vmatpush1.bf16.msra.mxu1 %v12909_v19  ;;  %v9342_v19 = vld [vmem:[%s21419_s15 + $0xc68] sm:$0xff] }
 0xece   : > { %12912 = vmatprep.subr.bf16.mxu1 %v12911_v52  ;;  %v9344_v52 = vld [vmem:[%s21419_s15 + $0xc78] sm:$0xff] }
 0xecf   : > { %v12943_v60 = vpack.c.bf16 %v9344_v52, %v9342_v19  ;;  %v9382_v19 = vld [vmem:[%s21419_s15 + $0xda8] sm:$0xff]  ;;  %v9384_v52 = vld [vmem:[%s21419_s15 + $0xdb8] sm:$0xff] }
 0xed1   : > { %12914 = vmatpush1.bf16.msra.mxu1 %v12913_v35  ;;  %v9346_v35 = vld [vmem:[%s21419_s15 + $0xc88] sm:$0xff] }
 0xed2   : > { %12916 = vmatprep.subr.bf16.mxu1 %v12915_v41  ;;  %v9348_v41 = vld [vmem:[%s21419_s15 + $0xc98] sm:$0xff] }
 0xed3   : > { %v12947_v59 = vpack.c.bf16 %v9348_v41, %v9346_v35  ;;  %v9386_v35 = vld [vmem:[%s21419_s15 + $0xdc8] sm:$0xff]  ;;  %v9388_v41 = vld [vmem:[%s21419_s15 + $0xdd8] sm:$0xff] }
 0xed5   : > { %12918 = vmatpush1.bf16.msra.mxu1 %v12917_v43  ;;  %v9350_v43 = vld [vmem:[%s21419_s15 + $0xca8] sm:$0xff] }
 0xed6   : > { %12920 = vmatprep.subr.bf16.mxu1 %v12919_v55  ;;  %v9352_v55 = vld [vmem:[%s21419_s15 + $0xcb8] sm:$0xff] }
 0xed7   : > { %v12951_v48 = vpack.c.bf16 %v9352_v55, %v9350_v43  ;;  %v9390_v43 = vld [vmem:[%s21419_s15 + $0xde8] sm:$0xff]  ;;  %v9392_v55 = vld [vmem:[%s21419_s15 + $0xdf8] sm:$0xff] }
 0xed9   : > { %12922 = vmatpush1.bf16.msra.mxu1 %v12921_v58  ;;  %v9354_v58 = vld [vmem:[%s21419_s15 + $0xcc8] sm:$0xff] }
 0xeda   : > { %12924 = vmatprep.subr.bf16.mxu1 %v12923_v24  ;;  %v9356_v24 = vld [vmem:[%s21419_s15 + $0xcd8] sm:$0xff] }
 0xedb   : > { %v12955_v3 = vpack.c.bf16 %v9356_v24, %v9354_v58  ;;  %v9523_v58 = vld [vmem:[%s21419_s15 + $0xe08] sm:$0xff]  ;;  %v9525_v24 = vld [vmem:[%s21419_s15 + $0xe18] sm:$0xff] }
 0xedc   : > { %v12995_v32 = vpack.c.bf16 %v9525_v24, %v9523_v58  ;;  %v9550_v58 = vld [vmem:[%s21419_s15 + $0xee0] sm:$0xff]  ;;  %v9552_v24 = vld [vmem:[%s21419_s15 + $0xef0] sm:$0xff] }
 0xedd   : > { %12926 = vmatpush1.bf16.msra.mxu1 %v12925_v18  ;;  %v9357_v18 = vld [vmem:[%s21419_s15 + $0xce0] sm:$0xff] }
 0xede   : > { %12928 = vmatprep.subr.bf16.mxu1 %v12927_v36  ;;  %v9359_v36 = vld [vmem:[%s21419_s15 + $0xcf0] sm:$0xff] }
 0xedf   : > { %v12961_v10 = vpack.c.bf16 %v9359_v36, %v9357_v18  ;;  %v9527_v18 = vld [vmem:[%s21419_s15 + $0xe28] sm:$0xff]  ;;  %v9529_v36 = vld [vmem:[%s21419_s15 + $0xe38] sm:$0xff] }
 0xee1   : > { %12930 = vmatpush1.bf16.msra.mxu1 %v12929_v42  ;;  %v12965_v42 = vpack.c.bf16 %v9363_v23, %v9361_v15  ;;  %v12999_v15 = vpack.c.bf16 %v9529_v36, %v9527_v18  ;;  %v9526_v23 = vld [vmem:[%s21419_s15 + $0xe20] sm:$0xff] }
 0xee2   : > { %12932 = vmatprep.subr.bf16.mxu1 %v12931_v54  ;;  %v12967_v54 = vpack.c.bf16 %v9368_v49, %v9366_v56  ;;  %v9528_v56 = vld [vmem:[%s21419_s15 + $0xe30] sm:$0xff]  ;;  %v10109_v49 = vrot.slane %v13980_v9, 9 }
 0xee3   : > { %v13001_v26 = vpack.c.bf16 %v9528_v56, %v9526_v23  ;;  %v9562_v56 = vld [vmem:[%s21419_s15 + $0xf40] sm:$0xff] }
 0xee4   : > { %9293 = vmatmul.mubr.f32.vlgmr.msra.gmra.mrb[84].mxu1 %v9220_v31  ;;  %v9371_v31 = vld [vmem:[%s21419_s15 + $0xd50] sm:$0xff] }
 0xee5   : > { %9298 = vmatprep.mubr.f32.mxu1 %v9223_v63  ;;  %12934 = vmatpush1.bf16.msra.mxu1 %v12933_v33  ;;  %v9369_v33 = vld [vmem:[%s21419_s15 + $0xd40] sm:$0xff] }
 0xee6   : > { %12936 = vmatprep.subr.bf16.mxu1 %v12935_v27  ;;  %v9374_v27 = vld [vmem:[%s21419_s15 + $0xd68] sm:$0xff]  ;;  %v12973_v40 = vpack.c.bf16 %v9371_v31, %v9369_v33  ;;  %v13003_v33 = vpack.c.bf16 %v9533_v53, %v9531_v7  ;;  %v9530_v31 = vld [vmem:[%s21419_s15 + $0xe40] sm:$0xff] }
 0xee7   : > { %v12975_v63 = vpack.c.bf16 %v9376_v12, %v9374_v27  ;;  %v9532_v27 = vld [vmem:[%s21419_s15 + $0xe50] sm:$0xff] }
 0xee8   : > { %9299 = vmatmul.mubr.f32.gmra.mrb[86].mxu1 %v9222_v5  ;;  %v9380_v5 = vld [vmem:[%s21419_s15 + $0xd98] sm:$0xff] }
 0xee9   : > { %12938 = vmatpush1.bf16.msra.mxu1 %v12937_v14  ;;  %9465 = vmatprep.mubr.f32.mxu1 %v13976_v39  ;;  %v9378_v14 = vld [vmem:[%s21419_s15 + $0xd88] sm:$0xff]  ;;  %v9379_v39 = vld [vmem:[%s21419_s15 + $0xd90] sm:$0xff] }
 0xeea   : > { %12940 = vmatprep.subr.bf16.mxu1 %v12939_v28  ;;  %v12977_v28 = vpack.c.bf16 %v9375_v45, %v9373_v11  ;;  %v12979_v0 = vpack.c.bf16 %v9380_v5, %v9378_v14  ;;  %v13005_v11 = vpack.c.bf16 %v9532_v27, %v9530_v31  ;;  %v9534_v14 = vld [vmem:[%s21419_s15 + $0xe60] sm:$0xff]  ;;  %v9536_v5 = vld [vmem:[%s21419_s15 + $0xe70] sm:$0xff]  ;;  %v9573_v31 = vld [vmem:[%s21419_s15 + $0xf98] sm:$0xff] }
 0xeed   : > { %12942 = vmatpush1.bf16.msra.mxu1 %v12941_v20  ;;  %v12981_v20 = vpack.c.bf16 %v9379_v39, %v9377_v4  ;;  %v13009_v4 = vpack.c.bf16 %v9536_v5, %v9534_v14 }
 0xeee   : > { %12944 = vmatprep.subr.bf16.mxu1 %v12943_v60  ;;  %v12983_v60 = vpack.c.bf16 %v9384_v52, %v9382_v19  ;;  %v9538_v19 = vld [vmem:[%s21419_s15 + $0xe80] sm:$0xff]  ;;  %v9540_v52 = vld [vmem:[%s21419_s15 + $0xe90] sm:$0xff] }
 0xef1   : > { %12946 = vmatpush1.bf16.msra.mxu1 %v12945_v13  ;;  %v12985_v13 = vpack.c.bf16 %v9383_v8, %v9381_v44  ;;  %v13013_v44 = vpack.c.bf16 %v9540_v52, %v9538_v19  ;;  %v13989_v52 = vld [vmem:[#allocation6 + $0x50] ss:$8 sps:$4 sm:$0xee]  }
 0xef2   : > { %12948 = vmatprep.subr.bf16.mxu1 %v12947_v59  ;;  %v12987_v59 = vpack.c.bf16 %v9388_v41, %v9386_v35  ;;  %v9542_v35 = vld [vmem:[%s21419_s15 + $0xea0] sm:$0xff]  ;;  %v9544_v41 = vld [vmem:[%s21419_s15 + $0xeb0] sm:$0xff] }
 0xef5   : > { %12950 = vmatpush1.bf16.msra.mxu1 %v12949_v16  ;;  %v12989_v16 = vpack.c.bf16 %v9387_v46, %v9385_v37  ;;  %v13017_v37 = vpack.c.bf16 %v9544_v41, %v9542_v35  ;;  %v13986_v35 = vld [vmem:[#allocation6 + $0x40] ss:$8 sps:$4 sm:$0xee]  }
 0xef6   : > { %12952 = vmatprep.subr.bf16.mxu1 %v12951_v48  ;;  %v12991_v48 = vpack.c.bf16 %v9392_v55, %v9390_v43  ;;  %v9546_v43 = vld [vmem:[%s21419_s15 + $0xec0] sm:$0xff]  ;;  %v9548_v55 = vld [vmem:[%s21419_s15 + $0xed0] sm:$0xff]  ;;  %v9583_v41 = vld [vmem:[%s21419_s15 + $0xfe8] sm:$0xff] }
 0xef7   : > { %v13021_v57 = vpack.c.bf16 %v9548_v55, %v9546_v43  ;;  %v9582_v43 = vld [vmem:[%s21419_s15 + $0xfe0] sm:$0xff]  ;;  %v9584_v55 = vld [vmem:[%s21419_s15 + $0xff0] sm:$0xff] }
 0xef9   : > { %12954 = vmatpush1.bf16.msra.mxu1 %v12953_v47  ;;  %v13983_v47 = vld [vmem:[#allocation6 + $0x30] ss:$8 sps:$4 sm:$0xee]  }
 0xefa   : > { %12956 = vmatprep.subr.bf16.mxu1 %v12955_v3  ;;  %v13985_v3 = vld [vmem:[#allocation6 + $0x34] ss:$8 sps:$4 sm:$0x11]   ;;  %v10110_v22 = vrot.slane %v13983_v47, 9  ;;  %v9555_v47 = vld [vmem:[%s21419_s15 + $0xf08] sm:$0xff] }
 0xefb   : > { %v9512_v38 = vrot.slane %v13985_v3, 5  ;;  %v9557_v3 = vld [vmem:[%s21419_s15 + $0xf18] sm:$0xff] }
 0xefc   : > { %v13027_v9 = vpack.c.bf16 %v9557_v3, %v9555_v47  ;;  %v13995_v47 = vld [vmem:[#allocation6 + $0x30] ss:$8 sps:$4 sm:$0xcc]   ;;  %v13997_v3 = vld [vmem:[#allocation6 + $0x34] ss:$8 sps:$4 sm:$0x33]  }
 0xefd   : > { %12958 = vmatpush1.bf16.msra.mxu1 %v12957_v61  ;;  %v9524_v61 = vld [vmem:[%s21419_s15 + $0xe10] sm:$0xff]  ;;  %v21008_v1 = vsel %vm17945_vm7, %v10110_v22, %v9512_v38  ;;  %v9558_v22 = vld [vmem:[%s21419_s15 + $0xf20] sm:$0xff] }
 0xefe   : > { %12960 = vmatprep.subr.bf16.mxu1 %v12959_v34  ;;  %v13982_v34 = vld [vmem:[#allocation6 + $0x24] ss:$8 sps:$4 sm:$0x11]   ;;  %v9560_v38 = vld [vmem:[%s21419_s15 + $0xf30] sm:$0xff] }
 0xf01   : > { %12962 = vmatpush1.bf16.msra.mxu1 %v12961_v10  ;;  %v12997_v10 = vpack.c.bf16 %v9524_v61, %v9522_v30  ;;  %v9556_v30 = vld [vmem:[%s21419_s15 + $0xf10] sm:$0xff]  ;;  %v9559_v61 = vld [vmem:[%s21419_s15 + $0xf28] sm:$0xff] }
 0xf02   : > { %12964 = vmatprep.subr.bf16.mxu1 %v12963_v25  ;;  %v13977_v25 = vld [vmem:[#allocation6 + $0x20] ss:$16 sps:$4 sm:$0xff]  }
 0xf05   : > { %12966 = vmatpush1.bf16.msra.mxu1 %v12965_v42  ;;  %v9508_v42 = vrot.slane %v13982_v34, 5  ;;  %v9561_v34 = vld [vmem:[%s21419_s15 + $0xf38] sm:$0xff] }
 0xf06   : > { %12968 = vmatprep.subr.bf16.mxu1 %v12967_v54  ;;  %v13978_v54 = vld [vmem:[#allocation6 + $0x48] ss:$16 sps:$4 sm:$0xff]   ;;  %v13031_v36 = vpack.c.bf16 %v9561_v34, %v9559_v61  ;;  %v9717_v61 = vld [vmem:[%s21419_s15 + $0x1010] sm:$0xff]  ;;  %v13994_v34 = vld [vmem:[#allocation6 + $0x24] ss:$8 sps:$4 sm:$0x33]  }
 0xf07   : > { %v9701_v6 = vrot.slane %v13994_v34, 6  ;;  %v9752_v34 = vld [vmem:[%s21419_s15 + $0x1128] sm:$0xff] }
 0xf09   : > { %12970 = vmatpush1.bf16.msra.mxu1 %v12969_v62  ;;  %v13979_v62 = vld [vmem:[#allocation6 + $0x40] ss:$16 sps:$4 sm:$0xff]  }
 0xf0a   : > { %12972 = vmatprep.subr.bf16.mxu1 %v12971_v21  ;;  %v21012_v21 = vsel %vm17945_vm7, %v10109_v49, %v9508_v42  ;;  %v9564_v49 = vld [vmem:[%s21419_s15 + $0xf50] sm:$0xff]  ;;  %v9567_v42 = vld [vmem:[%s21419_s15 + $0xf68] sm:$0xff] }
 0xf0b   : > { %v9587_v12 = vcombine.high %v21012_v21, %v21008_v1  ;;  %v13037_v7 = vpack.c.bf16 %v9564_v49, %v9562_v56  ;;  %v9719_v49 = vld [vmem:[%s21419_s15 + $0x1020] sm:$0xff] }
 0xf0d   : > { %12974 = vmatpush1.bf16.msra.mxu1 %v12973_v40  ;;  %v9535_v40 = vld [vmem:[%s21419_s15 + $0xe68] sm:$0xff] }
 0xf0e   : > { %12976 = vmatprep.subr.bf16.mxu1 %v12975_v63  ;;  %v9537_v63 = vld [vmem:[%s21419_s15 + $0xe78] sm:$0xff] }
 0xf0f   : > { %v13007_v45 = vpack.c.bf16 %v9537_v63, %v9535_v40  ;;  %v9570_v40 = vld [vmem:[%s21419_s15 + $0xf80] sm:$0xff]  ;;  %v9572_v63 = vld [vmem:[%s21419_s15 + $0xf90] sm:$0xff] }
 0xf10   : > { %v13045_v14 = vpack.c.bf16 %v9572_v63, %v9570_v40  ;;  %v9728_v63 = vld [vmem:[%s21419_s15 + $0x1068] sm:$0xff] }
 0xf11   : > { %12978 = vmatpush1.bf16.msra.mxu1 %v12977_v28  ;;  %v9539_v28 = vld [vmem:[%s21419_s15 + $0xe88] sm:$0xff] }
 0xf12   : > { %12980 = vmatprep.subr.bf16.mxu1 %v12979_v0  ;;  %v9541_v0 = vld [vmem:[%s21419_s15 + $0xe98] sm:$0xff] }
 0xf13   : > { %v13011_v39 = vpack.c.bf16 %v9541_v0, %v9539_v28  ;;  %v9574_v28 = vld [vmem:[%s21419_s15 + $0xfa0] sm:$0xff]  ;;  %v9576_v0 = vld [vmem:[%s21419_s15 + $0xfb0] sm:$0xff] }
 0xf14   : > { %v13049_v19 = vpack.c.bf16 %v9576_v0, %v9574_v28  ;;  %v9729_v28 = vld [vmem:[%s21419_s15 + $0x1070] sm:$0xff]  ;;  %v9732_v0 = vld [vmem:[%s21419_s15 + $0x1088] sm:$0xff] }
 0xf15   : > { %12982 = vmatpush1.bf16.msra.mxu1 %v12981_v20  ;;  %v9543_v20 = vld [vmem:[%s21419_s15 + $0xea8] sm:$0xff] }
 0xf16   : > { %12984 = vmatprep.subr.bf16.mxu1 %v12983_v60  ;;  %v9545_v60 = vld [vmem:[%s21419_s15 + $0xeb8] sm:$0xff] }
 0xf17   : > { %v13015_v8 = vpack.c.bf16 %v9545_v60, %v9543_v20  ;;  %v13991_v20 = vld [vmem:[#allocation6 + $0x54] ss:$8 sps:$4 sm:$0x11]  }
 0xf19   : > { %12986 = vmatpush1.bf16.msra.mxu1 %v12985_v13  ;;  %v9547_v13 = vld [vmem:[%s21419_s15 + $0xec8] sm:$0xff] }
 0xf1a   : > { %12988 = vmatprep.subr.bf16.mxu1 %v12987_v59  ;;  %v9549_v59 = vld [vmem:[%s21419_s15 + $0xed8] sm:$0xff] }
 0xf1b   : > { %v13019_v46 = vpack.c.bf16 %v9549_v59, %v9547_v13  ;;  %v9585_v13 = vld [vmem:[%s21419_s15 + $0xff8] sm:$0xff]  ;;  %v13988_v59 = vld [vmem:[#allocation6 + $0x44] ss:$8 sps:$4 sm:$0x11]  }
 0xf1d   : > { %12990 = vmatpush1.bf16.msra.mxu1 %v12989_v16  ;;  %v9551_v16 = vld [vmem:[%s21419_s15 + $0xee8] sm:$0xff] }
 0xf1e   : > { %12992 = vmatprep.subr.bf16.mxu1 %v12991_v48  ;;  %v9553_v48 = vld [vmem:[%s21419_s15 + $0xef8] sm:$0xff] }
 0xf1f   : > { %v13023_v17 = vpack.c.bf16 %v9553_v48, %v9551_v16  ;;  %v9716_v16 = vld [vmem:[%s21419_s15 + $0x1008] sm:$0xff]  ;;  %v9718_v48 = vld [vmem:[%s21419_s15 + $0x1018] sm:$0xff] }
 0xf21   : > { %12994 = vmatpush1.bf16.msra.mxu1 %v12993_v29  ;;  %v13025_v29 = vpack.c.bf16 %v9552_v24, %v9550_v58  ;;  %v10112_v58 = vrot.slane %v13989_v52, 9  ;;  %v9520_v24 = vrot.slane %v13991_v20, 5  ;;  %v9731_v52 = vld [vmem:[%s21419_s15 + $0x1080] sm:$0xff]  ;;  %v9733_v20 = vld [vmem:[%s21419_s15 + $0x1090] sm:$0xff] }
 0xf22   : > { %12996 = vmatprep.subr.bf16.mxu1 %v12995_v32  ;;  %v9554_v32 = vld [vmem:[%s21419_s15 + $0xf00] sm:$0xff] }
 0xf23   : > { %v13029_v18 = vpack.c.bf16 %v9556_v30, %v9554_v32  ;;  %v13059_v32 = vpack.c.bf16 %v9718_v48, %v9716_v16  ;;  %v9715_v30 = vld [vmem:[%s21419_s15 + $0x1000] sm:$0xff]  ;;  %v9741_v16 = vld [vmem:[%s21419_s15 + $0x10d0] sm:$0xff]  ;;  %v9744_v48 = vld [vmem:[%s21419_s15 + $0x10e8] sm:$0xff] }
 0xf24   : > { %9466 = vmatmul.mubr.f32.vlgmr.msra.gmra.mrb[84].mxu1 %v13977_v25  ;;  %v9565_v25 = vld [vmem:[%s21419_s15 + $0xf58] sm:$0xff] }
 0xf25   : > { %9471 = vmatprep.mubr.f32.mxu1 %v13978_v54  ;;  %12998 = vmatpush1.bf16.msra.mxu1 %v12997_v10  ;;  %v9563_v10 = vld [vmem:[%s21419_s15 + $0xf48] sm:$0xff]  ;;  %v9569_v54 = vld [vmem:[%s21419_s15 + $0xf78] sm:$0xff] }
 0xf26   : > { %13000 = vmatprep.subr.bf16.mxu1 %v12999_v15  ;;  %v13033_v15 = vpack.c.bf16 %v9560_v38, %v9558_v22  ;;  %v13035_v23 = vpack.c.bf16 %v9565_v25, %v9563_v10  ;;  %v13039_v53 = vpack.c.bf16 %v9569_v54, %v9567_v42  ;;  %v9521_v38 = vsel %vm17945_vm7, %v10112_v58, %v9520_v24  ;;  %v9721_v42 = vld [vmem:[%s21419_s15 + $0x1030] sm:$0xff]  ;;  %v9743_v24 = vld [vmem:[%s21419_s15 + $0x10e0] sm:$0xff] }
 0xf27   : > { %v10114_v10 = vrot.slane %v13995_v47, 10  ;;  %v9705_v25 = vrot.slane %v13997_v3, 6  ;;  %v9745_v47 = vld [vmem:[%s21419_s15 + $0x10f0] sm:$0xff]  ;;  %v9748_v3 = vld [vmem:[%s21419_s15 + $0x1108] sm:$0xff] }
 0xf28   : > { %9472 = vmatmul.mubr.f32.gmra.mrb[86].mxu1 %v13979_v62  ;;  %v9568_v62 = vld [vmem:[%s21419_s15 + $0xf70] sm:$0xff] }
 0xf29   : > { %13002 = vmatpush1.bf16.msra.mxu1 %v13001_v26  ;;  %9658 = vmatprep.mubr.f32.mxu1 %v9587_v12  ;;  %v9566_v26 = vld [vmem:[%s21419_s15 + $0xf60] sm:$0xff] }
 0xf2a   : > { %13004 = vmatprep.subr.bf16.mxu1 %v13003_v33  ;;  %v9571_v33 = vld [vmem:[%s21419_s15 + $0xf88] sm:$0xff]  ;;  %v13041_v27 = vpack.c.bf16 %v9568_v62, %v9566_v26  ;;  %v13065_v26 = vpack.c.bf16 %v9721_v42, %v9719_v49  ;;  %v9755_v49 = vld [vmem:[%s21419_s15 + $0x1140] sm:$0xff]  ;;  %v9757_v42 = vld [vmem:[%s21419_s15 + $0x1150] sm:$0xff] }
 0xf2b   : > { %v13043_v12 = vpack.c.bf16 %v9573_v31, %v9571_v33 }
 0xf2d   : > { %13006 = vmatpush1.bf16.msra.mxu1 %v13005_v11  ;;  %v9575_v11 = vld [vmem:[%s21419_s15 + $0xfa8] sm:$0xff] }
 0xf2e   : > { %13008 = vmatprep.subr.bf16.mxu1 %v13007_v45  ;;  %v9577_v45 = vld [vmem:[%s21419_s15 + $0xfb8] sm:$0xff] }
 0xf2f   : > { %v13047_v5 = vpack.c.bf16 %v9577_v45, %v9575_v11  ;;  %v9730_v11 = vld [vmem:[%s21419_s15 + $0x1078] sm:$0xff] }
 0xf31   : > { %13010 = vmatpush1.bf16.msra.mxu1 %v13009_v4  ;;  %v9579_v4 = vld [vmem:[%s21419_s15 + $0xfc8] sm:$0xff] }
 0xf32   : > { %13012 = vmatprep.subr.bf16.mxu1 %v13011_v39  ;;  %v9581_v39 = vld [vmem:[%s21419_s15 + $0xfd8] sm:$0xff] }
 0xf33   : > { %v13051_v60 = vpack.c.bf16 %v9581_v39, %v9579_v4  ;;  %v9734_v4 = vld [vmem:[%s21419_s15 + $0x1098] sm:$0xff] }
 0xf35   : > { %13014 = vmatpush1.bf16.msra.mxu1 %v13013_v44  ;;  %v9578_v44 = vld [vmem:[%s21419_s15 + $0xfc0] sm:$0xff] }
 0xf36   : > { %13016 = vmatprep.subr.bf16.mxu1 %v13015_v8  ;;  %v9580_v8 = vld [vmem:[%s21419_s15 + $0xfd0] sm:$0xff] }
 0xf39   : > { %13018 = vmatpush1.bf16.msra.mxu1 %v13017_v37  ;;  %v13053_v37 = vpack.c.bf16 %v9580_v8, %v9578_v44  ;;  %v9738_v44 = vld [vmem:[%s21419_s15 + $0x10b8] sm:$0xff]  ;;  %v13077_v8 = vpack.c.bf16 %v9733_v20, %v9731_v52  ;;  %v9771_v20 = vld [vmem:[%s21419_s15 + $0x11c0] sm:$0xff] }
 0xf3a   : > { %13020 = vmatprep.subr.bf16.mxu1 %v13019_v46  ;;  %v13055_v46 = vpack.c.bf16 %v9585_v13, %v9583_v41  ;;  %v9735_v41 = vld [vmem:[%s21419_s15 + $0x10a0] sm:$0xff]  ;;  %v9737_v13 = vld [vmem:[%s21419_s15 + $0x10b0] sm:$0xff] }
 0xf3d   : > { %13022 = vmatpush1.bf16.msra.mxu1 %v13021_v57  ;;  %v10111_v57 = vrot.slane %v13986_v35, 9 }
 0xf3e   : > { %13024 = vmatprep.subr.bf16.mxu1 %v13023_v17  ;;  %v9516_v17 = vrot.slane %v13988_v59, 5  ;;  %v9740_v59 = vld [vmem:[%s21419_s15 + $0x10c8] sm:$0xff] }
 0xf40   : > { %v9517_v22 = vsel %vm17945_vm7, %v10111_v57, %v9516_v17  ;;  %v9746_v57 = vld [vmem:[%s21419_s15 + $0x10f8] sm:$0xff] }
 0xf41   : > { %13026 = vmatpush1.bf16.msra.mxu1 %v13025_v29  ;;  %v13057_v29 = vpack.c.bf16 %v9584_v55, %v9582_v43  ;;  %v9588_v62 = vcombine.low %v9517_v22, %v9521_v38  ;;  %v9739_v55 = vld [vmem:[%s21419_s15 + $0x10c0] sm:$0xff]  ;;  %v13087_v58 = vpack.c.bf16 %v9746_v57, %v9744_v48 }
 0xf42   : > { %13028 = vmatprep.subr.bf16.mxu1 %v13027_v9  ;;  %v13992_v9 = vld [vmem:[#allocation6 + $0x20] ss:$8 sps:$4 sm:$0xcc]   ;;  %v13085_v17 = vpack.c.bf16 %v9741_v16, %v9739_v55  ;;  %v9777_v55 = vld [vmem:[%s21419_s15 + $0x11f0] sm:$0xff] }
 0xf43   : > { %v10113_v54 = vrot.slane %v13992_v9, 10  ;;  %v13089_v9 = vpack.c.bf16 %v9745_v47, %v9743_v24 }
 0xf45   : > { %13030 = vmatpush1.bf16.msra.mxu1 %v13029_v18  ;;  %v9720_v18 = vld [vmem:[%s21419_s15 + $0x1028] sm:$0xff]  ;;  %v21220_v33 = vsel %vm18161_vm10, %v10113_v54, %v9701_v6  ;;  %v9762_v6 = vld [vmem:[%s21419_s15 + $0x1178] sm:$0xff] }
 0xf46   : > { %13032 = vmatprep.subr.bf16.mxu1 %v13031_v36  ;;  %v9722_v36 = vld [vmem:[%s21419_s15 + $0x1038] sm:$0xff]  ;;  %v9760_v54 = vld [vmem:[%s21419_s15 + $0x1168] sm:$0xff] }
 0xf47   : > { %v13063_v56 = vpack.c.bf16 %v9722_v36, %v9720_v18  ;;  %v9754_v18 = vld [vmem:[%s21419_s15 + $0x1138] sm:$0xff] }
 0xf49   : > { %13034 = vmatpush1.bf16.msra.mxu1 %v13033_v15  ;;  %v13061_v15 = vpack.c.bf16 %v9717_v61, %v9715_v30  ;;  %v9747_v30 = vld [vmem:[%s21419_s15 + $0x1100] sm:$0xff]  ;;  %v9749_v61 = vld [vmem:[%s21419_s15 + $0x1110] sm:$0xff] }
 0xf4a   : > { %13036 = vmatprep.subr.bf16.mxu1 %v13035_v23  ;;  %v9586_v23 = vcombine.low %v21012_v21, %v21008_v1  ;;  %v9726_v1 = vld [vmem:[%s21419_s15 + $0x1058] sm:$0xff]  ;;  %v21216_v21 = vsel %vm18161_vm10, %v10114_v10, %v9705_v25  ;;  %v13093_v36 = vpack.c.bf16 %v9749_v61, %v9747_v30  ;;  %v9753_v10 = vld [vmem:[%s21419_s15 + $0x1130] sm:$0xff]  ;;  %v9756_v25 = vld [vmem:[%s21419_s15 + $0x1148] sm:$0xff] }
 0xf4b   : > { %v9780_v40 = vcombine.high %v21220_v33, %v21216_v21 }
 0xf4d   : > { %13038 = vmatpush1.bf16.msra.mxu1 %v13037_v7  ;;  %v9589_v7 = vcombine.high %v9517_v22, %v9521_v38  ;;  %v13095_v22 = vpack.c.bf16 %v9754_v18, %v9752_v34  ;;  %v9751_v38 = vld [vmem:[%s21419_s15 + $0x1120] sm:$0xff] }
 0xf4e   : > { %13040 = vmatprep.subr.bf16.mxu1 %v13039_v53  ;;  %v9724_v53 = vld [vmem:[%s21419_s15 + $0x1048] sm:$0xff] }
 0xf4f   : > { %v13067_v31 = vpack.c.bf16 %v9726_v1, %v9724_v53  ;;  %v13103_v53 = vpack.c.bf16 %v9762_v6, %v9760_v54  ;;  %v9759_v1 = vld [vmem:[%s21419_s15 + $0x1160] sm:$0xff] }
 0xf51   : > { %13042 = vmatpush1.bf16.msra.mxu1 %v13041_v27  ;;  %v9723_v27 = vld [vmem:[%s21419_s15 + $0x1040] sm:$0xff] }
 0xf52   : > { %13044 = vmatprep.subr.bf16.mxu1 %v13043_v12  ;;  %v9725_v12 = vld [vmem:[%s21419_s15 + $0x1050] sm:$0xff] }
 0xf53   : > { %v13069_v45 = vpack.c.bf16 %v9725_v12, %v9723_v27 }
 0xf55   : > { %13046 = vmatpush1.bf16.msra.mxu1 %v13045_v14  ;;  %v13071_v14 = vpack.c.bf16 %v9730_v11, %v9728_v63  ;;  %v9765_v63 = vld [vmem:[%s21419_s15 + $0x1190] sm:$0xff]  ;;  %v9768_v11 = vld [vmem:[%s21419_s15 + $0x11a8] sm:$0xff] }
 0xf56   : > { %13048 = vmatprep.subr.bf16.mxu1 %v13047_v5  ;;  %v9727_v5 = vld [vmem:[%s21419_s15 + $0x1060] sm:$0xff] }
 0xf57   : > { %v13073_v39 = vpack.c.bf16 %v9729_v28, %v9727_v5  ;;  %v9767_v28 = vld [vmem:[%s21419_s15 + $0x11a0] sm:$0xff] }
 0xf59   : > { %13050 = vmatpush1.bf16.msra.mxu1 %v13049_v19  ;;  %v13075_v19 = vpack.c.bf16 %v9734_v4, %v9732_v0  ;;  %v9769_v0 = vld [vmem:[%s21419_s15 + $0x11b0] sm:$0xff]  ;;  %v9772_v4 = vld [vmem:[%s21419_s15 + $0x11c8] sm:$0xff] }
 0xf5a   : > { %13052 = vmatprep.subr.bf16.mxu1 %v13051_v60  ;;  %v9736_v60 = vld [vmem:[%s21419_s15 + $0x10a8] sm:$0xff] }
 0xf5b   : > { %v13079_v35 = vpack.c.bf16 %v9738_v44, %v9736_v60  ;;  %v9773_v60 = vld [vmem:[%s21419_s15 + $0x11d0] sm:$0xff] }
 0xf5c   : > { %v14001_v44 = vld [vmem:[#allocation6 + $0x50] ss:$8 sps:$4 sm:$0xcc]  }
 0xf5d   : > { %13054 = vmatpush1.bf16.msra.mxu1 %v13053_v37  ;;  %v9742_v37 = vld [vmem:[%s21419_s15 + $0x10d8] sm:$0xff]  ;;  %v10116_v57 = vrot.slane %v14001_v44, 10 }
 0xf5e   : > { %13056 = vmatprep.subr.bf16.mxu1 %v13055_v46  ;;  %v13081_v46 = vpack.c.bf16 %v9737_v13, %v9735_v41  ;;  %v13083_v43 = vpack.c.bf16 %v9742_v37, %v9740_v59  ;;  %v14003_v41 = vld [vmem:[#allocation6 + $0x54] ss:$8 sps:$4 sm:$0x33]   ;;  %v13998_v13 = vld [vmem:[#allocation6 + $0x40] ss:$8 sps:$4 sm:$0xcc]   ;;  %v13117_v37 = vpack.c.bf16 %v9773_v60, %v9771_v20 }
 0xf5f   : > { %v14000_v59 = vld [vmem:[#allocation6 + $0x44] ss:$8 sps:$4 sm:$0x33]   ;;  %v10115_v16 = vrot.slane %v13998_v13, 10 }
 0xf60   : > { %v9709_v48 = vrot.slane %v14000_v59, 6 }
 0xf61   : > { %13058 = vmatpush1.bf16.msra.mxu1 %v13057_v29  ;;  %v9750_v29 = vld [vmem:[%s21419_s15 + $0x1118] sm:$0xff] }
 0xf62   : > { %13060 = vmatprep.subr.bf16.mxu1 %v13059_v32  ;;  %v13091_v32 = vpack.c.bf16 %v9750_v29, %v9748_v3  ;;  %v9710_v24 = vsel %vm18161_vm10, %v10115_v16, %v9709_v48  ;;  %v9779_v3 = vcombine.low %v21220_v33, %v21216_v21 }
 0xf64   : > { %9659 = vmatmul.mubr.f32.vlgmr.msra.gmra.mrb[84].mxu1 %v9586_v23  ;;  %v13097_v23 = vpack.c.bf16 %v9753_v10, %v9751_v38 }
 0xf65   : > { %9664 = vmatprep.mubr.f32.mxu1 %v9589_v7  ;;  %13062 = vmatpush1.bf16.msra.mxu1 %v13061_v15  ;;  %v9758_v15 = vld [vmem:[%s21419_s15 + $0x1158] sm:$0xff]  ;;  %v13101_v7 = vpack.c.bf16 %v9757_v42, %v9755_v49 }
 0xf66   : > { %13064 = vmatprep.subr.bf16.mxu1 %v13063_v56  ;;  %v13099_v56 = vpack.c.bf16 %v9758_v15, %v9756_v25 }
 0xf68   : > { %9665 = vmatmul.mubr.f32.gmra.mrb[86].mxu1 %v9588_v62  ;;  %v9764_v62 = vld [vmem:[%s21419_s15 + $0x1188] sm:$0xff] }
 0xf69   : > { %13066 = vmatpush1.bf16.msra.mxu1 %v13065_v26  ;;  %9851 = vmatprep.mubr.f32.mxu1 %v9780_v40  ;;  %v9761_v26 = vld [vmem:[%s21419_s15 + $0x1170] sm:$0xff]  ;;  %v9763_v40 = vld [vmem:[%s21419_s15 + $0x1180] sm:$0xff] }
 0xf6a   : > { %13068 = vmatprep.subr.bf16.mxu1 %v13067_v31  ;;  %v9766_v31 = vld [vmem:[%s21419_s15 + $0x1198] sm:$0xff]  ;;  %v13105_v27 = vpack.c.bf16 %v9761_v26, %v9759_v1 }
 0xf6b   : > { %v13107_v12 = vpack.c.bf16 %v9766_v31, %v9764_v62 }
 0xf6d   : > { %13070 = vmatpush1.bf16.msra.mxu1 %v13069_v45  ;;  %v9770_v45 = vld [vmem:[%s21419_s15 + $0x11b8] sm:$0xff] }
 0xf6e   : > { %13072 = vmatprep.subr.bf16.mxu1 %v13071_v14  ;;  %v13109_v14 = vpack.c.bf16 %v9765_v63, %v9763_v40  ;;  %v13111_v5 = vpack.c.bf16 %v9770_v45, %v9768_v11 }
 0xf71   : > { %13074 = vmatpush1.bf16.msra.mxu1 %v13073_v39  ;;  %v9774_v39 = vld [vmem:[%s21419_s15 + $0x11d8] sm:$0xff] }
 0xf72   : > { %13076 = vmatprep.subr.bf16.mxu1 %v13075_v19  ;;  %v13113_v19 = vpack.c.bf16 %v9769_v0, %v9767_v28  ;;  %v13115_v52 = vpack.c.bf16 %v9774_v39, %v9772_v4 }
 0xf75   : > { %13078 = vmatpush1.bf16.msra.mxu1 %v13077_v8  ;;  %v9776_v8 = vld [vmem:[%s21419_s15 + $0x11e8] sm:$0xff] }
 0xf76   : > { %13080 = vmatprep.subr.bf16.mxu1 %v13079_v35  ;;  %v9778_v35 = vld [vmem:[%s21419_s15 + $0x11f8] sm:$0xff] }
 0xf79   : > { %13082 = vmatpush1.bf16.msra.mxu1 %v13081_v46  ;;  %v13119_v46 = vpack.c.bf16 %v9778_v35, %v9776_v8 }
 0xf7a   : > { %13084 = vmatprep.subr.bf16.mxu1 %v13083_v43  ;;  %v9775_v43 = vld [vmem:[%s21419_s15 + $0x11e0] sm:$0xff] }
 0xf7d   : > { %13086 = vmatpush1.bf16.msra.mxu1 %v13085_v17  ;;  %v9713_v17 = vrot.slane %v14003_v41, 6 }
 0xf7e   : > { %13088 = vmatprep.subr.bf16.mxu1 %v13087_v58  ;;  %v13121_v58 = vpack.c.bf16 %v9777_v55, %v9775_v43 }
 0xf7f   : > { %v9714_v47 = vsel %vm18161_vm10, %v10116_v57, %v9713_v17 }
 0xf80   : > { %v9782_v29 = vcombine.high %v9710_v24, %v9714_v47 }
 0xf81   : > { %13090 = vmatpush1.bf16.msra.mxu1 %v13089_v9  ;;  %v9781_v9 = vcombine.low %v9710_v24, %v9714_v47 }
 0xf82   : > { %13092 = vmatprep.subr.bf16.mxu1 %v13091_v32  ;;  %v9868_v32 = vld [vmem:[%s21420_s16] sm:$0x3] }
 0xf83   : > { %v9873_v30 = vrot.slane %v9868_v32, %v17934_v51  ;;  %v9877_v61 = vrot.slane %v9868_v32, %v17939_v50 }
 0xf85   : > { %13094 = vmatpush1.bf16.msra.mxu1 %v13093_v36 }
 0xf86   : > { %13096 = vmatprep.subr.bf16.mxu1 %v13095_v22 }
 0xf89   : > { %13098 = vmatpush1.bf16.msra.mxu1 %v13097_v23 }
 0xf8a   : > { %13100 = vmatprep.subr.bf16.mxu1 %v13099_v56 }
 0xf8d   : > { %13102 = vmatpush1.bf16.msra.mxu1 %v13101_v7 }
 0xf8e   : > { %13104 = vmatprep.subr.bf16.mxu1 %v13103_v53 }
 0xf91   : > { %13106 = vmatpush1.bf16.msra.mxu1 %v13105_v27 }
 0xf92   : > { %13108 = vmatprep.subr.bf16.mxu1 %v13107_v12 }
 0xf95   : > { %13110 = vmatpush1.bf16.msra.mxu1 %v13109_v14 }
 0xf96   : > { %13112 = vmatprep.subr.bf16.mxu1 %v13111_v5 }
 0xf99   : > { %13114 = vmatpush1.bf16.msra.mxu1 %v13113_v19 }
 0xf9a   : > { %13116 = vmatprep.subr.bf16.mxu1 %v13115_v52 }
 0xf9d   : > { %13118 = vmatpush1.bf16.msra.mxu1 %v13117_v37 }
 0xf9e   : > { %13120 = vmatprep.subr.bf16.mxu1 %v13119_v46 }
 0xfa1   : > { %13122 = vmatpush1.bf16.msra.mxu1 %v13121_v58 }
 0xfa4   : > { %9852 = vmatmul.mubr.f32.vlgmr.msra.gmra.mrb[84].mxu1 %v9779_v3 }
 0xfa5   : > { %9857 = vmatprep.mubr.f32.mxu1 %v9782_v29 }
 0xfa8   : > { %9858 = vmatmul.mubr.f32.gmra.mrb[86].mxu1 %v9781_v9 }
0x1077   : > { %v9853_v2 = vpop.f32.mrb[84].mxu1 }
0x1078   : > { %v9880_v21 = vadd.f32 %v9873_v30, %v9853_v2  ;;  %v9855_v33 = vpop.f32.mrb[85].mxu1 }
0x1079   : > { %v9881_v34 = vadd.f32 %v9877_v61, %v9855_v33 }
0x107a   : > { %9884 = vst [vmem:[%s548_s21] sm:$0xff] %v9880_v21 }
0x107b   : > { %9885 = vst [vmem:[%s548_s21 + $0x8] sm:$0xff] %v9881_v34  ;;  %v9859_v18 = vpop.f32.mrb[86].mxu1 }
0x107c   : > { %v9882_v36 = vadd.f32 %v9873_v30, %v9859_v18  ;;  %v9861_v22 = vpop.f32.mrb[87].mxu1 }
0x107d   : > { %v9883_v38 = vadd.f32 %v9877_v61, %v9861_v22 }
0x107e   : > { %9886 = vst [vmem:[%s548_s21 + $0x10] sm:$0xff] %v9882_v36 }
0x107f   : > { %9887 = vst [vmem:[%s548_s21 + $0x18] sm:$0xff] %v9883_v38 }
0x1080 PF: > { %s27_s24 = sadd.s32 1, %s14013_s24  }
0x1081   : > { %p24_p4 = scmp.ge.s32.totalorder %s27_s24, 4  }
0x1083   :  { %26 = sbr.rel (!%p24_p4) target bundleno = 3 (0x3), region = 128 }

</bundles_post_ra>
